<compile_context>
chip_gen: v7x
topology: tpu7x:2x2x1
jax: 0.10.0
libtpu: 0.0.40
codegen_flags: <defaults>
</compile_context>

<pallas_src>
import functools
import math

import jax
import jax.numpy as jnp
from jax.experimental import pallas as pl
from jax.experimental.pallas import tpu as pltpu

F32 = jnp.float32
BF16 = jnp.bfloat16
EPS = 1e-5  # PyTorch LayerNorm default
VMEM_LIMIT = 32 * 1024 * 1024


# ----------------------------------------------------------------------------
# In-kernel helpers (operate on values already resident in vregs/VMEM)
# ----------------------------------------------------------------------------

def _ln(x, g, b, eps):
    """Row-wise LayerNorm over the last axis. x: (R, C) f32, g/b: (1, C) f32."""
    mean = jnp.mean(x, axis=-1, keepdims=True)
    c = x - mean
    var = jnp.mean(c * c, axis=-1, keepdims=True)
    return c * jax.lax.rsqrt(var + eps) * g + b


def _dot(a, b):
    """bf16 x bf16 matmul with f32 accumulation (MXU-native)."""
    return jnp.dot(a.astype(BF16), b.astype(BF16), preferred_element_type=F32)


def _mha(q2, k2, v2, wo_ref, bo, *, nhead, hd, scale, mask=None):
    """Multi-head attention with a single fused output projection.

    q2: (Sq, E) f32, k2/v2: (Sk, E) f32, wo_ref: (E, E) bf16 Ref, bo: (1, E) f32.
    Per-head scores/PV use a static python loop (everything stays in VMEM);
    head outputs are lane-concatenated into one (Sq, E) slab so the output
    projection is a single K=E MXU matmul (no per-head K=hd underfill, no
    per-head f32 accumulation adds).
    """
    Sq, E = q2.shape
    heads = []
    for h in range(nhead):
        lo = h * hd
        qh = (q2[:, lo:lo + hd] * scale).astype(BF16)   # fold 1/sqrt(hd) into q
        kh = k2[:, lo:lo + hd].astype(BF16)
        vh = v2[:, lo:lo + hd].astype(BF16)
        # s = qh @ kh^T expressed as a contraction over the lane dim (no transpose)
        s = jax.lax.dot_general(qh, kh, (((1,), (1,)), ((), ())),
                                preferred_element_type=F32)
        if mask is not None:
            s = s + mask
        s = s - jnp.max(s, axis=-1, keepdims=True)
        p = jnp.exp(s)
        inv = pl.reciprocal(jnp.sum(p, axis=-1, keepdims=True), approx=True)  # EUP
        p = (p * inv).astype(BF16)                       # bf16 probs for PV matmul
        heads.append(jnp.dot(p, vh, preferred_element_type=F32))
    o = jnp.concatenate(heads, axis=-1)                  # (Sq, E)
    return jnp.dot(o.astype(BF16), wo_ref[...].astype(BF16),
                   preferred_element_type=F32) + bo


# ----------------------------------------------------------------------------
# Fused Pallas kernels
# ----------------------------------------------------------------------------

def _vit_embed_kernel(patches_ref, w_ref, cls_ref, pos_ref, g_ref, b_ref,
                      o_ref, *, eps):
    """Per-image: patch-embed matmul + cls token + pos embed + ln_pre.
    Single lane/sublane-dense store of the whole (S, W) slab."""
    emb = _dot(patches_ref[...], w_ref[...])                       # (NP, W)
    slab = jnp.concatenate([cls_ref[...], emb], axis=0) + pos_ref[...]
    o_ref[...] = _ln(slab, g_ref[...], b_ref[...], eps).astype(o_ref.dtype)


def _vit_stack_kernel(x_ref, bias_ref,
                      ln1g, ln1b, wqkv, bqkv, wo, bo,
                      ln2g, ln2b, fc1w, fc1b, fc2w, fc2b,
                      lnpg, lnpb, proj,
                      o_ref, act, *, nhead, eps, batch, seq):
    """One pre-norm ViT block per grid step; full batch resident in `act`.

    The whole (B*S, W) activation slab is processed per layer (bigger M for
    the LN/QKV/MLP matmuls); a block-diagonal additive bias keeps each image's
    self-attention independent.  The last step fuses ln_post on the cls rows
    and the projection to the transformer width.
    """
    l = pl.program_id(0)

    @pl.when(l == 0)
    def _():
        act[...] = x_ref[...].astype(F32)

    BS, W = act.shape
    hd = W // nhead
    scale = 1.0 / math.sqrt(hd)
    x = act[...]
    mask = bias_ref[...]

    # pre-norm multi-head self-attention (fused QKV weight)
    h = _ln(x, ln1g[...], ln1b[...], eps)
    qkv = _dot(h, wqkv[...]) + bqkv[...]                           # (BS, 3W)
    q2, k2, v2 = qkv[:, :W], qkv[:, W:2 * W], qkv[:, 2 * W:]
    x = x + _mha(q2, k2, v2, wo, bo[...], nhead=nhead, hd=hd, scale=scale,
                 mask=mask)

    # pre-norm MLP with QuickGELU (open_clip / OpenAI CLIP activation)
    h = _ln(x, ln2g[...], ln2b[...], eps)
    h = _dot(h, fc1w[...]) + fc1b[...]
    h = h * jax.nn.sigmoid(1.702 * h)
    x = x + (_dot(h, fc2w[...]) + fc2b[...])
    act[...] = x

    @pl.when(l == pl.num_programs(0) - 1)
    def _():
        # gather the cls row of each image, ln_post, project to hidden dim
        cls = jnp.concatenate([x[b * seq:b * seq + 1, :] for b in range(batch)],
                              axis=0)                              # (B, W)
        o_ref[...] = _dot(_ln(cls, lnpg[...], lnpb[...], eps),
                          proj[...]).astype(o_ref.dtype)


def _enc_stack_kernel(x_ref,
                      wqkv, bqkv, wo, bo, n1g, n1b,
                      fc1w, fc1b, fc2w, fc2b, n2g, n2b,
                      fng, fnb,
                      o_ref, act, *, nhead, eps):
    """One post-norm TransformerEncoderLayer per grid step (activation resident);
    the encoder-final LayerNorm is fused into the last step."""
    l = pl.program_id(0)

    @pl.when(l == 0)
    def _():
        act[...] = x_ref[...].astype(F32)

    S, E = act.shape
    hd = E // nhead
    scale = 1.0 / math.sqrt(hd)
    x = act[...]

    qkv = _dot(x, wqkv[...]) + bqkv[...]                           # fused QKV
    q2, k2, v2 = qkv[:, :E], qkv[:, E:2 * E], qkv[:, 2 * E:]
    x = _ln(x + _mha(q2, k2, v2, wo, bo[...], nhead=nhead, hd=hd, scale=scale),
            n1g[...], n1b[...], eps)
    h = jnp.maximum(_dot(x, fc1w[...]) + fc1b[...], 0.0)           # relu
    x = _ln(x + _dot(h, fc2w[...]) + fc2b[...], n2g[...], n2b[...], eps)
    act[...] = x

    @pl.when(l == pl.num_programs(0) - 1)
    def _():
        o_ref[...] = _ln(x, fng[...], fnb[...], eps).astype(o_ref.dtype)


def _dec_stack_kernel(x_ref, mem_ref,
                      sa_wqkv, sa_bqkv, sa_wo, sa_bo, n1g, n1b,
                      ca_wq, ca_bq, ca_wkv, ca_bkv, ca_wo, ca_bo, n2g, n2b,
                      fc1w, fc1b, fc2w, fc2b, n3g, n3b,
                      fng, fnb,
                      o_ref, act, *, nhead, eps):
    """One post-norm TransformerDecoderLayer per grid step (activation resident);
    the decoder-final LayerNorm is fused into the last step (LN hoisted out of
    the LM-head vocab loop)."""
    l = pl.program_id(0)

    @pl.when(l == 0)
    def _():
        act[...] = x_ref[...].astype(F32)

    T, E = act.shape
    hd = E // nhead
    scale = 1.0 / math.sqrt(hd)
    x = act[...]
    mem = mem_ref[...].astype(F32)

    # self-attention (no tgt mask, matching the reference forward)
    qkv = _dot(x, sa_wqkv[...]) + sa_bqkv[...]
    q2, k2, v2 = qkv[:, :E], qkv[:, E:2 * E], qkv[:, 2 * E:]
    x = _ln(x + _mha(q2, k2, v2, sa_wo, sa_bo[...], nhead=nhead, hd=hd, scale=scale),
            n1g[...], n1b[...], eps)
    # cross-attention over the encoder memory (fused K/V weight)
    q2 = _dot(x, ca_wq[...]) + ca_bq[...]
    kv = _dot(mem, ca_wkv[...]) + ca_bkv[...]
    k2, v2 = kv[:, :E], kv[:, E:]
    x = _ln(x + _mha(q2, k2, v2, ca_wo, ca_bo[...], nhead=nhead, hd=hd, scale=scale),
            n2g[...], n2b[...], eps)
    # feed-forward (relu)
    h = jnp.maximum(_dot(x, fc1w[...]) + fc1b[...], 0.0)
    x = _ln(x + _dot(h, fc2w[...]) + fc2b[...], n3g[...], n3b[...], eps)
    act[...] = x

    @pl.when(l == pl.num_programs(0) - 1)
    def _():
        o_ref[...] = _ln(x, fng[...], fnb[...], eps).astype(o_ref.dtype)


def _lm_head_kernel(x_ref, w_ref, b_ref, o_ref):
    """Pure weight-streaming LM head: one vocab tile of x @ out_w + out_b
    (the final decoder LayerNorm was already applied in the decoder stack)."""
    o_ref[...] = (_dot(x_ref[...], w_ref[...]) + b_ref[...]).astype(o_ref.dtype)


# ----------------------------------------------------------------------------
# BlockSpec helpers + pallas_call wrappers
# ----------------------------------------------------------------------------

def _const_spec(shape):
    """Full-array block whose index never changes (loaded once, stays resident)."""
    n = len(shape)
    return pl.BlockSpec(shape, lambda *_: (0,) * n)


def _layer_spec(r, c):
    """Per-layer weight slice out of an (L, r, c) stacked array."""
    return pl.BlockSpec((None, r, c), lambda l: (l, 0, 0))


def vit_embed(patches, vp, cfg):
    B, NP, K = patches.shape
    W = cfg["vis_width"]
    S = NP + 1
    kern = functools.partial(_vit_embed_kernel, eps=EPS)
    return pl.pallas_call(
        kern,
        grid=(B,),
        in_specs=[pl.BlockSpec((None, NP, K), lambda b: (b, 0, 0)),
                  _const_spec((K, W)), _const_spec((1, W)), _const_spec((S, W)),
                  _const_spec((1, W)), _const_spec((1, W))],
        out_specs=pl.BlockSpec((None, S, W), lambda b: (b, 0, 0)),
        out_shape=jax.ShapeDtypeStruct((B, S, W), BF16),
        compiler_params=pltpu.CompilerParams(dimension_semantics=("parallel",)),
    )(patches, vp["patch_w"], vp["cls"], vp["pos"], vp["ln_pre_g"], vp["ln_pre_b"])


def vit_stack(x_flat, attn_bias, vp, cfg, batch):
    BS, W = x_flat.shape
    seq = BS // batch
    L = cfg["vis_layers"]
    H = cfg["hidden"]
    kern = functools.partial(_vit_stack_kernel, nhead=cfg["vis_heads"], eps=EPS,
                             batch=batch, seq=seq)
    return pl.pallas_call(
        kern,
        grid=(L,),
        in_specs=[
            _const_spec((BS, W)), _const_spec((BS, BS)),
            _layer_spec(1, W), _layer_spec(1, W),
            _layer_spec(W, 3 * W), _layer_spec(1, 3 * W),
            _layer_spec(W, W), _layer_spec(1, W),
            _layer_spec(1, W), _layer_spec(1, W),
            _layer_spec(W, 4 * W), _layer_spec(1, 4 * W),
            _layer_spec(4 * W, W), _layer_spec(1, W),
            _const_spec((1, W)), _const_spec((1, W)), _const_spec((W, H)),
        ],
        out_specs=_const_spec((batch, H)),
        out_shape=jax.ShapeDtypeStruct((batch, H), BF16),
        scratch_shapes=[pltpu.VMEM((BS, W), F32)],
        compiler_params=pltpu.CompilerParams(
            dimension_semantics=("arbitrary",), vmem_limit_bytes=VMEM_LIMIT),
    )(x_flat, attn_bias,
      vp["ln1_g"], vp["ln1_b"], vp["wqkv"], vp["bqkv"], vp["wo"], vp["bo"],
      vp["ln2_g"], vp["ln2_b"], vp["fc1_w"], vp["fc1_b"], vp["fc2_w"], vp["fc2_b"],
      vp["ln_post_g"], vp["ln_post_b"], vp["proj"])


def enc_stack(src, ep, fng, fnb, cfg):
    S, H = src.shape
    FF = cfg["ff"]
    L = cfg["enc_layers"]
    kern = functools.partial(_enc_stack_kernel, nhead=cfg["nhead"], eps=EPS)
    return pl.pallas_call(
        kern,
        grid=(L,),
        in_specs=[
            _const_spec((S, H)),
            _layer_spec(H, 3 * H), _layer_spec(1, 3 * H),
            _layer_spec(H, H), _layer_spec(1, H),
            _layer_spec(1, H), _layer_spec(1, H),
            _layer_spec(H, FF), _layer_spec(1, FF),
            _layer_spec(FF, H), _layer_spec(1, H),
            _layer_spec(1, H), _layer_spec(1, H),
            _const_spec((1, H)), _const_spec((1, H)),
        ],
        out_specs=_const_spec((S, H)),
        out_shape=jax.ShapeDtypeStruct((S, H), BF16),
        scratch_shapes=[pltpu.VMEM((S, H), F32)],
        compiler_params=pltpu.CompilerParams(
            dimension_semantics=("arbitrary",), vmem_limit_bytes=VMEM_LIMIT),
    )(src, ep["wqkv"], ep["bqkv"], ep["wo"], ep["bo"], ep["n1_g"], ep["n1_b"],
      ep["fc1_w"], ep["fc1_b"], ep["fc2_w"], ep["fc2_b"], ep["n2_g"], ep["n2_b"],
      fng, fnb)


def dec_stack(tgt, mem, dp, fng, fnb, cfg):
    T, H = tgt.shape
    Sk = mem.shape[0]
    FF = cfg["ff"]
    L = cfg["dec_layers"]
    kern = functools.partial(_dec_stack_kernel, nhead=cfg["nhead"], eps=EPS)
    return pl.pallas_call(
        kern,
        grid=(L,),
        in_specs=[
            _const_spec((T, H)), _const_spec((Sk, H)),
            _layer_spec(H, 3 * H), _layer_spec(1, 3 * H),
            _layer_spec(H, H), _layer_spec(1, H),
            _layer_spec(1, H), _layer_spec(1, H),
            _layer_spec(H, H), _layer_spec(1, H),
            _layer_spec(H, 2 * H), _layer_spec(1, 2 * H),
            _layer_spec(H, H), _layer_spec(1, H),
            _layer_spec(1, H), _layer_spec(1, H),
            _layer_spec(H, FF), _layer_spec(1, FF),
            _layer_spec(FF, H), _layer_spec(1, H),
            _layer_spec(1, H), _layer_spec(1, H),
            _const_spec((1, H)), _const_spec((1, H)),
        ],
        out_specs=_const_spec((T, H)),
        out_shape=jax.ShapeDtypeStruct((T, H), BF16),
        scratch_shapes=[pltpu.VMEM((T, H), F32)],
        compiler_params=pltpu.CompilerParams(
            dimension_semantics=("arbitrary",), vmem_limit_bytes=VMEM_LIMIT),
    )(tgt, mem,
      dp["wqkv"], dp["bqkv"], dp["wo"], dp["bo"], dp["n1_g"], dp["n1_b"],
      dp["ca_wq"], dp["ca_bq"], dp["ca_wkv"], dp["ca_bkv"], dp["ca_wo"], dp["ca_bo"],
      dp["n2_g"], dp["n2_b"],
      dp["fc1_w"], dp["fc1_b"], dp["fc2_w"], dp["fc2_b"], dp["n3_g"], dp["n3_b"],
      fng, fnb)


def lm_head(x, w, bias):
    """Output Linear, tiled over the vocab axis ('parallel' grid; shards over
    v7x's 2 TensorCores).  LN already applied in the decoder stack."""
    S, H = x.shape
    V = w.shape[1]
    tn = min(V, 2048)
    assert V % tn == 0
    return pl.pallas_call(
        _lm_head_kernel,
        grid=(V // tn,),
        in_specs=[
            pl.BlockSpec((S, H), lambda j: (0, 0)),
            pl.BlockSpec((H, tn), lambda j: (0, j)),
            pl.BlockSpec((1, tn), lambda j: (0, j)),
        ],
        out_specs=pl.BlockSpec((S, tn), lambda j: (0, j)),
        out_shape=jax.ShapeDtypeStruct((S, V), F32),
        compiler_params=pltpu.CompilerParams(
            dimension_semantics=("parallel",), vmem_limit_bytes=VMEM_LIMIT),
    )(x, w, bias)


# ----------------------------------------------------------------------------
# Model forward (glue around the fused kernels)
# ----------------------------------------------------------------------------

def forward(params, image, input_ids, attention_mask, cfg):
    """Mirrors VisionLanguageCaptioningModel.forward.

    image:          (B, C, Himg, Wimg) float32 NCHW
    input_ids:      (T, hidden) float32 (consumed directly as tgt embeddings,
                    as in the reference: there is no token-embedding layer)
    attention_mask: accepted but unused (the reference forward never uses it)
    returns logits: (T, 1, vocab) == (seq, batch=1, vocab) in PyTorch convention
    """
    del attention_mask  # unused in the reference forward

    B, C, Himg, Wimg = image.shape
    P = cfg["patch"]
    W = cfg["vis_width"]
    gh, gw = Himg // P, Wimg // P
    S = gh * gw + 1

    # conv(stride=patch) == matmul over unfolded patches; the unfold is plain-JAX
    # data movement, the matmul itself is fused into the embed kernel.
    patches = image.reshape(B, C, gh, P, gw, P).transpose(0, 2, 4, 1, 3, 5)
    patches = patches.reshape(B, gh * gw, C * P * P)

    x = vit_embed(patches, params["vision"], cfg)            # (B, S, W) bf16
    # Block-diagonal additive bias keeps each image's self-attention separate
    # when the whole batch runs as one (B*S, W) M-slab per ViT layer step.
    ids = jnp.arange(B * S, dtype=jnp.int32) // S
    attn_bias = jnp.where(ids[:, None] == ids[None, :], 0.0, -1e30).astype(F32)
    src = vit_stack(x.reshape(B * S, W), attn_bias,
                    params["vision"], cfg, B)                # (B, hidden) bf16

    # image_features.unsqueeze(1): (seq=B, batch=1, E); the batch=1 axis is squeezed.
    mem = enc_stack(src, params["enc"],
                    params["enc_norm_g"], params["enc_norm_b"], cfg)   # (B, H)
    out = dec_stack(input_ids, mem, params["dec"],
                    params["dec_norm_g"], params["dec_norm_b"], cfg)   # (T, H)
    logits = lm_head(out, params["out_w"], params["out_b"])            # (T, V) f32
    return logits[:, None, :]                                          # (T, 1, V)


# ----------------------------------------------------------------------------
# Deterministic parameter init (shapes from __init__, scaled down for the demo)
# Per-layer weights are stacked along a leading L axis.  Matmul weights are
# stored bf16 (MXU-native); LN params / biases stay f32.
# ----------------------------------------------------------------------------

def init_params(key, cfg):
    keys = iter(jax.random.split(key, 64))

    def nk():
        return next(keys)

    def w(shape, scale=0.02):
        return (scale * jax.random.normal(nk(), shape)).astype(BF16)

    def vec(shape, scale=0.02):
        return (scale * jax.random.normal(nk(), shape)).astype(F32)

    def zeros(*shape):
        return jnp.zeros(shape, F32)

    def ones(*shape):
        return jnp.ones(shape, F32)

    W, H = cfg["vis_width"], cfg["hidden"]
    P, C = cfg["patch"], cfg["img_ch"]
    K = C * P * P
    S = (cfg["img_size"] // P) ** 2 + 1
    FF, V = cfg["ff"], cfg["vocab"]
    Lv, Le, Ld = cfg["vis_layers"], cfg["enc_layers"], cfg["dec_layers"]

    vision = dict(
        patch_w=w((K, W)),                     # conv-as-matmul weight, no bias
        cls=vec((1, W)), pos=vec((S, W)),
        ln_pre_g=ones(1, W), ln_pre_b=zeros(1, W),
        ln1_g=ones(Lv, 1, W), ln1_b=zeros(Lv, 1, W),
        wqkv=w((Lv, W, 3 * W)), bqkv=zeros(Lv, 1, 3 * W),
        wo=w((Lv, W, W)), bo=zeros(Lv, 1, W),
        ln2_g=ones(Lv, 1, W), ln2_b=zeros(Lv, 1, W),
        fc1_w=w((Lv, W, 4 * W)), fc1_b=zeros(Lv, 1, 4 * W),
        fc2_w=w((Lv, 4 * W, W)), fc2_b=zeros(Lv, 1, W),
        ln_post_g=ones(1, W), ln_post_b=zeros(1, W),
        proj=w((W, H)))

    enc = dict(
        wqkv=w((Le, H, 3 * H)), bqkv=zeros(Le, 1, 3 * H),
        wo=w((Le, H, H)), bo=zeros(Le, 1, H),
        n1_g=ones(Le, 1, H), n1_b=zeros(Le, 1, H),
        fc1_w=w((Le, H, FF)), fc1_b=zeros(Le, 1, FF),
        fc2_w=w((Le, FF, H)), fc2_b=zeros(Le, 1, H),
        n2_g=ones(Le, 1, H), n2_b=zeros(Le, 1, H))

    dec = dict(
        wqkv=w((Ld, H, 3 * H)), bqkv=zeros(Ld, 1, 3 * H),
        wo=w((Ld, H, H)), bo=zeros(Ld, 1, H),
        n1_g=ones(Ld, 1, H), n1_b=zeros(Ld, 1, H),
        ca_wq=w((Ld, H, H)), ca_bq=zeros(Ld, 1, H),
        ca_wkv=w((Ld, H, 2 * H)), ca_bkv=zeros(Ld, 1, 2 * H),
        ca_wo=w((Ld, H, H)), ca_bo=zeros(Ld, 1, H),
        n2_g=ones(Ld, 1, H), n2_b=zeros(Ld, 1, H),
        fc1_w=w((Ld, H, FF)), fc1_b=zeros(Ld, 1, FF),
        fc2_w=w((Ld, FF, H)), fc2_b=zeros(Ld, 1, H),
        n3_g=ones(Ld, 1, H), n3_b=zeros(Ld, 1, H))

    return dict(vision=vision, enc=enc, dec=dec,
                enc_norm_g=ones(1, H), enc_norm_b=zeros(1, H),
                dec_norm_g=ones(1, H), dec_norm_b=zeros(1, H),
                out_w=w((H, V)), out_b=zeros(1, V))


# ----------------------------------------------------------------------------
# Demo
# ----------------------------------------------------------------------------

if __name__ == "__main__":
    # Demo dims are deliberately 128-aligned so every kernel output is lane-dense.
    cfg = dict(
        img_size=16, img_ch=3, patch=8,        # 16x16 image, 8x8 patches (4 patches + cls)
        vis_width=128, vis_layers=2, vis_heads=4,
        hidden=128,                             # d_model (512 in the module, scaled to 128)
        nhead=8,                                # nn.Transformer default nhead
        ff=128,                                 # dim_feedforward (1024 scaled to 128)
        enc_layers=4, dec_layers=4,             # num_encoder_layers / num_decoder_layers
        vocab=128,                              # vocab_size (50257 scaled to 128)
    )

    key = jax.random.PRNGKey(0)
    pkey, ikey, tkey = jax.random.split(key, 3)
    params = init_params(pkey, cfg)

    B = 2      # images (== encoder src sequence length after unsqueeze(1))
    T = 8      # decoder tgt sequence length
    image = jax.random.normal(
        ikey, (B, cfg["img_ch"], cfg["img_size"], cfg["img_size"]), F32)
    # In the reference forward, input_ids is consumed directly as the decoder tgt
    # embedding (no nn.Embedding), so it must be float of width hidden_dim.
    input_ids = jax.random.normal(tkey, (T, cfg["hidden"]), F32)
    attention_mask = jnp.ones((T,), F32)        # unused, like the reference

    fwd = jax.jit(functools.partial(forward, cfg=cfg))
    logits = fwd(params, image, input_ids, attention_mask)
    jax.block_until_ready(logits)
    assert logits.shape == (T, 1, cfg["vocab"]), logits.shape
    assert logits.dtype == F32
    print("KERNEL_OK")
</pallas_src>

<mosaic_0001>
module attributes {stable_mosaic.version = 11 : i64} {
  func.func @_vit_embed_kernel(%arg0: i32, %arg1: memref<1x4x192xf32, #tpu.memory_space<vmem>>, %arg2: memref<192x128xbf16, #tpu.memory_space<vmem>>, %arg3: memref<1x128xf32, #tpu.memory_space<vmem>>, %arg4: memref<5x128xf32, #tpu.memory_space<vmem>>, %arg5: memref<1x128xf32, #tpu.memory_space<vmem>>, %arg6: memref<1x128xf32, #tpu.memory_space<vmem>>, %arg7: memref<1x5x128xbf16, #tpu.memory_space<vmem>>) attributes {dimension_semantics = [#tpu.dimension_semantics<parallel>], iteration_bounds = array<i64: 2>, scalar_prefetch = 0 : i64, scratch_operands = 0 : i64, tpu.core_type = #tpu.core_type<tc>, window_params = [{transform_indices = @transform_0, window_bounds = array<i64: 1, 4, 192>}, {pipeline_mode = #tpu.pipeline_mode<synchronous>, transform_indices = @transform_1, window_bounds = array<i64: 192, 128>}, {pipeline_mode = #tpu.pipeline_mode<synchronous>, transform_indices = @transform_2, window_bounds = array<i64: 1, 128>}, {pipeline_mode = #tpu.pipeline_mode<synchronous>, transform_indices = @transform_3, window_bounds = array<i64: 5, 128>}, {pipeline_mode = #tpu.pipeline_mode<synchronous>, transform_indices = @transform_4, window_bounds = array<i64: 1, 128>}, {pipeline_mode = #tpu.pipeline_mode<synchronous>, transform_indices = @transform_5, window_bounds = array<i64: 1, 128>}, {transform_indices = @transform_6, window_bounds = array<i64: 1, 5, 128>}]} {
    %c0 = arith.constant 0 : index
    %c0_0 = arith.constant 0 : index
    %c0_1 = arith.constant 0 : index
    %0 = vector.load %arg1[%c0, %c0_0, %c0_1] : memref<1x4x192xf32, #tpu.memory_space<vmem>>, vector<1x4x192xf32>
    %1 = vector.shape_cast %0 : vector<1x4x192xf32> to vector<4x192xf32>
    %c0_2 = arith.constant 0 : index
    %c0_3 = arith.constant 0 : index
    %2 = vector.load %arg2[%c0_2, %c0_3] : memref<192x128xbf16, #tpu.memory_space<vmem>>, vector<192x128xbf16>
    %3 = arith.truncf %1 : vector<4x192xf32> to vector<4x192xbf16>
    %cst = arith.constant dense<0.000000e+00> : vector<4x128xf32>
    %4 = tpu.matmul %3, %2, %cst {dimension_numbers = #tpu.dot_dimension_numbers<[1], [0], [0], [1], [0, 0, 1, 1], [], []>} : vector<4x192xbf16>, vector<192x128xbf16>, vector<4x128xf32> -> vector<4x128xf32>
    %c0_4 = arith.constant 0 : index
    %c0_5 = arith.constant 0 : index
    %5 = vector.load %arg3[%c0_4, %c0_5] : memref<1x128xf32, #tpu.memory_space<vmem>>, vector<1x128xf32>
    %6 = tpu.concatenate %5, %4 in 0 : vector<1x128xf32>, vector<4x128xf32> -> vector<5x128xf32>
    %c0_6 = arith.constant 0 : index
    %c0_7 = arith.constant 0 : index
    %7 = vector.load %arg4[%c0_6, %c0_7] : memref<5x128xf32, #tpu.memory_space<vmem>>, vector<5x128xf32>
    %8 = arith.addf %6, %7 : vector<5x128xf32>
    %c0_8 = arith.constant 0 : index
    %c0_9 = arith.constant 0 : index
    %9 = vector.load %arg5[%c0_8, %c0_9] : memref<1x128xf32, #tpu.memory_space<vmem>>, vector<1x128xf32>
    %c0_10 = arith.constant 0 : index
    %c0_11 = arith.constant 0 : index
    %10 = vector.load %arg6[%c0_10, %c0_11] : memref<1x128xf32, #tpu.memory_space<vmem>>, vector<1x128xf32>
    %cst_12 = arith.constant dense<0.000000e+00> : vector<5xf32>
    %11 = vector.multi_reduction <add>, %8, %cst_12 [1] : vector<5x128xf32> to vector<5xf32>
    %12 = vector.shape_cast %11 : vector<5xf32> to vector<5x1xf32>
    %cst_13 = arith.constant 1.280000e+02 : f32
    %13 = vector.broadcast %cst_13 : f32 to vector<5x1xf32>
    %14 = arith.divf %12, %13 : vector<5x1xf32>
    %15 = vector.broadcast %14 : vector<5x1xf32> to vector<5x128xf32>
    %16 = arith.subf %8, %15 : vector<5x128xf32>
    %17 = arith.mulf %16, %16 : vector<5x128xf32>
    %cst_14 = arith.constant dense<0.000000e+00> : vector<5xf32>
    %18 = vector.multi_reduction <add>, %17, %cst_14 [1] : vector<5x128xf32> to vector<5xf32>
    %19 = vector.shape_cast %18 : vector<5xf32> to vector<5x1xf32>
    %cst_15 = arith.constant 1.280000e+02 : f32
    %20 = vector.broadcast %cst_15 : f32 to vector<5x1xf32>
    %21 = arith.divf %19, %20 : vector<5x1xf32>
    %cst_16 = arith.constant 9.99999974E-6 : f32
    %22 = vector.broadcast %cst_16 : f32 to vector<5x1xf32>
    %23 = arith.addf %21, %22 : vector<5x1xf32>
    %24 = math.rsqrt %23 : vector<5x1xf32>
    %25 = vector.broadcast %24 : vector<5x1xf32> to vector<5x128xf32>
    %26 = arith.mulf %16, %25 : vector<5x128xf32>
    %27 = vector.broadcast %9 : vector<1x128xf32> to vector<5x128xf32>
    %28 = arith.mulf %26, %27 : vector<5x128xf32>
    %29 = vector.broadcast %10 : vector<1x128xf32> to vector<5x128xf32>
    %30 = arith.addf %28, %29 : vector<5x128xf32>
    %31 = arith.truncf %30 : vector<5x128xf32> to vector<5x128xbf16>
    %c0_17 = arith.constant 0 : index
    %c0_18 = arith.constant 0 : index
    %c0_19 = arith.constant 0 : index
    %32 = vector.load %arg7[%c0_17, %c0_18, %c0_19] : memref<1x5x128xbf16, #tpu.memory_space<vmem>>, vector<1x5x128xbf16>
    %33 = vector.shape_cast %32 : vector<1x5x128xbf16> to vector<5x128xbf16>
    %34 = vector.shape_cast %31 : vector<5x128xbf16> to vector<1x5x128xbf16>
    tpu.vector_store %arg7[%c0_17, %c0_18, %c0_19], %34 {strides = array<i32>} : memref<1x5x128xbf16, #tpu.memory_space<vmem>>, vector<1x5x128xbf16>,
    return
  }
  func.func @transform_0(%arg0: i32) -> (i32, i32, i32) {
    %c0_i32 = arith.constant 0 : i32
    %c0_i32_0 = arith.constant 0 : i32
    %c0_i32_1 = arith.constant 0 : i32
    return %arg0, %c0_i32, %c0_i32_0 : i32, i32, i32
  }
  func.func @transform_1(%arg0: i32) -> (i32, i32) {
    %c0_i32 = arith.constant 0 : i32
    %c0_i32_0 = arith.constant 0 : i32
    %c0_i32_1 = arith.constant 0 : i32
    return %c0_i32, %c0_i32_0 : i32, i32
  }
  func.func @transform_2(%arg0: i32) -> (i32, i32) {
    %c0_i32 = arith.constant 0 : i32
    %c0_i32_0 = arith.constant 0 : i32
    %c0_i32_1 = arith.constant 0 : i32
    return %c0_i32, %c0_i32_0 : i32, i32
  }
  func.func @transform_3(%arg0: i32) -> (i32, i32) {
    %c0_i32 = arith.constant 0 : i32
    %c0_i32_0 = arith.constant 0 : i32
    %c0_i32_1 = arith.constant 0 : i32
    return %c0_i32, %c0_i32_0 : i32, i32
  }
  func.func @transform_4(%arg0: i32) -> (i32, i32) {
    %c0_i32 = arith.constant 0 : i32
    %c0_i32_0 = arith.constant 0 : i32
    %c0_i32_1 = arith.constant 0 : i32
    return %c0_i32, %c0_i32_0 : i32, i32
  }
  func.func @transform_5(%arg0: i32) -> (i32, i32) {
    %c0_i32 = arith.constant 0 : i32
    %c0_i32_0 = arith.constant 0 : i32
    %c0_i32_1 = arith.constant 0 : i32
    return %c0_i32, %c0_i32_0 : i32, i32
  }
  func.func @transform_6(%arg0: i32) -> (i32, i32, i32) {
    %c0_i32 = arith.constant 0 : i32
    %c0_i32_0 = arith.constant 0 : i32
    %c0_i32_1 = arith.constant 0 : i32
    return %arg0, %c0_i32, %c0_i32_0 : i32, i32, i32
  }
}

module attributes {stable_mosaic.version = 11 : i64} {
  func.func @_vit_stack_kernel(%arg0: i32, %arg1: memref<10x128xbf16, #tpu.memory_space<vmem>>, %arg2: memref<10x10xf32, #tpu.memory_space<vmem>>, %arg3: memref<1x1x128xf32, #tpu.memory_space<vmem>>, %arg4: memref<1x1x128xf32, #tpu.memory_space<vmem>>, %arg5: memref<1x128x384xbf16, #tpu.memory_space<vmem>>, %arg6: memref<1x1x384xf32, #tpu.memory_space<vmem>>, %arg7: memref<1x128x128xbf16, #tpu.memory_space<vmem>>, %arg8: memref<1x1x128xf32, #tpu.memory_space<vmem>>, %arg9: memref<1x1x128xf32, #tpu.memory_space<vmem>>, %arg10: memref<1x1x128xf32, #tpu.memory_space<vmem>>, %arg11: memref<1x128x512xbf16, #tpu.memory_space<vmem>>, %arg12: memref<1x1x512xf32, #tpu.memory_space<vmem>>, %arg13: memref<1x512x128xbf16, #tpu.memory_space<vmem>>, %arg14: memref<1x1x128xf32, #tpu.memory_space<vmem>>, %arg15: memref<1x128xf32, #tpu.memory_space<vmem>>, %arg16: memref<1x128xf32, #tpu.memory_space<vmem>>, %arg17: memref<128x128xbf16, #tpu.memory_space<vmem>>, %arg18: memref<2x128xbf16, #tpu.memory_space<vmem>>, %arg19: memref<10x128xf32, #tpu.memory_space<vmem>>) attributes {dimension_semantics = [#tpu.dimension_semantics<arbitrary>], iteration_bounds = array<i64: 2>, scalar_prefetch = 0 : i64, scratch_operands = 1 : i64, tpu.core_type = #tpu.core_type<tc>, window_params = [{pipeline_mode = #tpu.pipeline_mode<synchronous>, transform_indices = @transform_0, window_bounds = array<i64: 10, 128>}, {pipeline_mode = #tpu.pipeline_mode<synchronous>, transform_indices = @transform_1, window_bounds = array<i64: 10, 10>}, {transform_indices = @transform_2, window_bounds = array<i64: 1, 1, 128>}, {transform_indices = @transform_3, window_bounds = array<i64: 1, 1, 128>}, {transform_indices = @transform_4, window_bounds = array<i64: 1, 128, 384>}, {transform_indices = @transform_5, window_bounds = array<i64: 1, 1, 384>}, {transform_indices = @transform_6, window_bounds = array<i64: 1, 128, 128>}, {transform_indices = @transform_7, window_bounds = array<i64: 1, 1, 128>}, {transform_indices = @transform_8, window_bounds = array<i64: 1, 1, 128>}, {transform_indices = @transform_9, window_bounds = array<i64: 1, 1, 128>}, {transform_indices = @transform_10, window_bounds = array<i64: 1, 128, 512>}, {transform_indices = @transform_11, window_bounds = array<i64: 1, 1, 512>}, {transform_indices = @transform_12, window_bounds = array<i64: 1, 512, 128>}, {transform_indices = @transform_13, window_bounds = array<i64: 1, 1, 128>}, {pipeline_mode = #tpu.pipeline_mode<synchronous>, transform_indices = @transform_14, window_bounds = array<i64: 1, 128>}, {pipeline_mode = #tpu.pipeline_mode<synchronous>, transform_indices = @transform_15, window_bounds = array<i64: 1, 128>}, {pipeline_mode = #tpu.pipeline_mode<synchronous>, transform_indices = @transform_16, window_bounds = array<i64: 128, 128>}, {pipeline_mode = #tpu.pipeline_mode<synchronous>, transform_indices = @transform_17, window_bounds = array<i64: 2, 128>}]} {
    %c0_i32 = arith.constant 0 : i32
    %0 = arith.cmpi eq, %arg0, %c0_i32 : i32
    %1 = arith.extui %0 : i1 to i32
    %c0_i32_0 = arith.constant 0 : i32
    %2 = arith.cmpi ne, %1, %c0_i32_0 : i32
    scf.if %2 {
      %c0_78 = arith.constant 0 : index
      %c0_79 = arith.constant 0 : index
      %191 = vector.load %arg1[%c0_78, %c0_79] : memref<10x128xbf16, #tpu.memory_space<vmem>>, vector<10x128xbf16>
      %192 = arith.extf %191 : vector<10x128xbf16> to vector<10x128xf32>
      %c0_80 = arith.constant 0 : index
      %c0_81 = arith.constant 0 : index
      %193 = vector.load %arg19[%c0_80, %c0_81] : memref<10x128xf32, #tpu.memory_space<vmem>>, vector<10x128xf32>
      tpu.vector_store %arg19[%c0_80, %c0_81], %192 {strides = array<i32>} : memref<10x128xf32, #tpu.memory_space<vmem>>, vector<10x128xf32>,
    } else {
    }
    %c0 = arith.constant 0 : index
    %c0_1 = arith.constant 0 : index
    %3 = vector.load %arg19[%c0, %c0_1] : memref<10x128xf32, #tpu.memory_space<vmem>>, vector<10x128xf32>
    %c0_2 = arith.constant 0 : index
    %c0_3 = arith.constant 0 : index
    %4 = vector.load %arg2[%c0_2, %c0_3] : memref<10x10xf32, #tpu.memory_space<vmem>>, vector<10x10xf32>
    %c0_4 = arith.constant 0 : index
    %c0_5 = arith.constant 0 : index
    %c0_6 = arith.constant 0 : index
    %5 = vector.load %arg3[%c0_4, %c0_5, %c0_6] : memref<1x1x128xf32, #tpu.memory_space<vmem>>, vector<1x1x128xf32>
    %6 = vector.shape_cast %5 : vector<1x1x128xf32> to vector<1x128xf32>
    %c0_7 = arith.constant 0 : index
    %c0_8 = arith.constant 0 : index
    %c0_9 = arith.constant 0 : index
    %7 = vector.load %arg4[%c0_7, %c0_8, %c0_9] : memref<1x1x128xf32, #tpu.memory_space<vmem>>, vector<1x1x128xf32>
    %8 = vector.shape_cast %7 : vector<1x1x128xf32> to vector<1x128xf32>
    %cst = arith.constant dense<0.000000e+00> : vector<10xf32>
    %9 = vector.multi_reduction <add>, %3, %cst [1] : vector<10x128xf32> to vector<10xf32>
    %10 = vector.shape_cast %9 : vector<10xf32> to vector<10x1xf32>
    %cst_10 = arith.constant 1.280000e+02 : f32
    %11 = vector.broadcast %cst_10 : f32 to vector<10x1xf32>
    %12 = arith.divf %10, %11 : vector<10x1xf32>
    %13 = vector.broadcast %12 : vector<10x1xf32> to vector<10x128xf32>
    %14 = arith.subf %3, %13 : vector<10x128xf32>
    %15 = arith.mulf %14, %14 : vector<10x128xf32>
    %cst_11 = arith.constant dense<0.000000e+00> : vector<10xf32>
    %16 = vector.multi_reduction <add>, %15, %cst_11 [1] : vector<10x128xf32> to vector<10xf32>
    %17 = vector.shape_cast %16 : vector<10xf32> to vector<10x1xf32>
    %cst_12 = arith.constant 1.280000e+02 : f32
    %18 = vector.broadcast %cst_12 : f32 to vector<10x1xf32>
    %19 = arith.divf %17, %18 : vector<10x1xf32>
    %cst_13 = arith.constant 9.99999974E-6 : f32
    %20 = vector.broadcast %cst_13 : f32 to vector<10x1xf32>
    %21 = arith.addf %19, %20 : vector<10x1xf32>
    %22 = math.rsqrt %21 : vector<10x1xf32>
    %23 = vector.broadcast %22 : vector<10x1xf32> to vector<10x128xf32>
    %24 = arith.mulf %14, %23 : vector<10x128xf32>
    %25 = vector.broadcast %6 : vector<1x128xf32> to vector<10x128xf32>
    %26 = arith.mulf %24, %25 : vector<10x128xf32>
    %27 = vector.broadcast %8 : vector<1x128xf32> to vector<10x128xf32>
    %28 = arith.addf %26, %27 : vector<10x128xf32>
    %c0_14 = arith.constant 0 : index
    %c0_15 = arith.constant 0 : index
    %c0_16 = arith.constant 0 : index
    %29 = vector.load %arg5[%c0_14, %c0_15, %c0_16] : memref<1x128x384xbf16, #tpu.memory_space<vmem>>, vector<1x128x384xbf16>
    %30 = vector.shape_cast %29 : vector<1x128x384xbf16> to vector<128x384xbf16>
    %31 = arith.truncf %28 : vector<10x128xf32> to vector<10x128xbf16>
    %cst_17 = arith.constant dense<0.000000e+00> : vector<10x384xf32>
    %32 = tpu.matmul %31, %30, %cst_17 {dimension_numbers = #tpu.dot_dimension_numbers<[1], [0], [0], [1], [0, 0, 1, 1], [], []>} : vector<10x128xbf16>, vector<128x384xbf16>, vector<10x384xf32> -> vector<10x384xf32>
    %c0_18 = arith.constant 0 : index
    %c0_19 = arith.constant 0 : index
    %c0_20 = arith.constant 0 : index
    %33 = vector.load %arg6[%c0_18, %c0_19, %c0_20] : memref<1x1x384xf32, #tpu.memory_space<vmem>>, vector<1x1x384xf32>
    %34 = vector.shape_cast %33 : vector<1x1x384xf32> to vector<1x384xf32>
    %35 = vector.broadcast %34 : vector<1x384xf32> to vector<10x384xf32>
    %36 = arith.addf %32, %35 : vector<10x384xf32>
    %37 = vector.extract_strided_slice %36 {offsets = [0, 0], sizes = [10, 128], strides = [1, 1]} : vector<10x384xf32> to vector<10x128xf32>
    %38 = vector.extract_strided_slice %36 {offsets = [0, 128], sizes = [10, 128], strides = [1, 1]} : vector<10x384xf32> to vector<10x128xf32>
    %39 = vector.extract_strided_slice %36 {offsets = [0, 256], sizes = [10, 128], strides = [1, 1]} : vector<10x384xf32> to vector<10x128xf32>
    %c0_21 = arith.constant 0 : index
    %c0_22 = arith.constant 0 : index
    %c0_23 = arith.constant 0 : index
    %40 = vector.load %arg8[%c0_21, %c0_22, %c0_23] : memref<1x1x128xf32, #tpu.memory_space<vmem>>, vector<1x1x128xf32>
    %41 = vector.shape_cast %40 : vector<1x1x128xf32> to vector<1x128xf32>
    %42 = vector.extract_strided_slice %37 {offsets = [0, 0], sizes = [10, 32], strides = [1, 1]} : vector<10x128xf32> to vector<10x32xf32>
    %cst_24 = arith.constant 0.176776692 : f32
    %43 = vector.broadcast %cst_24 : f32 to vector<10x32xf32>
    %44 = arith.mulf %42, %43 : vector<10x32xf32>
    %45 = arith.truncf %44 : vector<10x32xf32> to vector<10x32xbf16>
    %46 = vector.extract_strided_slice %38 {offsets = [0, 0], sizes = [10, 32], strides = [1, 1]} : vector<10x128xf32> to vector<10x32xf32>
    %47 = arith.truncf %46 : vector<10x32xf32> to vector<10x32xbf16>
    %48 = vector.extract_strided_slice %39 {offsets = [0, 0], sizes = [10, 32], strides = [1, 1]} : vector<10x128xf32> to vector<10x32xf32>
    %49 = arith.truncf %48 : vector<10x32xf32> to vector<10x32xbf16>
    %cst_25 = arith.constant dense<0.000000e+00> : vector<10x10xf32>
    %50 = tpu.matmul %45, %47, %cst_25 {dimension_numbers = #tpu.dot_dimension_numbers<[1], [1], [0], [0], [0, 0, 1, 0], [], []>} : vector<10x32xbf16>, vector<10x32xbf16>, vector<10x10xf32> -> vector<10x10xf32>
    %51 = arith.addf %50, %4 : vector<10x10xf32>
    %cst_26 = arith.constant dense<0xFF800000> : vector<10xf32>
    %52 = vector.multi_reduction <maximumf>, %51, %cst_26 [1] : vector<10x10xf32> to vector<10xf32>
    %53 = vector.shape_cast %52 : vector<10xf32> to vector<10x1xf32>
    %54 = vector.broadcast %53 : vector<10x1xf32> to vector<10x10xf32>
    %55 = arith.subf %51, %54 : vector<10x10xf32>
    %56 = math.exp %55 : vector<10x10xf32>
    %cst_27 = arith.constant dense<0.000000e+00> : vector<10xf32>
    %57 = vector.multi_reduction <add>, %56, %cst_27 [1] : vector<10x10xf32> to vector<10xf32>
    %58 = vector.shape_cast %57 : vector<10xf32> to vector<10x1xf32>
    %59 = tpu.reciprocal %58 {approx = true} : vector<10x1xf32> -> vector<10x1xf32>
    %60 = vector.broadcast %59 : vector<10x1xf32> to vector<10x10xf32>
    %61 = arith.mulf %56, %60 : vector<10x10xf32>
    %62 = arith.truncf %61 : vector<10x10xf32> to vector<10x10xbf16>
    %cst_28 = arith.constant dense<0.000000e+00> : vector<10x32xf32>
    %63 = tpu.matmul %62, %49, %cst_28 {dimension_numbers = #tpu.dot_dimension_numbers<[1], [0], [0], [1], [0, 0, 1, 1], [], []>} : vector<10x10xbf16>, vector<10x32xbf16>, vector<10x32xf32> -> vector<10x32xf32>
    %64 = vector.extract_strided_slice %37 {offsets = [0, 32], sizes = [10, 32], strides = [1, 1]} : vector<10x128xf32> to vector<10x32xf32>
    %cst_29 = arith.constant 0.176776692 : f32
    %65 = vector.broadcast %cst_29 : f32 to vector<10x32xf32>
    %66 = arith.mulf %64, %65 : vector<10x32xf32>
    %67 = arith.truncf %66 : vector<10x32xf32> to vector<10x32xbf16>
    %68 = vector.extract_strided_slice %38 {offsets = [0, 32], sizes = [10, 32], strides = [1, 1]} : vector<10x128xf32> to vector<10x32xf32>
    %69 = arith.truncf %68 : vector<10x32xf32> to vector<10x32xbf16>
    %70 = vector.extract_strided_slice %39 {offsets = [0, 32], sizes = [10, 32], strides = [1, 1]} : vector<10x128xf32> to vector<10x32xf32>
    %71 = arith.truncf %70 : vector<10x32xf32> to vector<10x32xbf16>
    %cst_30 = arith.constant dense<0.000000e+00> : vector<10x10xf32>
    %72 = tpu.matmul %67, %69, %cst_30 {dimension_numbers = #tpu.dot_dimension_numbers<[1], [1], [0], [0], [0, 0, 1, 0], [], []>} : vector<10x32xbf16>, vector<10x32xbf16>, vector<10x10xf32> -> vector<10x10xf32>
    %73 = arith.addf %72, %4 : vector<10x10xf32>
    %cst_31 = arith.constant dense<0xFF800000> : vector<10xf32>
    %74 = vector.multi_reduction <maximumf>, %73, %cst_31 [1] : vector<10x10xf32> to vector<10xf32>
    %75 = vector.shape_cast %74 : vector<10xf32> to vector<10x1xf32>
    %76 = vector.broadcast %75 : vector<10x1xf32> to vector<10x10xf32>
    %77 = arith.subf %73, %76 : vector<10x10xf32>
    %78 = math.exp %77 : vector<10x10xf32>
    %cst_32 = arith.constant dense<0.000000e+00> : vector<10xf32>
    %79 = vector.multi_reduction <add>, %78, %cst_32 [1] : vector<10x10xf32> to vector<10xf32>
    %80 = vector.shape_cast %79 : vector<10xf32> to vector<10x1xf32>
    %81 = tpu.reciprocal %80 {approx = true} : vector<10x1xf32> -> vector<10x1xf32>
    %82 = vector.broadcast %81 : vector<10x1xf32> to vector<10x10xf32>
    %83 = arith.mulf %78, %82 : vector<10x10xf32>
    %84 = arith.truncf %83 : vector<10x10xf32> to vector<10x10xbf16>
    %cst_33 = arith.constant dense<0.000000e+00> : vector<10x32xf32>
    %85 = tpu.matmul %84, %71, %cst_33 {dimension_numbers = #tpu.dot_dimension_numbers<[1], [0], [0], [1], [0, 0, 1, 1], [], []>} : vector<10x10xbf16>, vector<10x32xbf16>, vector<10x32xf32> -> vector<10x32xf32>
    %86 = vector.extract_strided_slice %37 {offsets = [0, 64], sizes = [10, 32], strides = [1, 1]} : vector<10x128xf32> to vector<10x32xf32>
    %cst_34 = arith.constant 0.176776692 : f32
    %87 = vector.broadcast %cst_34 : f32 to vector<10x32xf32>
    %88 = arith.mulf %86, %87 : vector<10x32xf32>
    %89 = arith.truncf %88 : vector<10x32xf32> to vector<10x32xbf16>
    %90 = vector.extract_strided_slice %38 {offsets = [0, 64], sizes = [10, 32], strides = [1, 1]} : vector<10x128xf32> to vector<10x32xf32>
    %91 = arith.truncf %90 : vector<10x32xf32> to vector<10x32xbf16>
    %92 = vector.extract_strided_slice %39 {offsets = [0, 64], sizes = [10, 32], strides = [1, 1]} : vector<10x128xf32> to vector<10x32xf32>
    %93 = arith.truncf %92 : vector<10x32xf32> to vector<10x32xbf16>
    %cst_35 = arith.constant dense<0.000000e+00> : vector<10x10xf32>
    %94 = tpu.matmul %89, %91, %cst_35 {dimension_numbers = #tpu.dot_dimension_numbers<[1], [1], [0], [0], [0, 0, 1, 0], [], []>} : vector<10x32xbf16>, vector<10x32xbf16>, vector<10x10xf32> -> vector<10x10xf32>
    %95 = arith.addf %94, %4 : vector<10x10xf32>
    %cst_36 = arith.constant dense<0xFF800000> : vector<10xf32>
    %96 = vector.multi_reduction <maximumf>, %95, %cst_36 [1] : vector<10x10xf32> to vector<10xf32>
    %97 = vector.shape_cast %96 : vector<10xf32> to vector<10x1xf32>
    %98 = vector.broadcast %97 : vector<10x1xf32> to vector<10x10xf32>
    %99 = arith.subf %95, %98 : vector<10x10xf32>
    %100 = math.exp %99 : vector<10x10xf32>
    %cst_37 = arith.constant dense<0.000000e+00> : vector<10xf32>
    %101 = vector.multi_reduction <add>, %100, %cst_37 [1] : vector<10x10xf32> to vector<10xf32>
    %102 = vector.shape_cast %101 : vector<10xf32> to vector<10x1xf32>
    %103 = tpu.reciprocal %102 {approx = true} : vector<10x1xf32> -> vector<10x1xf32>
    %104 = vector.broadcast %103 : vector<10x1xf32> to vector<10x10xf32>
    %105 = arith.mulf %100, %104 : vector<10x10xf32>
    %106 = arith.truncf %105 : vector<10x10xf32> to vector<10x10xbf16>
    %cst_38 = arith.constant dense<0.000000e+00> : vector<10x32xf32>
    %107 = tpu.matmul %106, %93, %cst_38 {dimension_numbers = #tpu.dot_dimension_numbers<[1], [0], [0], [1], [0, 0, 1, 1], [], []>} : vector<10x10xbf16>, vector<10x32xbf16>, vector<10x32xf32> -> vector<10x32xf32>
    %108 = vector.extract_strided_slice %37 {offsets = [0, 96], sizes = [10, 32], strides = [1, 1]} : vector<10x128xf32> to vector<10x32xf32>
    %cst_39 = arith.constant 0.176776692 : f32
    %109 = vector.broadcast %cst_39 : f32 to vector<10x32xf32>
    %110 = arith.mulf %108, %109 : vector<10x32xf32>
    %111 = arith.truncf %110 : vector<10x32xf32> to vector<10x32xbf16>
    %112 = vector.extract_strided_slice %38 {offsets = [0, 96], sizes = [10, 32], strides = [1, 1]} : vector<10x128xf32> to vector<10x32xf32>
    %113 = arith.truncf %112 : vector<10x32xf32> to vector<10x32xbf16>
    %114 = vector.extract_strided_slice %39 {offsets = [0, 96], sizes = [10, 32], strides = [1, 1]} : vector<10x128xf32> to vector<10x32xf32>
    %115 = arith.truncf %114 : vector<10x32xf32> to vector<10x32xbf16>
    %cst_40 = arith.constant dense<0.000000e+00> : vector<10x10xf32>
    %116 = tpu.matmul %111, %113, %cst_40 {dimension_numbers = #tpu.dot_dimension_numbers<[1], [1], [0], [0], [0, 0, 1, 0], [], []>} : vector<10x32xbf16>, vector<10x32xbf16>, vector<10x10xf32> -> vector<10x10xf32>
    %117 = arith.addf %116, %4 : vector<10x10xf32>
    %cst_41 = arith.constant dense<0xFF800000> : vector<10xf32>
    %118 = vector.multi_reduction <maximumf>, %117, %cst_41 [1] : vector<10x10xf32> to vector<10xf32>
    %119 = vector.shape_cast %118 : vector<10xf32> to vector<10x1xf32>
    %120 = vector.broadcast %119 : vector<10x1xf32> to vector<10x10xf32>
    %121 = arith.subf %117, %120 : vector<10x10xf32>
    %122 = math.exp %121 : vector<10x10xf32>
    %cst_42 = arith.constant dense<0.000000e+00> : vector<10xf32>
    %123 = vector.multi_reduction <add>, %122, %cst_42 [1] : vector<10x10xf32> to vector<10xf32>
    %124 = vector.shape_cast %123 : vector<10xf32> to vector<10x1xf32>
    %125 = tpu.reciprocal %124 {approx = true} : vector<10x1xf32> -> vector<10x1xf32>
    %126 = vector.broadcast %125 : vector<10x1xf32> to vector<10x10xf32>
    %127 = arith.mulf %122, %126 : vector<10x10xf32>
    %128 = arith.truncf %127 : vector<10x10xf32> to vector<10x10xbf16>
    %cst_43 = arith.constant dense<0.000000e+00> : vector<10x32xf32>
    %129 = tpu.matmul %128, %115, %cst_43 {dimension_numbers = #tpu.dot_dimension_numbers<[1], [0], [0], [1], [0, 0, 1, 1], [], []>} : vector<10x10xbf16>, vector<10x32xbf16>, vector<10x32xf32> -> vector<10x32xf32>
    %130 = tpu.concatenate %63, %85, %107, %129 in 1 : vector<10x32xf32>, vector<10x32xf32>, vector<10x32xf32>, vector<10x32xf32> -> vector<10x128xf32>
    %131 = arith.truncf %130 : vector<10x128xf32> to vector<10x128xbf16>
    %c0_44 = arith.constant 0 : index
    %c0_45 = arith.constant 0 : index
    %c0_46 = arith.constant 0 : index
    %132 = vector.load %arg7[%c0_44, %c0_45, %c0_46] : memref<1x128x128xbf16, #tpu.memory_space<vmem>>, vector<1x128x128xbf16>
    %133 = vector.shape_cast %132 : vector<1x128x128xbf16> to vector<128x128xbf16>
    %cst_47 = arith.constant dense<0.000000e+00> : vector<10x128xf32>
    %134 = tpu.matmul %131, %133, %cst_47 {dimension_numbers = #tpu.dot_dimension_numbers<[1], [0], [0], [1], [0, 0, 1, 1], [], []>} : vector<10x128xbf16>, vector<128x128xbf16>, vector<10x128xf32> -> vector<10x128xf32>
    %135 = vector.broadcast %41 : vector<1x128xf32> to vector<10x128xf32>
    %136 = arith.addf %134, %135 : vector<10x128xf32>
    %137 = arith.addf %3, %136 : vector<10x128xf32>
    %c0_48 = arith.constant 0 : index
    %c0_49 = arith.constant 0 : index
    %c0_50 = arith.constant 0 : index
    %138 = vector.load %arg9[%c0_48, %c0_49, %c0_50] : memref<1x1x128xf32, #tpu.memory_space<vmem>>, vector<1x1x128xf32>
    %139 = vector.shape_cast %138 : vector<1x1x128xf32> to vector<1x128xf32>
    %c0_51 = arith.constant 0 : index
    %c0_52 = arith.constant 0 : index
    %c0_53 = arith.constant 0 : index
    %140 = vector.load %arg10[%c0_51, %c0_52, %c0_53] : memref<1x1x128xf32, #tpu.memory_space<vmem>>, vector<1x1x128xf32>
    %141 = vector.shape_cast %140 : vector<1x1x128xf32> to vector<1x128xf32>
    %cst_54 = arith.constant dense<0.000000e+00> : vector<10xf32>
    %142 = vector.multi_reduction <add>, %137, %cst_54 [1] : vector<10x128xf32> to vector<10xf32>
    %143 = vector.shape_cast %142 : vector<10xf32> to vector<10x1xf32>
    %cst_55 = arith.constant 1.280000e+02 : f32
    %144 = vector.broadcast %cst_55 : f32 to vector<10x1xf32>
    %145 = arith.divf %143, %144 : vector<10x1xf32>
    %146 = vector.broadcast %145 : vector<10x1xf32> to vector<10x128xf32>
    %147 = arith.subf %137, %146 : vector<10x128xf32>
    %148 = arith.mulf %147, %147 : vector<10x128xf32>
    %cst_56 = arith.constant dense<0.000000e+00> : vector<10xf32>
    %149 = vector.multi_reduction <add>, %148, %cst_56 [1] : vector<10x128xf32> to vector<10xf32>
    %150 = vector.shape_cast %149 : vector<10xf32> to vector<10x1xf32>
    %cst_57 = arith.constant 1.280000e+02 : f32
    %151 = vector.broadcast %cst_57 : f32 to vector<10x1xf32>
    %152 = arith.divf %150, %151 : vector<10x1xf32>
    %cst_58 = arith.constant 9.99999974E-6 : f32
    %153 = vector.broadcast %cst_58 : f32 to vector<10x1xf32>
    %154 = arith.addf %152, %153 : vector<10x1xf32>
    %155 = math.rsqrt %154 : vector<10x1xf32>
    %156 = vector.broadcast %155 : vector<10x1xf32> to vector<10x128xf32>
    %157 = arith.mulf %147, %156 : vector<10x128xf32>
    %158 = vector.broadcast %139 : vector<1x128xf32> to vector<10x128xf32>
    %159 = arith.mulf %157, %158 : vector<10x128xf32>
    %160 = vector.broadcast %141 : vector<1x128xf32> to vector<10x128xf32>
    %161 = arith.addf %159, %160 : vector<10x128xf32>
    %c0_59 = arith.constant 0 : index
    %c0_60 = arith.constant 0 : index
    %c0_61 = arith.constant 0 : index
    %162 = vector.load %arg11[%c0_59, %c0_60, %c0_61] : memref<1x128x512xbf16, #tpu.memory_space<vmem>>, vector<1x128x512xbf16>
    %163 = vector.shape_cast %162 : vector<1x128x512xbf16> to vector<128x512xbf16>
    %164 = arith.truncf %161 : vector<10x128xf32> to vector<10x128xbf16>
    %cst_62 = arith.constant dense<0.000000e+00> : vector<10x512xf32>
    %165 = tpu.matmul %164, %163, %cst_62 {dimension_numbers = #tpu.dot_dimension_numbers<[1], [0], [0], [1], [0, 0, 1, 1], [], []>} : vector<10x128xbf16>, vector<128x512xbf16>, vector<10x512xf32> -> vector<10x512xf32>
    %c0_63 = arith.constant 0 : index
    %c0_64 = arith.constant 0 : index
    %c0_65 = arith.constant 0 : index
    %166 = vector.load %arg12[%c0_63, %c0_64, %c0_65] : memref<1x1x512xf32, #tpu.memory_space<vmem>>, vector<1x1x512xf32>
    %167 = vector.shape_cast %166 : vector<1x1x512xf32> to vector<1x512xf32>
    %168 = vector.broadcast %167 : vector<1x512xf32> to vector<10x512xf32>
    %169 = arith.addf %165, %168 : vector<10x512xf32>
    %cst_66 = arith.constant 1.702000e+00 : f32
    %170 = vector.broadcast %cst_66 : f32 to vector<10x512xf32>
    %171 = arith.mulf %170, %169 : vector<10x512xf32>
    %172 = arith.negf %171 : vector<10x512xf32>
    %173 = math.exp %172 : vector<10x512xf32>
    %cst_67 = arith.constant 1.000000e+00 : f32
    %174 = vector.broadcast %cst_67 : f32 to vector<10x512xf32>
    %175 = arith.addf %174, %173 : vector<10x512xf32>
    %176 = arith.divf %174, %175 : vector<10x512xf32>
    %177 = arith.mulf %169, %176 : vector<10x512xf32>
    %c0_68 = arith.constant 0 : index
    %c0_69 = arith.constant 0 : index
    %c0_70 = arith.constant 0 : index
    %178 = vector.load %arg13[%c0_68, %c0_69, %c0_70] : memref<1x512x128xbf16, #tpu.memory_space<vmem>>, vector<1x512x128xbf16>
    %179 = vector.shape_cast %178 : vector<1x512x128xbf16> to vector<512x128xbf16>
    %180 = arith.truncf %177 : vector<10x512xf32> to vector<10x512xbf16>
    %cst_71 = arith.constant dense<0.000000e+00> : vector<10x128xf32>
    %181 = tpu.matmul %180, %179, %cst_71 {dimension_numbers = #tpu.dot_dimension_numbers<[1], [0], [0], [1], [0, 0, 1, 1], [], []>} : vector<10x512xbf16>, vector<512x128xbf16>, vector<10x128xf32> -> vector<10x128xf32>
    %c0_72 = arith.constant 0 : index
    %c0_73 = arith.constant 0 : index
    %c0_74 = arith.constant 0 : index
    %182 = vector.load %arg14[%c0_72, %c0_73, %c0_74] : memref<1x1x128xf32, #tpu.memory_space<vmem>>, vector<1x1x128xf32>
    %183 = vector.shape_cast %182 : vector<1x1x128xf32> to vector<1x128xf32>
    %184 = vector.broadcast %183 : vector<1x128xf32> to vector<10x128xf32>
    %185 = arith.addf %181, %184 : vector<10x128xf32>
    %186 = arith.addf %137, %185 : vector<10x128xf32>
    %c0_75 = arith.constant 0 : index
    %c0_76 = arith.constant 0 : index
    %187 = vector.load %arg19[%c0_75, %c0_76] : memref<10x128xf32, #tpu.memory_space<vmem>>, vector<10x128xf32>
    tpu.vector_store %arg19[%c0_75, %c0_76], %186 {strides = array<i32>} : memref<10x128xf32, #tpu.memory_space<vmem>>, vector<10x128xf32>,
    %c1_i32 = arith.constant 1 : i32
    %188 = arith.cmpi eq, %arg0, %c1_i32 : i32
    %189 = arith.extui %188 : i1 to i32
    %c0_i32_77 = arith.constant 0 : i32
    %190 = arith.cmpi ne, %189, %c0_i32_77 : i32
    scf.if %190 {
      %191 = vector.extract_strided_slice %186 {offsets = [0, 0], sizes = [1, 128], strides = [1, 1]} : vector<10x128xf32> to vector<1x128xf32>
      %192 = vector.extract_strided_slice %186 {offsets = [5, 0], sizes = [1, 128], strides = [1, 1]} : vector<10x128xf32> to vector<1x128xf32>
      %193 = tpu.concatenate %191, %192 in 0 : vector<1x128xf32>, vector<1x128xf32> -> vector<2x128xf32>
      %c0_78 = arith.constant 0 : index
      %c0_79 = arith.constant 0 : index
      %194 = vector.load %arg15[%c0_78, %c0_79] : memref<1x128xf32, #tpu.memory_space<vmem>>, vector<1x128xf32>
      %c0_80 = arith.constant 0 : index
      %c0_81 = arith.constant 0 : index
      %195 = vector.load %arg16[%c0_80, %c0_81] : memref<1x128xf32, #tpu.memory_space<vmem>>, vector<1x128xf32>
      %cst_82 = arith.constant dense<0.000000e+00> : vector<2xf32>
      %196 = vector.multi_reduction <add>, %193, %cst_82 [1] : vector<2x128xf32> to vector<2xf32>
      %197 = vector.shape_cast %196 : vector<2xf32> to vector<2x1xf32>
      %cst_83 = arith.constant 1.280000e+02 : f32
      %198 = vector.broadcast %cst_83 : f32 to vector<2x1xf32>
      %199 = arith.divf %197, %198 : vector<2x1xf32>
      %200 = vector.broadcast %199 : vector<2x1xf32> to vector<2x128xf32>
      %201 = arith.subf %193, %200 : vector<2x128xf32>
      %202 = arith.mulf %201, %201 : vector<2x128xf32>
      %cst_84 = arith.constant dense<0.000000e+00> : vector<2xf32>
      %203 = vector.multi_reduction <add>, %202, %cst_84 [1] : vector<2x128xf32> to vector<2xf32>
      %204 = vector.shape_cast %203 : vector<2xf32> to vector<2x1xf32>
      %cst_85 = arith.constant 1.280000e+02 : f32
      %205 = vector.broadcast %cst_85 : f32 to vector<2x1xf32>
      %206 = arith.divf %204, %205 : vector<2x1xf32>
      %cst_86 = arith.constant 9.99999974E-6 : f32
      %207 = vector.broadcast %cst_86 : f32 to vector<2x1xf32>
      %208 = arith.addf %206, %207 : vector<2x1xf32>
      %209 = math.rsqrt %208 : vector<2x1xf32>
      %210 = vector.broadcast %209 : vector<2x1xf32> to vector<2x128xf32>
      %211 = arith.mulf %201, %210 : vector<2x128xf32>
      %212 = vector.broadcast %194 : vector<1x128xf32> to vector<2x128xf32>
      %213 = arith.mulf %211, %212 : vector<2x128xf32>
      %214 = vector.broadcast %195 : vector<1x128xf32> to vector<2x128xf32>
      %215 = arith.addf %213, %214 : vector<2x128xf32>
      %c0_87 = arith.constant 0 : index
      %c0_88 = arith.constant 0 : index
      %216 = vector.load %arg17[%c0_87, %c0_88] : memref<128x128xbf16, #tpu.memory_space<vmem>>, vector<128x128xbf16>
      %217 = arith.truncf %215 : vector<2x128xf32> to vector<2x128xbf16>
      %cst_89 = arith.constant dense<0.000000e+00> : vector<2x128xf32>
      %218 = tpu.matmul %217, %216, %cst_89 {dimension_numbers = #tpu.dot_dimension_numbers<[1], [0], [0], [1], [0, 0, 1, 1], [], []>} : vector<2x128xbf16>, vector<128x128xbf16>, vector<2x128xf32> -> vector<2x128xf32>
      %219 = arith.truncf %218 : vector<2x128xf32> to vector<2x128xbf16>
      %c0_90 = arith.constant 0 : index
      %c0_91 = arith.constant 0 : index
      %220 = vector.load %arg18[%c0_90, %c0_91] : memref<2x128xbf16, #tpu.memory_space<vmem>>, vector<2x128xbf16>
      tpu.vector_store %arg18[%c0_90, %c0_91], %219 {strides = array<i32>} : memref<2x128xbf16, #tpu.memory_space<vmem>>, vector<2x128xbf16>,
    } else {
    }
    return
  }
  func.func @transform_0(%arg0: i32) -> (i32, i32) {
    %c0_i32 = arith.constant 0 : i32
    %c0_i32_0 = arith.constant 0 : i32
    %c0_i32_1 = arith.constant 0 : i32
    return %c0_i32, %c0_i32_0 : i32, i32
  }
  func.func @transform_1(%arg0: i32) -> (i32, i32) {
    %c0_i32 = arith.constant 0 : i32
    %c0_i32_0 = arith.constant 0 : i32
    %c0_i32_1 = arith.constant 0 : i32
    return %c0_i32, %c0_i32_0 : i32, i32
  }
  func.func @transform_2(%arg0: i32) -> (i32, i32, i32) {
    %c0_i32 = arith.constant 0 : i32
    %c0_i32_0 = arith.constant 0 : i32
    %c0_i32_1 = arith.constant 0 : i32
    return %arg0, %c0_i32, %c0_i32_0 : i32, i32, i32
  }
  func.func @transform_3(%arg0: i32) -> (i32, i32, i32) {
    %c0_i32 = arith.constant 0 : i32
    %c0_i32_0 = arith.constant 0 : i32
    %c0_i32_1 = arith.constant 0 : i32
    return %arg0, %c0_i32, %c0_i32_0 : i32, i32, i32
  }
  func.func @transform_4(%arg0: i32) -> (i32, i32, i32) {
    %c0_i32 = arith.constant 0 : i32
    %c0_i32_0 = arith.constant 0 : i32
    %c0_i32_1 = arith.constant 0 : i32
    return %arg0, %c0_i32, %c0_i32_0 : i32, i32, i32
  }
  func.func @transform_5(%arg0: i32) -> (i32, i32, i32) {
    %c0_i32 = arith.constant 0 : i32
    %c0_i32_0 = arith.constant 0 : i32
    %c0_i32_1 = arith.constant 0 : i32
    return %arg0, %c0_i32, %c0_i32_0 : i32, i32, i32
  }
  func.func @transform_6(%arg0: i32) -> (i32, i32, i32) {
    %c0_i32 = arith.constant 0 : i32
    %c0_i32_0 = arith.constant 0 : i32
    %c0_i32_1 = arith.constant 0 : i32
    return %arg0, %c0_i32, %c0_i32_0 : i32, i32, i32
  }
  func.func @transform_7(%arg0: i32) -> (i32, i32, i32) {
    %c0_i32 = arith.constant 0 : i32
    %c0_i32_0 = arith.constant 0 : i32
    %c0_i32_1 = arith.constant 0 : i32
    return %arg0, %c0_i32, %c0_i32_0 : i32, i32, i32
  }
  func.func @transform_8(%arg0: i32) -> (i32, i32, i32) {
    %c0_i32 = arith.constant 0 : i32
    %c0_i32_0 = arith.constant 0 : i32
    %c0_i32_1 = arith.constant 0 : i32
    return %arg0, %c0_i32, %c0_i32_0 : i32, i32, i32
  }
  func.func @transform_9(%arg0: i32) -> (i32, i32, i32) {
    %c0_i32 = arith.constant 0 : i32
    %c0_i32_0 = arith.constant 0 : i32
    %c0_i32_1 = arith.constant 0 : i32
    return %arg0, %c0_i32, %c0_i32_0 : i32, i32, i32
  }
  func.func @transform_10(%arg0: i32) -> (i32, i32, i32) {
    %c0_i32 = arith.constant 0 : i32
    %c0_i32_0 = arith.constant 0 : i32
    %c0_i32_1 = arith.constant 0 : i32
    return %arg0, %c0_i32, %c0_i32_0 : i32, i32, i32
  }
  func.func @transform_11(%arg0: i32) -> (i32, i32, i32) {
    %c0_i32 = arith.constant 0 : i32
    %c0_i32_0 = arith.constant 0 : i32
    %c0_i32_1 = arith.constant 0 : i32
    return %arg0, %c0_i32, %c0_i32_0 : i32, i32, i32
  }
  func.func @transform_12(%arg0: i32) -> (i32, i32, i32) {
    %c0_i32 = arith.constant 0 : i32
    %c0_i32_0 = arith.constant 0 : i32
    %c0_i32_1 = arith.constant 0 : i32
    return %arg0, %c0_i32, %c0_i32_0 : i32, i32, i32
  }
  func.func @transform_13(%arg0: i32) -> (i32, i32, i32) {
    %c0_i32 = arith.constant 0 : i32
    %c0_i32_0 = arith.constant 0 : i32
    %c0_i32_1 = arith.constant 0 : i32
    return %arg0, %c0_i32, %c0_i32_0 : i32, i32, i32
  }
  func.func @transform_14(%arg0: i32) -> (i32, i32) {
    %c0_i32 = arith.constant 0 : i32
    %c0_i32_0 = arith.constant 0 : i32
    %c0_i32_1 = arith.constant 0 : i32
    return %c0_i32, %c0_i32_0 : i32, i32
  }
  func.func @transform_15(%arg0: i32) -> (i32, i32) {
    %c0_i32 = arith.constant 0 : i32
    %c0_i32_0 = arith.constant 0 : i32
    %c0_i32_1 = arith.constant 0 : i32
    return %c0_i32, %c0_i32_0 : i32, i32
  }
  func.func @transform_16(%arg0: i32) -> (i32, i32) {
    %c0_i32 = arith.constant 0 : i32
    %c0_i32_0 = arith.constant 0 : i32
    %c0_i32_1 = arith.constant 0 : i32
    return %c0_i32, %c0_i32_0 : i32, i32
  }
  func.func @transform_17(%arg0: i32) -> (i32, i32) {
    %c0_i32 = arith.constant 0 : i32
    %c0_i32_0 = arith.constant 0 : i32
    %c0_i32_1 = arith.constant 0 : i32
    return %c0_i32, %c0_i32_0 : i32, i32
  }
}

module attributes {stable_mosaic.version = 11 : i64} {
  func.func @_enc_stack_kernel(%arg0: i32, %arg1: memref<2x128xbf16, #tpu.memory_space<vmem>>, %arg2: memref<1x128x384xbf16, #tpu.memory_space<vmem>>, %arg3: memref<1x1x384xf32, #tpu.memory_space<vmem>>, %arg4: memref<1x128x128xbf16, #tpu.memory_space<vmem>>, %arg5: memref<1x1x128xf32, #tpu.memory_space<vmem>>, %arg6: memref<1x1x128xf32, #tpu.memory_space<vmem>>, %arg7: memref<1x1x128xf32, #tpu.memory_space<vmem>>, %arg8: memref<1x128x128xbf16, #tpu.memory_space<vmem>>, %arg9: memref<1x1x128xf32, #tpu.memory_space<vmem>>, %arg10: memref<1x128x128xbf16, #tpu.memory_space<vmem>>, %arg11: memref<1x1x128xf32, #tpu.memory_space<vmem>>, %arg12: memref<1x1x128xf32, #tpu.memory_space<vmem>>, %arg13: memref<1x1x128xf32, #tpu.memory_space<vmem>>, %arg14: memref<1x128xf32, #tpu.memory_space<vmem>>, %arg15: memref<1x128xf32, #tpu.memory_space<vmem>>, %arg16: memref<2x128xbf16, #tpu.memory_space<vmem>>, %arg17: memref<2x128xf32, #tpu.memory_space<vmem>>) attributes {dimension_semantics = [#tpu.dimension_semantics<arbitrary>], iteration_bounds = array<i64: 4>, scalar_prefetch = 0 : i64, scratch_operands = 1 : i64, tpu.core_type = #tpu.core_type<tc>, window_params = [{pipeline_mode = #tpu.pipeline_mode<synchronous>, transform_indices = @transform_0, window_bounds = array<i64: 2, 128>}, {transform_indices = @transform_1, window_bounds = array<i64: 1, 128, 384>}, {transform_indices = @transform_2, window_bounds = array<i64: 1, 1, 384>}, {transform_indices = @transform_3, window_bounds = array<i64: 1, 128, 128>}, {transform_indices = @transform_4, window_bounds = array<i64: 1, 1, 128>}, {transform_indices = @transform_5, window_bounds = array<i64: 1, 1, 128>}, {transform_indices = @transform_6, window_bounds = array<i64: 1, 1, 128>}, {transform_indices = @transform_7, window_bounds = array<i64: 1, 128, 128>}, {transform_indices = @transform_8, window_bounds = array<i64: 1, 1, 128>}, {transform_indices = @transform_9, window_bounds = array<i64: 1, 128, 128>}, {transform_indices = @transform_10, window_bounds = array<i64: 1, 1, 128>}, {transform_indices = @transform_11, window_bounds = array<i64: 1, 1, 128>}, {transform_indices = @transform_12, window_bounds = array<i64: 1, 1, 128>}, {pipeline_mode = #tpu.pipeline_mode<synchronous>, transform_indices = @transform_13, window_bounds = array<i64: 1, 128>}, {pipeline_mode = #tpu.pipeline_mode<synchronous>, transform_indices = @transform_14, window_bounds = array<i64: 1, 128>}, {pipeline_mode = #tpu.pipeline_mode<synchronous>, transform_indices = @transform_15, window_bounds = array<i64: 2, 128>}]} {
    %c0_i32 = arith.constant 0 : i32
    %0 = arith.cmpi eq, %arg0, %c0_i32 : i32
    %1 = arith.extui %0 : i1 to i32
    %c0_i32_0 = arith.constant 0 : i32
    %2 = arith.cmpi ne, %1, %c0_i32_0 : i32
    scf.if %2 {
      %c0_95 = arith.constant 0 : index
      %c0_96 = arith.constant 0 : index
      %264 = vector.load %arg1[%c0_95, %c0_96] : memref<2x128xbf16, #tpu.memory_space<vmem>>, vector<2x128xbf16>
      %265 = arith.extf %264 : vector<2x128xbf16> to vector<2x128xf32>
      %c0_97 = arith.constant 0 : index
      %c0_98 = arith.constant 0 : index
      %266 = vector.load %arg17[%c0_97, %c0_98] : memref<2x128xf32, #tpu.memory_space<vmem>>, vector<2x128xf32>
      tpu.vector_store %arg17[%c0_97, %c0_98], %265 {strides = array<i32>} : memref<2x128xf32, #tpu.memory_space<vmem>>, vector<2x128xf32>,
    } else {
    }
    %c0 = arith.constant 0 : index
    %c0_1 = arith.constant 0 : index
    %3 = vector.load %arg17[%c0, %c0_1] : memref<2x128xf32, #tpu.memory_space<vmem>>, vector<2x128xf32>
    %c0_2 = arith.constant 0 : index
    %c0_3 = arith.constant 0 : index
    %c0_4 = arith.constant 0 : index
    %4 = vector.load %arg2[%c0_2, %c0_3, %c0_4] : memref<1x128x384xbf16, #tpu.memory_space<vmem>>, vector<1x128x384xbf16>
    %5 = vector.shape_cast %4 : vector<1x128x384xbf16> to vector<128x384xbf16>
    %6 = arith.truncf %3 : vector<2x128xf32> to vector<2x128xbf16>
    %cst = arith.constant dense<0.000000e+00> : vector<2x384xf32>
    %7 = tpu.matmul %6, %5, %cst {dimension_numbers = #tpu.dot_dimension_numbers<[1], [0], [0], [1], [0, 0, 1, 1], [], []>} : vector<2x128xbf16>, vector<128x384xbf16>, vector<2x384xf32> -> vector<2x384xf32>
    %c0_5 = arith.constant 0 : index
    %c0_6 = arith.constant 0 : index
    %c0_7 = arith.constant 0 : index
    %8 = vector.load %arg3[%c0_5, %c0_6, %c0_7] : memref<1x1x384xf32, #tpu.memory_space<vmem>>, vector<1x1x384xf32>
    %9 = vector.shape_cast %8 : vector<1x1x384xf32> to vector<1x384xf32>
    %10 = vector.broadcast %9 : vector<1x384xf32> to vector<2x384xf32>
    %11 = arith.addf %7, %10 : vector<2x384xf32>
    %12 = vector.extract_strided_slice %11 {offsets = [0, 0], sizes = [2, 128], strides = [1, 1]} : vector<2x384xf32> to vector<2x128xf32>
    %13 = vector.extract_strided_slice %11 {offsets = [0, 128], sizes = [2, 128], strides = [1, 1]} : vector<2x384xf32> to vector<2x128xf32>
    %14 = vector.extract_strided_slice %11 {offsets = [0, 256], sizes = [2, 128], strides = [1, 1]} : vector<2x384xf32> to vector<2x128xf32>
    %c0_8 = arith.constant 0 : index
    %c0_9 = arith.constant 0 : index
    %c0_10 = arith.constant 0 : index
    %15 = vector.load %arg5[%c0_8, %c0_9, %c0_10] : memref<1x1x128xf32, #tpu.memory_space<vmem>>, vector<1x1x128xf32>
    %16 = vector.shape_cast %15 : vector<1x1x128xf32> to vector<1x128xf32>
    %17 = vector.extract_strided_slice %12 {offsets = [0, 0], sizes = [2, 16], strides = [1, 1]} : vector<2x128xf32> to vector<2x16xf32>
    %cst_11 = arith.constant 2.500000e-01 : f32
    %18 = vector.broadcast %cst_11 : f32 to vector<2x16xf32>
    %19 = arith.mulf %17, %18 : vector<2x16xf32>
    %20 = arith.truncf %19 : vector<2x16xf32> to vector<2x16xbf16>
    %21 = vector.extract_strided_slice %13 {offsets = [0, 0], sizes = [2, 16], strides = [1, 1]} : vector<2x128xf32> to vector<2x16xf32>
    %22 = arith.truncf %21 : vector<2x16xf32> to vector<2x16xbf16>
    %23 = vector.extract_strided_slice %14 {offsets = [0, 0], sizes = [2, 16], strides = [1, 1]} : vector<2x128xf32> to vector<2x16xf32>
    %24 = arith.truncf %23 : vector<2x16xf32> to vector<2x16xbf16>
    %cst_12 = arith.constant dense<0.000000e+00> : vector<2x2xf32>
    %25 = tpu.matmul %20, %22, %cst_12 {dimension_numbers = #tpu.dot_dimension_numbers<[1], [1], [0], [0], [0, 0, 1, 0], [], []>} : vector<2x16xbf16>, vector<2x16xbf16>, vector<2x2xf32> -> vector<2x2xf32>
    %cst_13 = arith.constant dense<0xFF800000> : vector<2xf32>
    %26 = vector.multi_reduction <maximumf>, %25, %cst_13 [1] : vector<2x2xf32> to vector<2xf32>
    %27 = vector.shape_cast %26 : vector<2xf32> to vector<2x1xf32>
    %28 = vector.broadcast %27 : vector<2x1xf32> to vector<2x2xf32>
    %29 = arith.subf %25, %28 : vector<2x2xf32>
    %30 = math.exp %29 : vector<2x2xf32>
    %cst_14 = arith.constant dense<0.000000e+00> : vector<2xf32>
    %31 = vector.multi_reduction <add>, %30, %cst_14 [1] : vector<2x2xf32> to vector<2xf32>
    %32 = vector.shape_cast %31 : vector<2xf32> to vector<2x1xf32>
    %33 = tpu.reciprocal %32 {approx = true} : vector<2x1xf32> -> vector<2x1xf32>
    %34 = vector.broadcast %33 : vector<2x1xf32> to vector<2x2xf32>
    %35 = arith.mulf %30, %34 : vector<2x2xf32>
    %36 = arith.truncf %35 : vector<2x2xf32> to vector<2x2xbf16>
    %cst_15 = arith.constant dense<0.000000e+00> : vector<2x16xf32>
    %37 = tpu.matmul %36, %24, %cst_15 {dimension_numbers = #tpu.dot_dimension_numbers<[1], [0], [0], [1], [0, 0, 1, 1], [], []>} : vector<2x2xbf16>, vector<2x16xbf16>, vector<2x16xf32> -> vector<2x16xf32>
    %38 = vector.extract_strided_slice %12 {offsets = [0, 16], sizes = [2, 16], strides = [1, 1]} : vector<2x128xf32> to vector<2x16xf32>
    %cst_16 = arith.constant 2.500000e-01 : f32
    %39 = vector.broadcast %cst_16 : f32 to vector<2x16xf32>
    %40 = arith.mulf %38, %39 : vector<2x16xf32>
    %41 = arith.truncf %40 : vector<2x16xf32> to vector<2x16xbf16>
    %42 = vector.extract_strided_slice %13 {offsets = [0, 16], sizes = [2, 16], strides = [1, 1]} : vector<2x128xf32> to vector<2x16xf32>
    %43 = arith.truncf %42 : vector<2x16xf32> to vector<2x16xbf16>
    %44 = vector.extract_strided_slice %14 {offsets = [0, 16], sizes = [2, 16], strides = [1, 1]} : vector<2x128xf32> to vector<2x16xf32>
    %45 = arith.truncf %44 : vector<2x16xf32> to vector<2x16xbf16>
    %cst_17 = arith.constant dense<0.000000e+00> : vector<2x2xf32>
    %46 = tpu.matmul %41, %43, %cst_17 {dimension_numbers = #tpu.dot_dimension_numbers<[1], [1], [0], [0], [0, 0, 1, 0], [], []>} : vector<2x16xbf16>, vector<2x16xbf16>, vector<2x2xf32> -> vector<2x2xf32>
    %cst_18 = arith.constant dense<0xFF800000> : vector<2xf32>
    %47 = vector.multi_reduction <maximumf>, %46, %cst_18 [1] : vector<2x2xf32> to vector<2xf32>
    %48 = vector.shape_cast %47 : vector<2xf32> to vector<2x1xf32>
    %49 = vector.broadcast %48 : vector<2x1xf32> to vector<2x2xf32>
    %50 = arith.subf %46, %49 : vector<2x2xf32>
    %51 = math.exp %50 : vector<2x2xf32>
    %cst_19 = arith.constant dense<0.000000e+00> : vector<2xf32>
    %52 = vector.multi_reduction <add>, %51, %cst_19 [1] : vector<2x2xf32> to vector<2xf32>
    %53 = vector.shape_cast %52 : vector<2xf32> to vector<2x1xf32>
    %54 = tpu.reciprocal %53 {approx = true} : vector<2x1xf32> -> vector<2x1xf32>
    %55 = vector.broadcast %54 : vector<2x1xf32> to vector<2x2xf32>
    %56 = arith.mulf %51, %55 : vector<2x2xf32>
    %57 = arith.truncf %56 : vector<2x2xf32> to vector<2x2xbf16>
    %cst_20 = arith.constant dense<0.000000e+00> : vector<2x16xf32>
    %58 = tpu.matmul %57, %45, %cst_20 {dimension_numbers = #tpu.dot_dimension_numbers<[1], [0], [0], [1], [0, 0, 1, 1], [], []>} : vector<2x2xbf16>, vector<2x16xbf16>, vector<2x16xf32> -> vector<2x16xf32>
    %59 = vector.extract_strided_slice %12 {offsets = [0, 32], sizes = [2, 16], strides = [1, 1]} : vector<2x128xf32> to vector<2x16xf32>
    %cst_21 = arith.constant 2.500000e-01 : f32
    %60 = vector.broadcast %cst_21 : f32 to vector<2x16xf32>
    %61 = arith.mulf %59, %60 : vector<2x16xf32>
    %62 = arith.truncf %61 : vector<2x16xf32> to vector<2x16xbf16>
    %63 = vector.extract_strided_slice %13 {offsets = [0, 32], sizes = [2, 16], strides = [1, 1]} : vector<2x128xf32> to vector<2x16xf32>
    %64 = arith.truncf %63 : vector<2x16xf32> to vector<2x16xbf16>
    %65 = vector.extract_strided_slice %14 {offsets = [0, 32], sizes = [2, 16], strides = [1, 1]} : vector<2x128xf32> to vector<2x16xf32>
    %66 = arith.truncf %65 : vector<2x16xf32> to vector<2x16xbf16>
    %cst_22 = arith.constant dense<0.000000e+00> : vector<2x2xf32>
    %67 = tpu.matmul %62, %64, %cst_22 {dimension_numbers = #tpu.dot_dimension_numbers<[1], [1], [0], [0], [0, 0, 1, 0], [], []>} : vector<2x16xbf16>, vector<2x16xbf16>, vector<2x2xf32> -> vector<2x2xf32>
    %cst_23 = arith.constant dense<0xFF800000> : vector<2xf32>
    %68 = vector.multi_reduction <maximumf>, %67, %cst_23 [1] : vector<2x2xf32> to vector<2xf32>
    %69 = vector.shape_cast %68 : vector<2xf32> to vector<2x1xf32>
    %70 = vector.broadcast %69 : vector<2x1xf32> to vector<2x2xf32>
    %71 = arith.subf %67, %70 : vector<2x2xf32>
    %72 = math.exp %71 : vector<2x2xf32>
    %cst_24 = arith.constant dense<0.000000e+00> : vector<2xf32>
    %73 = vector.multi_reduction <add>, %72, %cst_24 [1] : vector<2x2xf32> to vector<2xf32>
    %74 = vector.shape_cast %73 : vector<2xf32> to vector<2x1xf32>
    %75 = tpu.reciprocal %74 {approx = true} : vector<2x1xf32> -> vector<2x1xf32>
    %76 = vector.broadcast %75 : vector<2x1xf32> to vector<2x2xf32>
    %77 = arith.mulf %72, %76 : vector<2x2xf32>
    %78 = arith.truncf %77 : vector<2x2xf32> to vector<2x2xbf16>
    %cst_25 = arith.constant dense<0.000000e+00> : vector<2x16xf32>
    %79 = tpu.matmul %78, %66, %cst_25 {dimension_numbers = #tpu.dot_dimension_numbers<[1], [0], [0], [1], [0, 0, 1, 1], [], []>} : vector<2x2xbf16>, vector<2x16xbf16>, vector<2x16xf32> -> vector<2x16xf32>
    %80 = vector.extract_strided_slice %12 {offsets = [0, 48], sizes = [2, 16], strides = [1, 1]} : vector<2x128xf32> to vector<2x16xf32>
    %cst_26 = arith.constant 2.500000e-01 : f32
    %81 = vector.broadcast %cst_26 : f32 to vector<2x16xf32>
    %82 = arith.mulf %80, %81 : vector<2x16xf32>
    %83 = arith.truncf %82 : vector<2x16xf32> to vector<2x16xbf16>
    %84 = vector.extract_strided_slice %13 {offsets = [0, 48], sizes = [2, 16], strides = [1, 1]} : vector<2x128xf32> to vector<2x16xf32>
    %85 = arith.truncf %84 : vector<2x16xf32> to vector<2x16xbf16>
    %86 = vector.extract_strided_slice %14 {offsets = [0, 48], sizes = [2, 16], strides = [1, 1]} : vector<2x128xf32> to vector<2x16xf32>
    %87 = arith.truncf %86 : vector<2x16xf32> to vector<2x16xbf16>
    %cst_27 = arith.constant dense<0.000000e+00> : vector<2x2xf32>
    %88 = tpu.matmul %83, %85, %cst_27 {dimension_numbers = #tpu.dot_dimension_numbers<[1], [1], [0], [0], [0, 0, 1, 0], [], []>} : vector<2x16xbf16>, vector<2x16xbf16>, vector<2x2xf32> -> vector<2x2xf32>
    %cst_28 = arith.constant dense<0xFF800000> : vector<2xf32>
    %89 = vector.multi_reduction <maximumf>, %88, %cst_28 [1] : vector<2x2xf32> to vector<2xf32>
    %90 = vector.shape_cast %89 : vector<2xf32> to vector<2x1xf32>
    %91 = vector.broadcast %90 : vector<2x1xf32> to vector<2x2xf32>
    %92 = arith.subf %88, %91 : vector<2x2xf32>
    %93 = math.exp %92 : vector<2x2xf32>
    %cst_29 = arith.constant dense<0.000000e+00> : vector<2xf32>
    %94 = vector.multi_reduction <add>, %93, %cst_29 [1] : vector<2x2xf32> to vector<2xf32>
    %95 = vector.shape_cast %94 : vector<2xf32> to vector<2x1xf32>
    %96 = tpu.reciprocal %95 {approx = true} : vector<2x1xf32> -> vector<2x1xf32>
    %97 = vector.broadcast %96 : vector<2x1xf32> to vector<2x2xf32>
    %98 = arith.mulf %93, %97 : vector<2x2xf32>
    %99 = arith.truncf %98 : vector<2x2xf32> to vector<2x2xbf16>
    %cst_30 = arith.constant dense<0.000000e+00> : vector<2x16xf32>
    %100 = tpu.matmul %99, %87, %cst_30 {dimension_numbers = #tpu.dot_dimension_numbers<[1], [0], [0], [1], [0, 0, 1, 1], [], []>} : vector<2x2xbf16>, vector<2x16xbf16>, vector<2x16xf32> -> vector<2x16xf32>
    %101 = vector.extract_strided_slice %12 {offsets = [0, 64], sizes = [2, 16], strides = [1, 1]} : vector<2x128xf32> to vector<2x16xf32>
    %cst_31 = arith.constant 2.500000e-01 : f32
    %102 = vector.broadcast %cst_31 : f32 to vector<2x16xf32>
    %103 = arith.mulf %101, %102 : vector<2x16xf32>
    %104 = arith.truncf %103 : vector<2x16xf32> to vector<2x16xbf16>
    %105 = vector.extract_strided_slice %13 {offsets = [0, 64], sizes = [2, 16], strides = [1, 1]} : vector<2x128xf32> to vector<2x16xf32>
    %106 = arith.truncf %105 : vector<2x16xf32> to vector<2x16xbf16>
    %107 = vector.extract_strided_slice %14 {offsets = [0, 64], sizes = [2, 16], strides = [1, 1]} : vector<2x128xf32> to vector<2x16xf32>
    %108 = arith.truncf %107 : vector<2x16xf32> to vector<2x16xbf16>
    %cst_32 = arith.constant dense<0.000000e+00> : vector<2x2xf32>
    %109 = tpu.matmul %104, %106, %cst_32 {dimension_numbers = #tpu.dot_dimension_numbers<[1], [1], [0], [0], [0, 0, 1, 0], [], []>} : vector<2x16xbf16>, vector<2x16xbf16>, vector<2x2xf32> -> vector<2x2xf32>
    %cst_33 = arith.constant dense<0xFF800000> : vector<2xf32>
    %110 = vector.multi_reduction <maximumf>, %109, %cst_33 [1] : vector<2x2xf32> to vector<2xf32>
    %111 = vector.shape_cast %110 : vector<2xf32> to vector<2x1xf32>
    %112 = vector.broadcast %111 : vector<2x1xf32> to vector<2x2xf32>
    %113 = arith.subf %109, %112 : vector<2x2xf32>
    %114 = math.exp %113 : vector<2x2xf32>
    %cst_34 = arith.constant dense<0.000000e+00> : vector<2xf32>
    %115 = vector.multi_reduction <add>, %114, %cst_34 [1] : vector<2x2xf32> to vector<2xf32>
    %116 = vector.shape_cast %115 : vector<2xf32> to vector<2x1xf32>
    %117 = tpu.reciprocal %116 {approx = true} : vector<2x1xf32> -> vector<2x1xf32>
    %118 = vector.broadcast %117 : vector<2x1xf32> to vector<2x2xf32>
    %119 = arith.mulf %114, %118 : vector<2x2xf32>
    %120 = arith.truncf %119 : vector<2x2xf32> to vector<2x2xbf16>
    %cst_35 = arith.constant dense<0.000000e+00> : vector<2x16xf32>
    %121 = tpu.matmul %120, %108, %cst_35 {dimension_numbers = #tpu.dot_dimension_numbers<[1], [0], [0], [1], [0, 0, 1, 1], [], []>} : vector<2x2xbf16>, vector<2x16xbf16>, vector<2x16xf32> -> vector<2x16xf32>
    %122 = vector.extract_strided_slice %12 {offsets = [0, 80], sizes = [2, 16], strides = [1, 1]} : vector<2x128xf32> to vector<2x16xf32>
    %cst_36 = arith.constant 2.500000e-01 : f32
    %123 = vector.broadcast %cst_36 : f32 to vector<2x16xf32>
    %124 = arith.mulf %122, %123 : vector<2x16xf32>
    %125 = arith.truncf %124 : vector<2x16xf32> to vector<2x16xbf16>
    %126 = vector.extract_strided_slice %13 {offsets = [0, 80], sizes = [2, 16], strides = [1, 1]} : vector<2x128xf32> to vector<2x16xf32>
    %127 = arith.truncf %126 : vector<2x16xf32> to vector<2x16xbf16>
    %128 = vector.extract_strided_slice %14 {offsets = [0, 80], sizes = [2, 16], strides = [1, 1]} : vector<2x128xf32> to vector<2x16xf32>
    %129 = arith.truncf %128 : vector<2x16xf32> to vector<2x16xbf16>
    %cst_37 = arith.constant dense<0.000000e+00> : vector<2x2xf32>
    %130 = tpu.matmul %125, %127, %cst_37 {dimension_numbers = #tpu.dot_dimension_numbers<[1], [1], [0], [0], [0, 0, 1, 0], [], []>} : vector<2x16xbf16>, vector<2x16xbf16>, vector<2x2xf32> -> vector<2x2xf32>
    %cst_38 = arith.constant dense<0xFF800000> : vector<2xf32>
    %131 = vector.multi_reduction <maximumf>, %130, %cst_38 [1] : vector<2x2xf32> to vector<2xf32>
    %132 = vector.shape_cast %131 : vector<2xf32> to vector<2x1xf32>
    %133 = vector.broadcast %132 : vector<2x1xf32> to vector<2x2xf32>
    %134 = arith.subf %130, %133 : vector<2x2xf32>
    %135 = math.exp %134 : vector<2x2xf32>
    %cst_39 = arith.constant dense<0.000000e+00> : vector<2xf32>
    %136 = vector.multi_reduction <add>, %135, %cst_39 [1] : vector<2x2xf32> to vector<2xf32>
    %137 = vector.shape_cast %136 : vector<2xf32> to vector<2x1xf32>
    %138 = tpu.reciprocal %137 {approx = true} : vector<2x1xf32> -> vector<2x1xf32>
    %139 = vector.broadcast %138 : vector<2x1xf32> to vector<2x2xf32>
    %140 = arith.mulf %135, %139 : vector<2x2xf32>
    %141 = arith.truncf %140 : vector<2x2xf32> to vector<2x2xbf16>
    %cst_40 = arith.constant dense<0.000000e+00> : vector<2x16xf32>
    %142 = tpu.matmul %141, %129, %cst_40 {dimension_numbers = #tpu.dot_dimension_numbers<[1], [0], [0], [1], [0, 0, 1, 1], [], []>} : vector<2x2xbf16>, vector<2x16xbf16>, vector<2x16xf32> -> vector<2x16xf32>
    %143 = vector.extract_strided_slice %12 {offsets = [0, 96], sizes = [2, 16], strides = [1, 1]} : vector<2x128xf32> to vector<2x16xf32>
    %cst_41 = arith.constant 2.500000e-01 : f32
    %144 = vector.broadcast %cst_41 : f32 to vector<2x16xf32>
    %145 = arith.mulf %143, %144 : vector<2x16xf32>
    %146 = arith.truncf %145 : vector<2x16xf32> to vector<2x16xbf16>
    %147 = vector.extract_strided_slice %13 {offsets = [0, 96], sizes = [2, 16], strides = [1, 1]} : vector<2x128xf32> to vector<2x16xf32>
    %148 = arith.truncf %147 : vector<2x16xf32> to vector<2x16xbf16>
    %149 = vector.extract_strided_slice %14 {offsets = [0, 96], sizes = [2, 16], strides = [1, 1]} : vector<2x128xf32> to vector<2x16xf32>
    %150 = arith.truncf %149 : vector<2x16xf32> to vector<2x16xbf16>
    %cst_42 = arith.constant dense<0.000000e+00> : vector<2x2xf32>
    %151 = tpu.matmul %146, %148, %cst_42 {dimension_numbers = #tpu.dot_dimension_numbers<[1], [1], [0], [0], [0, 0, 1, 0], [], []>} : vector<2x16xbf16>, vector<2x16xbf16>, vector<2x2xf32> -> vector<2x2xf32>
    %cst_43 = arith.constant dense<0xFF800000> : vector<2xf32>
    %152 = vector.multi_reduction <maximumf>, %151, %cst_43 [1] : vector<2x2xf32> to vector<2xf32>
    %153 = vector.shape_cast %152 : vector<2xf32> to vector<2x1xf32>
    %154 = vector.broadcast %153 : vector<2x1xf32> to vector<2x2xf32>
    %155 = arith.subf %151, %154 : vector<2x2xf32>
    %156 = math.exp %155 : vector<2x2xf32>
    %cst_44 = arith.constant dense<0.000000e+00> : vector<2xf32>
    %157 = vector.multi_reduction <add>, %156, %cst_44 [1] : vector<2x2xf32> to vector<2xf32>
    %158 = vector.shape_cast %157 : vector<2xf32> to vector<2x1xf32>
    %159 = tpu.reciprocal %158 {approx = true} : vector<2x1xf32> -> vector<2x1xf32>
    %160 = vector.broadcast %159 : vector<2x1xf32> to vector<2x2xf32>
    %161 = arith.mulf %156, %160 : vector<2x2xf32>
    %162 = arith.truncf %161 : vector<2x2xf32> to vector<2x2xbf16>
    %cst_45 = arith.constant dense<0.000000e+00> : vector<2x16xf32>
    %163 = tpu.matmul %162, %150, %cst_45 {dimension_numbers = #tpu.dot_dimension_numbers<[1], [0], [0], [1], [0, 0, 1, 1], [], []>} : vector<2x2xbf16>, vector<2x16xbf16>, vector<2x16xf32> -> vector<2x16xf32>
    %164 = vector.extract_strided_slice %12 {offsets = [0, 112], sizes = [2, 16], strides = [1, 1]} : vector<2x128xf32> to vector<2x16xf32>
    %cst_46 = arith.constant 2.500000e-01 : f32
    %165 = vector.broadcast %cst_46 : f32 to vector<2x16xf32>
    %166 = arith.mulf %164, %165 : vector<2x16xf32>
    %167 = arith.truncf %166 : vector<2x16xf32> to vector<2x16xbf16>
    %168 = vector.extract_strided_slice %13 {offsets = [0, 112], sizes = [2, 16], strides = [1, 1]} : vector<2x128xf32> to vector<2x16xf32>
    %169 = arith.truncf %168 : vector<2x16xf32> to vector<2x16xbf16>
    %170 = vector.extract_strided_slice %14 {offsets = [0, 112], sizes = [2, 16], strides = [1, 1]} : vector<2x128xf32> to vector<2x16xf32>
    %171 = arith.truncf %170 : vector<2x16xf32> to vector<2x16xbf16>
    %cst_47 = arith.constant dense<0.000000e+00> : vector<2x2xf32>
    %172 = tpu.matmul %167, %169, %cst_47 {dimension_numbers = #tpu.dot_dimension_numbers<[1], [1], [0], [0], [0, 0, 1, 0], [], []>} : vector<2x16xbf16>, vector<2x16xbf16>, vector<2x2xf32> -> vector<2x2xf32>
    %cst_48 = arith.constant dense<0xFF800000> : vector<2xf32>
    %173 = vector.multi_reduction <maximumf>, %172, %cst_48 [1] : vector<2x2xf32> to vector<2xf32>
    %174 = vector.shape_cast %173 : vector<2xf32> to vector<2x1xf32>
    %175 = vector.broadcast %174 : vector<2x1xf32> to vector<2x2xf32>
    %176 = arith.subf %172, %175 : vector<2x2xf32>
    %177 = math.exp %176 : vector<2x2xf32>
    %cst_49 = arith.constant dense<0.000000e+00> : vector<2xf32>
    %178 = vector.multi_reduction <add>, %177, %cst_49 [1] : vector<2x2xf32> to vector<2xf32>
    %179 = vector.shape_cast %178 : vector<2xf32> to vector<2x1xf32>
    %180 = tpu.reciprocal %179 {approx = true} : vector<2x1xf32> -> vector<2x1xf32>
    %181 = vector.broadcast %180 : vector<2x1xf32> to vector<2x2xf32>
    %182 = arith.mulf %177, %181 : vector<2x2xf32>
    %183 = arith.truncf %182 : vector<2x2xf32> to vector<2x2xbf16>
    %cst_50 = arith.constant dense<0.000000e+00> : vector<2x16xf32>
    %184 = tpu.matmul %183, %171, %cst_50 {dimension_numbers = #tpu.dot_dimension_numbers<[1], [0], [0], [1], [0, 0, 1, 1], [], []>} : vector<2x2xbf16>, vector<2x16xbf16>, vector<2x16xf32> -> vector<2x16xf32>
    %185 = tpu.concatenate %37, %58, %79, %100, %121, %142, %163, %184 in 1 : vector<2x16xf32>, vector<2x16xf32>, vector<2x16xf32>, vector<2x16xf32>, vector<2x16xf32>, vector<2x16xf32>, vector<2x16xf32>, vector<2x16xf32> -> vector<2x128xf32>
    %186 = arith.truncf %185 : vector<2x128xf32> to vector<2x128xbf16>
    %c0_51 = arith.constant 0 : index
    %c0_52 = arith.constant 0 : index
    %c0_53 = arith.constant 0 : index
    %187 = vector.load %arg4[%c0_51, %c0_52, %c0_53] : memref<1x128x128xbf16, #tpu.memory_space<vmem>>, vector<1x128x128xbf16>
    %188 = vector.shape_cast %187 : vector<1x128x128xbf16> to vector<128x128xbf16>
    %cst_54 = arith.constant dense<0.000000e+00> : vector<2x128xf32>
    %189 = tpu.matmul %186, %188, %cst_54 {dimension_numbers = #tpu.dot_dimension_numbers<[1], [0], [0], [1], [0, 0, 1, 1], [], []>} : vector<2x128xbf16>, vector<128x128xbf16>, vector<2x128xf32> -> vector<2x128xf32>
    %190 = vector.broadcast %16 : vector<1x128xf32> to vector<2x128xf32>
    %191 = arith.addf %189, %190 : vector<2x128xf32>
    %192 = arith.addf %3, %191 : vector<2x128xf32>
    %c0_55 = arith.constant 0 : index
    %c0_56 = arith.constant 0 : index
    %c0_57 = arith.constant 0 : index
    %193 = vector.load %arg6[%c0_55, %c0_56, %c0_57] : memref<1x1x128xf32, #tpu.memory_space<vmem>>, vector<1x1x128xf32>
    %194 = vector.shape_cast %193 : vector<1x1x128xf32> to vector<1x128xf32>
    %c0_58 = arith.constant 0 : index
    %c0_59 = arith.constant 0 : index
    %c0_60 = arith.constant 0 : index
    %195 = vector.load %arg7[%c0_58, %c0_59, %c0_60] : memref<1x1x128xf32, #tpu.memory_space<vmem>>, vector<1x1x128xf32>
    %196 = vector.shape_cast %195 : vector<1x1x128xf32> to vector<1x128xf32>
    %cst_61 = arith.constant dense<0.000000e+00> : vector<2xf32>
    %197 = vector.multi_reduction <add>, %192, %cst_61 [1] : vector<2x128xf32> to vector<2xf32>
    %198 = vector.shape_cast %197 : vector<2xf32> to vector<2x1xf32>
    %cst_62 = arith.constant 1.280000e+02 : f32
    %199 = vector.broadcast %cst_62 : f32 to vector<2x1xf32>
    %200 = arith.divf %198, %199 : vector<2x1xf32>
    %201 = vector.broadcast %200 : vector<2x1xf32> to vector<2x128xf32>
    %202 = arith.subf %192, %201 : vector<2x128xf32>
    %203 = arith.mulf %202, %202 : vector<2x128xf32>
    %cst_63 = arith.constant dense<0.000000e+00> : vector<2xf32>
    %204 = vector.multi_reduction <add>, %203, %cst_63 [1] : vector<2x128xf32> to vector<2xf32>
    %205 = vector.shape_cast %204 : vector<2xf32> to vector<2x1xf32>
    %cst_64 = arith.constant 1.280000e+02 : f32
    %206 = vector.broadcast %cst_64 : f32 to vector<2x1xf32>
    %207 = arith.divf %205, %206 : vector<2x1xf32>
    %cst_65 = arith.constant 9.99999974E-6 : f32
    %208 = vector.broadcast %cst_65 : f32 to vector<2x1xf32>
    %209 = arith.addf %207, %208 : vector<2x1xf32>
    %210 = math.rsqrt %209 : vector<2x1xf32>
    %211 = vector.broadcast %210 : vector<2x1xf32> to vector<2x128xf32>
    %212 = arith.mulf %202, %211 : vector<2x128xf32>
    %213 = vector.broadcast %194 : vector<1x128xf32> to vector<2x128xf32>
    %214 = arith.mulf %212, %213 : vector<2x128xf32>
    %215 = vector.broadcast %196 : vector<1x128xf32> to vector<2x128xf32>
    %216 = arith.addf %214, %215 : vector<2x128xf32>
    %c0_66 = arith.constant 0 : index
    %c0_67 = arith.constant 0 : index
    %c0_68 = arith.constant 0 : index
    %217 = vector.load %arg8[%c0_66, %c0_67, %c0_68] : memref<1x128x128xbf16, #tpu.memory_space<vmem>>, vector<1x128x128xbf16>
    %218 = vector.shape_cast %217 : vector<1x128x128xbf16> to vector<128x128xbf16>
    %219 = arith.truncf %216 : vector<2x128xf32> to vector<2x128xbf16>
    %cst_69 = arith.constant dense<0.000000e+00> : vector<2x128xf32>
    %220 = tpu.matmul %219, %218, %cst_69 {dimension_numbers = #tpu.dot_dimension_numbers<[1], [0], [0], [1], [0, 0, 1, 1], [], []>} : vector<2x128xbf16>, vector<128x128xbf16>, vector<2x128xf32> -> vector<2x128xf32>
    %c0_70 = arith.constant 0 : index
    %c0_71 = arith.constant 0 : index
    %c0_72 = arith.constant 0 : index
    %221 = vector.load %arg9[%c0_70, %c0_71, %c0_72] : memref<1x1x128xf32, #tpu.memory_space<vmem>>, vector<1x1x128xf32>
    %222 = vector.shape_cast %221 : vector<1x1x128xf32> to vector<1x128xf32>
    %223 = vector.broadcast %222 : vector<1x128xf32> to vector<2x128xf32>
    %224 = arith.addf %220, %223 : vector<2x128xf32>
    %cst_73 = arith.constant 0.000000e+00 : f32
    %225 = vector.broadcast %cst_73 : f32 to vector<2x128xf32>
    %226 = arith.maximumf %224, %225 : vector<2x128xf32>
    %c0_74 = arith.constant 0 : index
    %c0_75 = arith.constant 0 : index
    %c0_76 = arith.constant 0 : index
    %227 = vector.load %arg10[%c0_74, %c0_75, %c0_76] : memref<1x128x128xbf16, #tpu.memory_space<vmem>>, vector<1x128x128xbf16>
    %228 = vector.shape_cast %227 : vector<1x128x128xbf16> to vector<128x128xbf16>
    %229 = arith.truncf %226 : vector<2x128xf32> to vector<2x128xbf16>
    %cst_77 = arith.constant dense<0.000000e+00> : vector<2x128xf32>
    %230 = tpu.matmul %229, %228, %cst_77 {dimension_numbers = #tpu.dot_dimension_numbers<[1], [0], [0], [1], [0, 0, 1, 1], [], []>} : vector<2x128xbf16>, vector<128x128xbf16>, vector<2x128xf32> -> vector<2x128xf32>
    %231 = arith.addf %216, %230 : vector<2x128xf32>
    %c0_78 = arith.constant 0 : index
    %c0_79 = arith.constant 0 : index
    %c0_80 = arith.constant 0 : index
    %232 = vector.load %arg11[%c0_78, %c0_79, %c0_80] : memref<1x1x128xf32, #tpu.memory_space<vmem>>, vector<1x1x128xf32>
    %233 = vector.shape_cast %232 : vector<1x1x128xf32> to vector<1x128xf32>
    %234 = vector.broadcast %233 : vector<1x128xf32> to vector<2x128xf32>
    %235 = arith.addf %231, %234 : vector<2x128xf32>
    %c0_81 = arith.constant 0 : index
    %c0_82 = arith.constant 0 : index
    %c0_83 = arith.constant 0 : index
    %236 = vector.load %arg12[%c0_81, %c0_82, %c0_83] : memref<1x1x128xf32, #tpu.memory_space<vmem>>, vector<1x1x128xf32>
    %237 = vector.shape_cast %236 : vector<1x1x128xf32> to vector<1x128xf32>
    %c0_84 = arith.constant 0 : index
    %c0_85 = arith.constant 0 : index
    %c0_86 = arith.constant 0 : index
    %238 = vector.load %arg13[%c0_84, %c0_85, %c0_86] : memref<1x1x128xf32, #tpu.memory_space<vmem>>, vector<1x1x128xf32>
    %239 = vector.shape_cast %238 : vector<1x1x128xf32> to vector<1x128xf32>
    %cst_87 = arith.constant dense<0.000000e+00> : vector<2xf32>
    %240 = vector.multi_reduction <add>, %235, %cst_87 [1] : vector<2x128xf32> to vector<2xf32>
    %241 = vector.shape_cast %240 : vector<2xf32> to vector<2x1xf32>
    %cst_88 = arith.constant 1.280000e+02 : f32
    %242 = vector.broadcast %cst_88 : f32 to vector<2x1xf32>
    %243 = arith.divf %241, %242 : vector<2x1xf32>
    %244 = vector.broadcast %243 : vector<2x1xf32> to vector<2x128xf32>
    %245 = arith.subf %235, %244 : vector<2x128xf32>
    %246 = arith.mulf %245, %245 : vector<2x128xf32>
    %cst_89 = arith.constant dense<0.000000e+00> : vector<2xf32>
    %247 = vector.multi_reduction <add>, %246, %cst_89 [1] : vector<2x128xf32> to vector<2xf32>
    %248 = vector.shape_cast %247 : vector<2xf32> to vector<2x1xf32>
    %cst_90 = arith.constant 1.280000e+02 : f32
    %249 = vector.broadcast %cst_90 : f32 to vector<2x1xf32>
    %250 = arith.divf %248, %249 : vector<2x1xf32>
    %cst_91 = arith.constant 9.99999974E-6 : f32
    %251 = vector.broadcast %cst_91 : f32 to vector<2x1xf32>
    %252 = arith.addf %250, %251 : vector<2x1xf32>
    %253 = math.rsqrt %252 : vector<2x1xf32>
    %254 = vector.broadcast %253 : vector<2x1xf32> to vector<2x128xf32>
    %255 = arith.mulf %245, %254 : vector<2x128xf32>
    %256 = vector.broadcast %237 : vector<1x128xf32> to vector<2x128xf32>
    %257 = arith.mulf %255, %256 : vector<2x128xf32>
    %258 = vector.broadcast %239 : vector<1x128xf32> to vector<2x128xf32>
    %259 = arith.addf %257, %258 : vector<2x128xf32>
    %c0_92 = arith.constant 0 : index
    %c0_93 = arith.constant 0 : index
    %260 = vector.load %arg17[%c0_92, %c0_93] : memref<2x128xf32, #tpu.memory_space<vmem>>, vector<2x128xf32>
    tpu.vector_store %arg17[%c0_92, %c0_93], %259 {strides = array<i32>} : memref<2x128xf32, #tpu.memory_space<vmem>>, vector<2x128xf32>,
    %c3_i32 = arith.constant 3 : i32
    %261 = arith.cmpi eq, %arg0, %c3_i32 : i32
    %262 = arith.extui %261 : i1 to i32
    %c0_i32_94 = arith.constant 0 : i32
    %263 = arith.cmpi ne, %262, %c0_i32_94 : i32
    scf.if %263 {
      %c0_95 = arith.constant 0 : index
      %c0_96 = arith.constant 0 : index
      %264 = vector.load %arg14[%c0_95, %c0_96] : memref<1x128xf32, #tpu.memory_space<vmem>>, vector<1x128xf32>
      %c0_97 = arith.constant 0 : index
      %c0_98 = arith.constant 0 : index
      %265 = vector.load %arg15[%c0_97, %c0_98] : memref<1x128xf32, #tpu.memory_space<vmem>>, vector<1x128xf32>
      %cst_99 = arith.constant dense<0.000000e+00> : vector<2xf32>
      %266 = vector.multi_reduction <add>, %259, %cst_99 [1] : vector<2x128xf32> to vector<2xf32>
      %267 = vector.shape_cast %266 : vector<2xf32> to vector<2x1xf32>
      %cst_100 = arith.constant 1.280000e+02 : f32
      %268 = vector.broadcast %cst_100 : f32 to vector<2x1xf32>
      %269 = arith.divf %267, %268 : vector<2x1xf32>
      %270 = vector.broadcast %269 : vector<2x1xf32> to vector<2x128xf32>
      %271 = arith.subf %259, %270 : vector<2x128xf32>
      %272 = arith.mulf %271, %271 : vector<2x128xf32>
      %cst_101 = arith.constant dense<0.000000e+00> : vector<2xf32>
      %273 = vector.multi_reduction <add>, %272, %cst_101 [1] : vector<2x128xf32> to vector<2xf32>
      %274 = vector.shape_cast %273 : vector<2xf32> to vector<2x1xf32>
      %cst_102 = arith.constant 1.280000e+02 : f32
      %275 = vector.broadcast %cst_102 : f32 to vector<2x1xf32>
      %276 = arith.divf %274, %275 : vector<2x1xf32>
      %cst_103 = arith.constant 9.99999974E-6 : f32
      %277 = vector.broadcast %cst_103 : f32 to vector<2x1xf32>
      %278 = arith.addf %276, %277 : vector<2x1xf32>
      %279 = math.rsqrt %278 : vector<2x1xf32>
      %280 = vector.broadcast %279 : vector<2x1xf32> to vector<2x128xf32>
      %281 = arith.mulf %271, %280 : vector<2x128xf32>
      %282 = vector.broadcast %264 : vector<1x128xf32> to vector<2x128xf32>
      %283 = arith.mulf %281, %282 : vector<2x128xf32>
      %284 = vector.broadcast %265 : vector<1x128xf32> to vector<2x128xf32>
      %285 = arith.addf %283, %284 : vector<2x128xf32>
      %286 = arith.truncf %285 : vector<2x128xf32> to vector<2x128xbf16>
      %c0_104 = arith.constant 0 : index
      %c0_105 = arith.constant 0 : index
      %287 = vector.load %arg16[%c0_104, %c0_105] : memref<2x128xbf16, #tpu.memory_space<vmem>>, vector<2x128xbf16>
      tpu.vector_store %arg16[%c0_104, %c0_105], %286 {strides = array<i32>} : memref<2x128xbf16, #tpu.memory_space<vmem>>, vector<2x128xbf16>,
    } else {
    }
    return
  }
  func.func @transform_0(%arg0: i32) -> (i32, i32) {
    %c0_i32 = arith.constant 0 : i32
    %c0_i32_0 = arith.constant 0 : i32
    %c0_i32_1 = arith.constant 0 : i32
    return %c0_i32, %c0_i32_0 : i32, i32
  }
  func.func @transform_1(%arg0: i32) -> (i32, i32, i32) {
    %c0_i32 = arith.constant 0 : i32
    %c0_i32_0 = arith.constant 0 : i32
    %c0_i32_1 = arith.constant 0 : i32
    return %arg0, %c0_i32, %c0_i32_0 : i32, i32, i32
  }
  func.func @transform_2(%arg0: i32) -> (i32, i32, i32) {
    %c0_i32 = arith.constant 0 : i32
    %c0_i32_0 = arith.constant 0 : i32
    %c0_i32_1 = arith.constant 0 : i32
    return %arg0, %c0_i32, %c0_i32_0 : i32, i32, i32
  }
  func.func @transform_3(%arg0: i32) -> (i32, i32, i32) {
    %c0_i32 = arith.constant 0 : i32
    %c0_i32_0 = arith.constant 0 : i32
    %c0_i32_1 = arith.constant 0 : i32
    return %arg0, %c0_i32, %c0_i32_0 : i32, i32, i32
  }
  func.func @transform_4(%arg0: i32) -> (i32, i32, i32) {
    %c0_i32 = arith.constant 0 : i32
    %c0_i32_0 = arith.constant 0 : i32
    %c0_i32_1 = arith.constant 0 : i32
    return %arg0, %c0_i32, %c0_i32_0 : i32, i32, i32
  }
  func.func @transform_5(%arg0: i32) -> (i32, i32, i32) {
    %c0_i32 = arith.constant 0 : i32
    %c0_i32_0 = arith.constant 0 : i32
    %c0_i32_1 = arith.constant 0 : i32
    return %arg0, %c0_i32, %c0_i32_0 : i32, i32, i32
  }
  func.func @transform_6(%arg0: i32) -> (i32, i32, i32) {
    %c0_i32 = arith.constant 0 : i32
    %c0_i32_0 = arith.constant 0 : i32
    %c0_i32_1 = arith.constant 0 : i32
    return %arg0, %c0_i32, %c0_i32_0 : i32, i32, i32
  }
  func.func @transform_7(%arg0: i32) -> (i32, i32, i32) {
    %c0_i32 = arith.constant 0 : i32
    %c0_i32_0 = arith.constant 0 : i32
    %c0_i32_1 = arith.constant 0 : i32
    return %arg0, %c0_i32, %c0_i32_0 : i32, i32, i32
  }
  func.func @transform_8(%arg0: i32) -> (i32, i32, i32) {
    %c0_i32 = arith.constant 0 : i32
    %c0_i32_0 = arith.constant 0 : i32
    %c0_i32_1 = arith.constant 0 : i32
    return %arg0, %c0_i32, %c0_i32_0 : i32, i32, i32
  }
  func.func @transform_9(%arg0: i32) -> (i32, i32, i32) {
    %c0_i32 = arith.constant 0 : i32
    %c0_i32_0 = arith.constant 0 : i32
    %c0_i32_1 = arith.constant 0 : i32
    return %arg0, %c0_i32, %c0_i32_0 : i32, i32, i32
  }
  func.func @transform_10(%arg0: i32) -> (i32, i32, i32) {
    %c0_i32 = arith.constant 0 : i32
    %c0_i32_0 = arith.constant 0 : i32
    %c0_i32_1 = arith.constant 0 : i32
    return %arg0, %c0_i32, %c0_i32_0 : i32, i32, i32
  }
  func.func @transform_11(%arg0: i32) -> (i32, i32, i32) {
    %c0_i32 = arith.constant 0 : i32
    %c0_i32_0 = arith.constant 0 : i32
    %c0_i32_1 = arith.constant 0 : i32
    return %arg0, %c0_i32, %c0_i32_0 : i32, i32, i32
  }
  func.func @transform_12(%arg0: i32) -> (i32, i32, i32) {
    %c0_i32 = arith.constant 0 : i32
    %c0_i32_0 = arith.constant 0 : i32
    %c0_i32_1 = arith.constant 0 : i32
    return %arg0, %c0_i32, %c0_i32_0 : i32, i32, i32
  }
  func.func @transform_13(%arg0: i32) -> (i32, i32) {
    %c0_i32 = arith.constant 0 : i32
    %c0_i32_0 = arith.constant 0 : i32
    %c0_i32_1 = arith.constant 0 : i32
    return %c0_i32, %c0_i32_0 : i32, i32
  }
  func.func @transform_14(%arg0: i32) -> (i32, i32) {
    %c0_i32 = arith.constant 0 : i32
    %c0_i32_0 = arith.constant 0 : i32
    %c0_i32_1 = arith.constant 0 : i32
    return %c0_i32, %c0_i32_0 : i32, i32
  }
  func.func @transform_15(%arg0: i32) -> (i32, i32) {
    %c0_i32 = arith.constant 0 : i32
    %c0_i32_0 = arith.constant 0 : i32
    %c0_i32_1 = arith.constant 0 : i32
    return %c0_i32, %c0_i32_0 : i32, i32
  }
}

module attributes {stable_mosaic.version = 11 : i64} {
  func.func @_dec_stack_kernel(%arg0: i32, %arg1: memref<8x128xf32, #tpu.memory_space<vmem>>, %arg2: memref<2x128xbf16, #tpu.memory_space<vmem>>, %arg3: memref<1x128x384xbf16, #tpu.memory_space<vmem>>, %arg4: memref<1x1x384xf32, #tpu.memory_space<vmem>>, %arg5: memref<1x128x128xbf16, #tpu.memory_space<vmem>>, %arg6: memref<1x1x128xf32, #tpu.memory_space<vmem>>, %arg7: memref<1x1x128xf32, #tpu.memory_space<vmem>>, %arg8: memref<1x1x128xf32, #tpu.memory_space<vmem>>, %arg9: memref<1x128x128xbf16, #tpu.memory_space<vmem>>, %arg10: memref<1x1x128xf32, #tpu.memory_space<vmem>>, %arg11: memref<1x128x256xbf16, #tpu.memory_space<vmem>>, %arg12: memref<1x1x256xf32, #tpu.memory_space<vmem>>, %arg13: memref<1x128x128xbf16, #tpu.memory_space<vmem>>, %arg14: memref<1x1x128xf32, #tpu.memory_space<vmem>>, %arg15: memref<1x1x128xf32, #tpu.memory_space<vmem>>, %arg16: memref<1x1x128xf32, #tpu.memory_space<vmem>>, %arg17: memref<1x128x128xbf16, #tpu.memory_space<vmem>>, %arg18: memref<1x1x128xf32, #tpu.memory_space<vmem>>, %arg19: memref<1x128x128xbf16, #tpu.memory_space<vmem>>, %arg20: memref<1x1x128xf32, #tpu.memory_space<vmem>>, %arg21: memref<1x1x128xf32, #tpu.memory_space<vmem>>, %arg22: memref<1x1x128xf32, #tpu.memory_space<vmem>>, %arg23: memref<1x128xf32, #tpu.memory_space<vmem>>, %arg24: memref<1x128xf32, #tpu.memory_space<vmem>>, %arg25: memref<8x128xbf16, #tpu.memory_space<vmem>>, %arg26: memref<8x128xf32, #tpu.memory_space<vmem>>) attributes {dimension_semantics = [#tpu.dimension_semantics<arbitrary>], iteration_bounds = array<i64: 4>, scalar_prefetch = 0 : i64, scratch_operands = 1 : i64, tpu.core_type = #tpu.core_type<tc>, window_params = [{pipeline_mode = #tpu.pipeline_mode<synchronous>, transform_indices = @transform_0, window_bounds = array<i64: 8, 128>}, {pipeline_mode = #tpu.pipeline_mode<synchronous>, transform_indices = @transform_1, window_bounds = array<i64: 2, 128>}, {transform_indices = @transform_2, window_bounds = array<i64: 1, 128, 384>}, {transform_indices = @transform_3, window_bounds = array<i64: 1, 1, 384>}, {transform_indices = @transform_4, window_bounds = array<i64: 1, 128, 128>}, {transform_indices = @transform_5, window_bounds = array<i64: 1, 1, 128>}, {transform_indices = @transform_6, window_bounds = array<i64: 1, 1, 128>}, {transform_indices = @transform_7, window_bounds = array<i64: 1, 1, 128>}, {transform_indices = @transform_8, window_bounds = array<i64: 1, 128, 128>}, {transform_indices = @transform_9, window_bounds = array<i64: 1, 1, 128>}, {transform_indices = @transform_10, window_bounds = array<i64: 1, 128, 256>}, {transform_indices = @transform_11, window_bounds = array<i64: 1, 1, 256>}, {transform_indices = @transform_12, window_bounds = array<i64: 1, 128, 128>}, {transform_indices = @transform_13, window_bounds = array<i64: 1, 1, 128>}, {transform_indices = @transform_14, window_bounds = array<i64: 1, 1, 128>}, {transform_indices = @transform_15, window_bounds = array<i64: 1, 1, 128>}, {transform_indices = @transform_16, window_bounds = array<i64: 1, 128, 128>}, {transform_indices = @transform_17, window_bounds = array<i64: 1, 1, 128>}, {transform_indices = @transform_18, window_bounds = array<i64: 1, 128, 128>}, {transform_indices = @transform_19, window_bounds = array<i64: 1, 1, 128>}, {transform_indices = @transform_20, window_bounds = array<i64: 1, 1, 128>}, {transform_indices = @transform_21, window_bounds = array<i64: 1, 1, 128>}, {pipeline_mode = #tpu.pipeline_mode<synchronous>, transform_indices = @transform_22, window_bounds = array<i64: 1, 128>}, {pipeline_mode = #tpu.pipeline_mode<synchronous>, transform_indices = @transform_23, window_bounds = array<i64: 1, 128>}, {pipeline_mode = #tpu.pipeline_mode<synchronous>, transform_indices = @transform_24, window_bounds = array<i64: 8, 128>}]} {
    %c0_i32 = arith.constant 0 : i32
    %0 = arith.cmpi eq, %arg0, %c0_i32 : i32
    %1 = arith.extui %0 : i1 to i32
    %c0_i32_0 = arith.constant 0 : i32
    %2 = arith.cmpi ne, %1, %c0_i32_0 : i32
    scf.if %2 {
      %c0_169 = arith.constant 0 : index
      %c0_170 = arith.constant 0 : index
      %486 = vector.load %arg1[%c0_169, %c0_170] : memref<8x128xf32, #tpu.memory_space<vmem>>, vector<8x128xf32>
      %c0_171 = arith.constant 0 : index
      %c0_172 = arith.constant 0 : index
      %487 = vector.load %arg26[%c0_171, %c0_172] : memref<8x128xf32, #tpu.memory_space<vmem>>, vector<8x128xf32>
      tpu.vector_store %arg26[%c0_171, %c0_172], %486 {strides = array<i32>} : memref<8x128xf32, #tpu.memory_space<vmem>>, vector<8x128xf32>,
    } else {
    }
    %c0 = arith.constant 0 : index
    %c0_1 = arith.constant 0 : index
    %3 = vector.load %arg26[%c0, %c0_1] : memref<8x128xf32, #tpu.memory_space<vmem>>, vector<8x128xf32>
    %c0_2 = arith.constant 0 : index
    %c0_3 = arith.constant 0 : index
    %4 = vector.load %arg2[%c0_2, %c0_3] : memref<2x128xbf16, #tpu.memory_space<vmem>>, vector<2x128xbf16>
    %5 = arith.extf %4 : vector<2x128xbf16> to vector<2x128xf32>
    %c0_4 = arith.constant 0 : index
    %c0_5 = arith.constant 0 : index
    %c0_6 = arith.constant 0 : index
    %6 = vector.load %arg3[%c0_4, %c0_5, %c0_6] : memref<1x128x384xbf16, #tpu.memory_space<vmem>>, vector<1x128x384xbf16>
    %7 = vector.shape_cast %6 : vector<1x128x384xbf16> to vector<128x384xbf16>
    %8 = arith.truncf %3 : vector<8x128xf32> to vector<8x128xbf16>
    %cst = arith.constant dense<0.000000e+00> : vector<8x384xf32>
    %9 = tpu.matmul %8, %7, %cst {dimension_numbers = #tpu.dot_dimension_numbers<[1], [0], [0], [1], [0, 0, 1, 1], [], []>} : vector<8x128xbf16>, vector<128x384xbf16>, vector<8x384xf32> -> vector<8x384xf32>
    %c0_7 = arith.constant 0 : index
    %c0_8 = arith.constant 0 : index
    %c0_9 = arith.constant 0 : index
    %10 = vector.load %arg4[%c0_7, %c0_8, %c0_9] : memref<1x1x384xf32, #tpu.memory_space<vmem>>, vector<1x1x384xf32>
    %11 = vector.shape_cast %10 : vector<1x1x384xf32> to vector<1x384xf32>
    %12 = vector.broadcast %11 : vector<1x384xf32> to vector<8x384xf32>
    %13 = arith.addf %9, %12 : vector<8x384xf32>
    %14 = vector.extract_strided_slice %13 {offsets = [0, 0], sizes = [8, 128], strides = [1, 1]} : vector<8x384xf32> to vector<8x128xf32>
    %15 = vector.extract_strided_slice %13 {offsets = [0, 128], sizes = [8, 128], strides = [1, 1]} : vector<8x384xf32> to vector<8x128xf32>
    %16 = vector.extract_strided_slice %13 {offsets = [0, 256], sizes = [8, 128], strides = [1, 1]} : vector<8x384xf32> to vector<8x128xf32>
    %c0_10 = arith.constant 0 : index
    %c0_11 = arith.constant 0 : index
    %c0_12 = arith.constant 0 : index
    %17 = vector.load %arg6[%c0_10, %c0_11, %c0_12] : memref<1x1x128xf32, #tpu.memory_space<vmem>>, vector<1x1x128xf32>
    %18 = vector.shape_cast %17 : vector<1x1x128xf32> to vector<1x128xf32>
    %19 = vector.extract_strided_slice %14 {offsets = [0, 0], sizes = [8, 16], strides = [1, 1]} : vector<8x128xf32> to vector<8x16xf32>
    %cst_13 = arith.constant 2.500000e-01 : f32
    %20 = vector.broadcast %cst_13 : f32 to vector<8x16xf32>
    %21 = arith.mulf %19, %20 : vector<8x16xf32>
    %22 = arith.truncf %21 : vector<8x16xf32> to vector<8x16xbf16>
    %23 = vector.extract_strided_slice %15 {offsets = [0, 0], sizes = [8, 16], strides = [1, 1]} : vector<8x128xf32> to vector<8x16xf32>
    %24 = arith.truncf %23 : vector<8x16xf32> to vector<8x16xbf16>
    %25 = vector.extract_strided_slice %16 {offsets = [0, 0], sizes = [8, 16], strides = [1, 1]} : vector<8x128xf32> to vector<8x16xf32>
    %26 = arith.truncf %25 : vector<8x16xf32> to vector<8x16xbf16>
    %cst_14 = arith.constant dense<0.000000e+00> : vector<8x8xf32>
    %27 = tpu.matmul %22, %24, %cst_14 {dimension_numbers = #tpu.dot_dimension_numbers<[1], [1], [0], [0], [0, 0, 1, 0], [], []>} : vector<8x16xbf16>, vector<8x16xbf16>, vector<8x8xf32> -> vector<8x8xf32>
    %cst_15 = arith.constant dense<0xFF800000> : vector<8xf32>
    %28 = vector.multi_reduction <maximumf>, %27, %cst_15 [1] : vector<8x8xf32> to vector<8xf32>
    %29 = vector.shape_cast %28 : vector<8xf32> to vector<8x1xf32>
    %30 = vector.broadcast %29 : vector<8x1xf32> to vector<8x8xf32>
    %31 = arith.subf %27, %30 : vector<8x8xf32>
    %32 = math.exp %31 : vector<8x8xf32>
    %cst_16 = arith.constant dense<0.000000e+00> : vector<8xf32>
    %33 = vector.multi_reduction <add>, %32, %cst_16 [1] : vector<8x8xf32> to vector<8xf32>
    %34 = vector.shape_cast %33 : vector<8xf32> to vector<8x1xf32>
    %35 = tpu.reciprocal %34 {approx = true} : vector<8x1xf32> -> vector<8x1xf32>
    %36 = vector.broadcast %35 : vector<8x1xf32> to vector<8x8xf32>
    %37 = arith.mulf %32, %36 : vector<8x8xf32>
    %38 = arith.truncf %37 : vector<8x8xf32> to vector<8x8xbf16>
    %cst_17 = arith.constant dense<0.000000e+00> : vector<8x16xf32>
    %39 = tpu.matmul %38, %26, %cst_17 {dimension_numbers = #tpu.dot_dimension_numbers<[1], [0], [0], [1], [0, 0, 1, 1], [], []>} : vector<8x8xbf16>, vector<8x16xbf16>, vector<8x16xf32> -> vector<8x16xf32>
    %40 = vector.extract_strided_slice %14 {offsets = [0, 16], sizes = [8, 16], strides = [1, 1]} : vector<8x128xf32> to vector<8x16xf32>
    %cst_18 = arith.constant 2.500000e-01 : f32
    %41 = vector.broadcast %cst_18 : f32 to vector<8x16xf32>
    %42 = arith.mulf %40, %41 : vector<8x16xf32>
    %43 = arith.truncf %42 : vector<8x16xf32> to vector<8x16xbf16>
    %44 = vector.extract_strided_slice %15 {offsets = [0, 16], sizes = [8, 16], strides = [1, 1]} : vector<8x128xf32> to vector<8x16xf32>
    %45 = arith.truncf %44 : vector<8x16xf32> to vector<8x16xbf16>
    %46 = vector.extract_strided_slice %16 {offsets = [0, 16], sizes = [8, 16], strides = [1, 1]} : vector<8x128xf32> to vector<8x16xf32>
    %47 = arith.truncf %46 : vector<8x16xf32> to vector<8x16xbf16>
    %cst_19 = arith.constant dense<0.000000e+00> : vector<8x8xf32>
    %48 = tpu.matmul %43, %45, %cst_19 {dimension_numbers = #tpu.dot_dimension_numbers<[1], [1], [0], [0], [0, 0, 1, 0], [], []>} : vector<8x16xbf16>, vector<8x16xbf16>, vector<8x8xf32> -> vector<8x8xf32>
    %cst_20 = arith.constant dense<0xFF800000> : vector<8xf32>
    %49 = vector.multi_reduction <maximumf>, %48, %cst_20 [1] : vector<8x8xf32> to vector<8xf32>
    %50 = vector.shape_cast %49 : vector<8xf32> to vector<8x1xf32>
    %51 = vector.broadcast %50 : vector<8x1xf32> to vector<8x8xf32>
    %52 = arith.subf %48, %51 : vector<8x8xf32>
    %53 = math.exp %52 : vector<8x8xf32>
    %cst_21 = arith.constant dense<0.000000e+00> : vector<8xf32>
    %54 = vector.multi_reduction <add>, %53, %cst_21 [1] : vector<8x8xf32> to vector<8xf32>
    %55 = vector.shape_cast %54 : vector<8xf32> to vector<8x1xf32>
    %56 = tpu.reciprocal %55 {approx = true} : vector<8x1xf32> -> vector<8x1xf32>
    %57 = vector.broadcast %56 : vector<8x1xf32> to vector<8x8xf32>
    %58 = arith.mulf %53, %57 : vector<8x8xf32>
    %59 = arith.truncf %58 : vector<8x8xf32> to vector<8x8xbf16>
    %cst_22 = arith.constant dense<0.000000e+00> : vector<8x16xf32>
    %60 = tpu.matmul %59, %47, %cst_22 {dimension_numbers = #tpu.dot_dimension_numbers<[1], [0], [0], [1], [0, 0, 1, 1], [], []>} : vector<8x8xbf16>, vector<8x16xbf16>, vector<8x16xf32> -> vector<8x16xf32>
    %61 = vector.extract_strided_slice %14 {offsets = [0, 32], sizes = [8, 16], strides = [1, 1]} : vector<8x128xf32> to vector<8x16xf32>
    %cst_23 = arith.constant 2.500000e-01 : f32
    %62 = vector.broadcast %cst_23 : f32 to vector<8x16xf32>
    %63 = arith.mulf %61, %62 : vector<8x16xf32>
    %64 = arith.truncf %63 : vector<8x16xf32> to vector<8x16xbf16>
    %65 = vector.extract_strided_slice %15 {offsets = [0, 32], sizes = [8, 16], strides = [1, 1]} : vector<8x128xf32> to vector<8x16xf32>
    %66 = arith.truncf %65 : vector<8x16xf32> to vector<8x16xbf16>
    %67 = vector.extract_strided_slice %16 {offsets = [0, 32], sizes = [8, 16], strides = [1, 1]} : vector<8x128xf32> to vector<8x16xf32>
    %68 = arith.truncf %67 : vector<8x16xf32> to vector<8x16xbf16>
    %cst_24 = arith.constant dense<0.000000e+00> : vector<8x8xf32>
    %69 = tpu.matmul %64, %66, %cst_24 {dimension_numbers = #tpu.dot_dimension_numbers<[1], [1], [0], [0], [0, 0, 1, 0], [], []>} : vector<8x16xbf16>, vector<8x16xbf16>, vector<8x8xf32> -> vector<8x8xf32>
    %cst_25 = arith.constant dense<0xFF800000> : vector<8xf32>
    %70 = vector.multi_reduction <maximumf>, %69, %cst_25 [1] : vector<8x8xf32> to vector<8xf32>
    %71 = vector.shape_cast %70 : vector<8xf32> to vector<8x1xf32>
    %72 = vector.broadcast %71 : vector<8x1xf32> to vector<8x8xf32>
    %73 = arith.subf %69, %72 : vector<8x8xf32>
    %74 = math.exp %73 : vector<8x8xf32>
    %cst_26 = arith.constant dense<0.000000e+00> : vector<8xf32>
    %75 = vector.multi_reduction <add>, %74, %cst_26 [1] : vector<8x8xf32> to vector<8xf32>
    %76 = vector.shape_cast %75 : vector<8xf32> to vector<8x1xf32>
    %77 = tpu.reciprocal %76 {approx = true} : vector<8x1xf32> -> vector<8x1xf32>
    %78 = vector.broadcast %77 : vector<8x1xf32> to vector<8x8xf32>
    %79 = arith.mulf %74, %78 : vector<8x8xf32>
    %80 = arith.truncf %79 : vector<8x8xf32> to vector<8x8xbf16>
    %cst_27 = arith.constant dense<0.000000e+00> : vector<8x16xf32>
    %81 = tpu.matmul %80, %68, %cst_27 {dimension_numbers = #tpu.dot_dimension_numbers<[1], [0], [0], [1], [0, 0, 1, 1], [], []>} : vector<8x8xbf16>, vector<8x16xbf16>, vector<8x16xf32> -> vector<8x16xf32>
    %82 = vector.extract_strided_slice %14 {offsets = [0, 48], sizes = [8, 16], strides = [1, 1]} : vector<8x128xf32> to vector<8x16xf32>
    %cst_28 = arith.constant 2.500000e-01 : f32
    %83 = vector.broadcast %cst_28 : f32 to vector<8x16xf32>
    %84 = arith.mulf %82, %83 : vector<8x16xf32>
    %85 = arith.truncf %84 : vector<8x16xf32> to vector<8x16xbf16>
    %86 = vector.extract_strided_slice %15 {offsets = [0, 48], sizes = [8, 16], strides = [1, 1]} : vector<8x128xf32> to vector<8x16xf32>
    %87 = arith.truncf %86 : vector<8x16xf32> to vector<8x16xbf16>
    %88 = vector.extract_strided_slice %16 {offsets = [0, 48], sizes = [8, 16], strides = [1, 1]} : vector<8x128xf32> to vector<8x16xf32>
    %89 = arith.truncf %88 : vector<8x16xf32> to vector<8x16xbf16>
    %cst_29 = arith.constant dense<0.000000e+00> : vector<8x8xf32>
    %90 = tpu.matmul %85, %87, %cst_29 {dimension_numbers = #tpu.dot_dimension_numbers<[1], [1], [0], [0], [0, 0, 1, 0], [], []>} : vector<8x16xbf16>, vector<8x16xbf16>, vector<8x8xf32> -> vector<8x8xf32>
    %cst_30 = arith.constant dense<0xFF800000> : vector<8xf32>
    %91 = vector.multi_reduction <maximumf>, %90, %cst_30 [1] : vector<8x8xf32> to vector<8xf32>
    %92 = vector.shape_cast %91 : vector<8xf32> to vector<8x1xf32>
    %93 = vector.broadcast %92 : vector<8x1xf32> to vector<8x8xf32>
    %94 = arith.subf %90, %93 : vector<8x8xf32>
    %95 = math.exp %94 : vector<8x8xf32>
    %cst_31 = arith.constant dense<0.000000e+00> : vector<8xf32>
    %96 = vector.multi_reduction <add>, %95, %cst_31 [1] : vector<8x8xf32> to vector<8xf32>
    %97 = vector.shape_cast %96 : vector<8xf32> to vector<8x1xf32>
    %98 = tpu.reciprocal %97 {approx = true} : vector<8x1xf32> -> vector<8x1xf32>
    %99 = vector.broadcast %98 : vector<8x1xf32> to vector<8x8xf32>
    %100 = arith.mulf %95, %99 : vector<8x8xf32>
    %101 = arith.truncf %100 : vector<8x8xf32> to vector<8x8xbf16>
    %cst_32 = arith.constant dense<0.000000e+00> : vector<8x16xf32>
    %102 = tpu.matmul %101, %89, %cst_32 {dimension_numbers = #tpu.dot_dimension_numbers<[1], [0], [0], [1], [0, 0, 1, 1], [], []>} : vector<8x8xbf16>, vector<8x16xbf16>, vector<8x16xf32> -> vector<8x16xf32>
    %103 = vector.extract_strided_slice %14 {offsets = [0, 64], sizes = [8, 16], strides = [1, 1]} : vector<8x128xf32> to vector<8x16xf32>
    %cst_33 = arith.constant 2.500000e-01 : f32
    %104 = vector.broadcast %cst_33 : f32 to vector<8x16xf32>
    %105 = arith.mulf %103, %104 : vector<8x16xf32>
    %106 = arith.truncf %105 : vector<8x16xf32> to vector<8x16xbf16>
    %107 = vector.extract_strided_slice %15 {offsets = [0, 64], sizes = [8, 16], strides = [1, 1]} : vector<8x128xf32> to vector<8x16xf32>
    %108 = arith.truncf %107 : vector<8x16xf32> to vector<8x16xbf16>
    %109 = vector.extract_strided_slice %16 {offsets = [0, 64], sizes = [8, 16], strides = [1, 1]} : vector<8x128xf32> to vector<8x16xf32>
    %110 = arith.truncf %109 : vector<8x16xf32> to vector<8x16xbf16>
    %cst_34 = arith.constant dense<0.000000e+00> : vector<8x8xf32>
    %111 = tpu.matmul %106, %108, %cst_34 {dimension_numbers = #tpu.dot_dimension_numbers<[1], [1], [0], [0], [0, 0, 1, 0], [], []>} : vector<8x16xbf16>, vector<8x16xbf16>, vector<8x8xf32> -> vector<8x8xf32>
    %cst_35 = arith.constant dense<0xFF800000> : vector<8xf32>
    %112 = vector.multi_reduction <maximumf>, %111, %cst_35 [1] : vector<8x8xf32> to vector<8xf32>
    %113 = vector.shape_cast %112 : vector<8xf32> to vector<8x1xf32>
    %114 = vector.broadcast %113 : vector<8x1xf32> to vector<8x8xf32>
    %115 = arith.subf %111, %114 : vector<8x8xf32>
    %116 = math.exp %115 : vector<8x8xf32>
    %cst_36 = arith.constant dense<0.000000e+00> : vector<8xf32>
    %117 = vector.multi_reduction <add>, %116, %cst_36 [1] : vector<8x8xf32> to vector<8xf32>
    %118 = vector.shape_cast %117 : vector<8xf32> to vector<8x1xf32>
    %119 = tpu.reciprocal %118 {approx = true} : vector<8x1xf32> -> vector<8x1xf32>
    %120 = vector.broadcast %119 : vector<8x1xf32> to vector<8x8xf32>
    %121 = arith.mulf %116, %120 : vector<8x8xf32>
    %122 = arith.truncf %121 : vector<8x8xf32> to vector<8x8xbf16>
    %cst_37 = arith.constant dense<0.000000e+00> : vector<8x16xf32>
    %123 = tpu.matmul %122, %110, %cst_37 {dimension_numbers = #tpu.dot_dimension_numbers<[1], [0], [0], [1], [0, 0, 1, 1], [], []>} : vector<8x8xbf16>, vector<8x16xbf16>, vector<8x16xf32> -> vector<8x16xf32>
    %124 = vector.extract_strided_slice %14 {offsets = [0, 80], sizes = [8, 16], strides = [1, 1]} : vector<8x128xf32> to vector<8x16xf32>
    %cst_38 = arith.constant 2.500000e-01 : f32
    %125 = vector.broadcast %cst_38 : f32 to vector<8x16xf32>
    %126 = arith.mulf %124, %125 : vector<8x16xf32>
    %127 = arith.truncf %126 : vector<8x16xf32> to vector<8x16xbf16>
    %128 = vector.extract_strided_slice %15 {offsets = [0, 80], sizes = [8, 16], strides = [1, 1]} : vector<8x128xf32> to vector<8x16xf32>
    %129 = arith.truncf %128 : vector<8x16xf32> to vector<8x16xbf16>
    %130 = vector.extract_strided_slice %16 {offsets = [0, 80], sizes = [8, 16], strides = [1, 1]} : vector<8x128xf32> to vector<8x16xf32>
    %131 = arith.truncf %130 : vector<8x16xf32> to vector<8x16xbf16>
    %cst_39 = arith.constant dense<0.000000e+00> : vector<8x8xf32>
    %132 = tpu.matmul %127, %129, %cst_39 {dimension_numbers = #tpu.dot_dimension_numbers<[1], [1], [0], [0], [0, 0, 1, 0], [], []>} : vector<8x16xbf16>, vector<8x16xbf16>, vector<8x8xf32> -> vector<8x8xf32>
    %cst_40 = arith.constant dense<0xFF800000> : vector<8xf32>
    %133 = vector.multi_reduction <maximumf>, %132, %cst_40 [1] : vector<8x8xf32> to vector<8xf32>
    %134 = vector.shape_cast %133 : vector<8xf32> to vector<8x1xf32>
    %135 = vector.broadcast %134 : vector<8x1xf32> to vector<8x8xf32>
    %136 = arith.subf %132, %135 : vector<8x8xf32>
    %137 = math.exp %136 : vector<8x8xf32>
    %cst_41 = arith.constant dense<0.000000e+00> : vector<8xf32>
    %138 = vector.multi_reduction <add>, %137, %cst_41 [1] : vector<8x8xf32> to vector<8xf32>
    %139 = vector.shape_cast %138 : vector<8xf32> to vector<8x1xf32>
    %140 = tpu.reciprocal %139 {approx = true} : vector<8x1xf32> -> vector<8x1xf32>
    %141 = vector.broadcast %140 : vector<8x1xf32> to vector<8x8xf32>
    %142 = arith.mulf %137, %141 : vector<8x8xf32>
    %143 = arith.truncf %142 : vector<8x8xf32> to vector<8x8xbf16>
    %cst_42 = arith.constant dense<0.000000e+00> : vector<8x16xf32>
    %144 = tpu.matmul %143, %131, %cst_42 {dimension_numbers = #tpu.dot_dimension_numbers<[1], [0], [0], [1], [0, 0, 1, 1], [], []>} : vector<8x8xbf16>, vector<8x16xbf16>, vector<8x16xf32> -> vector<8x16xf32>
    %145 = vector.extract_strided_slice %14 {offsets = [0, 96], sizes = [8, 16], strides = [1, 1]} : vector<8x128xf32> to vector<8x16xf32>
    %cst_43 = arith.constant 2.500000e-01 : f32
    %146 = vector.broadcast %cst_43 : f32 to vector<8x16xf32>
    %147 = arith.mulf %145, %146 : vector<8x16xf32>
    %148 = arith.truncf %147 : vector<8x16xf32> to vector<8x16xbf16>
    %149 = vector.extract_strided_slice %15 {offsets = [0, 96], sizes = [8, 16], strides = [1, 1]} : vector<8x128xf32> to vector<8x16xf32>
    %150 = arith.truncf %149 : vector<8x16xf32> to vector<8x16xbf16>
    %151 = vector.extract_strided_slice %16 {offsets = [0, 96], sizes = [8, 16], strides = [1, 1]} : vector<8x128xf32> to vector<8x16xf32>
    %152 = arith.truncf %151 : vector<8x16xf32> to vector<8x16xbf16>
    %cst_44 = arith.constant dense<0.000000e+00> : vector<8x8xf32>
    %153 = tpu.matmul %148, %150, %cst_44 {dimension_numbers = #tpu.dot_dimension_numbers<[1], [1], [0], [0], [0, 0, 1, 0], [], []>} : vector<8x16xbf16>, vector<8x16xbf16>, vector<8x8xf32> -> vector<8x8xf32>
    %cst_45 = arith.constant dense<0xFF800000> : vector<8xf32>
    %154 = vector.multi_reduction <maximumf>, %153, %cst_45 [1] : vector<8x8xf32> to vector<8xf32>
    %155 = vector.shape_cast %154 : vector<8xf32> to vector<8x1xf32>
    %156 = vector.broadcast %155 : vector<8x1xf32> to vector<8x8xf32>
    %157 = arith.subf %153, %156 : vector<8x8xf32>
    %158 = math.exp %157 : vector<8x8xf32>
    %cst_46 = arith.constant dense<0.000000e+00> : vector<8xf32>
    %159 = vector.multi_reduction <add>, %158, %cst_46 [1] : vector<8x8xf32> to vector<8xf32>
    %160 = vector.shape_cast %159 : vector<8xf32> to vector<8x1xf32>
    %161 = tpu.reciprocal %160 {approx = true} : vector<8x1xf32> -> vector<8x1xf32>
    %162 = vector.broadcast %161 : vector<8x1xf32> to vector<8x8xf32>
    %163 = arith.mulf %158, %162 : vector<8x8xf32>
    %164 = arith.truncf %163 : vector<8x8xf32> to vector<8x8xbf16>
    %cst_47 = arith.constant dense<0.000000e+00> : vector<8x16xf32>
    %165 = tpu.matmul %164, %152, %cst_47 {dimension_numbers = #tpu.dot_dimension_numbers<[1], [0], [0], [1], [0, 0, 1, 1], [], []>} : vector<8x8xbf16>, vector<8x16xbf16>, vector<8x16xf32> -> vector<8x16xf32>
    %166 = vector.extract_strided_slice %14 {offsets = [0, 112], sizes = [8, 16], strides = [1, 1]} : vector<8x128xf32> to vector<8x16xf32>
    %cst_48 = arith.constant 2.500000e-01 : f32
    %167 = vector.broadcast %cst_48 : f32 to vector<8x16xf32>
    %168 = arith.mulf %166, %167 : vector<8x16xf32>
    %169 = arith.truncf %168 : vector<8x16xf32> to vector<8x16xbf16>
    %170 = vector.extract_strided_slice %15 {offsets = [0, 112], sizes = [8, 16], strides = [1, 1]} : vector<8x128xf32> to vector<8x16xf32>
    %171 = arith.truncf %170 : vector<8x16xf32> to vector<8x16xbf16>
    %172 = vector.extract_strided_slice %16 {offsets = [0, 112], sizes = [8, 16], strides = [1, 1]} : vector<8x128xf32> to vector<8x16xf32>
    %173 = arith.truncf %172 : vector<8x16xf32> to vector<8x16xbf16>
    %cst_49 = arith.constant dense<0.000000e+00> : vector<8x8xf32>
    %174 = tpu.matmul %169, %171, %cst_49 {dimension_numbers = #tpu.dot_dimension_numbers<[1], [1], [0], [0], [0, 0, 1, 0], [], []>} : vector<8x16xbf16>, vector<8x16xbf16>, vector<8x8xf32> -> vector<8x8xf32>
    %cst_50 = arith.constant dense<0xFF800000> : vector<8xf32>
    %175 = vector.multi_reduction <maximumf>, %174, %cst_50 [1] : vector<8x8xf32> to vector<8xf32>
    %176 = vector.shape_cast %175 : vector<8xf32> to vector<8x1xf32>
    %177 = vector.broadcast %176 : vector<8x1xf32> to vector<8x8xf32>
    %178 = arith.subf %174, %177 : vector<8x8xf32>
    %179 = math.exp %178 : vector<8x8xf32>
    %cst_51 = arith.constant dense<0.000000e+00> : vector<8xf32>
    %180 = vector.multi_reduction <add>, %179, %cst_51 [1] : vector<8x8xf32> to vector<8xf32>
    %181 = vector.shape_cast %180 : vector<8xf32> to vector<8x1xf32>
    %182 = tpu.reciprocal %181 {approx = true} : vector<8x1xf32> -> vector<8x1xf32>
    %183 = vector.broadcast %182 : vector<8x1xf32> to vector<8x8xf32>
    %184 = arith.mulf %179, %183 : vector<8x8xf32>
    %185 = arith.truncf %184 : vector<8x8xf32> to vector<8x8xbf16>
    %cst_52 = arith.constant dense<0.000000e+00> : vector<8x16xf32>
    %186 = tpu.matmul %185, %173, %cst_52 {dimension_numbers = #tpu.dot_dimension_numbers<[1], [0], [0], [1], [0, 0, 1, 1], [], []>} : vector<8x8xbf16>, vector<8x16xbf16>, vector<8x16xf32> -> vector<8x16xf32>
    %187 = tpu.concatenate %39, %60, %81, %102, %123, %144, %165, %186 in 1 : vector<8x16xf32>, vector<8x16xf32>, vector<8x16xf32>, vector<8x16xf32>, vector<8x16xf32>, vector<8x16xf32>, vector<8x16xf32>, vector<8x16xf32> -> vector<8x128xf32>
    %188 = arith.truncf %187 : vector<8x128xf32> to vector<8x128xbf16>
    %c0_53 = arith.constant 0 : index
    %c0_54 = arith.constant 0 : index
    %c0_55 = arith.constant 0 : index
    %189 = vector.load %arg5[%c0_53, %c0_54, %c0_55] : memref<1x128x128xbf16, #tpu.memory_space<vmem>>, vector<1x128x128xbf16>
    %190 = vector.shape_cast %189 : vector<1x128x128xbf16> to vector<128x128xbf16>
    %cst_56 = arith.constant dense<0.000000e+00> : vector<8x128xf32>
    %191 = tpu.matmul %188, %190, %cst_56 {dimension_numbers = #tpu.dot_dimension_numbers<[1], [0], [0], [1], [0, 0, 1, 1], [], []>} : vector<8x128xbf16>, vector<128x128xbf16>, vector<8x128xf32> -> vector<8x128xf32>
    %192 = vector.broadcast %18 : vector<1x128xf32> to vector<8x128xf32>
    %193 = arith.addf %191, %192 : vector<8x128xf32>
    %194 = arith.addf %3, %193 : vector<8x128xf32>
    %c0_57 = arith.constant 0 : index
    %c0_58 = arith.constant 0 : index
    %c0_59 = arith.constant 0 : index
    %195 = vector.load %arg7[%c0_57, %c0_58, %c0_59] : memref<1x1x128xf32, #tpu.memory_space<vmem>>, vector<1x1x128xf32>
    %196 = vector.shape_cast %195 : vector<1x1x128xf32> to vector<1x128xf32>
    %c0_60 = arith.constant 0 : index
    %c0_61 = arith.constant 0 : index
    %c0_62 = arith.constant 0 : index
    %197 = vector.load %arg8[%c0_60, %c0_61, %c0_62] : memref<1x1x128xf32, #tpu.memory_space<vmem>>, vector<1x1x128xf32>
    %198 = vector.shape_cast %197 : vector<1x1x128xf32> to vector<1x128xf32>
    %cst_63 = arith.constant dense<0.000000e+00> : vector<8xf32>
    %199 = vector.multi_reduction <add>, %194, %cst_63 [1] : vector<8x128xf32> to vector<8xf32>
    %200 = vector.shape_cast %199 : vector<8xf32> to vector<8x1xf32>
    %cst_64 = arith.constant 1.280000e+02 : f32
    %201 = vector.broadcast %cst_64 : f32 to vector<8x1xf32>
    %202 = arith.divf %200, %201 : vector<8x1xf32>
    %203 = vector.broadcast %202 : vector<8x1xf32> to vector<8x128xf32>
    %204 = arith.subf %194, %203 : vector<8x128xf32>
    %205 = arith.mulf %204, %204 : vector<8x128xf32>
    %cst_65 = arith.constant dense<0.000000e+00> : vector<8xf32>
    %206 = vector.multi_reduction <add>, %205, %cst_65 [1] : vector<8x128xf32> to vector<8xf32>
    %207 = vector.shape_cast %206 : vector<8xf32> to vector<8x1xf32>
    %cst_66 = arith.constant 1.280000e+02 : f32
    %208 = vector.broadcast %cst_66 : f32 to vector<8x1xf32>
    %209 = arith.divf %207, %208 : vector<8x1xf32>
    %cst_67 = arith.constant 9.99999974E-6 : f32
    %210 = vector.broadcast %cst_67 : f32 to vector<8x1xf32>
    %211 = arith.addf %209, %210 : vector<8x1xf32>
    %212 = math.rsqrt %211 : vector<8x1xf32>
    %213 = vector.broadcast %212 : vector<8x1xf32> to vector<8x128xf32>
    %214 = arith.mulf %204, %213 : vector<8x128xf32>
    %215 = vector.broadcast %196 : vector<1x128xf32> to vector<8x128xf32>
    %216 = arith.mulf %214, %215 : vector<8x128xf32>
    %217 = vector.broadcast %198 : vector<1x128xf32> to vector<8x128xf32>
    %218 = arith.addf %216, %217 : vector<8x128xf32>
    %c0_68 = arith.constant 0 : index
    %c0_69 = arith.constant 0 : index
    %c0_70 = arith.constant 0 : index
    %219 = vector.load %arg9[%c0_68, %c0_69, %c0_70] : memref<1x128x128xbf16, #tpu.memory_space<vmem>>, vector<1x128x128xbf16>
    %220 = vector.shape_cast %219 : vector<1x128x128xbf16> to vector<128x128xbf16>
    %221 = arith.truncf %218 : vector<8x128xf32> to vector<8x128xbf16>
    %cst_71 = arith.constant dense<0.000000e+00> : vector<8x128xf32>
    %222 = tpu.matmul %221, %220, %cst_71 {dimension_numbers = #tpu.dot_dimension_numbers<[1], [0], [0], [1], [0, 0, 1, 1], [], []>} : vector<8x128xbf16>, vector<128x128xbf16>, vector<8x128xf32> -> vector<8x128xf32>
    %c0_72 = arith.constant 0 : index
    %c0_73 = arith.constant 0 : index
    %c0_74 = arith.constant 0 : index
    %223 = vector.load %arg10[%c0_72, %c0_73, %c0_74] : memref<1x1x128xf32, #tpu.memory_space<vmem>>, vector<1x1x128xf32>
    %224 = vector.shape_cast %223 : vector<1x1x128xf32> to vector<1x128xf32>
    %225 = vector.broadcast %224 : vector<1x128xf32> to vector<8x128xf32>
    %226 = arith.addf %222, %225 : vector<8x128xf32>
    %c0_75 = arith.constant 0 : index
    %c0_76 = arith.constant 0 : index
    %c0_77 = arith.constant 0 : index
    %227 = vector.load %arg11[%c0_75, %c0_76, %c0_77] : memref<1x128x256xbf16, #tpu.memory_space<vmem>>, vector<1x128x256xbf16>
    %228 = vector.shape_cast %227 : vector<1x128x256xbf16> to vector<128x256xbf16>
    %229 = arith.truncf %5 : vector<2x128xf32> to vector<2x128xbf16>
    %cst_78 = arith.constant dense<0.000000e+00> : vector<2x256xf32>
    %230 = tpu.matmul %229, %228, %cst_78 {dimension_numbers = #tpu.dot_dimension_numbers<[1], [0], [0], [1], [0, 0, 1, 1], [], []>} : vector<2x128xbf16>, vector<128x256xbf16>, vector<2x256xf32> -> vector<2x256xf32>
    %c0_79 = arith.constant 0 : index
    %c0_80 = arith.constant 0 : index
    %c0_81 = arith.constant 0 : index
    %231 = vector.load %arg12[%c0_79, %c0_80, %c0_81] : memref<1x1x256xf32, #tpu.memory_space<vmem>>, vector<1x1x256xf32>
    %232 = vector.shape_cast %231 : vector<1x1x256xf32> to vector<1x256xf32>
    %233 = vector.broadcast %232 : vector<1x256xf32> to vector<2x256xf32>
    %234 = arith.addf %230, %233 : vector<2x256xf32>
    %235 = vector.extract_strided_slice %234 {offsets = [0, 0], sizes = [2, 128], strides = [1, 1]} : vector<2x256xf32> to vector<2x128xf32>
    %236 = vector.extract_strided_slice %234 {offsets = [0, 128], sizes = [2, 128], strides = [1, 1]} : vector<2x256xf32> to vector<2x128xf32>
    %c0_82 = arith.constant 0 : index
    %c0_83 = arith.constant 0 : index
    %c0_84 = arith.constant 0 : index
    %237 = vector.load %arg14[%c0_82, %c0_83, %c0_84] : memref<1x1x128xf32, #tpu.memory_space<vmem>>, vector<1x1x128xf32>
    %238 = vector.shape_cast %237 : vector<1x1x128xf32> to vector<1x128xf32>
    %239 = vector.extract_strided_slice %226 {offsets = [0, 0], sizes = [8, 16], strides = [1, 1]} : vector<8x128xf32> to vector<8x16xf32>
    %cst_85 = arith.constant 2.500000e-01 : f32
    %240 = vector.broadcast %cst_85 : f32 to vector<8x16xf32>
    %241 = arith.mulf %239, %240 : vector<8x16xf32>
    %242 = arith.truncf %241 : vector<8x16xf32> to vector<8x16xbf16>
    %243 = vector.extract_strided_slice %235 {offsets = [0, 0], sizes = [2, 16], strides = [1, 1]} : vector<2x128xf32> to vector<2x16xf32>
    %244 = arith.truncf %243 : vector<2x16xf32> to vector<2x16xbf16>
    %245 = vector.extract_strided_slice %236 {offsets = [0, 0], sizes = [2, 16], strides = [1, 1]} : vector<2x128xf32> to vector<2x16xf32>
    %246 = arith.truncf %245 : vector<2x16xf32> to vector<2x16xbf16>
    %cst_86 = arith.constant dense<0.000000e+00> : vector<8x2xf32>
    %247 = tpu.matmul %242, %244, %cst_86 {dimension_numbers = #tpu.dot_dimension_numbers<[1], [1], [0], [0], [0, 0, 1, 0], [], []>} : vector<8x16xbf16>, vector<2x16xbf16>, vector<8x2xf32> -> vector<8x2xf32>
    %cst_87 = arith.constant dense<0xFF800000> : vector<8xf32>
    %248 = vector.multi_reduction <maximumf>, %247, %cst_87 [1] : vector<8x2xf32> to vector<8xf32>
    %249 = vector.shape_cast %248 : vector<8xf32> to vector<8x1xf32>
    %250 = vector.broadcast %249 : vector<8x1xf32> to vector<8x2xf32>
    %251 = arith.subf %247, %250 : vector<8x2xf32>
    %252 = math.exp %251 : vector<8x2xf32>
    %cst_88 = arith.constant dense<0.000000e+00> : vector<8xf32>
    %253 = vector.multi_reduction <add>, %252, %cst_88 [1] : vector<8x2xf32> to vector<8xf32>
    %254 = vector.shape_cast %253 : vector<8xf32> to vector<8x1xf32>
    %255 = tpu.reciprocal %254 {approx = true} : vector<8x1xf32> -> vector<8x1xf32>
    %256 = vector.broadcast %255 : vector<8x1xf32> to vector<8x2xf32>
    %257 = arith.mulf %252, %256 : vector<8x2xf32>
    %258 = arith.truncf %257 : vector<8x2xf32> to vector<8x2xbf16>
    %cst_89 = arith.constant dense<0.000000e+00> : vector<8x16xf32>
    %259 = tpu.matmul %258, %246, %cst_89 {dimension_numbers = #tpu.dot_dimension_numbers<[1], [0], [0], [1], [0, 0, 1, 1], [], []>} : vector<8x2xbf16>, vector<2x16xbf16>, vector<8x16xf32> -> vector<8x16xf32>
    %260 = vector.extract_strided_slice %226 {offsets = [0, 16], sizes = [8, 16], strides = [1, 1]} : vector<8x128xf32> to vector<8x16xf32>
    %cst_90 = arith.constant 2.500000e-01 : f32
    %261 = vector.broadcast %cst_90 : f32 to vector<8x16xf32>
    %262 = arith.mulf %260, %261 : vector<8x16xf32>
    %263 = arith.truncf %262 : vector<8x16xf32> to vector<8x16xbf16>
    %264 = vector.extract_strided_slice %235 {offsets = [0, 16], sizes = [2, 16], strides = [1, 1]} : vector<2x128xf32> to vector<2x16xf32>
    %265 = arith.truncf %264 : vector<2x16xf32> to vector<2x16xbf16>
    %266 = vector.extract_strided_slice %236 {offsets = [0, 16], sizes = [2, 16], strides = [1, 1]} : vector<2x128xf32> to vector<2x16xf32>
    %267 = arith.truncf %266 : vector<2x16xf32> to vector<2x16xbf16>
    %cst_91 = arith.constant dense<0.000000e+00> : vector<8x2xf32>
    %268 = tpu.matmul %263, %265, %cst_91 {dimension_numbers = #tpu.dot_dimension_numbers<[1], [1], [0], [0], [0, 0, 1, 0], [], []>} : vector<8x16xbf16>, vector<2x16xbf16>, vector<8x2xf32> -> vector<8x2xf32>
    %cst_92 = arith.constant dense<0xFF800000> : vector<8xf32>
    %269 = vector.multi_reduction <maximumf>, %268, %cst_92 [1] : vector<8x2xf32> to vector<8xf32>
    %270 = vector.shape_cast %269 : vector<8xf32> to vector<8x1xf32>
    %271 = vector.broadcast %270 : vector<8x1xf32> to vector<8x2xf32>
    %272 = arith.subf %268, %271 : vector<8x2xf32>
    %273 = math.exp %272 : vector<8x2xf32>
    %cst_93 = arith.constant dense<0.000000e+00> : vector<8xf32>
    %274 = vector.multi_reduction <add>, %273, %cst_93 [1] : vector<8x2xf32> to vector<8xf32>
    %275 = vector.shape_cast %274 : vector<8xf32> to vector<8x1xf32>
    %276 = tpu.reciprocal %275 {approx = true} : vector<8x1xf32> -> vector<8x1xf32>
    %277 = vector.broadcast %276 : vector<8x1xf32> to vector<8x2xf32>
    %278 = arith.mulf %273, %277 : vector<8x2xf32>
    %279 = arith.truncf %278 : vector<8x2xf32> to vector<8x2xbf16>
    %cst_94 = arith.constant dense<0.000000e+00> : vector<8x16xf32>
    %280 = tpu.matmul %279, %267, %cst_94 {dimension_numbers = #tpu.dot_dimension_numbers<[1], [0], [0], [1], [0, 0, 1, 1], [], []>} : vector<8x2xbf16>, vector<2x16xbf16>, vector<8x16xf32> -> vector<8x16xf32>
    %281 = vector.extract_strided_slice %226 {offsets = [0, 32], sizes = [8, 16], strides = [1, 1]} : vector<8x128xf32> to vector<8x16xf32>
    %cst_95 = arith.constant 2.500000e-01 : f32
    %282 = vector.broadcast %cst_95 : f32 to vector<8x16xf32>
    %283 = arith.mulf %281, %282 : vector<8x16xf32>
    %284 = arith.truncf %283 : vector<8x16xf32> to vector<8x16xbf16>
    %285 = vector.extract_strided_slice %235 {offsets = [0, 32], sizes = [2, 16], strides = [1, 1]} : vector<2x128xf32> to vector<2x16xf32>
    %286 = arith.truncf %285 : vector<2x16xf32> to vector<2x16xbf16>
    %287 = vector.extract_strided_slice %236 {offsets = [0, 32], sizes = [2, 16], strides = [1, 1]} : vector<2x128xf32> to vector<2x16xf32>
    %288 = arith.truncf %287 : vector<2x16xf32> to vector<2x16xbf16>
    %cst_96 = arith.constant dense<0.000000e+00> : vector<8x2xf32>
    %289 = tpu.matmul %284, %286, %cst_96 {dimension_numbers = #tpu.dot_dimension_numbers<[1], [1], [0], [0], [0, 0, 1, 0], [], []>} : vector<8x16xbf16>, vector<2x16xbf16>, vector<8x2xf32> -> vector<8x2xf32>
    %cst_97 = arith.constant dense<0xFF800000> : vector<8xf32>
    %290 = vector.multi_reduction <maximumf>, %289, %cst_97 [1] : vector<8x2xf32> to vector<8xf32>
    %291 = vector.shape_cast %290 : vector<8xf32> to vector<8x1xf32>
    %292 = vector.broadcast %291 : vector<8x1xf32> to vector<8x2xf32>
    %293 = arith.subf %289, %292 : vector<8x2xf32>
    %294 = math.exp %293 : vector<8x2xf32>
    %cst_98 = arith.constant dense<0.000000e+00> : vector<8xf32>
    %295 = vector.multi_reduction <add>, %294, %cst_98 [1] : vector<8x2xf32> to vector<8xf32>
    %296 = vector.shape_cast %295 : vector<8xf32> to vector<8x1xf32>
    %297 = tpu.reciprocal %296 {approx = true} : vector<8x1xf32> -> vector<8x1xf32>
    %298 = vector.broadcast %297 : vector<8x1xf32> to vector<8x2xf32>
    %299 = arith.mulf %294, %298 : vector<8x2xf32>
    %300 = arith.truncf %299 : vector<8x2xf32> to vector<8x2xbf16>
    %cst_99 = arith.constant dense<0.000000e+00> : vector<8x16xf32>
    %301 = tpu.matmul %300, %288, %cst_99 {dimension_numbers = #tpu.dot_dimension_numbers<[1], [0], [0], [1], [0, 0, 1, 1], [], []>} : vector<8x2xbf16>, vector<2x16xbf16>, vector<8x16xf32> -> vector<8x16xf32>
    %302 = vector.extract_strided_slice %226 {offsets = [0, 48], sizes = [8, 16], strides = [1, 1]} : vector<8x128xf32> to vector<8x16xf32>
    %cst_100 = arith.constant 2.500000e-01 : f32
    %303 = vector.broadcast %cst_100 : f32 to vector<8x16xf32>
    %304 = arith.mulf %302, %303 : vector<8x16xf32>
    %305 = arith.truncf %304 : vector<8x16xf32> to vector<8x16xbf16>
    %306 = vector.extract_strided_slice %235 {offsets = [0, 48], sizes = [2, 16], strides = [1, 1]} : vector<2x128xf32> to vector<2x16xf32>
    %307 = arith.truncf %306 : vector<2x16xf32> to vector<2x16xbf16>
    %308 = vector.extract_strided_slice %236 {offsets = [0, 48], sizes = [2, 16], strides = [1, 1]} : vector<2x128xf32> to vector<2x16xf32>
    %309 = arith.truncf %308 : vector<2x16xf32> to vector<2x16xbf16>
    %cst_101 = arith.constant dense<0.000000e+00> : vector<8x2xf32>
    %310 = tpu.matmul %305, %307, %cst_101 {dimension_numbers = #tpu.dot_dimension_numbers<[1], [1], [0], [0], [0, 0, 1, 0], [], []>} : vector<8x16xbf16>, vector<2x16xbf16>, vector<8x2xf32> -> vector<8x2xf32>
    %cst_102 = arith.constant dense<0xFF800000> : vector<8xf32>
    %311 = vector.multi_reduction <maximumf>, %310, %cst_102 [1] : vector<8x2xf32> to vector<8xf32>
    %312 = vector.shape_cast %311 : vector<8xf32> to vector<8x1xf32>
    %313 = vector.broadcast %312 : vector<8x1xf32> to vector<8x2xf32>
    %314 = arith.subf %310, %313 : vector<8x2xf32>
    %315 = math.exp %314 : vector<8x2xf32>
    %cst_103 = arith.constant dense<0.000000e+00> : vector<8xf32>
    %316 = vector.multi_reduction <add>, %315, %cst_103 [1] : vector<8x2xf32> to vector<8xf32>
    %317 = vector.shape_cast %316 : vector<8xf32> to vector<8x1xf32>
    %318 = tpu.reciprocal %317 {approx = true} : vector<8x1xf32> -> vector<8x1xf32>
    %319 = vector.broadcast %318 : vector<8x1xf32> to vector<8x2xf32>
    %320 = arith.mulf %315, %319 : vector<8x2xf32>
    %321 = arith.truncf %320 : vector<8x2xf32> to vector<8x2xbf16>
    %cst_104 = arith.constant dense<0.000000e+00> : vector<8x16xf32>
    %322 = tpu.matmul %321, %309, %cst_104 {dimension_numbers = #tpu.dot_dimension_numbers<[1], [0], [0], [1], [0, 0, 1, 1], [], []>} : vector<8x2xbf16>, vector<2x16xbf16>, vector<8x16xf32> -> vector<8x16xf32>
    %323 = vector.extract_strided_slice %226 {offsets = [0, 64], sizes = [8, 16], strides = [1, 1]} : vector<8x128xf32> to vector<8x16xf32>
    %cst_105 = arith.constant 2.500000e-01 : f32
    %324 = vector.broadcast %cst_105 : f32 to vector<8x16xf32>
    %325 = arith.mulf %323, %324 : vector<8x16xf32>
    %326 = arith.truncf %325 : vector<8x16xf32> to vector<8x16xbf16>
    %327 = vector.extract_strided_slice %235 {offsets = [0, 64], sizes = [2, 16], strides = [1, 1]} : vector<2x128xf32> to vector<2x16xf32>
    %328 = arith.truncf %327 : vector<2x16xf32> to vector<2x16xbf16>
    %329 = vector.extract_strided_slice %236 {offsets = [0, 64], sizes = [2, 16], strides = [1, 1]} : vector<2x128xf32> to vector<2x16xf32>
    %330 = arith.truncf %329 : vector<2x16xf32> to vector<2x16xbf16>
    %cst_106 = arith.constant dense<0.000000e+00> : vector<8x2xf32>
    %331 = tpu.matmul %326, %328, %cst_106 {dimension_numbers = #tpu.dot_dimension_numbers<[1], [1], [0], [0], [0, 0, 1, 0], [], []>} : vector<8x16xbf16>, vector<2x16xbf16>, vector<8x2xf32> -> vector<8x2xf32>
    %cst_107 = arith.constant dense<0xFF800000> : vector<8xf32>
    %332 = vector.multi_reduction <maximumf>, %331, %cst_107 [1] : vector<8x2xf32> to vector<8xf32>
    %333 = vector.shape_cast %332 : vector<8xf32> to vector<8x1xf32>
    %334 = vector.broadcast %333 : vector<8x1xf32> to vector<8x2xf32>
    %335 = arith.subf %331, %334 : vector<8x2xf32>
    %336 = math.exp %335 : vector<8x2xf32>
    %cst_108 = arith.constant dense<0.000000e+00> : vector<8xf32>
    %337 = vector.multi_reduction <add>, %336, %cst_108 [1] : vector<8x2xf32> to vector<8xf32>
    %338 = vector.shape_cast %337 : vector<8xf32> to vector<8x1xf32>
    %339 = tpu.reciprocal %338 {approx = true} : vector<8x1xf32> -> vector<8x1xf32>
    %340 = vector.broadcast %339 : vector<8x1xf32> to vector<8x2xf32>
    %341 = arith.mulf %336, %340 : vector<8x2xf32>
    %342 = arith.truncf %341 : vector<8x2xf32> to vector<8x2xbf16>
    %cst_109 = arith.constant dense<0.000000e+00> : vector<8x16xf32>
    %343 = tpu.matmul %342, %330, %cst_109 {dimension_numbers = #tpu.dot_dimension_numbers<[1], [0], [0], [1], [0, 0, 1, 1], [], []>} : vector<8x2xbf16>, vector<2x16xbf16>, vector<8x16xf32> -> vector<8x16xf32>
    %344 = vector.extract_strided_slice %226 {offsets = [0, 80], sizes = [8, 16], strides = [1, 1]} : vector<8x128xf32> to vector<8x16xf32>
    %cst_110 = arith.constant 2.500000e-01 : f32
    %345 = vector.broadcast %cst_110 : f32 to vector<8x16xf32>
    %346 = arith.mulf %344, %345 : vector<8x16xf32>
    %347 = arith.truncf %346 : vector<8x16xf32> to vector<8x16xbf16>
    %348 = vector.extract_strided_slice %235 {offsets = [0, 80], sizes = [2, 16], strides = [1, 1]} : vector<2x128xf32> to vector<2x16xf32>
    %349 = arith.truncf %348 : vector<2x16xf32> to vector<2x16xbf16>
    %350 = vector.extract_strided_slice %236 {offsets = [0, 80], sizes = [2, 16], strides = [1, 1]} : vector<2x128xf32> to vector<2x16xf32>
    %351 = arith.truncf %350 : vector<2x16xf32> to vector<2x16xbf16>
    %cst_111 = arith.constant dense<0.000000e+00> : vector<8x2xf32>
    %352 = tpu.matmul %347, %349, %cst_111 {dimension_numbers = #tpu.dot_dimension_numbers<[1], [1], [0], [0], [0, 0, 1, 0], [], []>} : vector<8x16xbf16>, vector<2x16xbf16>, vector<8x2xf32> -> vector<8x2xf32>
    %cst_112 = arith.constant dense<0xFF800000> : vector<8xf32>
    %353 = vector.multi_reduction <maximumf>, %352, %cst_112 [1] : vector<8x2xf32> to vector<8xf32>
    %354 = vector.shape_cast %353 : vector<8xf32> to vector<8x1xf32>
    %355 = vector.broadcast %354 : vector<8x1xf32> to vector<8x2xf32>
    %356 = arith.subf %352, %355 : vector<8x2xf32>
    %357 = math.exp %356 : vector<8x2xf32>
    %cst_113 = arith.constant dense<0.000000e+00> : vector<8xf32>
    %358 = vector.multi_reduction <add>, %357, %cst_113 [1] : vector<8x2xf32> to vector<8xf32>
    %359 = vector.shape_cast %358 : vector<8xf32> to vector<8x1xf32>
    %360 = tpu.reciprocal %359 {approx = true} : vector<8x1xf32> -> vector<8x1xf32>
    %361 = vector.broadcast %360 : vector<8x1xf32> to vector<8x2xf32>
    %362 = arith.mulf %357, %361 : vector<8x2xf32>
    %363 = arith.truncf %362 : vector<8x2xf32> to vector<8x2xbf16>
    %cst_114 = arith.constant dense<0.000000e+00> : vector<8x16xf32>
    %364 = tpu.matmul %363, %351, %cst_114 {dimension_numbers = #tpu.dot_dimension_numbers<[1], [0], [0], [1], [0, 0, 1, 1], [], []>} : vector<8x2xbf16>, vector<2x16xbf16>, vector<8x16xf32> -> vector<8x16xf32>
    %365 = vector.extract_strided_slice %226 {offsets = [0, 96], sizes = [8, 16], strides = [1, 1]} : vector<8x128xf32> to vector<8x16xf32>
    %cst_115 = arith.constant 2.500000e-01 : f32
    %366 = vector.broadcast %cst_115 : f32 to vector<8x16xf32>
    %367 = arith.mulf %365, %366 : vector<8x16xf32>
    %368 = arith.truncf %367 : vector<8x16xf32> to vector<8x16xbf16>
    %369 = vector.extract_strided_slice %235 {offsets = [0, 96], sizes = [2, 16], strides = [1, 1]} : vector<2x128xf32> to vector<2x16xf32>
    %370 = arith.truncf %369 : vector<2x16xf32> to vector<2x16xbf16>
    %371 = vector.extract_strided_slice %236 {offsets = [0, 96], sizes = [2, 16], strides = [1, 1]} : vector<2x128xf32> to vector<2x16xf32>
    %372 = arith.truncf %371 : vector<2x16xf32> to vector<2x16xbf16>
    %cst_116 = arith.constant dense<0.000000e+00> : vector<8x2xf32>
    %373 = tpu.matmul %368, %370, %cst_116 {dimension_numbers = #tpu.dot_dimension_numbers<[1], [1], [0], [0], [0, 0, 1, 0], [], []>} : vector<8x16xbf16>, vector<2x16xbf16>, vector<8x2xf32> -> vector<8x2xf32>
    %cst_117 = arith.constant dense<0xFF800000> : vector<8xf32>
    %374 = vector.multi_reduction <maximumf>, %373, %cst_117 [1] : vector<8x2xf32> to vector<8xf32>
    %375 = vector.shape_cast %374 : vector<8xf32> to vector<8x1xf32>
    %376 = vector.broadcast %375 : vector<8x1xf32> to vector<8x2xf32>
    %377 = arith.subf %373, %376 : vector<8x2xf32>
    %378 = math.exp %377 : vector<8x2xf32>
    %cst_118 = arith.constant dense<0.000000e+00> : vector<8xf32>
    %379 = vector.multi_reduction <add>, %378, %cst_118 [1] : vector<8x2xf32> to vector<8xf32>
    %380 = vector.shape_cast %379 : vector<8xf32> to vector<8x1xf32>
    %381 = tpu.reciprocal %380 {approx = true} : vector<8x1xf32> -> vector<8x1xf32>
    %382 = vector.broadcast %381 : vector<8x1xf32> to vector<8x2xf32>
    %383 = arith.mulf %378, %382 : vector<8x2xf32>
    %384 = arith.truncf %383 : vector<8x2xf32> to vector<8x2xbf16>
    %cst_119 = arith.constant dense<0.000000e+00> : vector<8x16xf32>
    %385 = tpu.matmul %384, %372, %cst_119 {dimension_numbers = #tpu.dot_dimension_numbers<[1], [0], [0], [1], [0, 0, 1, 1], [], []>} : vector<8x2xbf16>, vector<2x16xbf16>, vector<8x16xf32> -> vector<8x16xf32>
    %386 = vector.extract_strided_slice %226 {offsets = [0, 112], sizes = [8, 16], strides = [1, 1]} : vector<8x128xf32> to vector<8x16xf32>
    %cst_120 = arith.constant 2.500000e-01 : f32
    %387 = vector.broadcast %cst_120 : f32 to vector<8x16xf32>
    %388 = arith.mulf %386, %387 : vector<8x16xf32>
    %389 = arith.truncf %388 : vector<8x16xf32> to vector<8x16xbf16>
    %390 = vector.extract_strided_slice %235 {offsets = [0, 112], sizes = [2, 16], strides = [1, 1]} : vector<2x128xf32> to vector<2x16xf32>
    %391 = arith.truncf %390 : vector<2x16xf32> to vector<2x16xbf16>
    %392 = vector.extract_strided_slice %236 {offsets = [0, 112], sizes = [2, 16], strides = [1, 1]} : vector<2x128xf32> to vector<2x16xf32>
    %393 = arith.truncf %392 : vector<2x16xf32> to vector<2x16xbf16>
    %cst_121 = arith.constant dense<0.000000e+00> : vector<8x2xf32>
    %394 = tpu.matmul %389, %391, %cst_121 {dimension_numbers = #tpu.dot_dimension_numbers<[1], [1], [0], [0], [0, 0, 1, 0], [], []>} : vector<8x16xbf16>, vector<2x16xbf16>, vector<8x2xf32> -> vector<8x2xf32>
    %cst_122 = arith.constant dense<0xFF800000> : vector<8xf32>
    %395 = vector.multi_reduction <maximumf>, %394, %cst_122 [1] : vector<8x2xf32> to vector<8xf32>
    %396 = vector.shape_cast %395 : vector<8xf32> to vector<8x1xf32>
    %397 = vector.broadcast %396 : vector<8x1xf32> to vector<8x2xf32>
    %398 = arith.subf %394, %397 : vector<8x2xf32>
    %399 = math.exp %398 : vector<8x2xf32>
    %cst_123 = arith.constant dense<0.000000e+00> : vector<8xf32>
    %400 = vector.multi_reduction <add>, %399, %cst_123 [1] : vector<8x2xf32> to vector<8xf32>
    %401 = vector.shape_cast %400 : vector<8xf32> to vector<8x1xf32>
    %402 = tpu.reciprocal %401 {approx = true} : vector<8x1xf32> -> vector<8x1xf32>
    %403 = vector.broadcast %402 : vector<8x1xf32> to vector<8x2xf32>
    %404 = arith.mulf %399, %403 : vector<8x2xf32>
    %405 = arith.truncf %404 : vector<8x2xf32> to vector<8x2xbf16>
    %cst_124 = arith.constant dense<0.000000e+00> : vector<8x16xf32>
    %406 = tpu.matmul %405, %393, %cst_124 {dimension_numbers = #tpu.dot_dimension_numbers<[1], [0], [0], [1], [0, 0, 1, 1], [], []>} : vector<8x2xbf16>, vector<2x16xbf16>, vector<8x16xf32> -> vector<8x16xf32>
    %407 = tpu.concatenate %259, %280, %301, %322, %343, %364, %385, %406 in 1 : vector<8x16xf32>, vector<8x16xf32>, vector<8x16xf32>, vector<8x16xf32>, vector<8x16xf32>, vector<8x16xf32>, vector<8x16xf32>, vector<8x16xf32> -> vector<8x128xf32>
    %408 = arith.truncf %407 : vector<8x128xf32> to vector<8x128xbf16>
    %c0_125 = arith.constant 0 : index
    %c0_126 = arith.constant 0 : index
    %c0_127 = arith.constant 0 : index
    %409 = vector.load %arg13[%c0_125, %c0_126, %c0_127] : memref<1x128x128xbf16, #tpu.memory_space<vmem>>, vector<1x128x128xbf16>
    %410 = vector.shape_cast %409 : vector<1x128x128xbf16> to vector<128x128xbf16>
    %cst_128 = arith.constant dense<0.000000e+00> : vector<8x128xf32>
    %411 = tpu.matmul %408, %410, %cst_128 {dimension_numbers = #tpu.dot_dimension_numbers<[1], [0], [0], [1], [0, 0, 1, 1], [], []>} : vector<8x128xbf16>, vector<128x128xbf16>, vector<8x128xf32> -> vector<8x128xf32>
    %412 = vector.broadcast %238 : vector<1x128xf32> to vector<8x128xf32>
    %413 = arith.addf %411, %412 : vector<8x128xf32>
    %414 = arith.addf %218, %413 : vector<8x128xf32>
    %c0_129 = arith.constant 0 : index
    %c0_130 = arith.constant 0 : index
    %c0_131 = arith.constant 0 : index
    %415 = vector.load %arg15[%c0_129, %c0_130, %c0_131] : memref<1x1x128xf32, #tpu.memory_space<vmem>>, vector<1x1x128xf32>
    %416 = vector.shape_cast %415 : vector<1x1x128xf32> to vector<1x128xf32>
    %c0_132 = arith.constant 0 : index
    %c0_133 = arith.constant 0 : index
    %c0_134 = arith.constant 0 : index
    %417 = vector.load %arg16[%c0_132, %c0_133, %c0_134] : memref<1x1x128xf32, #tpu.memory_space<vmem>>, vector<1x1x128xf32>
    %418 = vector.shape_cast %417 : vector<1x1x128xf32> to vector<1x128xf32>
    %cst_135 = arith.constant dense<0.000000e+00> : vector<8xf32>
    %419 = vector.multi_reduction <add>, %414, %cst_135 [1] : vector<8x128xf32> to vector<8xf32>
    %420 = vector.shape_cast %419 : vector<8xf32> to vector<8x1xf32>
    %cst_136 = arith.constant 1.280000e+02 : f32
    %421 = vector.broadcast %cst_136 : f32 to vector<8x1xf32>
    %422 = arith.divf %420, %421 : vector<8x1xf32>
    %423 = vector.broadcast %422 : vector<8x1xf32> to vector<8x128xf32>
    %424 = arith.subf %414, %423 : vector<8x128xf32>
    %425 = arith.mulf %424, %424 : vector<8x128xf32>
    %cst_137 = arith.constant dense<0.000000e+00> : vector<8xf32>
    %426 = vector.multi_reduction <add>, %425, %cst_137 [1] : vector<8x128xf32> to vector<8xf32>
    %427 = vector.shape_cast %426 : vector<8xf32> to vector<8x1xf32>
    %cst_138 = arith.constant 1.280000e+02 : f32
    %428 = vector.broadcast %cst_138 : f32 to vector<8x1xf32>
    %429 = arith.divf %427, %428 : vector<8x1xf32>
    %cst_139 = arith.constant 9.99999974E-6 : f32
    %430 = vector.broadcast %cst_139 : f32 to vector<8x1xf32>
    %431 = arith.addf %429, %430 : vector<8x1xf32>
    %432 = math.rsqrt %431 : vector<8x1xf32>
    %433 = vector.broadcast %432 : vector<8x1xf32> to vector<8x128xf32>
    %434 = arith.mulf %424, %433 : vector<8x128xf32>
    %435 = vector.broadcast %416 : vector<1x128xf32> to vector<8x128xf32>
    %436 = arith.mulf %434, %435 : vector<8x128xf32>
    %437 = vector.broadcast %418 : vector<1x128xf32> to vector<8x128xf32>
    %438 = arith.addf %436, %437 : vector<8x128xf32>
    %c0_140 = arith.constant 0 : index
    %c0_141 = arith.constant 0 : index
    %c0_142 = arith.constant 0 : index
    %439 = vector.load %arg17[%c0_140, %c0_141, %c0_142] : memref<1x128x128xbf16, #tpu.memory_space<vmem>>, vector<1x128x128xbf16>
    %440 = vector.shape_cast %439 : vector<1x128x128xbf16> to vector<128x128xbf16>
    %441 = arith.truncf %438 : vector<8x128xf32> to vector<8x128xbf16>
    %cst_143 = arith.constant dense<0.000000e+00> : vector<8x128xf32>
    %442 = tpu.matmul %441, %440, %cst_143 {dimension_numbers = #tpu.dot_dimension_numbers<[1], [0], [0], [1], [0, 0, 1, 1], [], []>} : vector<8x128xbf16>, vector<128x128xbf16>, vector<8x128xf32> -> vector<8x128xf32>
    %c0_144 = arith.constant 0 : index
    %c0_145 = arith.constant 0 : index
    %c0_146 = arith.constant 0 : index
    %443 = vector.load %arg18[%c0_144, %c0_145, %c0_146] : memref<1x1x128xf32, #tpu.memory_space<vmem>>, vector<1x1x128xf32>
    %444 = vector.shape_cast %443 : vector<1x1x128xf32> to vector<1x128xf32>
    %445 = vector.broadcast %444 : vector<1x128xf32> to vector<8x128xf32>
    %446 = arith.addf %442, %445 : vector<8x128xf32>
    %cst_147 = arith.constant 0.000000e+00 : f32
    %447 = vector.broadcast %cst_147 : f32 to vector<8x128xf32>
    %448 = arith.maximumf %446, %447 : vector<8x128xf32>
    %c0_148 = arith.constant 0 : index
    %c0_149 = arith.constant 0 : index
    %c0_150 = arith.constant 0 : index
    %449 = vector.load %arg19[%c0_148, %c0_149, %c0_150] : memref<1x128x128xbf16, #tpu.memory_space<vmem>>, vector<1x128x128xbf16>
    %450 = vector.shape_cast %449 : vector<1x128x128xbf16> to vector<128x128xbf16>
    %451 = arith.truncf %448 : vector<8x128xf32> to vector<8x128xbf16>
    %cst_151 = arith.constant dense<0.000000e+00> : vector<8x128xf32>
    %452 = tpu.matmul %451, %450, %cst_151 {dimension_numbers = #tpu.dot_dimension_numbers<[1], [0], [0], [1], [0, 0, 1, 1], [], []>} : vector<8x128xbf16>, vector<128x128xbf16>, vector<8x128xf32> -> vector<8x128xf32>
    %453 = arith.addf %438, %452 : vector<8x128xf32>
    %c0_152 = arith.constant 0 : index
    %c0_153 = arith.constant 0 : index
    %c0_154 = arith.constant 0 : index
    %454 = vector.load %arg20[%c0_152, %c0_153, %c0_154] : memref<1x1x128xf32, #tpu.memory_space<vmem>>, vector<1x1x128xf32>
    %455 = vector.shape_cast %454 : vector<1x1x128xf32> to vector<1x128xf32>
    %456 = vector.broadcast %455 : vector<1x128xf32> to vector<8x128xf32>
    %457 = arith.addf %453, %456 : vector<8x128xf32>
    %c0_155 = arith.constant 0 : index
    %c0_156 = arith.constant 0 : index
    %c0_157 = arith.constant 0 : index
    %458 = vector.load %arg21[%c0_155, %c0_156, %c0_157] : memref<1x1x128xf32, #tpu.memory_space<vmem>>, vector<1x1x128xf32>
    %459 = vector.shape_cast %458 : vector<1x1x128xf32> to vector<1x128xf32>
    %c0_158 = arith.constant 0 : index
    %c0_159 = arith.constant 0 : index
    %c0_160 = arith.constant 0 : index
    %460 = vector.load %arg22[%c0_158, %c0_159, %c0_160] : memref<1x1x128xf32, #tpu.memory_space<vmem>>, vector<1x1x128xf32>
    %461 = vector.shape_cast %460 : vector<1x1x128xf32> to vector<1x128xf32>
    %cst_161 = arith.constant dense<0.000000e+00> : vector<8xf32>
    %462 = vector.multi_reduction <add>, %457, %cst_161 [1] : vector<8x128xf32> to vector<8xf32>
    %463 = vector.shape_cast %462 : vector<8xf32> to vector<8x1xf32>
    %cst_162 = arith.constant 1.280000e+02 : f32
    %464 = vector.broadcast %cst_162 : f32 to vector<8x1xf32>
    %465 = arith.divf %463, %464 : vector<8x1xf32>
    %466 = vector.broadcast %465 : vector<8x1xf32> to vector<8x128xf32>
    %467 = arith.subf %457, %466 : vector<8x128xf32>
    %468 = arith.mulf %467, %467 : vector<8x128xf32>
    %cst_163 = arith.constant dense<0.000000e+00> : vector<8xf32>
    %469 = vector.multi_reduction <add>, %468, %cst_163 [1] : vector<8x128xf32> to vector<8xf32>
    %470 = vector.shape_cast %469 : vector<8xf32> to vector<8x1xf32>
    %cst_164 = arith.constant 1.280000e+02 : f32
    %471 = vector.broadcast %cst_164 : f32 to vector<8x1xf32>
    %472 = arith.divf %470, %471 : vector<8x1xf32>
    %cst_165 = arith.constant 9.99999974E-6 : f32
    %473 = vector.broadcast %cst_165 : f32 to vector<8x1xf32>
    %474 = arith.addf %472, %473 : vector<8x1xf32>
    %475 = math.rsqrt %474 : vector<8x1xf32>
    %476 = vector.broadcast %475 : vector<8x1xf32> to vector<8x128xf32>
    %477 = arith.mulf %467, %476 : vector<8x128xf32>
    %478 = vector.broadcast %459 : vector<1x128xf32> to vector<8x128xf32>
    %479 = arith.mulf %477, %478 : vector<8x128xf32>
    %480 = vector.broadcast %461 : vector<1x128xf32> to vector<8x128xf32>
    %481 = arith.addf %479, %480 : vector<8x128xf32>
    %c0_166 = arith.constant 0 : index
    %c0_167 = arith.constant 0 : index
    %482 = vector.load %arg26[%c0_166, %c0_167] : memref<8x128xf32, #tpu.memory_space<vmem>>, vector<8x128xf32>
    tpu.vector_store %arg26[%c0_166, %c0_167], %481 {strides = array<i32>} : memref<8x128xf32, #tpu.memory_space<vmem>>, vector<8x128xf32>,
    %c3_i32 = arith.constant 3 : i32
    %483 = arith.cmpi eq, %arg0, %c3_i32 : i32
    %484 = arith.extui %483 : i1 to i32
    %c0_i32_168 = arith.constant 0 : i32
    %485 = arith.cmpi ne, %484, %c0_i32_168 : i32
    scf.if %485 {
      %c0_169 = arith.constant 0 : index
      %c0_170 = arith.constant 0 : index
      %486 = vector.load %arg23[%c0_169, %c0_170] : memref<1x128xf32, #tpu.memory_space<vmem>>, vector<1x128xf32>
      %c0_171 = arith.constant 0 : index
      %c0_172 = arith.constant 0 : index
      %487 = vector.load %arg24[%c0_171, %c0_172] : memref<1x128xf32, #tpu.memory_space<vmem>>, vector<1x128xf32>
      %cst_173 = arith.constant dense<0.000000e+00> : vector<8xf32>
      %488 = vector.multi_reduction <add>, %481, %cst_173 [1] : vector<8x128xf32> to vector<8xf32>
      %489 = vector.shape_cast %488 : vector<8xf32> to vector<8x1xf32>
      %cst_174 = arith.constant 1.280000e+02 : f32
      %490 = vector.broadcast %cst_174 : f32 to vector<8x1xf32>
      %491 = arith.divf %489, %490 : vector<8x1xf32>
      %492 = vector.broadcast %491 : vector<8x1xf32> to vector<8x128xf32>
      %493 = arith.subf %481, %492 : vector<8x128xf32>
      %494 = arith.mulf %493, %493 : vector<8x128xf32>
      %cst_175 = arith.constant dense<0.000000e+00> : vector<8xf32>
      %495 = vector.multi_reduction <add>, %494, %cst_175 [1] : vector<8x128xf32> to vector<8xf32>
      %496 = vector.shape_cast %495 : vector<8xf32> to vector<8x1xf32>
      %cst_176 = arith.constant 1.280000e+02 : f32
      %497 = vector.broadcast %cst_176 : f32 to vector<8x1xf32>
      %498 = arith.divf %496, %497 : vector<8x1xf32>
      %cst_177 = arith.constant 9.99999974E-6 : f32
      %499 = vector.broadcast %cst_177 : f32 to vector<8x1xf32>
      %500 = arith.addf %498, %499 : vector<8x1xf32>
      %501 = math.rsqrt %500 : vector<8x1xf32>
      %502 = vector.broadcast %501 : vector<8x1xf32> to vector<8x128xf32>
      %503 = arith.mulf %493, %502 : vector<8x128xf32>
      %504 = vector.broadcast %486 : vector<1x128xf32> to vector<8x128xf32>
      %505 = arith.mulf %503, %504 : vector<8x128xf32>
      %506 = vector.broadcast %487 : vector<1x128xf32> to vector<8x128xf32>
      %507 = arith.addf %505, %506 : vector<8x128xf32>
      %508 = arith.truncf %507 : vector<8x128xf32> to vector<8x128xbf16>
      %c0_178 = arith.constant 0 : index
      %c0_179 = arith.constant 0 : index
      %509 = vector.load %arg25[%c0_178, %c0_179] : memref<8x128xbf16, #tpu.memory_space<vmem>>, vector<8x128xbf16>
      tpu.vector_store %arg25[%c0_178, %c0_179], %508 {strides = array<i32>} : memref<8x128xbf16, #tpu.memory_space<vmem>>, vector<8x128xbf16>,
    } else {
    }
    return
  }
  func.func @transform_0(%arg0: i32) -> (i32, i32) {
    %c0_i32 = arith.constant 0 : i32
    %c0_i32_0 = arith.constant 0 : i32
    %c0_i32_1 = arith.constant 0 : i32
    return %c0_i32, %c0_i32_0 : i32, i32
  }
  func.func @transform_1(%arg0: i32) -> (i32, i32) {
    %c0_i32 = arith.constant 0 : i32
    %c0_i32_0 = arith.constant 0 : i32
    %c0_i32_1 = arith.constant 0 : i32
    return %c0_i32, %c0_i32_0 : i32, i32
  }
  func.func @transform_2(%arg0: i32) -> (i32, i32, i32) {
    %c0_i32 = arith.constant 0 : i32
    %c0_i32_0 = arith.constant 0 : i32
    %c0_i32_1 = arith.constant 0 : i32
    return %arg0, %c0_i32, %c0_i32_0 : i32, i32, i32
  }
  func.func @transform_3(%arg0: i32) -> (i32, i32, i32) {
    %c0_i32 = arith.constant 0 : i32
    %c0_i32_0 = arith.constant 0 : i32
    %c0_i32_1 = arith.constant 0 : i32
    return %arg0, %c0_i32, %c0_i32_0 : i32, i32, i32
  }
  func.func @transform_4(%arg0: i32) -> (i32, i32, i32) {
    %c0_i32 = arith.constant 0 : i32
    %c0_i32_0 = arith.constant 0 : i32
    %c0_i32_1 = arith.constant 0 : i32
    return %arg0, %c0_i32, %c0_i32_0 : i32, i32, i32
  }
  func.func @transform_5(%arg0: i32) -> (i32, i32, i32) {
    %c0_i32 = arith.constant 0 : i32
    %c0_i32_0 = arith.constant 0 : i32
    %c0_i32_1 = arith.constant 0 : i32
    return %arg0, %c0_i32, %c0_i32_0 : i32, i32, i32
  }
  func.func @transform_6(%arg0: i32) -> (i32, i32, i32) {
    %c0_i32 = arith.constant 0 : i32
    %c0_i32_0 = arith.constant 0 : i32
    %c0_i32_1 = arith.constant 0 : i32
    return %arg0, %c0_i32, %c0_i32_0 : i32, i32, i32
  }
  func.func @transform_7(%arg0: i32) -> (i32, i32, i32) {
    %c0_i32 = arith.constant 0 : i32
    %c0_i32_0 = arith.constant 0 : i32
    %c0_i32_1 = arith.constant 0 : i32
    return %arg0, %c0_i32, %c0_i32_0 : i32, i32, i32
  }
  func.func @transform_8(%arg0: i32) -> (i32, i32, i32) {
    %c0_i32 = arith.constant 0 : i32
    %c0_i32_0 = arith.constant 0 : i32
    %c0_i32_1 = arith.constant 0 : i32
    return %arg0, %c0_i32, %c0_i32_0 : i32, i32, i32
  }
  func.func @transform_9(%arg0: i32) -> (i32, i32, i32) {
    %c0_i32 = arith.constant 0 : i32
    %c0_i32_0 = arith.constant 0 : i32
    %c0_i32_1 = arith.constant 0 : i32
    return %arg0, %c0_i32, %c0_i32_0 : i32, i32, i32
  }
  func.func @transform_10(%arg0: i32) -> (i32, i32, i32) {
    %c0_i32 = arith.constant 0 : i32
    %c0_i32_0 = arith.constant 0 : i32
    %c0_i32_1 = arith.constant 0 : i32
    return %arg0, %c0_i32, %c0_i32_0 : i32, i32, i32
  }
  func.func @transform_11(%arg0: i32) -> (i32, i32, i32) {
    %c0_i32 = arith.constant 0 : i32
    %c0_i32_0 = arith.constant 0 : i32
    %c0_i32_1 = arith.constant 0 : i32
    return %arg0, %c0_i32, %c0_i32_0 : i32, i32, i32
  }
  func.func @transform_12(%arg0: i32) -> (i32, i32, i32) {
    %c0_i32 = arith.constant 0 : i32
    %c0_i32_0 = arith.constant 0 : i32
    %c0_i32_1 = arith.constant 0 : i32
    return %arg0, %c0_i32, %c0_i32_0 : i32, i32, i32
  }
  func.func @transform_13(%arg0: i32) -> (i32, i32, i32) {
    %c0_i32 = arith.constant 0 : i32
    %c0_i32_0 = arith.constant 0 : i32
    %c0_i32_1 = arith.constant 0 : i32
    return %arg0, %c0_i32, %c0_i32_0 : i32, i32, i32
  }
  func.func @transform_14(%arg0: i32) -> (i32, i32, i32) {
    %c0_i32 = arith.constant 0 : i32
    %c0_i32_0 = arith.constant 0 : i32
    %c0_i32_1 = arith.constant 0 : i32
    return %arg0, %c0_i32, %c0_i32_0 : i32, i32, i32
  }
  func.func @transform_15(%arg0: i32) -> (i32, i32, i32) {
    %c0_i32 = arith.constant 0 : i32
    %c0_i32_0 = arith.constant 0 : i32
    %c0_i32_1 = arith.constant 0 : i32
    return %arg0, %c0_i32, %c0_i32_0 : i32, i32, i32
  }
  func.func @transform_16(%arg0: i32) -> (i32, i32, i32) {
    %c0_i32 = arith.constant 0 : i32
    %c0_i32_0 = arith.constant 0 : i32
    %c0_i32_1 = arith.constant 0 : i32
    return %arg0, %c0_i32, %c0_i32_0 : i32, i32, i32
  }
  func.func @transform_17(%arg0: i32) -> (i32, i32, i32) {
    %c0_i32 = arith.constant 0 : i32
    %c0_i32_0 = arith.constant 0 : i32
    %c0_i32_1 = arith.constant 0 : i32
    return %arg0, %c0_i32, %c0_i32_0 : i32, i32, i32
  }
  func.func @transform_18(%arg0: i32) -> (i32, i32, i32) {
    %c0_i32 = arith.constant 0 : i32
    %c0_i32_0 = arith.constant 0 : i32
    %c0_i32_1 = arith.constant 0 : i32
    return %arg0, %c0_i32, %c0_i32_0 : i32, i32, i32
  }
  func.func @transform_19(%arg0: i32) -> (i32, i32, i32) {
    %c0_i32 = arith.constant 0 : i32
    %c0_i32_0 = arith.constant 0 : i32
    %c0_i32_1 = arith.constant 0 : i32
    return %arg0, %c0_i32, %c0_i32_0 : i32, i32, i32
  }
  func.func @transform_20(%arg0: i32) -> (i32, i32, i32) {
    %c0_i32 = arith.constant 0 : i32
    %c0_i32_0 = arith.constant 0 : i32
    %c0_i32_1 = arith.constant 0 : i32
    return %arg0, %c0_i32, %c0_i32_0 : i32, i32, i32
  }
  func.func @transform_21(%arg0: i32) -> (i32, i32, i32) {
    %c0_i32 = arith.constant 0 : i32
    %c0_i32_0 = arith.constant 0 : i32
    %c0_i32_1 = arith.constant 0 : i32
    return %arg0, %c0_i32, %c0_i32_0 : i32, i32, i32
  }
  func.func @transform_22(%arg0: i32) -> (i32, i32) {
    %c0_i32 = arith.constant 0 : i32
    %c0_i32_0 = arith.constant 0 : i32
    %c0_i32_1 = arith.constant 0 : i32
    return %c0_i32, %c0_i32_0 : i32, i32
  }
  func.func @transform_23(%arg0: i32) -> (i32, i32) {
    %c0_i32 = arith.constant 0 : i32
    %c0_i32_0 = arith.constant 0 : i32
    %c0_i32_1 = arith.constant 0 : i32
    return %c0_i32, %c0_i32_0 : i32, i32
  }
  func.func @transform_24(%arg0: i32) -> (i32, i32) {
    %c0_i32 = arith.constant 0 : i32
    %c0_i32_0 = arith.constant 0 : i32
    %c0_i32_1 = arith.constant 0 : i32
    return %c0_i32, %c0_i32_0 : i32, i32
  }
}

module attributes {stable_mosaic.version = 11 : i64} {
  func.func @_lm_head_kernel(%arg0: i32, %arg1: memref<8x128xbf16, #tpu.memory_space<vmem>>, %arg2: memref<128x128xbf16, #tpu.memory_space<vmem>>, %arg3: memref<1x128xf32, #tpu.memory_space<vmem>>, %arg4: memref<8x128xf32, #tpu.memory_space<vmem>>) attributes {dimension_semantics = [#tpu.dimension_semantics<parallel>], iteration_bounds = array<i64: 1>, scalar_prefetch = 0 : i64, scratch_operands = 0 : i64, tpu.core_type = #tpu.core_type<tc>, window_params = [{pipeline_mode = #tpu.pipeline_mode<synchronous>, transform_indices = @transform_0, window_bounds = array<i64: 8, 128>}, {transform_indices = @transform_1, window_bounds = array<i64: 128, 128>}, {transform_indices = @transform_2, window_bounds = array<i64: 1, 128>}, {transform_indices = @transform_3, window_bounds = array<i64: 8, 128>}]} {
    %c0 = arith.constant 0 : index
    %c0_0 = arith.constant 0 : index
    %0 = vector.load %arg1[%c0, %c0_0] : memref<8x128xbf16, #tpu.memory_space<vmem>>, vector<8x128xbf16>
    %c0_1 = arith.constant 0 : index
    %c0_2 = arith.constant 0 : index
    %1 = vector.load %arg2[%c0_1, %c0_2] : memref<128x128xbf16, #tpu.memory_space<vmem>>, vector<128x128xbf16>
    %cst = arith.constant dense<0.000000e+00> : vector<8x128xf32>
    %2 = tpu.matmul %0, %1, %cst {dimension_numbers = #tpu.dot_dimension_numbers<[1], [0], [0], [1], [0, 0, 1, 1], [], []>} : vector<8x128xbf16>, vector<128x128xbf16>, vector<8x128xf32> -> vector<8x128xf32>
    %c0_3 = arith.constant 0 : index
    %c0_4 = arith.constant 0 : index
    %3 = vector.load %arg3[%c0_3, %c0_4] : memref<1x128xf32, #tpu.memory_space<vmem>>, vector<1x128xf32>
    %4 = vector.broadcast %3 : vector<1x128xf32> to vector<8x128xf32>
    %5 = arith.addf %2, %4 : vector<8x128xf32>
    %c0_5 = arith.constant 0 : index
    %c0_6 = arith.constant 0 : index
    %6 = vector.load %arg4[%c0_5, %c0_6] : memref<8x128xf32, #tpu.memory_space<vmem>>, vector<8x128xf32>
    tpu.vector_store %arg4[%c0_5, %c0_6], %5 {strides = array<i32>} : memref<8x128xf32, #tpu.memory_space<vmem>>, vector<8x128xf32>,
    return
  }
  func.func @transform_0(%arg0: i32) -> (i32, i32) {
    %c0_i32 = arith.constant 0 : i32
    %c0_i32_0 = arith.constant 0 : i32
    %c0_i32_1 = arith.constant 0 : i32
    return %c0_i32, %c0_i32_0 : i32, i32
  }
  func.func @transform_1(%arg0: i32) -> (i32, i32) {
    %c0_i32 = arith.constant 0 : i32
    %c0_i32_0 = arith.constant 0 : i32
    return %c0_i32, %arg0 : i32, i32
  }
  func.func @transform_2(%arg0: i32) -> (i32, i32) {
    %c0_i32 = arith.constant 0 : i32
    %c0_i32_0 = arith.constant 0 : i32
    return %c0_i32, %arg0 : i32, i32
  }
  func.func @transform_3(%arg0: i32) -> (i32, i32) {
    %c0_i32 = arith.constant 0 : i32
    %c0_i32_0 = arith.constant 0 : i32
    return %c0_i32, %arg0 : i32, i32
  }
}

</mosaic_0001>

<bundles_post_ra>
// kernel: forward.5
= control target key start
LH: loop header
LB: loop body
LE: loop exit
PB: predicated region body
PF: predicated region fallthrough
CT: control target
= control target key end

     0   :  { %11 = vsyncpa [#allocation3], 0  ;;  %s869_s0 = inlined_call_operand.vmem [shape: f32[2,4,192], index: 0, kind: input, shape index: {}]   ;;  %s870_s1 = inlined_call_operand.vmem [shape: bf16[192,128], index: 1, kind: input, shape index: {}]   ;;  %s871_s2 = inlined_call_operand.vmem [shape: f32[1,128], index: 2, kind: input, shape index: {}]   ;;  %s872_s3 = inlined_call_operand.hbm [shape: f32[5,128], index: 3, kind: input, shape index: {}]   ;;  %s873_s4 = inlined_call_operand.hbm [shape: f32[1,128], index: 4, kind: input, shape index: {}]   ;;  %s874_s5 = inlined_call_operand.vmem [shape: f32[1,128], index: 5, kind: input, shape index: {}]   ;;  %s875_s6 = inlined_call_operand.vmem [shape: bf16[2,5,128], index: 6, kind: output, shape index: {}]  }
   0x1   :  { %12 = vsyncpa [#allocation5], 0  ;;  %s729_s21 = smov 0  }
   0x2 LB: > { %s735_s22 = sadd.s32 4294967295, %s689_s21   ;;  %p546_p0 = scmp.ge.s32.totalorder %s689_s21, 1  ;;  %s689_s21 = sphi %s729_s21, %s18_s21  }
   0x3   : > { %p180_p1 = scmp.lt.s32.totalorder %s689_s21, 3  ;;  %p876_p2 = scmp.eq.s32.totalorder %s735_s22, 0 }
   0x4   : > { %s691_s24 = smov [#allocation2]   ;;  %s692_s26 = smov [#allocation4]  }
   0x5   : > { %p740_p3 = pnand %p546_p0, %p180_p1  ;;  %s199_s25 = sshll.u32 %s691_s24, 4  ;;  %s200_s25 = int_to_ptr.vmem [resolvable:$true] %s199_s25 }
   0x6   : > { %s210_s27 = sshll.u32 %s692_s26, 4  ;;  %s619_s7 = scalar_lea.hbm %s872_s3, 128  ;;  %s752_s27 = int_to_ptr.vmem [resolvable:$true] %s210_s27 }
   0x7   : > { %s878_s23 = scalar_select %p740_p3, 1, 0 }
   0x8   : > { %p582_p4 = pneg %p740_p3  ;;  %p620_p6 = scmp.ne.s32.totalorder %s872_s3, %s619_s7 }
   0x9   : > { %p626_p10 = scmp.lt.u32.totalorder %s619_s7, %s872_s3 }
   0xa   : > { %p748_p5 = pnand %p876_p2, %p582_p4 }
   0xc   : > { %p621_p7 = pneg %p748_p5 }
   0xe   : > { %p622_p8 = pnand %p621_p7, %p620_p6 }
  0x10   : > { %p623_p9 = pneg %p622_p8 }
  0x12   : > { %p628_p11 = pnand %p626_p10, %p623_p9 }
  0x14   : > { %631 = shalt.err (!%p628_p11)
}
  0x15   : > { %s632_s12 = scalar_lea.vmem %s200_s25, 128  ;;  %p640_p1 = scmp.lt.s32.totalorder %s200_s25, %s200_s25 }
  0x16   : > { %p633_p12 = scmp.ne.s32.totalorder %s200_s25, %s632_s12  ;;  %p641_p4 = scmp.lt.s32.totalorder %s632_s12, %s632_s12 }
  0x18   : > { %p635_p13 = pnand %p633_p12, %p621_p7  ;;  %p642_p2 = por %p641_p4, %p640_p1 }
  0x1a   : > { %p636_p0 = pneg %p635_p13 }
  0x1c   : > { %p643_p3 = pnand %p642_p2, %p636_p0 }
  0x1e   : > { %646 = shalt.err (!%p643_p3)
}
  0x1f   : > { %585 = dma.hbm_to_vmem [thread:$0]  (!%p748_p5), %s872_s3, 128, %s200_s25, [#allocation3]  }
  0x20   : > { %s647_s17 = scalar_lea.hbm %s873_s4, 16 }
  0x21   : > { %p648_p6 = scmp.ne.s32.totalorder %s873_s4, %s647_s17  ;;  %p654_p3 = scmp.lt.u32.totalorder %s647_s17, %s873_s4 }
  0x23   : > { %p650_p8 = pnand %p648_p6, %p621_p7 }
  0x25   : > { %p651_p2 = pneg %p650_p8 }
  0x27   : > { %p656_p9 = pnand %p654_p3, %p651_p2 }
  0x29   : > { %659 = shalt.err (!%p656_p9)
}
  0x2a   : > { %s660_s25 = scalar_lea.vmem %s752_s27, 16  ;;  %s667_s26 = scalar_lea.vmem %s752_s27, 32 }
  0x2b   : > { %p661_p10 = scmp.ne.s32.totalorder %s752_s27, %s660_s25  ;;  %p668_p13 = scmp.lt.s32.totalorder %s752_s27, %s752_s27 }
  0x2c   : > { %p669_p0 = scmp.lt.s32.totalorder %s667_s26, %s660_s25 }
  0x2d   : > { %p663_p11 = pnand %p661_p10, %p621_p7 }
  0x2e   : > { %p670_p1 = por %p669_p0, %p668_p13 }
  0x2f   : > { %p664_p12 = pneg %p663_p11 }
  0x31   : > { %p671_p4 = pnand %p670_p1, %p664_p12 }
  0x33   : > { %674 = shalt.err (!%p671_p4)
}
  0x34   : > { %588 = dma.hbm_to_vmem [thread:$0]  (!%p748_p5), %s873_s4, 16, %s752_s27, [#allocation5]  }
  0x35   : > { %p880_p6 = scmp.ne.s32.totalorder %s878_s23, 0 }
  0x36   : > { %p881_p7 = scmp.eq.s32.totalorder (!%p880_p6), %s735_s22, 0 }
  0x37   : > { %234 = sbr.rel (%p880_p6) target bundleno = 649 (0x289), region = 44 }
  0x3e   : > { %680 = dma.done.wait (%p881_p7), [#allocation3], 128   ;;  %p882_p8 = pmov %p881_p7 }
  0x3f   : > { %p883_p2 = pmov %p881_p7 }
  0x40   : > { %682 = vsyncadd (%p882_p8), [#allocation3], 4294967168 }
  0x41   : > { %684 = dma.done.wait (%p883_p2), [#allocation5], 16   ;;  %p884_p3 = pmov %p883_p2 }
  0x42   : > { %v693_v0 = vmov 0   ;;  %p267_p5 = scmp.lt.s32.totalorder %s735_s22, 1  ;;  %v604_v1 = vld [vmem:[%s870_s1] sm:$0xff]   ;;  %v605_v2 = vld [vmem:[%s870_s1 + $0x8] sm:$0xff]   ;;  %v606_v3 = vld [vmem:[%s870_s1 + $0x10] sm:$0xff]   ;;  %vm379_vm0 = vcmask 523264  }
  0x43   : > { %686 = vsyncadd (%p884_p3), [#allocation5], 4294967280  ;;  %383 = vmatprep.subr.bf16.mxu0 %v693_v0  ;;  %v607_v4 = vld [vmem:[%s870_s1 + $0x18] sm:$0xff]   ;;  %v608_v7 = vld [vmem:[%s870_s1 + $0x20] sm:$0xff]   ;;  %vm427_vm1 = vcmask 1040384   ;;  %vm433_vm2 = vcmask 1044480  }
  0x44   : > { %384 = vmatpush1.bf16.msra.mxu0 %v604_v1  ;;  %s886_s22 = smov (!%p267_p5, %s735_s22), 1  ;;  %v609_v9 = vld [vmem:[%s870_s1 + $0x28] sm:$0xff]   ;;  %v610_v10 = vld [vmem:[%s870_s1 + $0x30] sm:$0xff]   ;;  %v611_v11 = vld [vmem:[%s870_s1 + $0x38] sm:$0xff]   ;;  %vm463_vm3 = vcmask 1042432  }
  0x45   : > { %385 = vmatprep.subr.bf16.mxu0 %v693_v0  ;;  %s573_s10 = sshll.u32 %s886_s22, 3  ;;  %v612_v12 = vld [vmem:[%s870_s1 + $0x40] sm:$0xff]   ;;  %v613_v13 = vld [vmem:[%s870_s1 + $0x48] sm:$0xff]   ;;  %v614_v14 = vld [vmem:[%s870_s1 + $0x50] sm:$0xff]   ;;  %s555_s12 = sshll.u32 %s886_s22, 2 }
  0x46   : > { %s271_s13 = scalar_lea.vmem %s869_s0, %s573_s10  ;;  %v615_v15 = vld [vmem:[%s870_s1 + $0x58] sm:$0xff]   ;;  %v423_v18 = vld [vmem:[%s871_s2] sm:$0x1]  ;;  %v569_v36 = vld [vmem:[#allocation4] ss:$0 sm:$0xff]  ;;  %s275_s17 = scalar_lea.vmem %s875_s6, %s555_s12 }
  0x47   : > { %v277_v5 = vld [vmem:[%s271_s13] sm:$0xff]  ;;  %vm464_vm4 = vsmask.f32 2304 }
  0x48   : > { %386 = vmatpush1.bf16.msra.mxu0 %v605_v2  ;;  %v303_v6 = vcombine.high %v277_v5, %v277_v5  ;;  %v305_v16 = vpack.c.bf16 %v277_v5, %v277_v5  ;;  %v429_v21 = vld [vmem:[#allocation2] sm:$0x1f]  ;;  %vm465_vm5 = vmand %vm463_vm3, %vm464_vm4 }
  0x49   : > { %387 = vmatprep.subr.bf16.mxu0 %v693_v0  ;;  %v570_v38 = vld [vmem:[%s874_s5] ss:$0 sm:$0xff] }
  0x4a   : > { %v306_v8 = vpack.c.bf16 %v303_v6, %v303_v6  ;;  %v466_v41 = vld [vmem:[%s275_s17] sm:$0x7] }
  0x4c   : > { %388 = vmatpush1.bf16.msra.mxu0 %v606_v3  ;;  %568 = vmatprep.mubr.msk.bf16.mxu0 %vm379_vm0, %v306_v8 }
  0x4d   : > { %389 = vmatprep.subr.bf16.mxu0 %v693_v0 }
  0x50   : > { %390 = vmatpush1.bf16.msra.mxu0 %v607_v4 }
  0x51   : > { %391 = vmatprep.subr.bf16.mxu0 %v693_v0 }
  0x54   : > { %392 = vmatpush1.bf16.msra.mxu0 %v608_v7 }
  0x55   : > { %393 = vmatprep.subr.bf16.mxu0 %v693_v0 }
  0x58   : > { %394 = vmatpush1.bf16.msra.mxu0 %v609_v9 }
  0x59   : > { %395 = vmatprep.subr.bf16.mxu0 %v693_v0 }
  0x5c   : > { %396 = vmatpush1.bf16.msra.mxu0 %v610_v10 }
  0x5d   : > { %397 = vmatprep.subr.bf16.mxu0 %v693_v0 }
  0x60   : > { %398 = vmatpush1.bf16.msra.mxu0 %v611_v11 }
  0x61   : > { %399 = vmatprep.subr.bf16.mxu0 %v693_v0 }
  0x64   : > { %400 = vmatpush1.bf16.msra.mxu0 %v612_v12 }
  0x65   : > { %401 = vmatprep.subr.bf16.mxu0 %v693_v0 }
  0x68   : > { %402 = vmatpush1.bf16.msra.mxu0 %v613_v13 }
  0x69   : > { %403 = vmatprep.subr.bf16.mxu0 %v693_v0 }
  0x6c   : > { %404 = vmatpush1.bf16.msra.mxu0 %v614_v14 }
  0x6d   : > { %405 = vmatprep.subr.bf16.mxu0 %v693_v0 }
  0x70   : > { %406 = vmatpush1.bf16.msra.mxu0 %v615_v15 }
  0x73   : > { %416 = vmatmul.mubr.bf16.vlgmr.msra.gmra.mrb[0].mxu0 %v305_v16 }
 0x146   : > { %v417_v17 = vpop.f32.mrb[0].mxu0 }
 0x147   : > { %v425_v19 = vrot.slane %v417_v17, 7  ;;  %v419_v20 = vpop.f32.mrb[1].mxu0 }
 0x148   : > { %v420_v22 = vpop.f32.mrb[2].mxu0 }
 0x149   : > { %v421_v23 = vpop.f32.mrb[3].mxu0  ;;  %v428_v24 = vsel %vm427_vm1, %v423_v18, %v425_v19 }
 0x14a   : > { %v430_v25 = vadd.f32 %v429_v21, %v428_v24 }
 0x14c   : > { %v434_v26 = vsel %vm433_vm2, %v430_v25, 0.0 }
 0x14d   : > { %435 = vadd.xlane.f32.xlu0 %v434_v26 }
 0x1da   : > { %v436_v27 = vpop.xlane.xlu0 %435 }
 0x1db   : > { %v438_v28 = vmul.f32 0.0078125, %v436_v27 }
 0x1dd   : > { %v439_v29 = vsub.f32 %v430_v25, %v438_v28 }
 0x1df   : > { %v440_v30 = vmul.f32 %v439_v29, %v439_v29 }
 0x1e1   : > { %v441_v31 = vsel %vm433_vm2, %v440_v30, 0.0 }
 0x1e2   : > { %442 = vadd.xlane.f32.xlu0 %v441_v31 }
 0x26f   : > { %v443_v32 = vpop.xlane.xlu0 %442 }
 0x270   : > { %v444_v33 = vmul.f32 0.0078125, %v443_v32 }
 0x272   : > { %v445_v34 = vadd.f32 1e-05, %v444_v33 }
 0x274   : > { %617 = vrsqrt.f32 %v445_v34 }
 0x27e   : > { %v618_v35 = vpop.eup %617 }
 0x27f   : > { %v447_v37 = vmul.f32 %v618_v35, %v439_v29 }
 0x281   : > { %v454_v39 = vmul.f32 %v569_v36, %v447_v37 }
 0x283   : > { %v461_v40 = vadd.f32 %v570_v38, %v454_v39 }
 0x285   : > { %v462_v42 = vpack.c.bf16 %v461_v40, %v461_v40 }
 0x287   : > { %v467_v43 = vsel %vm465_vm5, %v462_v42, %v466_v41 }
 0x288   : > { %468 = vst [vmem:[%s275_s17] sm:$0x7] %v467_v43 }
 0x289 PF: > { %s18_s21 = sadd.s32 1, %s689_s21  }
 0x28a   : > { %p15_p9 = scmp.ge.s32.totalorder %s18_s21, 4  }
 0x28c   :  { %17 = sbr.rel (!%p15_p9) target bundleno = 2 (0x2), region = 83 }
 0x293   :  { %488 = vsyncpa [#allocation3], 1 }
 0x294   :  { %490 = vsyncpa [#allocation3 + $0x1], 1 }
 0x295   :  { %491 = vsyncpa [#allocation5], 1 }

// kernel: forward.9
= control target key start
LH: loop header
LB: loop body
LE: loop exit
PB: predicated region body
PF: predicated region fallthrough
CT: control target
= control target key end

     0   :  { %v216_v1 = vmov 0.0   ;;  %vm217_vm0 = vmmov 0   ;;  %s281_s0 = inlined_call_operand.vmem [shape: bf16[8,128], index: 0, kind: input, shape index: {}]   ;;  %s282_s1 = inlined_call_operand.vmem [shape: bf16[128,128], index: 1, kind: input, shape index: {}]   ;;  %s283_s2 = inlined_call_operand.vmem [shape: f32[1,128], index: 2, kind: input, shape index: {}]   ;;  %s284_s3 = inlined_call_operand.hbm [shape: f32[8,128], index: 3, kind: output, shape index: {}]  }
   0x1   :  { %v184_v0 = vld [vmem:[%s282_s1] sm:$0xff]   ;;  %161 = vmatprep.subr.bf16.mxu0 %v216_v1  ;;  %v185_v2 = vld [vmem:[%s282_s1 + $0x8] sm:$0xff]   ;;  %177 = vmatprep.mubr.msk.bf16.mxu0 %vm217_vm0, %v216_v1  ;;  %v186_v3 = vld [vmem:[%s282_s1 + $0x10] sm:$0xff]  }
   0x2   :  { %162 = vmatpush3.bf16.msra.mxu0 %v184_v0 }
   0x3   :  { %163 = vmatprep.subr.bf16.mxu0 %v216_v1 }
   0x6   :  { %164 = vmatpush3.bf16.msra.mxu0 %v185_v2 }
   0x7   :  { %165 = vmatprep.subr.bf16.mxu0 %v216_v1 }
   0x8   :  { %8 = vsyncpa [#allocation3], 0  ;;  %v187_v4 = vld [vmem:[%s282_s1 + $0x18] sm:$0xff]   ;;  %v188_v5 = vld [vmem:[%s282_s1 + $0x20] sm:$0xff]   ;;  %s218_s5 = smov [#allocation2]  }
   0x9   :  { %v189_v6 = vld [vmem:[%s282_s1 + $0x28] sm:$0xff]   ;;  %v190_v7 = vld [vmem:[%s282_s1 + $0x30] sm:$0xff]   ;;  %v191_v8 = vld [vmem:[%s282_s1 + $0x38] sm:$0xff]   ;;  %s135_s6 = sshll.u32 %s218_s5, 4  ;;  %s136_s6 = int_to_ptr.vmem [resolvable:$true] %s135_s6 }
   0xa   :  { %166 = vmatpush3.bf16.msra.mxu0 %v186_v3  ;;  %v16_v9 = vld [vmem:[%s281_s0] sm:$0xf]  ;;  %s192_s1 = scalar_lea.vmem %s136_s6, 128  ;;  %p197_p1 = scmp.lt.s32.totalorder %s136_s6, %s136_s6 }
   0xb   :  { %167 = vmatprep.subr.bf16.mxu0 %v216_v1  ;;  %v143_v10 = vld [vmem:[%s283_s2] ss:$0 sm:$0xff]  ;;  %p193_p0 = scmp.ne.s32.totalorder %s136_s6, %s192_s1  ;;  %p198_p2 = scmp.lt.s32.totalorder %s192_s1, %s192_s1 }
   0xd   :  { %p199_p3 = por %p198_p2, %p197_p1 }
   0xe   :  { %168 = vmatpush3.bf16.msra.mxu0 %v187_v4 }
   0xf   :  { %169 = vmatprep.subr.bf16.mxu0 %v216_v1  ;;  %p200_p4 = pnand %p199_p3, %p193_p0 }
  0x12   :  { %170 = vmatpush3.bf16.msra.mxu0 %v188_v5 }
  0x13   :  { %171 = vmatprep.subr.bf16.mxu0 %v216_v1 }
  0x16   :  { %172 = vmatpush3.bf16.msra.mxu0 %v189_v6 }
  0x17   :  { %173 = vmatprep.subr.bf16.mxu0 %v216_v1 }
  0x1a   :  { %174 = vmatpush3.bf16.msra.mxu0 %v190_v7 }
  0x1b   :  { %175 = vmatprep.subr.bf16.mxu0 %v216_v1 }
  0x1e   :  { %176 = vmatpush3.bf16.msra.mxu0 %v191_v8 }
  0x21   :  { %178 = vmatmul.mubr.bf16.vlgmr.msra.gmra.mrb[0].mxu0 %v16_v9 }
  0xf4   :  { %v122_v11 = vpop.f32.mrb[0].mxu0 }
  0xf5   :  { %v123_v12 = vadd.f32 %v143_v10, %v122_v11  ;;  %v179_v13 = vpop.f32.mrb[1].mxu0 }
  0xf6   :  { %v125_v14 = vpop.f32.mrb[2].mxu0 }
  0xf7   :  { %128 = vst [vmem:[#allocation2] sm:$0xff] %v123_v12  ;;  %v180_v15 = vpop.f32.mrb[3].mxu0 }
  0xf8   :  { %203 = shalt.err (!%p200_p4)
}
  0xf9   :  { %s204_s2 = scalar_lea.hbm %s284_s3, 128 }
  0xfa   :  { %p205_p5 = scmp.ne.s32.totalorder %s284_s3, %s204_s2  ;;  %p208_p6 = scmp.lt.u32.totalorder %s204_s2, %s284_s3 }
  0xfc   :  { %p210_p7 = pnand %p208_p6, %p205_p5 }
  0xfe   :  { %213 = shalt.err (!%p210_p7)
}
  0xff   :  { %138 = dma.vmem_to_hbm [thread:$0]  %s136_s6, 128, %s284_s3, [#allocation3]  }
 0x100   :  { %214 = dma.done.wait [#allocation3], 128  }
 0x101   :  { %215 = vsyncadd [#allocation3], 4294967168 }
 0x102   :  { %142 = vsyncpa [#allocation3], 1 }

// kernel: forward.6
= control target key start
LH: loop header
LB: loop body
LE: loop exit
PB: predicated region body
PF: predicated region fallthrough
CT: control target
= control target key end

     0   :  { %s4906_s0 = inlined_call_operand.vmem [shape: bf16[10,128], index: 0, kind: input, shape index: {}]   ;;  %s4907_s1 = inlined_call_operand.vmem [shape: f32[10,10], index: 1, kind: input, shape index: {}]   ;;  %s4908_s2 = inlined_call_operand.vmem [shape: f32[2,1,128], index: 2, kind: input, shape index: {}]   ;;  %s4909_s3 = inlined_call_operand.vmem [shape: f32[2,1,128], index: 3, kind: input, shape index: {}]   ;;  %s4910_s4 = inlined_call_operand.hbm [shape: bf16[2,128,384], index: 4, kind: input, shape index: {}]   ;;  %s4911_s5 = inlined_call_operand.hbm [shape: f32[2,1,384], index: 5, kind: input, shape index: {}]   ;;  %s4912_s6 = inlined_call_operand.vmem [shape: bf16[2,128,128], index: 6, kind: input, shape index: {}]   ;;  %s4913_s7 = inlined_call_operand.hbm [shape: f32[2,1,128], index: 7, kind: input, shape index: {}]   ;;  %s4914_s8 = inlined_call_operand.hbm [shape: f32[2,1,128], index: 8, kind: input, shape index: {}]   ;;  %s4915_s9 = inlined_call_operand.hbm [shape: f32[2,1,128], index: 9, kind: input, shape index: {}]   ;;  %s4916_s10 = inlined_call_operand.vmem [shape: bf16[2,128,512], index: 10, kind: input, shape index: {}]   ;;  %s4917_s11 = inlined_call_operand.hbm [shape: f32[2,1,512], index: 11, kind: input, shape index: {}]   ;;  %s4918_s12 = inlined_call_operand.vmem [shape: bf16[2,512,128], index: 12, kind: input, shape index: {}]   ;;  %s4919_s13 = inlined_call_operand.hbm [shape: f32[2,1,128], index: 13, kind: input, shape index: {}]   ;;  %s4920_s14 = inlined_call_operand.hbm [shape: f32[1,128], index: 14, kind: input, shape index: {}]   ;;  %s4921_s15 = inlined_call_operand.hbm [shape: f32[1,128], index: 15, kind: input, shape index: {}]   ;;  %s4922_s16 = inlined_call_operand.hbm [shape: bf16[128,128], index: 16, kind: input, shape index: {}]   ;;  %s4923_s17 = inlined_call_operand.vmem [shape: bf16[2,128], index: 17, kind: output, shape index: {}]  }
   0x1   :  { %4944 = sst [smem:[#allocation29_spill]] %s4906_s0 }
   0x2   :  { %4945 = sst [smem:[#allocation30_spill]] %s4907_s1 }
   0x3   :  { %4946 = sst [smem:[#allocation31_spill]] %s4908_s2 }
   0x4   :  { %4947 = sst [smem:[#allocation32_spill]] %s4909_s3 }
   0x5   :  { %4948 = sst [smem:[#allocation33_spill]] %s4910_s4 }
   0x6   :  { %4949 = sst [smem:[#allocation34_spill]] %s4911_s5 }
   0x7   :  { %4950 = sst [smem:[#allocation35_spill]] %s4912_s6 }
   0x8   :  { %4951 = sst [smem:[#allocation36_spill]] %s4914_s8 }
   0x9   :  { %4952 = sst [smem:[#allocation37_spill]] %s4916_s10 }
   0xa   :  { %4953 = sst [smem:[#allocation38_spill]] %s4917_s11 }
   0xb   :  { %4954 = sst [smem:[#allocation39_spill]] %s4918_s12 }
   0xc   :  { %4955 = sst [smem:[#allocation40_spill]] %s4920_s14 }
   0xd   :  { %4956 = sst [smem:[#allocation41_spill]] %s4923_s17 }
   0xe   :  { %22 = vsyncpa [#allocation4], 0 }
   0xf   :  { %24 = vsyncpa [#allocation4 + $0x1], 0 }
  0x10   :  { %25 = vsyncpa [#allocation6], 0 }
  0x11   :  { %27 = vsyncpa [#allocation6 + $0x1], 0 }
  0x12   :  { %28 = vsyncpa [#allocation9], 0 }
  0x13   :  { %30 = vsyncpa [#allocation9 + $0x1], 0 }
  0x14   :  { %31 = vsyncpa [#allocation12], 0 }
  0x15   :  { %33 = vsyncpa [#allocation12 + $0x1], 0 }
  0x16   :  { %34 = vsyncpa [#allocation15], 0 }
  0x17   :  { %35 = vsyncpa [#allocation18], 0  ;;  %s4151_s24 = smov 0   ;;  %s4153_s25 = smov 0  }
  0x18   :  { %s4155_s26 = smov 0   ;;  %s4157_s27 = smov 0  }
  0x19 LB: > { %4957 = sst [smem:[#allocation25_spill]] %s4033_s26  ;;  %s4170_s28 = sadd.s32 4294967295, %s4037_s27   ;;  %s4037_s27 = sphi %s4157_s27, %s5010_s27   ;;  %s4033_s26 = sphi %s4155_s26, %s5012_s26   ;;  %s4029_s25 = sphi %s4153_s25, %s5014_s25   ;;  %s4025_s24 = sphi %s4151_s24, %s5013_s24  }
  0x1a   : > { %4958 = sst [smem:[#allocation26_spill]] %s4170_s28  ;;  %s4173_s29 = sadd.s32 1, %s4037_s27  }
  0x1b   : > { %4959 = sst [smem:[#allocation27_spill]] %s4173_s29  ;;  %s139_s0 = ssub.s32 %s4037_s27, %s4173_s29 }
  0x1c   : > { %s142_s30 = sadd.s32 1, %s4033_s26  ;;  %p140_p0 = scmp.eq.s32.totalorder %s139_s0, 0 }
  0x1d   : > { %p149_p1 = scmp.ne.s32.totalorder %s4033_s26, %s4029_s25  ;;  %p150_p2 = scmp.eq.s32.totalorder %s4037_s27, 0 }
  0x1e   : > { %p155_p3 = scmp.ne.s32.totalorder %s4029_s25, %s4025_s24  ;;  %p4929_p5 = scmp.eq.s32.totalorder %s4170_s28, 0 }
  0x1f   : > { %s4183_s18 = scalar_select %p140_p0, %s4033_s26, %s142_s30  }
  0x20   : > { %p4185_p4 = por %p150_p2, %p149_p1  ;;  %p2996_p6 = scmp.ge.s32.totalorder %s4037_s27, 1 }
  0x21   : > { %4960 = sst [smem:[#allocation28_spill]] %s4183_s18  ;;  %p484_p7 = scmp.lt.s32.totalorder %s4037_s27, 3 }
  0x22   : > { %p4194_p8 = por %p4929_p5, %p155_p3  ;;  %s4039_s21 = smov [#allocation14]  }
  0x23   : > { %p4199_p10 = pnand %p2996_p6, %p484_p7  ;;  %s503_s22 = sshll.u32 %s4039_s21, 4  ;;  %s504_s22 = int_to_ptr.vmem [resolvable:$true] %s503_s22 }
  0x24   : > { %s4962_s1 = scalar_select %p4194_p8, 1, 0 }
  0x25   : > { %s4963_s20 = scalar_select %p4199_p10, 1, 0 }
  0x26   : > { %p3384_p11 = pneg %p4199_p10  ;;  %p3419_p12 = scmp.lt.s32.totalorder %s4037_s27, 2 }
  0x27   : > { %s4207_s23 = sand.u32 1, %s4033_s26   ;;  %s4216_s0 = sand.u32 1, %s4037_s27  }
  0x28   : > { %p4211_p13 = pnand %p3384_p11, %p4929_p5  ;;  %p4220_p0 = pnand %p3419_p12, %p4185_p4 }
  0x29   : > { %s3354_s21 = smul.u32 3, %s4207_s23  ;;  %s4966_s14 = sld [smem:[#allocation40_spill]] }
  0x2a   : > { %s4964_s24 = scalar_select %p4211_p13, 1, 0 }
  0x2b   : > { %s4965_s30 = scalar_select %p4220_p0, 1, 0 }
  0x2c   : > { %p4233_p2 = pneg %p4211_p13 }
  0x2e   : > { %s4967_s10 = scalar_select %p4233_p2, 1, 0 }
  0x2f   : > { %s3689_s26 = scalar_lea.hbm %s4966_s14, 16 }
  0x30   : > { %p3690_p1 = scmp.ne.s32.totalorder %s4966_s14, %s3689_s26  ;;  %p3696_p6 = scmp.lt.u32.totalorder %s3689_s26, %s4966_s14 }
  0x32   : > { %p3692_p3 = pnand %p4233_p2, %p3690_p1 }
  0x34   : > { %p3693_p4 = pneg %p3692_p3 }
  0x36   : > { %p3698_p7 = pnand %p3696_p6, %p3693_p4 }
  0x38   : > { %3701 = shalt.err (!%p3698_p7)
}
  0x39   : > { %s3702_s29 = scalar_lea.vmem %s504_s22, 16  ;;  %s3709_s12 = scalar_lea.vmem %s504_s22, 32 }
  0x3a   : > { %p3703_p11 = scmp.ne.s32.totalorder %s504_s22, %s3702_s29  ;;  %p3710_p5 = scmp.lt.s32.totalorder %s504_s22, %s504_s22 }
  0x3b   : > { %p3711_p8 = scmp.lt.s32.totalorder %s3709_s12, %s3702_s29 }
  0x3c   : > { %p3705_p12 = pnand %p3703_p11, %p4233_p2 }
  0x3d   : > { %p3712_p10 = por %p3711_p8, %p3710_p5 }
  0x3e   : > { %p3706_p9 = pneg %p3705_p12 }
  0x40   : > { %p3713_p0 = pnand %p3712_p10, %p3706_p9 }
  0x42   : > { %3716 = shalt.err (!%p3713_p0)
}
  0x43   : > { %3387 = dma.hbm_to_vmem [thread:$0]  (!%p4211_p13), %s4966_s14, 16, %s504_s22, [#allocation15]  }
  0x44   : > { %s3355_s6 = smul.u32 48, %s4037_s27  ;;  %s575_s26 = scalar_lea.vmem [#allocation5], %s3354_s21 }
  0x45   : > { %s583_s19 = sshll.u32 %s575_s26, 4  ;;  %s4253_s3 = sshll.u32 %s4037_s27, 4  ;;  %s4250_s19 = int_to_ptr.vmem [resolvable:$true] %s583_s19 }
  0x46   : > { %s4968_s5 = sld [smem:[#allocation34_spill]]  ;;  %p4969_p8 = scmp.ne.s32.totalorder %s4965_s30, 0 }
  0x48   : > { %p4265_p9 = pneg %p4969_p8 }
  0x4a   : > { %s4970_s22 = scalar_select %p4265_p9, 1, 0 }
  0x4c   : > { %s4258_s2 = scalar_lea.hbm %s4968_s5, %s3355_s6  ;;  %s3722_s6 = scalar_lea.hbm %s4968_s5, 96 }
  0x4d   : > { %s3717_s18 = scalar_lea.hbm %s4258_s2, 48  ;;  %p3723_p1 = scmp.lt.u32.totalorder %s4258_s2, %s4968_s5 }
  0x4e   : > { %p3718_p5 = scmp.ne.s32.totalorder %s4258_s2, %s3717_s18  ;;  %p3724_p3 = scmp.lt.u32.totalorder %s3722_s6, %s3717_s18 }
  0x4f   : > { %p3726_p6 = scmp.lt.u32.totalorder %s3717_s18, %s4258_s2 }
  0x50   : > { %p3720_p10 = pnand %p4265_p9, %p3718_p5  ;;  %p3725_p4 = por %p3724_p3, %p3723_p1 }
  0x52   : > { %p3721_p0 = pneg %p3720_p10  ;;  %p3727_p7 = por %p3726_p6, %p3725_p4 }
  0x54   : > { %p3728_p11 = pnand %p3727_p7, %p3721_p0 }
  0x56   : > { %3731 = shalt.err (!%p3728_p11)
}
  0x57   : > { %s3732_s17 = scalar_lea.vmem %s4250_s19, 48  ;;  %s4040_s21 = smov [#allocation5]  }
  0x58   : > { %p3733_p12 = scmp.ne.s32.totalorder %s4250_s19, %s3732_s17  ;;  %s3737_s26 = sshll.u32 %s4040_s21, 4  ;;  %s3738_s26 = int_to_ptr.vmem [resolvable:$false] %s3737_s26 }
  0x59   : > { %s3739_s29 = scalar_lea.vmem %s3738_s26, 96  ;;  %p3740_p13 = scmp.lt.s32.totalorder %s4250_s19, %s3738_s26 }
  0x5a   : > { %p3735_p5 = pnand %p3733_p12, %p4265_p9  ;;  %p3741_p2 = scmp.lt.s32.totalorder %s3739_s29, %s3732_s17 }
  0x5c   : > { %p3736_p10 = pneg %p3735_p5  ;;  %p3742_p1 = por %p3741_p2, %p3740_p13 }
  0x5e   : > { %p3743_p3 = pnand %p3742_p1, %p3736_p10 }
  0x60   : > { %3746 = shalt.err (!%p3743_p3)
}
  0x61   : > { %s4971_s18 = scalar_lea.sflag [#allocation6], %s4216_s0  ;;  %s4972_s8 = sld [smem:[#allocation36_spill]] }
  0x62   : > { %3400 = dma.hbm_to_vmem [thread:$0]  (!%p4969_p8), %s4258_s2, 48, %s4250_s19, %s4971_s18  }
  0x63   : > { %s618_s17 = scalar_lea.vmem [#allocation8], %s4207_s23  ;;  %s3006_s29 = sshll.u32 %s4207_s23, 2 }
  0x64   : > { %s625_s26 = sshll.u32 %s618_s17, 4  ;;  %s4937_s5 = scalar_lea.sflag [#allocation9], %s4216_s0  ;;  %s4297_s26 = int_to_ptr.vmem [resolvable:$true] %s625_s26 }
  0x67   : > { %s4294_s21 = scalar_lea.hbm %s4972_s8, %s4253_s3  ;;  %s3752_s18 = scalar_lea.hbm %s4972_s8, 32 }
  0x68   : > { %s3747_s14 = scalar_lea.hbm %s4294_s21, 16  ;;  %p3753_p4 = scmp.lt.u32.totalorder %s4294_s21, %s4972_s8 }
  0x69   : > { %p3748_p13 = scmp.ne.s32.totalorder %s4294_s21, %s3747_s14  ;;  %p3754_p6 = scmp.lt.u32.totalorder %s3752_s18, %s3747_s14 }
  0x6a   : > { %p3756_p11 = scmp.lt.u32.totalorder %s3747_s14, %s4294_s21 }
  0x6b   : > { %p3750_p2 = pnand %p3748_p13, %p4265_p9  ;;  %p3755_p7 = por %p3754_p6, %p3753_p4 }
  0x6d   : > { %p3751_p0 = pneg %p3750_p2  ;;  %p3757_p12 = por %p3756_p11, %p3755_p7 }
  0x6f   : > { %p3758_p5 = pnand %p3757_p12, %p3751_p0 }
  0x71   : > { %3761 = shalt.err (!%p3758_p5)
}
  0x72   : > { %s3762_s17 = scalar_lea.vmem %s4297_s26, 16  ;;  %s4041_s2 = smov [#allocation8]  }
  0x73   : > { %p3763_p10 = scmp.ne.s32.totalorder %s4297_s26, %s3762_s17  ;;  %s3767_s19 = sshll.u32 %s4041_s2, 4  ;;  %s3768_s19 = int_to_ptr.vmem [resolvable:$false] %s3767_s19 }
  0x74   : > { %s3769_s6 = scalar_lea.vmem %s3768_s19, 32  ;;  %p3770_p13 = scmp.lt.s32.totalorder %s4297_s26, %s3768_s19 }
  0x75   : > { %p3765_p1 = pnand %p3763_p10, %p4265_p9  ;;  %p3771_p2 = scmp.lt.s32.totalorder %s3769_s6, %s3762_s17 }
  0x77   : > { %p3766_p3 = pneg %p3765_p1  ;;  %p3772_p4 = por %p3771_p2, %p3770_p13 }
  0x79   : > { %p3773_p6 = pnand %p3772_p4, %p3766_p3 }
  0x7b   : > { %3776 = shalt.err (!%p3773_p6)
}
  0x7c   : > { %3406 = dma.hbm_to_vmem [thread:$0]  (!%p4969_p8), %s4294_s21, 16, %s4297_s26, %s4937_s5  }
  0x7d   : > { %s3153_s14 = sshll.u32 %s4037_s27, 6  ;;  %s4973_s11 = sld [smem:[#allocation38_spill]] }
  0x7e   : > { %s661_s17 = scalar_lea.vmem [#allocation11], %s3006_s29  ;;  %s4943_s6 = scalar_lea.sflag [#allocation12], %s4216_s0 }
  0x7f   : > { %s669_s19 = sshll.u32 %s661_s17, 4  ;;  %s670_s19 = int_to_ptr.vmem [resolvable:$true] %s669_s19 }
  0x83   : > { %s4328_s2 = scalar_lea.hbm %s4973_s11, %s3153_s14  ;;  %s3782_s18 = scalar_lea.hbm %s4973_s11, 128 }
  0x84   : > { %s3777_s8 = scalar_lea.hbm %s4328_s2, 64  ;;  %p3783_p12 = scmp.lt.u32.totalorder %s4328_s2, %s4973_s11 }
  0x85   : > { %p3778_p0 = scmp.ne.s32.totalorder %s4328_s2, %s3777_s8  ;;  %p3784_p5 = scmp.lt.u32.totalorder %s3782_s18, %s3777_s8 }
  0x86   : > { %p3786_p1 = scmp.lt.u32.totalorder %s3777_s8, %s4328_s2 }
  0x87   : > { %p3780_p7 = pnand %p3778_p0, %p4265_p9  ;;  %p3785_p10 = por %p3784_p5, %p3783_p12 }
  0x89   : > { %p3781_p11 = pneg %p3780_p7  ;;  %p3787_p3 = por %p3786_p1, %p3785_p10 }
  0x8b   : > { %p3788_p13 = pnand %p3787_p3, %p3781_p11 }
  0x8d   : > { %3791 = shalt.err (!%p3788_p13)
}
  0x8e   : > { %s3792_s29 = scalar_lea.vmem %s670_s19, 64  ;;  %s4042_s17 = smov [#allocation11]  }
  0x8f   : > { %p3793_p2 = scmp.ne.s32.totalorder %s670_s19, %s3792_s29  ;;  %s3797_s5 = sshll.u32 %s4042_s17, 4  ;;  %s3798_s5 = int_to_ptr.vmem [resolvable:$false] %s3797_s5 }
  0x90   : > { %s3799_s21 = scalar_lea.vmem %s3798_s5, 128  ;;  %p3800_p0 = scmp.lt.s32.totalorder %s670_s19, %s3798_s5 }
  0x91   : > { %p3795_p4 = pnand %p3793_p2, %p4265_p9  ;;  %p3801_p7 = scmp.lt.s32.totalorder %s3799_s21, %s3792_s29 }
  0x93   : > { %p3796_p6 = pneg %p3795_p4  ;;  %p3802_p8 = por %p3801_p7, %p3800_p0 }
  0x95   : > { %p3803_p5 = pnand %p3802_p8, %p3796_p6 }
  0x97   : > { %3806 = shalt.err (!%p3803_p5)
}
  0x98   : > { %p4974_p12 = scmp.ne.s32.totalorder %s4965_s30, 0  ;;  %s4043_s8 = smov [#allocation16]  }
  0x99   : > { %s514_s26 = sshll.u32 %s4043_s8, 4  ;;  %s4044_s18 = smov [#allocation17]   ;;  %s515_s26 = int_to_ptr.vmem [resolvable:$true] %s514_s26 }
  0x9a   : > { %3412 = dma.hbm_to_vmem [thread:$0]  (!%p4974_p12), %s4328_s2, 64, %s670_s19, %s4943_s6  }
  0x9b   : > { %s524_s14 = sshll.u32 %s4044_s18, 4  ;;  %s3807_s5 = scalar_lea.hbm %s4921_s15, 16  ;;  %s525_s14 = int_to_ptr.vmem [resolvable:$true] %s524_s14 }
  0x9c   : > { %p3808_p8 = scmp.ne.s32.totalorder %s4921_s15, %s3807_s5  ;;  %p4975_p11 = scmp.ne.s32.totalorder %s4967_s10, 0 }
  0x9d   : > { %p3814_p3 = scmp.lt.u32.totalorder %s3807_s5, %s4921_s15 }
  0x9e   : > { %p3810_p10 = pnand %p3808_p8, %p4975_p11 }
  0xa0   : > { %p3811_p1 = pneg %p3810_p10 }
  0xa2   : > { %p3816_p13 = pnand %p3814_p3, %p3811_p1 }
  0xa4   : > { %3819 = shalt.err (!%p3816_p13)
}
  0xa5   : > { %s3820_s2 = scalar_lea.vmem %s515_s26, 16  ;;  %s3827_s19 = scalar_lea.vmem %s515_s26, 32 }
  0xa6   : > { %p3821_p2 = scmp.ne.s32.totalorder %s515_s26, %s3820_s2  ;;  %p3828_p0 = scmp.lt.s32.totalorder %s515_s26, %s515_s26 }
  0xa7   : > { %p3829_p7 = scmp.lt.s32.totalorder %s3827_s19, %s3820_s2 }
  0xa8   : > { %p3823_p4 = pnand %p3821_p2, %p4975_p11 }
  0xa9   : > { %p3830_p5 = por %p3829_p7, %p3828_p0 }
  0xaa   : > { %p3824_p6 = pneg %p3823_p4 }
  0xac   : > { %p3831_p12 = pnand %p3830_p5, %p3824_p6 }
  0xae   : > { %3834 = shalt.err (!%p3831_p12)
}
  0xaf   : > { %p4976_p8 = scmp.ne.s32.totalorder %s4964_s24, 0  ;;  %s3835_s12 = scalar_lea.hbm %s4922_s16, 1024 }
  0xb0   : > { %p3836_p10 = scmp.ne.s32.totalorder %s4922_s16, %s3835_s12  ;;  %p3842_p12 = scmp.lt.u32.totalorder %s3835_s12, %s4922_s16 }
  0xb1   : > { %3390 = dma.hbm_to_vmem [thread:$0]  (!%p4976_p8), %s4921_s15, 16, %s515_s26, [#allocation15]  }
  0xb2   : > { %p3838_p1 = pnand %p3836_p10, %p4975_p11 }
  0xb4   : > { %p3839_p3 = pneg %p3838_p1 }
  0xb6   : > { %p3844_p13 = pnand %p3842_p12, %p3839_p3 }
  0xb8   : > { %3847 = shalt.err (!%p3844_p13)
}
  0xb9   : > { %s3848_s2 = scalar_lea.vmem %s525_s14, 1024  ;;  %p3856_p0 = scmp.lt.s32.totalorder %s525_s14, %s525_s14 }
  0xba   : > { %p3849_p2 = scmp.ne.s32.totalorder %s525_s14, %s3848_s2  ;;  %p3857_p7 = scmp.lt.s32.totalorder %s3848_s2, %s3848_s2 }
  0xbc   : > { %p3851_p4 = pnand %p3849_p2, %p4975_p11  ;;  %p3858_p5 = por %p3857_p7, %p3856_p0 }
  0xbe   : > { %p3852_p6 = pneg %p3851_p4 }
  0xc0   : > { %p3859_p9 = pnand %p3858_p5, %p3852_p6 }
  0xc2   : > { %3862 = shalt.err (!%p3859_p9)
}
  0xc3   : > { %s4045_s26 = smov 64   ;;  %s4046_s19 = smov 4  }
  0xc4   : > { %3393 = dma.hbm_to_vmem [thread:$0]  (!%p4976_p8), %s4922_s16, 1024, %s525_s14, [#allocation18], %s4045_s26, %s4045_s26, %s4046_s19  }
  0xc5   : > { %s3352_s10 = smul.u32 192, %s4207_s23  ;;  %s4977_s4 = sld [smem:[#allocation33_spill]] }
  0xc6   : > { %s3353_s11 = smul.u32 3072, %s4037_s27  ;;  %s4401_s2 = scalar_lea.hbm %s4913_s7, %s4253_s3 }
  0xc7   : > { %s554_s5 = scalar_lea.vmem [#allocation3], %s3352_s10  ;;  %s551_s14 = scalar_lea.sflag [#allocation4], %s4207_s23 }
  0xc8   : > { %s561_s29 = sshll.u32 %s554_s5, 4  ;;  %p4978_p11 = scmp.ne.s32.totalorder %s4970_s22, 0  ;;  %s4395_s29 = int_to_ptr.vmem [resolvable:$true] %s561_s29 }
  0xcb   : > { %s4393_s17 = scalar_lea.hbm %s4977_s4, %s3353_s11  ;;  %s3868_s8 = scalar_lea.hbm %s4977_s4, 6144 }
  0xcc   : > { %s3863_s27 = scalar_lea.hbm %s4393_s17, 3072  ;;  %p3869_p1 = scmp.lt.u32.totalorder %s4393_s17, %s4977_s4 }
  0xcd   : > { %p3864_p9 = scmp.ne.s32.totalorder %s4393_s17, %s3863_s27  ;;  %p3870_p3 = scmp.lt.u32.totalorder %s3868_s8, %s3863_s27 }
  0xce   : > { %p3872_p13 = scmp.lt.u32.totalorder %s3863_s27, %s4393_s17 }
  0xcf   : > { %p3866_p8 = pnand %p3864_p9, %p4978_p11  ;;  %p3871_p12 = por %p3870_p3, %p3869_p1 }
  0xd1   : > { %p3867_p10 = pneg %p3866_p8  ;;  %p3873_p2 = por %p3872_p13, %p3871_p12 }
  0xd3   : > { %p3874_p4 = pnand %p3873_p2, %p3867_p10 }
  0xd5   : > { %3877 = shalt.err (!%p3874_p4)
}
  0xd6   : > { %s3878_s11 = scalar_lea.vmem %s4395_s29, 3072  ;;  %s4047_s28 = smov [#allocation3]  }
  0xd7   : > { %p3879_p6 = scmp.ne.s32.totalorder %s4395_s29, %s3878_s11  ;;  %s3883_s12 = sshll.u32 %s4047_s28, 4  ;;  %s3884_s12 = int_to_ptr.vmem [resolvable:$false] %s3883_s12 }
  0xd8   : > { %s3885_s5 = scalar_lea.vmem %s3884_s12, 6144  ;;  %p3886_p5 = scmp.lt.s32.totalorder %s4395_s29, %s3884_s12 }
  0xd9   : > { %p3881_p0 = pnand %p3879_p6, %p4978_p11  ;;  %p3887_p9 = scmp.lt.s32.totalorder %s3885_s5, %s3878_s11 }
  0xdb   : > { %p3882_p7 = pneg %p3881_p0  ;;  %p3888_p8 = por %p3887_p9, %p3886_p5 }
  0xdd   : > { %p3889_p1 = pnand %p3888_p8, %p3882_p7 }
  0xdf   : > { %3892 = shalt.err (!%p3889_p1)
}
  0xe0   : > { %s4048_s24 = smov 192   ;;  %s4049_s21 = smov 12  }
  0xe1   : > { %p4979_p10 = scmp.ne.s32.totalorder %s4965_s30, 0  ;;  %s601_s27 = scalar_lea.vmem [#allocation7], %s4207_s23 }
  0xe2   : > { %s608_s26 = sshll.u32 %s601_s27, 4  ;;  %s4432_s18 = scalar_lea.hbm %s4915_s9, %s4253_s3  ;;  %s609_s26 = int_to_ptr.vmem [resolvable:$true] %s608_s26 }
  0xe3   : > { %3397 = dma.hbm_to_vmem [thread:$0]  (!%p4979_p10), %s4393_s17, 3072, %s4395_s29, %s551_s14, %s4048_s24, %s4048_s24, %s4049_s21  }
  0xe4   : > { %s3893_s10 = scalar_lea.hbm %s4401_s2, 16  ;;  %s3898_s12 = scalar_lea.hbm %s4913_s7, 32 }
  0xe5   : > { %p3894_p3 = scmp.ne.s32.totalorder %s4401_s2, %s3893_s10  ;;  %p3899_p2 = scmp.lt.u32.totalorder %s4401_s2, %s4913_s7 }
  0xe6   : > { %p3900_p4 = scmp.lt.u32.totalorder %s3898_s12, %s3893_s10  ;;  %p3902_p0 = scmp.lt.u32.totalorder %s3893_s10, %s4401_s2 }
  0xe7   : > { %p3896_p12 = pnand %p3894_p3, %p4978_p11 }
  0xe8   : > { %p3901_p6 = por %p3900_p4, %p3899_p2 }
  0xe9   : > { %p3897_p13 = pneg %p3896_p12 }
  0xea   : > { %p3903_p7 = por %p3902_p0, %p3901_p6 }
  0xec   : > { %p3904_p5 = pnand %p3903_p7, %p3897_p13 }
  0xee   : > { %3907 = shalt.err (!%p3904_p5)
}
  0xef   : > { %s3908_s17 = scalar_lea.vmem %s609_s26, 16  ;;  %s4050_s29 = smov [#allocation7]  }
  0xf0   : > { %p3909_p9 = scmp.ne.s32.totalorder %s609_s26, %s3908_s17  ;;  %s3913_s14 = sshll.u32 %s4050_s29, 4  ;;  %s3914_s14 = int_to_ptr.vmem [resolvable:$false] %s3913_s14 }
  0xf1   : > { %s3915_s24 = scalar_lea.vmem %s3914_s14, 32  ;;  %p3916_p3 = scmp.lt.s32.totalorder %s609_s26, %s3914_s14 }
  0xf2   : > { %p3911_p8 = pnand %p3909_p9, %p4978_p11  ;;  %p3917_p12 = scmp.lt.s32.totalorder %s3915_s24, %s3908_s17 }
  0xf4   : > { %p3912_p1 = pneg %p3911_p8  ;;  %p3918_p10 = por %p3917_p12, %p3916_p3 }
  0xf6   : > { %p3919_p2 = pnand %p3918_p10, %p3912_p1 }
  0xf8   : > { %3922 = shalt.err (!%p3919_p2)
}
  0xf9   : > { %p4980_p4 = scmp.ne.s32.totalorder %s4965_s30, 0  ;;  %s4981_s6 = scalar_lea.sflag [#allocation6], %s4216_s0 }
  0xfa   : > { %s635_s21 = scalar_lea.vmem [#allocation10], %s4207_s23  ;;  %s4458_s10 = scalar_lea.hbm %s4919_s13, %s4253_s3 }
  0xfb   : > { %3403 = dma.hbm_to_vmem [thread:$0]  (!%p4980_p4), %s4401_s2, 16, %s609_s26, %s4981_s6  }
  0xfc   : > { %s642_s27 = sshll.u32 %s635_s21, 4  ;;  %s3923_s11 = scalar_lea.hbm %s4432_s18, 16  ;;  %s643_s27 = int_to_ptr.vmem [resolvable:$true] %s642_s27 }
  0xfd   : > { %p3924_p10 = scmp.ne.s32.totalorder %s4432_s18, %s3923_s11  ;;  %s3928_s5 = scalar_lea.hbm %s4915_s9, 32 }
  0xfe   : > { %p3929_p0 = scmp.lt.u32.totalorder %s4432_s18, %s4915_s9  ;;  %p3930_p7 = scmp.lt.u32.totalorder %s3928_s5, %s3923_s11 }
  0xff   : > { %p3926_p13 = pnand %p3924_p10, %p4978_p11  ;;  %p3932_p9 = scmp.lt.u32.totalorder %s3923_s11, %s4432_s18 }
 0x100   : > { %p3931_p5 = por %p3930_p7, %p3929_p0 }
 0x101   : > { %p3927_p6 = pneg %p3926_p13 }
 0x102   : > { %p3933_p8 = por %p3932_p9, %p3931_p5 }
 0x104   : > { %p3934_p1 = pnand %p3933_p8, %p3927_p6 }
 0x106   : > { %3937 = shalt.err (!%p3934_p1)
}
 0x107   : > { %s3938_s3 = scalar_lea.vmem %s643_s27, 16  ;;  %s4051_s2 = smov [#allocation10]  }
 0x108   : > { %p3939_p3 = scmp.ne.s32.totalorder %s643_s27, %s3938_s3  ;;  %s3943_s26 = sshll.u32 %s4051_s2, 4  ;;  %s3944_s26 = int_to_ptr.vmem [resolvable:$false] %s3943_s26 }
 0x109   : > { %s3945_s14 = scalar_lea.vmem %s3944_s26, 32  ;;  %p3946_p10 = scmp.lt.s32.totalorder %s643_s27, %s3944_s26 }
 0x10a   : > { %p3941_p12 = pnand %p3939_p3, %p4978_p11  ;;  %p3947_p13 = scmp.lt.s32.totalorder %s3945_s14, %s3938_s3 }
 0x10c   : > { %p3942_p2 = pneg %p3941_p12  ;;  %p3948_p4 = por %p3947_p13, %p3946_p10 }
 0x10e   : > { %p3949_p0 = pnand %p3948_p4, %p3942_p2 }
 0x110   : > { %3952 = shalt.err (!%p3949_p0)
}
 0x111   : > { %p4982_p7 = scmp.ne.s32.totalorder %s4965_s30, 0  ;;  %s4983_s24 = scalar_lea.sflag [#allocation9], %s4216_s0 }
 0x112   : > { %s687_s6 = scalar_lea.vmem [#allocation13], %s4207_s23  ;;  %s3953_s19 = scalar_lea.hbm %s4458_s10, 16 }
 0x113   : > { %3409 = dma.hbm_to_vmem [thread:$0]  (!%p4982_p7), %s4432_s18, 16, %s643_s27, %s4983_s24  }
 0x114   : > { %s694_s21 = sshll.u32 %s687_s6, 4  ;;  %p3954_p6 = scmp.ne.s32.totalorder %s4458_s10, %s3953_s19  ;;  %s695_s21 = int_to_ptr.vmem [resolvable:$true] %s694_s21 }
 0x115   : > { %s3958_s28 = scalar_lea.hbm %s4919_s13, 32  ;;  %p3959_p9 = scmp.lt.u32.totalorder %s4458_s10, %s4919_s13 }
 0x116   : > { %p3956_p4 = pnand %p3954_p6, %p4978_p11  ;;  %p3960_p8 = scmp.lt.u32.totalorder %s3958_s28, %s3953_s19 }
 0x117   : > { %p3962_p3 = scmp.lt.u32.totalorder %s3953_s19, %s4458_s10 }
 0x118   : > { %p3957_p5 = pneg %p3956_p4  ;;  %p3961_p1 = por %p3960_p8, %p3959_p9 }
 0x11a   : > { %p3963_p12 = por %p3962_p3, %p3961_p1 }
 0x11c   : > { %p3964_p2 = pnand %p3963_p12, %p3957_p5 }
 0x11e   : > { %3967 = shalt.err (!%p3964_p2)
}
 0x11f   : > { %s3968_s23 = scalar_lea.vmem %s695_s21, 16  ;;  %s4052_s18 = smov [#allocation13]  }
 0x120   : > { %p3969_p10 = scmp.ne.s32.totalorder %s695_s21, %s3968_s23  ;;  %s3973_s27 = sshll.u32 %s4052_s18, 4  ;;  %s3974_s27 = int_to_ptr.vmem [resolvable:$false] %s3973_s27 }
 0x121   : > { %s3975_s17 = scalar_lea.vmem %s3974_s27, 32  ;;  %p3976_p6 = scmp.lt.s32.totalorder %s695_s21, %s3974_s27 }
 0x122   : > { %p3971_p13 = pnand %p3969_p10, %p4978_p11  ;;  %p3977_p4 = scmp.lt.s32.totalorder %s3975_s17, %s3968_s23 }
 0x124   : > { %p3972_p0 = pneg %p3971_p13  ;;  %p3978_p7 = por %p3977_p4, %p3976_p6 }
 0x126   : > { %p3979_p8 = pnand %p3978_p7, %p3972_p0 }
 0x128   : > { %3982 = shalt.err (!%p3979_p8)
}
 0x129   : > { %p4984_p9 = scmp.ne.s32.totalorder %s4965_s30, 0  ;;  %s4985_s29 = scalar_lea.sflag [#allocation12], %s4216_s0 }
 0x12a   : > { %p4986_p5 = scmp.ne.s32.totalorder %s4963_s20, 0 }
 0x12b   : > { %3415 = dma.hbm_to_vmem [thread:$0]  (!%p4984_p9), %s4458_s10, 16, %s695_s21, %s4985_s29  }
 0x12c   : > { %703 = sbr.rel (%p4986_p5) target bundleno = 3882 (0xf2a), region = 88  ;;  %s4502_s22 = sand.u32 (!%p4986_p5), 1, %s4029_s25  }
 0x12d   : > { %s3356_s3 = smul.u32 (!%p4986_p5), 192, %s4502_s22  ;;  %s706_s2 = scalar_lea.sflag (!%p4986_p5), [#allocation4], %s4502_s22 }
 0x12e   : > { %p4987_p11 = scmp.ne.s32.totalorder (!%p4986_p5), %s4962_s1, 0 }
 0x12f   : > { %s4506_s26 = scalar_lea.vmem (!%p4986_p5), [#allocation3], %s3356_s3 }
 0x133   : > { %4000 = dma.done.wait (%p4987_p11), %s706_s2, 3072  }
 0x134   : > { %4002 = vsyncadd (%p4987_p11), %s706_s2, 4294964224  ;;  %s4988_s0 = sld [smem:[#allocation26_spill]]  ;;  %s3357_s30 = smul.u32 3, %s4502_s22 }
 0x136   : > { %s4514_s14 = scalar_lea.vmem [#allocation5], %s3357_s30 }
 0x13a   : > { %s714_s20 = sand.u32 1, %s4988_s0  }
 0x13b   : > { %s715_s10 = scalar_lea.sflag [#allocation6], %s714_s20 }
 0x13c   : > { %4004 = dma.done.wait (%p4987_p11), %s715_s10, 64  }
 0x13d   : > { %4006 = vsyncadd (%p4987_p11), %s715_s10, 4294967232  ;;  %s732_s6 = scalar_lea.sflag [#allocation9], %s714_s20 }
 0x13e   : > { %4008 = dma.done.wait (%p4987_p11), %s732_s6, 32  }
 0x13f   : > { %4010 = vsyncadd (%p4987_p11), %s732_s6, 4294967264  ;;  %s3011_s19 = sshll.u32 %s4502_s22, 2  ;;  %s748_s11 = scalar_lea.sflag [#allocation12], %s714_s20 }
 0x140   : > { %s4528_s28 = scalar_lea.vmem [#allocation11], %s3011_s19 }
 0x141   : > { %4012 = dma.done.wait (%p4987_p11), %s748_s11, 80  }
 0x142   : > { %4014 = vsyncadd (%p4987_p11), %s748_s11, 4294967216  ;;  %p4989_p7 = scmp.eq.s32.totalorder %s4988_s0, 0 }
 0x144   : > { %4016 = dma.done.wait (%p4989_p7), [#allocation15], 32   ;;  %p4990_p1 = pmov %p4989_p7 }
 0x146   : > { %4018 = vsyncadd (%p4990_p1), [#allocation15], 4294967264  ;;  %p4991_p3 = pmov %p4990_p1 }
 0x147   : > { %p4992_p12 = pmov %p4990_p1 }
 0x148   : > { %4020 = dma.done.wait (%p4991_p3), [#allocation18], 1024  }
 0x149   : > { %4022 = vsyncadd (%p4992_p12), [#allocation18], 4294966272  ;;  %p864_p2 = scmp.lt.s32.totalorder %s4988_s0, 1  ;;  %s4993_s18 = sld [smem:[#allocation31_spill]] }
 0x14a   : > { %s4994_s3 = sld [smem:[#allocation32_spill]]  ;;  %s4995_s19 = sld [smem:[#allocation35_spill]] }
 0x14b   : > { %s4545_s5 = scalar_select %p864_p2, %s4988_s0, 1 }
 0x14c   : > { %s4996_s21 = sld [smem:[#allocation37_spill]]  ;;  %s4997_s4 = sld [smem:[#allocation39_spill]] }
 0x14d   : > { %s3154_s20 = sshll.u32 %s4545_s5, 6  ;;  %s3155_s30 = sshll.u32 %s4545_s5, 8 }
 0x14e   : > { %p4998_p10 = scmp.ne.s32.totalorder %s4988_s0, 0 }
 0x14f   : > { %s866_s27 = scalar_lea.vmem %s4993_s18, %s4545_s5 }
 0x150   : > { %s869_s2 = scalar_lea.vmem %s4994_s3, %s4545_s5  ;;  %s4560_s11 = scalar_lea.vmem %s4995_s19, %s3154_s20 }
 0x151   : > { %889 = sbr.rel (%p4998_p10) target bundleno = 347 (0x15b), region = 132  ;;  %s4999_s3 = sld [smem:[#allocation29_spill]] (!%p4998_p10) }
 0x152   : > { %s4565_s24 = scalar_lea.vmem %s4996_s21, %s3155_s30  ;;  %s4570_s18 = scalar_lea.vmem %s4997_s4, %s3155_s30 }
 0x157   : > { %v890_v0 = vld [vmem:[%s4999_s3] sm:$0xf] (!%p4998_p10)  ;;  %v891_v1 = vld [vmem:[%s4999_s3 + $0x4] sm:$0x1] (!%p4998_p10) }
 0x158   : > { %v892_v2 = vunpack.c.l.bf16 %v890_v0  ;;  %v893_v3 = vunpack.c.l.bf16 %v891_v1 }
 0x15a   : > { %894 = vst [vmem:[#allocation2] sm:$0xff] %v892_v2  ;;  %895 = vst [vmem:[#allocation2 + $0x8] sm:$0x3] %v893_v3 }
 0x15b PF: > { %vm904_vm0 = vcmask 1041408   ;;  %v3485_v7 = vld [vmem:[%s4506_s26 + $0x4] ss:$12 sps:$4 sm:$0xff]   ;;  %v3487_v8 = vld [vmem:[%s4506_s26] ss:$12 sps:$4 sm:$0xff]   ;;  %v4053_v9 = vmov 0.0   ;;  %v979_v59 = vlaneseq }
 0x15c   : > { %3244 = vmatprep.subr.bf16.mxu1 %v4053_v9  ;;  %v3488_v10 = vld [vmem:[%s4506_s26 + $0x8] ss:$12 sps:$4 sm:$0xff]   ;;  %1122 = vmatprep.subr.bf16.mxu0 %v3485_v7  ;;  %v3491_v21 = vld [vmem:[%s4506_s26 + $0x18] ss:$12 sps:$4 sm:$0xff]   ;;  %v3492_v22 = vld [vmem:[%s4506_s26 + $0x20] ss:$12 sps:$4 sm:$0xff]  }
 0x15d   : > { %v3489_v11 = vld [vmem:[%s4506_s26 + $0x1c] ss:$12 sps:$4 sm:$0xff]   ;;  %1123 = vmatpush1.bf16.msra.mxu0 %v3487_v8  ;;  %3245 = vmatpush3.bf16.msra.mxu1 %v3488_v10  ;;  %v3493_v23 = vld [vmem:[%s4506_s26 + $0x34] ss:$12 sps:$4 sm:$0xff]   ;;  %v3496_v25 = vld [vmem:[%s4506_s26 + $0x38] ss:$12 sps:$4 sm:$0xff]  }
 0x15e   : > { %1124 = vmatprep.subr.bf16.mxu0 %v3489_v11  ;;  %3246 = vmatprep.subr.bf16.mxu1 %v4053_v9  ;;  %v3495_v24 = vld [vmem:[%s4506_s26 + $0x30] ss:$12 sps:$4 sm:$0xff]   ;;  %v3497_v26 = vld [vmem:[%s4506_s26 + $0x4c] ss:$12 sps:$4 sm:$0xff]   ;;  %v3499_v27 = vld [vmem:[%s4506_s26 + $0x48] ss:$12 sps:$4 sm:$0xff]  }
 0x15f   : > { %v3500_v28 = vld [vmem:[%s4506_s26 + $0x50] ss:$12 sps:$4 sm:$0xff]   ;;  %v3503_v30 = vld [vmem:[%s4506_s26 + $0x60] ss:$12 sps:$4 sm:$0xff]   ;;  %v3504_v31 = vld [vmem:[%s4506_s26 + $0x68] ss:$12 sps:$4 sm:$0xff]  }
 0x160   : > { %v3501_v29 = vld [vmem:[%s4506_s26 + $0x64] ss:$12 sps:$4 sm:$0xff]   ;;  %v3505_v32 = vld [vmem:[%s4506_s26 + $0x7c] ss:$12 sps:$4 sm:$0xff]   ;;  %v3508_v34 = vld [vmem:[%s4506_s26 + $0x80] ss:$12 sps:$4 sm:$0xff]  }
 0x161   : > { %v897_v4 = vld [vmem:[#allocation2 + $0x8] sm:$0x3]  ;;  %v896_v6 = vld [vmem:[#allocation2] sm:$0xff]  ;;  %1125 = vmatpush1.bf16.msra.mxu0 %v3491_v21  ;;  %3247 = vmatpush3.bf16.msra.mxu1 %v3492_v22  ;;  %v4054_v36 = vmov 0   ;;  %vm4055_vm1 = vmmov 0   ;;  %v4643_v60 = vshrl.u32 %v979_v59, 7 }
 0x162   : > { %v905_v5 = vsel %vm904_vm0, %v897_v4, 0.0  ;;  %3248 = vmatprep.subr.bf16.mxu1 %v4053_v9  ;;  %1126 = vmatprep.subr.bf16.mxu0 %v3493_v23  ;;  %v3507_v33 = vld [vmem:[%s4506_s26 + $0x78] ss:$12 sps:$4 sm:$0xff]   ;;  %v3509_v35 = vld [vmem:[%s4506_s26 + $0x94] ss:$12 sps:$4 sm:$0xff]   ;;  %vm1212_vm2 = vcmask 261120  }
 0x163   : > { %906 = vadd.xlane.f32.xlu0 %v905_v5  ;;  %1154 = vmatprep.mubr.bf16.mxu0 %v4054_v36  ;;  %v3511_v37 = vld [vmem:[%s4506_s26 + $0x90] ss:$12 sps:$4 sm:$0xff]   ;;  %v3512_v38 = vld [vmem:[%s4506_s26 + $0x98] ss:$12 sps:$4 sm:$0xff]   ;;  %v3515_v40 = vld [vmem:[%s4506_s26 + $0xa8] ss:$12 sps:$4 sm:$0xff]  }
 0x164   : > { %3260 = vmatprep.mubr.msk.bf16.mxu1 %vm4055_vm1, %v4053_v9  ;;  %v3513_v39 = vld [vmem:[%s4506_s26 + $0xac] ss:$12 sps:$4 sm:$0xff]   ;;  %v3516_v41 = vld [vmem:[%s4506_s26 + $0xb0] ss:$12 sps:$4 sm:$0xff]   ;;  %v981_v61 = vsub.s32 0, %v4643_v60  ;;  %v989_v63 = vsub.s32 2, %v4643_v60 }
 0x165   : > { %1127 = vmatpush1.bf16.msra.mxu0 %v3495_v24  ;;  %3249 = vmatpush3.bf16.msra.mxu1 %v3496_v25  ;;  %v3022_v50 = vld [vmem:[%s866_s27] ss:$0 sm:$0xff]  ;;  %v977_v62 = vld [vmem:[%s4514_s14] sm:$0x7]  ;;  %v985_v0 = vsub.s32 1, %v4643_v60  ;;  %vm1288_vm3 = vcmask 1044480  }
 0x166   : > { %3250 = vmatprep.subr.bf16.mxu1 %v4053_v9  ;;  %1128 = vmatprep.subr.bf16.mxu0 %v3497_v26  ;;  %v3023_v54 = vld [vmem:[%s869_s2] ss:$0 sm:$0xff]  ;;  %v982_v1 = vrot.slane %v977_v62, %v981_v61  ;;  %v990_v2 = vrot.slane %v977_v62, %v989_v63  ;;  %s5002_s27 = sld [smem:[#allocation30_spill]]  ;;  %vm1260_vm4 = vcmask 80896   ;;  %vm1264_vm5 = vcmask 74752   ;;  %s4056_s19 = smov 96  }
 0x167   : > { %902 = vadd.xlane.f32.xlu0 %v896_v6  ;;  %v986_v5 = vrot.slane %v977_v62, %v985_v0  ;;  %s4057_s1 = smov 64   ;;  %s4058_s23 = smov 32   ;;  %vm1731_vm6 = vcmask 523264   ;;  %vm1734_vm7 = vcmask 785408  }
 0x168   : > { %s5006_s17 = scalar_lea.vmem [#allocation10], %s4502_s22 }
 0x169   : > { %1129 = vmatpush1.bf16.msra.mxu0 %v3499_v27  ;;  %3251 = vmatpush3.bf16.msra.mxu1 %v3500_v28 }
 0x16a   : > { %3252 = vmatprep.subr.bf16.mxu1 %v4053_v9  ;;  %1130 = vmatprep.subr.bf16.mxu0 %v3501_v29 }
 0x16c   : > { %s5003_s2 = smov %s5002_s27  ;;  %v4668_v26 = vld [vmem:[%s5002_s27] sm:$0xff] }
 0x16d   : > { %1131 = vmatpush1.bf16.msra.mxu0 %v3503_v30  ;;  %3253 = vmatpush3.bf16.msra.mxu1 %v3504_v31  ;;  %v4673_v28 = vld [vmem:[%s5003_s2 + $0x8] sm:$0x3] }
 0x16e   : > { %1132 = vmatprep.subr.bf16.mxu0 %v3505_v32  ;;  %3254 = vmatprep.subr.bf16.mxu1 %v4053_v9 }
 0x171   : > { %1133 = vmatpush1.bf16.msra.mxu0 %v3507_v33  ;;  %3255 = vmatpush3.bf16.msra.mxu1 %v3508_v34 }
 0x172   : > { %1134 = vmatprep.subr.bf16.mxu0 %v3509_v35  ;;  %3256 = vmatprep.subr.bf16.mxu1 %v4053_v9 }
 0x175   : > { %1135 = vmatpush1.bf16.msra.mxu0 %v3511_v37  ;;  %3257 = vmatpush3.bf16.msra.mxu1 %v3512_v38 }
 0x176   : > { %1136 = vmatprep.subr.bf16.mxu0 %v3513_v39  ;;  %3258 = vmatprep.subr.bf16.mxu1 %v4053_v9 }
 0x179   : > { %1137 = vmatpush1.bf16.msra.mxu0 %v3515_v40  ;;  %3259 = vmatpush3.bf16.msra.mxu1 %v3516_v41 }
 0x17a   : > { %3264 = vmatprep.subr.bf16.mxu1 %v4053_v9  ;;  %3288 = vmatprep.subr.bf16.mxu0 %v4053_v9 }
 0x1f0   : > { %v907_v12 = vpop.xlane.xlu0 %906 }
 0x1f1   : > { %v910_v13 = vmul.f32 0.0078125, %v907_v12 }
 0x1f3   : > { %v4587_v16 = vsub.f32 %v897_v4, %v910_v13 }
 0x1f4   : > { %v903_v14 = vpop.xlane.xlu0 %902 }
 0x1f5   : > { %v909_v15 = vmul.f32 0.0078125, %v903_v14  ;;  %v914_v19 = vmul.f32 %v4587_v16, %v4587_v16 }
 0x1f7   : > { %v4589_v17 = vsub.f32 %v896_v6, %v909_v15  ;;  %v917_v20 = vsel %vm904_vm0, %v914_v19, 0.0 }
 0x1f9   : > { %v913_v18 = vmul.f32 %v4589_v17, %v4589_v17 }
 0x1fb   : > { %915 = vadd.xlane.f32.xlu1 %v913_v18 }
 0x1ff   : > { %918 = vadd.xlane.f32.xlu1 %v917_v20 }
 0x288   : > { %v916_v42 = vpop.xlane.xlu1 %915 }
 0x289   : > { %v920_v43 = vmul.f32 0.0078125, %v916_v42 }
 0x28b   : > { %v922_v44 = vadd.f32 1e-05, %v920_v43 }
 0x28c   : > { %v919_v45 = vpop.xlane.xlu1 %918 }
 0x28d   : > { %3605 = vrsqrt.f32 %v922_v44  ;;  %v921_v46 = vmul.f32 0.0078125, %v919_v45 }
 0x28f   : > { %v923_v47 = vadd.f32 1e-05, %v921_v46 }
 0x291   : > { %3607 = vrsqrt.f32 %v923_v47 }
 0x297   : > { %v3606_v48 = vpop.eup %3605 }
 0x298   : > { %v926_v49 = vmul.f32 %v3606_v48, %v4589_v17 }
 0x29a   : > { %v934_v53 = vmul.f32 %v3022_v50, %v926_v49 }
 0x29b   : > { %v3608_v51 = vpop.eup %3607 }
 0x29c   : > { %v927_v52 = vmul.f32 %v3608_v51, %v4587_v16  ;;  %v942_v56 = vadd.f32 %v3023_v54, %v934_v53 }
 0x29e   : > { %v935_v55 = vmul.f32 %v3022_v50, %v927_v52 }
 0x2a0   : > { %v943_v57 = vadd.f32 %v3023_v54, %v935_v55 }
 0x2a2   : > { %v976_v58 = vpack.c.bf16 %v943_v57, %v942_v56 }
 0x2a4   : > { %1155 = vmatmul.mubr.bf16.vlgmr.msra.gmra.mrb[0].mxu0 %v976_v58  ;;  %3261 = vmatmul.mubr.bf16.vlgmr.msra.gmra.mrb[0].mxu1 %v976_v58 }
 0x2a5   : > { %3266 = vmatprep.mubr.msk.bf16.mxu1 %vm4055_vm1, %v4053_v9  ;;  %3290 = vmatprep.mubr.msk.bf16.mxu0 %vm4055_vm1, %v4053_v9 }
 0x377   : > { %v1156_v3 = vpop.f32.mrb[0].mxu0  ;;  %v1199_v4 = vpop.f32.mrb[0].mxu1 }
 0x378   : > { %v1157_v6 = vadd.f32 %v1156_v3, %v982_v1  ;;  %v1158_v7 = vpop.f32.mrb[1].mxu0  ;;  %v3262_v8 = vpop.f32.mrb[1].mxu1  ;;  %v1200_v12 = vadd.f32 %v1199_v4, %v990_v2 }
 0x379   : > { %v1160_v10 = vpop.f32.mrb[2].mxu0  ;;  %v1202_v11 = vpop.f32.mrb[2].mxu1  ;;  %v1159_v17 = vadd.f32 %v1158_v7, %v986_v5 }
 0x37a   : > { %v1161_v13 = vadd.f32 %v1160_v10, %v982_v1  ;;  %v1203_v14 = vadd.f32 %v1202_v11, %v990_v2  ;;  %v1162_v15 = vpop.f32.mrb[3].mxu0  ;;  %v3263_v16 = vpop.f32.mrb[3].mxu1  ;;  %v1207_v19 = vmul.f32 0.17677669, %v1157_v6 }
 0x37b   : > { %v1163_v18 = vadd.f32 %v1162_v15, %v986_v5 }
 0x37c   : > { %v1208_v20 = vmul.f32 0.17677669, %v1161_v13  ;;  %v4655_v21 = vpack.c.bf16 %v1203_v14, %v1200_v12 }
 0x37d   : > { %v1210_v22 = vpack.c.bf16 %v1163_v18, %v1159_v17 }
 0x37e   : > { %v1209_v23 = vpack.c.bf16 %v1208_v20, %v1207_v19  ;;  %v1290_v25 = vsel %vm1288_vm3, %v4655_v21, 0 }
 0x37f   : > { %v1217_v24 = vsel %vm1212_vm2, %v1210_v22, 0 }
 0x380   : > { %3265 = vmatpush3.bf16.xpose.msra.mxu1 %v1217_v24 }
 0x381   : > { %3270 = vmatprep.subr.bf16.mxu1 %v4053_v9 }
 0x387   : > { %3267 = vmatmul.mubr.msk.bf16.vlgmr.msra.gmra.mrb[4].mxu1 %vm1212_vm2, %v1209_v23 }
 0x388   : > { %3271 = vmatpush3.bf16.msra.mxu1 %v1290_v25  ;;  %3272 = vmatprep.mubr.msk.bf16.mxu1 %vm4055_vm1, %v4053_v9 }
 0x389   : > { %3276 = vmatprep.subr.bf16.mxu1 %v4053_v9 }
 0x45a   : > { %v1253_v27 = vpop.f32.mrb[4].mxu1 }
 0x45b   : > { %v1254_v29 = vadd.f32 %v1253_v27, %v4668_v26  ;;  %v3268_v30 = vpop.f32.mrb[5].mxu1 }
 0x45c   : > { %v1256_v31 = vpop.f32.mrb[6].mxu1 }
 0x45d   : > { %v1257_v32 = vadd.f32 %v1256_v31, %v4673_v28  ;;  %v3269_v33 = vpop.f32.mrb[7].mxu1  ;;  %v1261_v34 = vsel %vm1260_vm4, %v1254_v29, -inf }
 0x45e   : > { %1262 = vmax.xlane.f32.xlu0 %v1261_v34 }
 0x45f   : > { %v1265_v35 = vsel %vm1264_vm5, %v1257_v32, -inf }
 0x460   : > { %1266 = vmax.xlane.f32.xlu1 %v1265_v35 }
 0x4eb   : > { %v1263_v37 = vpop.xlane.xlu0 %1262 }
 0x4ec   : > { %v1268_v38 = vsub.f32 %v1254_v29, %v1263_v37 }
 0x4ed   : > { %v1267_v39 = vpop.xlane.xlu1 %1266 }
 0x4ee   : > { %v1270_v40 = vmul.f32 1.442695, %v1268_v38  ;;  %v1269_v41 = vsub.f32 %v1257_v32, %v1267_v39 }
 0x4f0   : > { %3609 = vpow2.f32 %v1270_v40  ;;  %v1272_v42 = vmul.f32 1.442695, %v1269_v41 }
 0x4f2   : > { %3611 = vpow2.f32 %v1272_v42 }
 0x4fa   : > { %v3610_v43 = vpop.eup %3609 }
 0x4fb   : > { %v1274_v44 = vsel %vm1260_vm4, %v3610_v43, 0.0 }
 0x4fc   : > { %v3612_v45 = vpop.eup %3611  ;;  %1275 = vadd.xlane.f32.xlu0 %v1274_v44 }
 0x4fd   : > { %v1277_v46 = vsel %vm1264_vm5, %v3612_v45, 0.0 }
 0x4fe   : > { %1278 = vadd.xlane.f32.xlu1 %v1277_v46 }
 0x50f   : > { %1334 = vrot.lane.b32.xlu1 %v1209_v23, %s4056_s19 }
 0x512   : > { %1337 = vrot.lane.b32.xlu0 %v1210_v22, %s4056_s19 }
 0x513   : > { %1461 = vrot.lane.b32.xlu1 %v1210_v22, %s4057_s1 }
 0x516   : > { %1584 = vrot.lane.b32.xlu0 %v1210_v22, %s4058_s23 }
 0x517   : > { %1459 = vrot.lane.b32.xlu1 %v1209_v23, %s4057_s1 }
 0x51b   : > { %1582 = vrot.lane.b32.xlu1 %v1209_v23, %s4058_s23 }
 0x589   : > { %v1276_v47 = vpop.xlane.xlu0 %1275 }
 0x58a   : > { %3613 = vrcp.f32 %v1276_v47 }
 0x58b   : > { %v1279_v48 = vpop.xlane.xlu1 %1278 }
 0x58c   : > { %3615 = vrcp.f32 %v1279_v48 }
 0x58d   : > { %v1338_v50 = vpop.permute.xlu0 %1337 }
 0x58e   : > { %v1343_v59 = vsel %vm1212_vm2, %v1338_v50, 0 }
 0x58f   : > { %v1335_v49 = vpop.permute.xlu1 %1334 }
 0x591   : > { %v1585_v57 = vpop.permute.xlu0 %1584 }
 0x592   : > { %v1590_v1 = vsel %vm1212_vm2, %v1585_v57, 0 }
 0x593   : > { %v1462_v51 = vpop.permute.xlu1 %1461 }
 0x594   : > { %v3614_v52 = vpop.eup %3613  ;;  %v1467_v53 = vsel %vm1212_vm2, %v1462_v51, 0 }
 0x595   : > { %3289 = vmatpush3.bf16.xpose.msra.mxu0 %v1467_v53  ;;  %v1282_v55 = vmul.f32 %v3614_v52, %v3610_v43 }
 0x596   : > { %v3616_v54 = vpop.eup %3615  ;;  %3300 = vmatprep.subr.bf16.mxu0 %v4053_v9 }
 0x597   : > { %v1283_v56 = vmul.f32 %v3616_v54, %v3612_v45  ;;  %v1460_v62 = vpop.permute.xlu1 %1459 }
 0x599   : > { %v1284_v58 = vpack.c.bf16 %v1283_v56, %v1282_v55 }
 0x59b   : > { %3273 = vmatmul.mubr.msk.bf16.vlgmr.msra.gmra.mrb[8].mxu1 %vm1260_vm4, %v1284_v58  ;;  %v1583_v2 = vpop.permute.xlu1 %1582 }
 0x59c   : > { %3277 = vmatpush3.bf16.xpose.msra.mxu1 %v1343_v59  ;;  %3291 = vmatmul.mubr.msk.bf16.vlgmr.msra.gmra.mrb[4].mxu0 %vm1212_vm2, %v1460_v62 }
 0x59d   : > { %3301 = vmatpush3.bf16.xpose.msra.mxu0 %v1590_v1  ;;  %3278 = vmatprep.mubr.msk.bf16.mxu1 %vm4055_vm1, %v4053_v9 }
 0x59e   : > { %3302 = vmatprep.mubr.msk.bf16.mxu0 %vm4055_vm1, %v4053_v9  ;;  %3282 = vmatprep.subr.bf16.mxu1 %v4053_v9 }
 0x59f   : > { %3312 = vmatprep.subr.bf16.mxu0 %v4053_v9 }
 0x5a3   : > { %3279 = vmatmul.mubr.msk.bf16.vlgmr.msra.gmra.mrb[12].mxu1 %vm1212_vm2, %v1335_v49 }
 0x5a4   : > { %3303 = vmatmul.mubr.msk.bf16.vlgmr.msra.gmra.mrb[8].mxu0 %vm1212_vm2, %v1583_v2  ;;  %3284 = vmatprep.mubr.msk.bf16.mxu1 %vm4055_vm1, %v4053_v9 }
 0x5a5   : > { %3328 = vmatprep.mubr.msk.bf16.mxu0 %vm4055_vm1, %v4053_v9 }
 0x66e   : > { %v4705_v3 = vpop.f32.mrb[8].mxu1 }
 0x66f   : > { %v3274_v4 = vpop.f32.mrb[9].mxu1  ;;  %v1503_v5 = vpop.f32.mrb[4].mxu0 }
 0x670   : > { %v4707_v6 = vpop.f32.mrb[10].mxu1  ;;  %v3292_v7 = vpop.f32.mrb[5].mxu0  ;;  %v1504_v18 = vadd.f32 %v1503_v5, %v4668_v26 }
 0x671   : > { %v3275_v8 = vpop.f32.mrb[11].mxu1  ;;  %v1506_v10 = vpop.f32.mrb[6].mxu0 }
 0x672   : > { %v3293_v11 = vpop.f32.mrb[7].mxu0  ;;  %v1507_v29 = vadd.f32 %v1506_v10, %v4673_v28  ;;  %v1510_v30 = vsel %vm1260_vm4, %v1504_v18, -inf }
 0x674   : > { %v1513_v33 = vsel %vm1264_vm5, %v1507_v29, -inf }
 0x676   : > { %v1379_v12 = vpop.f32.mrb[12].mxu1 }
 0x677   : > { %v1380_v13 = vadd.f32 %v1379_v12, %v4668_v26  ;;  %v3280_v14 = vpop.f32.mrb[13].mxu1  ;;  %v1626_v15 = vpop.f32.mrb[8].mxu0 }
 0x678   : > { %v1382_v16 = vpop.f32.mrb[14].mxu1  ;;  %v3304_v17 = vpop.f32.mrb[9].mxu0  ;;  %v1627_v32 = vadd.f32 %v1626_v15, %v4668_v26 }
 0x679   : > { %v1383_v19 = vadd.f32 %v1382_v16, %v4673_v28  ;;  %v3281_v20 = vpop.f32.mrb[15].mxu1  ;;  %v1629_v22 = vpop.f32.mrb[10].mxu0  ;;  %v1386_v23 = vsel %vm1260_vm4, %v1380_v13, -inf }
 0x67a   : > { %v3305_v24 = vpop.f32.mrb[11].mxu0  ;;  %1387 = vmax.xlane.f32.xlu0 %v1386_v23  ;;  %v1630_v25 = vadd.f32 %v1629_v22, %v4673_v28  ;;  %v1633_v34 = vsel %vm1260_vm4, %v1627_v32, -inf }
 0x67b   : > { %v1389_v27 = vsel %vm1264_vm5, %v1383_v19, -inf }
 0x67c   : > { %1390 = vmax.xlane.f32.xlu1 %v1389_v27  ;;  %v1636_v31 = vsel %vm1264_vm5, %v1630_v25, -inf }
 0x67e   : > { %1511 = vmax.xlane.f32.xlu0 %v1510_v30 }
 0x680   : > { %1637 = vmax.xlane.f32.xlu1 %v1636_v31 }
 0x682   : > { %1514 = vmax.xlane.f32.xlu0 %v1513_v33 }
 0x686   : > { %1634 = vmax.xlane.f32.xlu0 %v1633_v34 }
 0x707   : > { %v1388_v35 = vpop.xlane.xlu0 %1387 }
 0x708   : > { %v1392_v44 = vsub.f32 %v1380_v13, %v1388_v35 }
 0x709   : > { %v1391_v37 = vpop.xlane.xlu1 %1390 }
 0x70a   : > { %v1393_v45 = vsub.f32 %v1383_v19, %v1391_v37  ;;  %v1394_v49 = vmul.f32 1.442695, %v1392_v44  ;;  %v3517_v37 = vld [vmem:[%s4560_s11] sm:$0xff]  }
 0x70b   : > { %v1512_v38 = vpop.xlane.xlu0 %1511  ;;  %3313 = vmatpush3.bf16.msra.mxu0 %v3517_v37 }
 0x70c   : > { %v1516_v39 = vsub.f32 %v1504_v18, %v1512_v38  ;;  %v1396_v50 = vmul.f32 1.442695, %v1393_v45  ;;  %v3518_v38 = vld [vmem:[%s4560_s11 + $0x8] sm:$0xff]   ;;  %3314 = vmatprep.subr.bf16.mxu0 %v4053_v9 }
 0x70d   : > { %v1638_v40 = vpop.xlane.xlu1 %1637 }
 0x70e   : > { %v1518_v28 = vmul.f32 1.442695, %v1516_v39  ;;  %v1640_v41 = vsub.f32 %v1630_v25, %v1638_v40  ;;  %v3519_v39 = vld [vmem:[%s4560_s11 + $0x10] sm:$0xff]   ;;  %v3520_v40 = vld [vmem:[%s4560_s11 + $0x18] sm:$0xff]  }
 0x70f   : > { %v1515_v42 = vpop.xlane.xlu0 %1514  ;;  %3315 = vmatpush3.bf16.msra.mxu0 %v3518_v38 }
 0x710   : > { %3617 = vpow2.f32 %v1518_v28  ;;  %v1517_v43 = vsub.f32 %v1507_v29, %v1515_v42  ;;  %v1643_v46 = vmul.f32 1.442695, %v1640_v41  ;;  %3316 = vmatprep.subr.bf16.mxu0 %v4053_v9  ;;  %v3521_v28 = vld [vmem:[%s4560_s11 + $0x20] sm:$0xff]  }
 0x712   : > { %v1520_v26 = vmul.f32 1.442695, %v1517_v43  ;;  %v3522_v43 = vld [vmem:[%s4560_s11 + $0x28] sm:$0xff]  }
 0x713   : > { %v1635_v47 = vpop.xlane.xlu0 %1634  ;;  %3317 = vmatpush3.bf16.msra.mxu0 %v3519_v39 }
 0x714   : > { %3619 = vpow2.f32 %v1520_v26  ;;  %v1639_v48 = vsub.f32 %v1627_v32, %v1635_v47  ;;  %3318 = vmatprep.subr.bf16.mxu0 %v4053_v9  ;;  %v3523_v26 = vld [vmem:[%s4560_s11 + $0x30] sm:$0xff]  }
 0x715   : > { %3621 = vpow2.f32 %v1643_v46 }
 0x716   : > { %v1641_v51 = vmul.f32 1.442695, %v1639_v48 }
 0x717   : > { %3319 = vmatpush3.bf16.msra.mxu0 %v3520_v40 }
 0x718   : > { %3623 = vpow2.f32 %v1641_v51  ;;  %3320 = vmatprep.subr.bf16.mxu0 %v4053_v9 }
 0x719   : > { %3625 = vpow2.f32 %v1394_v49  ;;  %v3524_v49 = vld [vmem:[%s4560_s11 + $0x38] sm:$0xff]   ;;  %s5004_s11 = scalar_lea.vmem [#allocation7], %s4502_s22 }
 0x71a   : > { %v3618_v52 = vpop.eup %3617  ;;  %3627 = vpow2.f32 %v1396_v50 }
 0x71b   : > { %v1522_v53 = vsel %vm1260_vm4, %v3618_v52, 0.0  ;;  %3321 = vmatpush3.bf16.msra.mxu0 %v3521_v28 }
 0x71c   : > { %1523 = vadd.xlane.f32.xlu0 %v1522_v53  ;;  %3322 = vmatprep.subr.bf16.mxu0 %v4053_v9 }
 0x71e   : > { %v3620_v54 = vpop.eup %3619 }
 0x71f   : > { %v1525_v55 = vsel %vm1264_vm5, %v3620_v54, 0.0  ;;  %v3622_v56 = vpop.eup %3621  ;;  %3323 = vmatpush3.bf16.msra.mxu0 %v3522_v43 }
 0x720   : > { %1526 = vadd.xlane.f32.xlu1 %v1525_v55  ;;  %v1648_v62 = vsel %vm1264_vm5, %v3622_v56, 0.0  ;;  %3324 = vmatprep.subr.bf16.mxu0 %v4053_v9 }
 0x722   : > { %v3624_v57 = vpop.eup %3623 }
 0x723   : > { %v3626_v58 = vpop.eup %3625  ;;  %v1645_v59 = vsel %vm1260_vm4, %v3624_v57, 0.0  ;;  %3325 = vmatpush3.bf16.msra.mxu0 %v3523_v26  ;;  %v3540_v26 = vld [vmem:[%s4565_s24 + $0x48] ss:$16 sps:$4 sm:$0xff]  }
 0x724   : > { %v3628_v1 = vpop.eup %3627  ;;  %1646 = vadd.xlane.f32.xlu0 %v1645_v59  ;;  %1649 = vadd.xlane.f32.xlu1 %v1648_v62  ;;  %v1398_v2 = vsel %vm1260_vm4, %v3626_v58, 0.0 }
 0x725   : > { %v1401_v4 = vsel %vm1264_vm5, %v3628_v1, 0.0  ;;  %3326 = vmatprep.subr.bf16.mxu0 %v4053_v9 }
 0x727   : > { %3327 = vmatpush3.bf16.msra.mxu0 %v3524_v49  ;;  %v3543_v49 = vld [vmem:[%s4565_s24 + $0x60] ss:$16 sps:$4 sm:$0xff]  }
 0x728   : > { %1399 = vadd.xlane.f32.xlu0 %v1398_v2  ;;  %1402 = vadd.xlane.f32.xlu1 %v1401_v4 }
 0x739   : > { %1533 = vrot.lane.b32.xlu1 %v4655_v21, %s4057_s1 }
 0x73d   : > { %1656 = vrot.lane.b32.xlu1 %v4655_v21, %s4058_s23 }
 0x73e   : > { %1410 = vrot.lane.b32.xlu0 %v4655_v21, %s4056_s19 }
 0x7a9   : > { %v1524_v5 = vpop.xlane.xlu0 %1523 }
 0x7ad   : > { %v1527_v7 = vpop.xlane.xlu1 %1526 }
 0x7b1   : > { %v1647_v8 = vpop.xlane.xlu0 %1646  ;;  %v1650_v10 = vpop.xlane.xlu1 %1649 }
 0x7b5   : > { %v1400_v11 = vpop.xlane.xlu0 %1399  ;;  %v1403_v12 = vpop.xlane.xlu1 %1402 }
 0x7b6   : > { %3629 = vrcp.f32 %v1400_v11 }
 0x7b7   : > { %3631 = vrcp.f32 %v1403_v12 }
 0x7b8   : > { %3633 = vrcp.f32 %v1527_v7 }
 0x7b9   : > { %v1411_v13 = vpop.permute.xlu0 %1410  ;;  %3635 = vrcp.f32 %v1524_v5  ;;  %v1534_v18 = vpop.permute.xlu1 %1533 }
 0x7ba   : > { %v1416_v14 = vsel %vm1288_vm3, %v1411_v13, 0  ;;  %3637 = vrcp.f32 %v1647_v8  ;;  %v1539_v22 = vsel %vm1288_vm3, %v1534_v18, 0  ;;  %v3677_v18 = vld [vmem:[#allocation2] sm:$0xff] }
 0x7bb   : > { %3283 = vmatpush3.bf16.msra.mxu1 %v1416_v14  ;;  %3639 = vrcp.f32 %v1650_v10 }
 0x7bc   : > { %3294 = vmatprep.subr.bf16.mxu1 %v4053_v9 }
 0x7bd   : > { %v1657_v27 = vpop.permute.xlu1 %1656 }
 0x7be   : > { %v1662_v32 = vsel %vm1288_vm3, %v1657_v27, 0  ;;  %v3527_v27 = vld [vmem:[%s4565_s24 + $0x4] ss:$16 sps:$4 sm:$0xff]  }
 0x7c0   : > { %v3630_v15 = vpop.eup %3629 }
 0x7c1   : > { %v3632_v16 = vpop.eup %3631  ;;  %v1406_v17 = vmul.f32 %v3630_v15, %v3626_v58 }
 0x7c2   : > { %v1407_v21 = vmul.f32 %v3632_v16, %v3628_v1  ;;  %v3634_v20 = vpop.eup %3633  ;;  %v3056_v16 = vld [vmem:[%s5004_s11] ss:$0 sm:$0xff] }
 0x7c3   : > { %v3636_v23 = vpop.eup %3635  ;;  %v1531_v24 = vmul.f32 %v3634_v20, %v3620_v54 }
 0x7c4   : > { %v1408_v19 = vpack.c.bf16 %v1407_v21, %v1406_v17  ;;  %v1530_v25 = vmul.f32 %v3636_v23, %v3618_v52  ;;  %v3638_v29 = vpop.eup %3637  ;;  %v3678_v23 = vld [vmem:[#allocation2 + $0x8] sm:$0x3] }
 0x7c5   : > { %v3640_v31 = vpop.eup %3639  ;;  %v1653_v33 = vmul.f32 %v3638_v29, %v3624_v57  ;;  %v3528_v29 = vld [vmem:[%s4565_s24 + $0x8] ss:$16 sps:$4 sm:$0xff]  }
 0x7c6   : > { %3285 = vmatmul.mubr.msk.bf16.vlgmr.msra.gmra.mrb[16].mxu1 %vm1260_vm4, %v1408_v19  ;;  %v1532_v30 = vpack.c.bf16 %v1531_v24, %v1530_v25  ;;  %v1654_v34 = vmul.f32 %v3640_v31, %v3622_v56  ;;  %v3525_v25 = vld [vmem:[%s4565_s24] ss:$16 sps:$4 sm:$0xff]   ;;  %v3533_v31 = vld [vmem:[%s4565_s24 + $0x24] ss:$16 sps:$4 sm:$0xff]  }
 0x7c7   : > { %3295 = vmatpush3.bf16.msra.mxu1 %v1539_v22  ;;  %3296 = vmatprep.mubr.msk.bf16.mxu1 %vm4055_vm1, %v4053_v9 }
 0x7c8   : > { %3306 = vmatprep.subr.bf16.mxu1 %v4053_v9  ;;  %v1655_v35 = vpack.c.bf16 %v1654_v34, %v1653_v33  ;;  %v3531_v33 = vld [vmem:[%s4565_s24 + $0x20] ss:$16 sps:$4 sm:$0xff]   ;;  %v3534_v34 = vld [vmem:[%s4565_s24 + $0x28] ss:$16 sps:$4 sm:$0xff]  }
 0x7ce   : > { %3297 = vmatmul.mubr.msk.bf16.vlgmr.msra.gmra.mrb[20].mxu1 %vm1260_vm4, %v1532_v30  ;;  %v3530_v30 = vld [vmem:[%s4565_s24 + $0xc] ss:$16 sps:$4 sm:$0xff]  }
 0x7cf   : > { %3307 = vmatpush3.bf16.msra.mxu1 %v1662_v32  ;;  %3308 = vmatprep.mubr.msk.bf16.mxu1 %vm4055_vm1, %v4053_v9  ;;  %v3536_v32 = vld [vmem:[%s4565_s24 + $0x2c] ss:$16 sps:$4 sm:$0xff]  }
 0x7d0   : > { %2108 = vmatprep.subr.bf16.mxu1 %v3527_v27  ;;  %2151 = vmatprep.subr.bf16.mxu0 %v3530_v30  ;;  %v3574_v27 = vld [vmem:[%s4570_s18 + $0xc0] sm:$0xff]  }
 0x7d1   : > { %v3576_v30 = vld [vmem:[%s4570_s18 + $0x80] sm:$0xff]  }
 0x7d6   : > { %3309 = vmatmul.mubr.msk.bf16.vlgmr.msra.gmra.mrb[24].mxu1 %vm1260_vm4, %v1655_v35 }
 0x7d7   : > { %2140 = vmatprep.mubr.bf16.mxu1 %v4054_v36  ;;  %2109 = vmatpush1.bf16.msra.mxu1 %v3525_v25  ;;  %v3573_v25 = vld [vmem:[%s4570_s18 + $0x40] sm:$0xff]  }
 0x7d8   : > { %2110 = vmatprep.subr.bf16.mxu1 %v3533_v31  ;;  %v3577_v31 = vld [vmem:[%s4570_s18 + $0x48] sm:$0xff]  }
 0x7db   : > { %2111 = vmatpush1.bf16.msra.mxu1 %v3531_v33  ;;  %v3579_v33 = vld [vmem:[%s4570_s18 + $0x8] sm:$0xff]  }
 0x899   : > { %v1452_v41 = vpop.f32.mrb[16].mxu1 }
 0x89a   : > { %v3286_v42 = vpop.f32.mrb[17].mxu1 }
 0x89b   : > { %v1455_v44 = vpop.f32.mrb[18].mxu1 }
 0x89c   : > { %v3470_v45 = vpack.i.bf16 %v1455_v44, %v1452_v41  ;;  %v3287_v46 = vpop.f32.mrb[19].mxu1  ;;  %v3539_v44 = vld [vmem:[%s4565_s24 + $0x44] ss:$16 sps:$4 sm:$0xff]  }
 0x89d   : > { %v3537_v46 = vld [vmem:[%s4565_s24 + $0x40] ss:$16 sps:$4 sm:$0xff]   ;;  %2112 = vmatprep.subr.bf16.mxu1 %v3539_v44 }
 0x89e   : > { %3471 = vrot.lane.b32.xlu1 %v3470_v45, %s4058_s23  ;;  %v3542_v45 = vld [vmem:[%s4565_s24 + $0x4c] ss:$16 sps:$4 sm:$0xff]   ;;  %2113 = vmatpush1.bf16.msra.mxu1 %v3537_v46  ;;  %v3590_v44 = vld [vmem:[%s4570_s18 + $0xe0] sm:$0xff]  }
 0x89f   : > { %v3592_v46 = vld [vmem:[%s4570_s18 + $0xa0] sm:$0xff]  }
 0x8a1   : > { %v1575_v47 = vpop.f32.mrb[20].mxu1 }
 0x8a2   : > { %v3298_v48 = vpop.f32.mrb[21].mxu1 }
 0x8a3   : > { %v1578_v50 = vpop.f32.mrb[22].mxu1  ;;  %v3548_v48 = vld [vmem:[%s4565_s24 + $0x6c] ss:$16 sps:$4 sm:$0xff]  }
 0x8a4   : > { %v3475_v51 = vpack.i.bf16 %v1578_v50, %v1575_v47  ;;  %v3299_v52 = vpop.f32.mrb[23].mxu1  ;;  %v3545_v47 = vld [vmem:[%s4565_s24 + $0x64] ss:$16 sps:$4 sm:$0xff]   ;;  %v3546_v50 = vld [vmem:[%s4565_s24 + $0x68] ss:$16 sps:$4 sm:$0xff]  }
 0x8a5   : > { %2114 = vmatprep.subr.bf16.mxu1 %v3545_v47  ;;  %v3554_v52 = vld [vmem:[%s4565_s24 + $0x8c] ss:$16 sps:$4 sm:$0xff]  }
 0x8a6   : > { %3476 = vrot.lane.b32.xlu0 %v3475_v51, %s4057_s1  ;;  %2115 = vmatpush1.bf16.msra.mxu1 %v3543_v49  ;;  %v3551_v51 = vld [vmem:[%s4565_s24 + $0x84] ss:$16 sps:$4 sm:$0xff]   ;;  %v3594_v47 = vld [vmem:[%s4570_s18 + $0xe8] sm:$0xff]  }
 0x8a7   : > { %2116 = vmatprep.subr.bf16.mxu1 %v3551_v51  ;;  %v3596_v49 = vld [vmem:[%s4570_s18 + $0xa8] sm:$0xff]   ;;  %v3598_v51 = vld [vmem:[%s4570_s18 + $0xf0] sm:$0xff]  }
 0x8a9   : > { %v1698_v53 = vpop.f32.mrb[24].mxu1 }
 0x8aa   : > { %v3310_v54 = vpop.f32.mrb[25].mxu1 }
 0x8ab   : > { %v1701_v55 = vpop.f32.mrb[26].mxu1  ;;  %v3552_v54 = vld [vmem:[%s4565_s24 + $0x88] ss:$16 sps:$4 sm:$0xff]  }
 0x8ac   : > { %v3480_v56 = vpack.i.bf16 %v1701_v55, %v1698_v53  ;;  %v3311_v57 = vpop.f32.mrb[27].mxu1  ;;  %v3549_v53 = vld [vmem:[%s4565_s24 + $0x80] ss:$16 sps:$4 sm:$0xff]   ;;  %v3557_v55 = vld [vmem:[%s4565_s24 + $0xa4] ss:$16 sps:$4 sm:$0xff]  }
 0x8ad   : > { %2117 = vmatpush1.bf16.msra.mxu1 %v3549_v53  ;;  %v3555_v57 = vld [vmem:[%s4565_s24 + $0xa0] ss:$16 sps:$4 sm:$0xff]  }
 0x8ae   : > { %3481 = vrot.lane.b32.xlu1 %v3480_v56, %s4056_s19  ;;  %v3560_v56 = vld [vmem:[%s4565_s24 + $0xac] ss:$16 sps:$4 sm:$0xff]   ;;  %2118 = vmatprep.subr.bf16.mxu1 %v3557_v55  ;;  %v3600_v53 = vld [vmem:[%s4570_s18 + $0xb0] sm:$0xff]  }
 0x8af   : > { %v3602_v55 = vld [vmem:[%s4570_s18 + $0xf8] sm:$0xff]  }
 0x8b1   : > { %2119 = vmatpush1.bf16.msra.mxu1 %v3555_v57  ;;  %v3604_v57 = vld [vmem:[%s4570_s18 + $0xb8] sm:$0xff]  }
 0x910   : > { %v3472_v58 = vpop.permute.xlu1 %3471 }
 0x911   : > { %v3474_v62 = vunpack.i.h.bf16 %v3472_v58  ;;  %v3473_v1 = vunpack.i.l.bf16 %v3472_v58  ;;  %v3558_v58 = vld [vmem:[%s4565_s24 + $0xa8] ss:$16 sps:$4 sm:$0xff]  }
 0x913   : > { %v1730_v5 = vsel %vm1212_vm2, %v4707_v6, %v3474_v62  ;;  %v1729_v7 = vsel %vm1212_vm2, %v4705_v3, %v3473_v1  ;;  %v3566_v62 = vld [vmem:[%s4565_s24 + $0xcc] ss:$16 sps:$4 sm:$0xff]   ;;  %v3561_v1 = vld [vmem:[%s4565_s24 + $0xc0] ss:$16 sps:$4 sm:$0xff]  }
 0x918   : > { %v3477_v59 = vpop.permute.xlu0 %3476 }
 0x919   : > { %v3479_v9 = vunpack.i.h.bf16 %v3477_v59  ;;  %v3478_v2 = vunpack.i.l.bf16 %v3477_v59  ;;  %v3563_v59 = vld [vmem:[%s4565_s24 + $0xc4] ss:$16 sps:$4 sm:$0xff]  }
 0x91a   : > { %2120 = vmatprep.subr.bf16.mxu1 %v3563_v59  ;;  %v1942_v59 = vsub.s32 3, %v4643_v60 }
 0x91b   : > { %v1733_v11 = vsel %vm1731_vm6, %v1730_v5, %v3479_v9  ;;  %v1732_v12 = vsel %vm1731_vm6, %v1729_v7, %v3478_v2  ;;  %v3564_v9 = vld [vmem:[%s4565_s24 + $0xc8] ss:$16 sps:$4 sm:$0xff]   ;;  %v3569_v2 = vld [vmem:[%s4565_s24 + $0xe4] ss:$16 sps:$4 sm:$0xff]   ;;  %2121 = vmatpush1.bf16.msra.mxu1 %v3561_v1  ;;  %v3567_v5 = vld [vmem:[%s4565_s24 + $0xe0] ss:$16 sps:$4 sm:$0xff]  }
 0x91c   : > { %v3570_v7 = vld [vmem:[%s4565_s24 + $0xe8] ss:$16 sps:$4 sm:$0xff]   ;;  %2122 = vmatprep.subr.bf16.mxu1 %v3569_v2 }
 0x91f   : > { %2123 = vmatpush1.bf16.msra.mxu1 %v3567_v5 }
 0x920   : > { %v3482_v4 = vpop.permute.xlu1 %3481  ;;  %3191 = vmatprep.subr.bf16.mxu1 %v3573_v25 }
 0x921   : > { %v3484_v8 = vunpack.i.h.bf16 %v3482_v4  ;;  %v3483_v10 = vunpack.i.l.bf16 %v3482_v4  ;;  %v3572_v4 = vld [vmem:[%s4565_s24 + $0xec] ss:$16 sps:$4 sm:$0xff]   ;;  %s5005_s24 = scalar_lea.vmem [#allocation8], %s4502_s22 }
 0x923   : > { %v1736_v13 = vsel %vm1734_vm7, %v1733_v11, %v3484_v8  ;;  %v1735_v14 = vsel %vm1734_vm7, %v1732_v12, %v3483_v10 }
 0x924   : > { %v1737_v15 = vpack.c.bf16 %v1736_v13, %v1735_v14 }
 0x926   : > { %3329 = vmatmul.mubr.bf16.vlgmr.msra.gmra.mrb[12].mxu0 %v1737_v15 }
 0x927   : > { %2183 = vmatprep.mubr.bf16.mxu0 %v4054_v36  ;;  %2152 = vmatpush1.bf16.msra.mxu0 %v3528_v29  ;;  %v3575_v29 = vld [vmem:[%s4570_s18] sm:$0xff]  }
 0x928   : > { %2153 = vmatprep.subr.bf16.mxu0 %v3536_v32  ;;  %v3578_v32 = vld [vmem:[%s4570_s18 + $0xc8] sm:$0xff]  }
 0x92b   : > { %2154 = vmatpush1.bf16.msra.mxu0 %v3534_v34  ;;  %v3580_v34 = vld [vmem:[%s4570_s18 + $0x88] sm:$0xff]  }
 0x92c   : > { %2155 = vmatprep.subr.bf16.mxu0 %v3542_v45  ;;  %v3591_v45 = vld [vmem:[%s4570_s18 + $0x20] sm:$0xff]  }
 0x92f   : > { %2156 = vmatpush1.bf16.msra.mxu0 %v3540_v26  ;;  %v3593_v26 = vld [vmem:[%s4570_s18 + $0x68] sm:$0xff]  }
 0x930   : > { %2157 = vmatprep.subr.bf16.mxu0 %v3548_v48  ;;  %v3595_v48 = vld [vmem:[%s4570_s18 + $0x28] sm:$0xff]  }
 0x933   : > { %2158 = vmatpush1.bf16.msra.mxu0 %v3546_v50  ;;  %v3597_v50 = vld [vmem:[%s4570_s18 + $0x70] sm:$0xff]  }
 0x934   : > { %2159 = vmatprep.subr.bf16.mxu0 %v3554_v52  ;;  %v3599_v52 = vld [vmem:[%s4570_s18 + $0x30] sm:$0xff]  }
 0x937   : > { %2160 = vmatpush1.bf16.msra.mxu0 %v3552_v54  ;;  %v3601_v54 = vld [vmem:[%s4570_s18 + $0x78] sm:$0xff]  }
 0x938   : > { %2161 = vmatprep.subr.bf16.mxu0 %v3560_v56  ;;  %v3603_v56 = vld [vmem:[%s4570_s18 + $0x38] sm:$0xff]  }
 0x93b   : > { %2162 = vmatpush1.bf16.msra.mxu0 %v3558_v58  ;;  %v1926_v58 = vld [vmem:[%s4528_s28] sm:$0xf]  ;;  %s5007_s28 = scalar_lea.vmem [#allocation13], %s4502_s22  ;;  %s5008_s22 = sld [smem:[#allocation26_spill]] }
 0x93c   : > { %2163 = vmatprep.subr.bf16.mxu0 %v3566_v62  ;;  %v1931_v62 = vrot.slane %v1926_v58, %v981_v61  ;;  %v1939_v1 = vrot.slane %v1926_v58, %v989_v63  ;;  %v1943_v2 = vrot.slane %v1926_v58, %v1942_v59 }
 0x93f   : > { %2164 = vmatpush1.bf16.msra.mxu0 %v3564_v9  ;;  %v1935_v9 = vrot.slane %v1926_v58, %v985_v0 }
 0x940   : > { %2165 = vmatprep.subr.bf16.mxu0 %v3572_v4 }
 0x941   : > { %p3140_p13 = scmp.ne.s32.totalorder %s5008_s22, 1 }
 0x942   : > { %vm2618_vm8 = vcmask (!%p3140_p13), 1040384   ;;  %vm4060_vm9 = vmmov (!%p3140_p13), 0   ;;  %s5009_s10 = sld [smem:[#allocation41_spill]] (!%p3140_p13) }
 0x943   : > { %2166 = vmatpush1.bf16.msra.mxu0 %v3570_v7 }
 0x944   : > { %3213 = vmatprep.subr.bf16.mxu0 %v3574_v27 }
 0x9f9   : > { %v1842_v17 = vpop.f32.mrb[12].mxu0 }
 0x9fa   : > { %v1843_v6 = vadd.f32 %v3056_v16, %v1842_v17  ;;  %v3330_v3 = vpop.f32.mrb[13].mxu0  ;;  %v3065_v17 = vld [vmem:[%s5005_s24] ss:$0 sm:$0xff] }
 0x9fb   : > { %v1845_v21 = vpop.f32.mrb[14].mxu0 }
 0x9fc   : > { %v4771_v19 = vadd.f32 %v3677_v18, %v1843_v6  ;;  %v1846_v20 = vadd.f32 %v3056_v16, %v1845_v21  ;;  %v3331_v22 = vpop.f32.mrb[15].mxu0  ;;  %v3066_v18 = vld [vmem:[%s5006_s17] ss:$0 sm:$0xff] }
 0x9fe   : > { %v4773_v24 = vadd.f32 %v3678_v23, %v1846_v20  ;;  %1853 = vadd.xlane.f32.xlu1 %v4771_v19 }
 0xa00   : > { %v1855_v36 = vsel %vm904_vm0, %v4773_v24, 0.0 }
 0xa01   : > { %1856 = vadd.xlane.f32.xlu0 %v1855_v36 }
 0xa8b   : > { %v1854_v35 = vpop.xlane.xlu1 %1853 }
 0xa8c   : > { %v1858_v37 = vmul.f32 0.0078125, %v1854_v35  ;;  %v3581_v35 = vld [vmem:[%s4570_s18 + $0x50] sm:$0xff]  }
 0xa8e   : > { %v4787_v38 = vsub.f32 %v4771_v19, %v1858_v37  ;;  %v1857_v39 = vpop.xlane.xlu0 %1856  ;;  %v3582_v37 = vld [vmem:[%s4570_s18 + $0xd0] sm:$0xff]  }
 0xa8f   : > { %v1859_v40 = vmul.f32 0.0078125, %v1857_v39  ;;  %v3584_v39 = vld [vmem:[%s4570_s18 + $0x90] sm:$0xff]  }
 0xa90   : > { %v1862_v28 = vmul.f32 %v4787_v38, %v4787_v38 }
 0xa91   : > { %v4792_v41 = vsub.f32 %v4773_v24, %v1859_v40  ;;  %v3585_v40 = vld [vmem:[%s4570_s18 + $0x58] sm:$0xff]  }
 0xa92   : > { %1864 = vadd.xlane.f32.xlu0 %v1862_v28  ;;  %v3586_v28 = vld [vmem:[%s4570_s18 + $0xd8] sm:$0xff]  }
 0xa93   : > { %v1863_v42 = vmul.f32 %v4792_v41, %v4792_v41 }
 0xa95   : > { %v1866_v43 = vsel %vm904_vm0, %v1863_v42, 0.0  ;;  %v3588_v42 = vld [vmem:[%s4570_s18 + $0x98] sm:$0xff]  }
 0xa96   : > { %1867 = vadd.xlane.f32.xlu0 %v1866_v43  ;;  %v3589_v43 = vld [vmem:[%s4570_s18 + $0x60] sm:$0xff]  }
 0xb1f   : > { %v1865_v8 = vpop.xlane.xlu0 %1864 }
 0xb20   : > { %v1869_v10 = vmul.f32 0.0078125, %v1865_v8 }
 0xb22   : > { %v1871_v11 = vadd.f32 1e-05, %v1869_v10 }
 0xb23   : > { %v1868_v12 = vpop.xlane.xlu0 %1867 }
 0xb24   : > { %3641 = vrsqrt.f32 %v1871_v11  ;;  %v1870_v13 = vmul.f32 0.0078125, %v1868_v12 }
 0xb26   : > { %v1872_v14 = vadd.f32 1e-05, %v1870_v13 }
 0xb28   : > { %3643 = vrsqrt.f32 %v1872_v14 }
 0xb2e   : > { %v3642_v15 = vpop.eup %3641 }
 0xb2f   : > { %v1875_v16 = vmul.f32 %v3642_v15, %v4787_v38  ;;  %v3583_v38 = vld [vmem:[%s4570_s18 + $0x10] sm:$0xff]  }
 0xb31   : > { %v1883_v21 = vmul.f32 %v3065_v17, %v1875_v16 }
 0xb32   : > { %v3644_v6 = vpop.eup %3643 }
 0xb33   : > { %v1876_v3 = vmul.f32 %v3644_v6, %v4792_v41  ;;  %v1891_v22 = vadd.f32 %v3066_v18, %v1883_v21  ;;  %v3587_v41 = vld [vmem:[%s4570_s18 + $0x18] sm:$0xff]  }
 0xb35   : > { %v1884_v20 = vmul.f32 %v3065_v17, %v1876_v3 }
 0xb37   : > { %v1892_v23 = vadd.f32 %v3066_v18, %v1884_v20 }
 0xb39   : > { %v1925_v36 = vpack.c.bf16 %v1892_v23, %v1891_v22 }
 0xb3b   : > { %2141 = vmatmul.mubr.bf16.vlgmr.msra.gmra.mrb[28].mxu1 %v1925_v36  ;;  %2184 = vmatmul.mubr.bf16.vlgmr.msra.gmra.mrb[16].mxu0 %v1925_v36 }
 0xb3c   : > { %3192 = vmatpush3.bf16.msra.mxu1 %v3575_v29  ;;  %3214 = vmatpush3.bf16.msra.mxu0 %v3576_v30 }
 0xb3d   : > { %3193 = vmatprep.subr.bf16.mxu1 %v3577_v31  ;;  %3215 = vmatprep.subr.bf16.mxu0 %v3578_v32 }
 0xb40   : > { %3194 = vmatpush3.bf16.msra.mxu1 %v3579_v33  ;;  %3216 = vmatpush3.bf16.msra.mxu0 %v3580_v34 }
 0xb41   : > { %3195 = vmatprep.subr.bf16.mxu1 %v3581_v35  ;;  %3217 = vmatprep.subr.bf16.mxu0 %v3582_v37 }
 0xb44   : > { %3196 = vmatpush3.bf16.msra.mxu1 %v3583_v38  ;;  %3218 = vmatpush3.bf16.msra.mxu0 %v3584_v39 }
 0xb45   : > { %3197 = vmatprep.subr.bf16.mxu1 %v3585_v40  ;;  %3219 = vmatprep.subr.bf16.mxu0 %v3586_v28 }
 0xb48   : > { %3198 = vmatpush3.bf16.msra.mxu1 %v3587_v41  ;;  %3220 = vmatpush3.bf16.msra.mxu0 %v3588_v42 }
 0xb49   : > { %3199 = vmatprep.subr.bf16.mxu1 %v3589_v43  ;;  %3221 = vmatprep.subr.bf16.mxu0 %v3590_v44 }
 0xb4c   : > { %3200 = vmatpush3.bf16.msra.mxu1 %v3591_v45  ;;  %3222 = vmatpush3.bf16.msra.mxu0 %v3592_v46 }
 0xb4d   : > { %3201 = vmatprep.subr.bf16.mxu1 %v3593_v26  ;;  %3223 = vmatprep.subr.bf16.mxu0 %v3594_v47 }
 0xb50   : > { %3202 = vmatpush3.bf16.msra.mxu1 %v3595_v48  ;;  %3224 = vmatpush3.bf16.msra.mxu0 %v3596_v49 }
 0xb51   : > { %3203 = vmatprep.subr.bf16.mxu1 %v3597_v50  ;;  %3225 = vmatprep.subr.bf16.mxu0 %v3598_v51 }
 0xb54   : > { %3204 = vmatpush3.bf16.msra.mxu1 %v3599_v52  ;;  %3226 = vmatpush3.bf16.msra.mxu0 %v3600_v53 }
 0xb55   : > { %3205 = vmatprep.subr.bf16.mxu1 %v3601_v54  ;;  %3227 = vmatprep.subr.bf16.mxu0 %v3602_v55 }
 0xb58   : > { %3206 = vmatpush3.bf16.msra.mxu1 %v3603_v56  ;;  %3228 = vmatpush3.bf16.msra.mxu0 %v3604_v57 }
 0xc0e   : > { %v2142_v4 = vpop.f32.mrb[28].mxu1  ;;  %v2185_v5 = vpop.f32.mrb[16].mxu0 }
 0xc0f   : > { %v4867_v7 = vadd.f32 %v2142_v4, %v1931_v62  ;;  %v4869_v8 = vadd.f32 %v2185_v5, %v1939_v1  ;;  %v2144_v10 = vpop.f32.mrb[29].mxu1  ;;  %v2187_v11 = vpop.f32.mrb[17].mxu0 }
 0xc10   : > { %v4871_v12 = vadd.f32 %v2144_v10, %v1935_v9  ;;  %v4873_v13 = vadd.f32 %v2187_v11, %v1943_v2  ;;  %v2146_v61 = vpop.f32.mrb[30].mxu1  ;;  %v2189_v14 = vpop.f32.mrb[18].mxu0 }
 0xc11   : > { %v3099_v63 = vmul.f32 -1.702, %v4867_v7  ;;  %v3101_v60 = vmul.f32 -1.702, %v4869_v8  ;;  %v2147_v0 = vadd.f32 %v2146_v61, %v1931_v62  ;;  %v2190_v15 = vadd.f32 %v2189_v14, %v1939_v1  ;;  %v2148_v16 = vpop.f32.mrb[31].mxu1  ;;  %v2191_v17 = vpop.f32.mrb[19].mxu0 }
 0xc12   : > { %v3100_v6 = vmul.f32 -1.702, %v4871_v12  ;;  %v3102_v3 = vmul.f32 -1.702, %v4873_v13  ;;  %v2149_v21 = vadd.f32 %v2148_v16, %v1935_v9  ;;  %v2192_v18 = vadd.f32 %v2191_v17, %v1943_v2 }
 0xc13   : > { %v2210_v20 = vmul.f32 1.442695, %v3099_v63  ;;  %v2214_v22 = vmul.f32 1.442695, %v3101_v60  ;;  %v3103_v23 = vmul.f32 -1.702, %v2147_v0 }
 0xc14   : > { %v2212_v36 = vmul.f32 1.442695, %v3100_v6  ;;  %v2216_v25 = vmul.f32 1.442695, %v3102_v3  ;;  %v3105_v27 = vmul.f32 -1.702, %v2190_v15 }
 0xc15   : > { %3645 = vpow2.f32 %v2210_v20  ;;  %v2218_v29 = vmul.f32 1.442695, %v3103_v23  ;;  %v3104_v30 = vmul.f32 -1.702, %v2149_v21  ;;  %v3106_v31 = vmul.f32 -1.702, %v2192_v18 }
 0xc16   : > { %3647 = vpow2.f32 %v2214_v22  ;;  %v2222_v32 = vmul.f32 1.442695, %v3105_v27 }
 0xc17   : > { %3649 = vpow2.f32 %v2212_v36  ;;  %v2220_v33 = vmul.f32 1.442695, %v3104_v30  ;;  %v2224_v34 = vmul.f32 1.442695, %v3106_v31  ;;  %v3679_v31 = vld [vmem:[#allocation17] sm:$0xff] (!%p3140_p13)  }
 0xc18   : > { %3651 = vpow2.f32 %v2216_v25 }
 0xc19   : > { %3653 = vpow2.f32 %v2218_v29 }
 0xc1a   : > { %3655 = vpow2.f32 %v2222_v32  ;;  %v4059_v32 = vmov (!%p3140_p13), 0.0  }
 0xc1b   : > { %3657 = vpow2.f32 %v2220_v33  ;;  %3332 = vmatprep.subr.bf16.mxu0 (!%p3140_p13), %v4059_v32  ;;  %v3680_v33 = vld [vmem:[#allocation17 + $0x8] sm:$0xff] (!%p3140_p13)  }
 0xc1c   : > { %3659 = vpow2.f32 %v2224_v34 }
 0xc1f   : > { %v3646_v35 = vpop.eup %3645 }
 0xc20   : > { %v3648_v37 = vpop.eup %3647  ;;  %v2226_v38 = vadd.f32 1.0, %v3646_v35 }
 0xc21   : > { %v3650_v39 = vpop.eup %3649  ;;  %v2228_v40 = vadd.f32 1.0, %v3648_v37 }
 0xc22   : > { %v3652_v28 = vpop.eup %3651  ;;  %3661 = vrcp.f32 %v2226_v38  ;;  %v2227_v41 = vadd.f32 1.0, %v3650_v39  ;;  %v3681_v38 = vld [vmem:[#allocation17 + $0x10] sm:$0xff] (!%p3140_p13)   ;;  %v3682_v39 = vld [vmem:[#allocation17 + $0x18] sm:$0xff] (!%p3140_p13)  }
 0xc23   : > { %v3654_v42 = vpop.eup %3653  ;;  %3663 = vrcp.f32 %v2228_v40  ;;  %v2229_v43 = vadd.f32 1.0, %v3652_v28  ;;  %v3683_v40 = vld [vmem:[#allocation17 + $0x20] sm:$0xff] (!%p3140_p13)   ;;  %v3684_v28 = vld [vmem:[#allocation17 + $0x28] sm:$0xff] (!%p3140_p13)  }
 0xc24   : > { %v3656_v44 = vpop.eup %3655  ;;  %3665 = vrcp.f32 %v2227_v41  ;;  %v2230_v45 = vadd.f32 1.0, %v3654_v42  ;;  %v3685_v41 = vld [vmem:[#allocation17 + $0x30] sm:$0xff] (!%p3140_p13)   ;;  %v3686_v42 = vld [vmem:[#allocation17 + $0x38] sm:$0xff] (!%p3140_p13)  }
 0xc25   : > { %v3658_v46 = vpop.eup %3657  ;;  %3667 = vrcp.f32 %v2229_v43  ;;  %v2232_v26 = vadd.f32 1.0, %v3656_v44 }
 0xc26   : > { %v3660_v47 = vpop.eup %3659  ;;  %3669 = vrcp.f32 %v2230_v45  ;;  %v2231_v48 = vadd.f32 1.0, %v3658_v46 }
 0xc27   : > { %3671 = vrcp.f32 %v2232_v26  ;;  %v2233_v49 = vadd.f32 1.0, %v3660_v47  ;;  %v3141_v26 = vld [vmem:[#allocation14] ss:$0 sm:$0xff] (!%p3140_p13) }
 0xc28   : > { %3673 = vrcp.f32 %v2231_v48  ;;  %v3142_v48 = vld [vmem:[#allocation16] ss:$0 sm:$0xff] (!%p3140_p13) }
 0xc29   : > { %3675 = vrcp.f32 %v2233_v49 }
 0xc2c   : > { %v3662_v50 = vpop.eup %3661 }
 0xc2d   : > { %v3664_v51 = vpop.eup %3663  ;;  %v2250_v56 = vmul.f32 %v3662_v50, %v4867_v7 }
 0xc2e   : > { %v3666_v52 = vpop.eup %3665  ;;  %v2252_v59 = vmul.f32 %v3664_v51, %v4869_v8  ;;  %v3107_v8 = vld [vmem:[%s5007_s28] ss:$0 sm:$0xff] }
 0xc2f   : > { %v3668_v53 = vpop.eup %3667  ;;  %v2251_v9 = vmul.f32 %v3666_v52, %v4871_v12 }
 0xc30   : > { %v3670_v54 = vpop.eup %3669  ;;  %v2253_v5 = vmul.f32 %v3668_v53, %v4873_v13 }
 0xc31   : > { %v3672_v55 = vpop.eup %3671  ;;  %v2254_v57 = vmul.f32 %v3670_v54, %v2147_v0 }
 0xc32   : > { %v3674_v58 = vpop.eup %3673  ;;  %v2256_v62 = vmul.f32 %v3672_v55, %v2190_v15 }
 0xc33   : > { %v3676_v1 = vpop.eup %3675  ;;  %v2322_v2 = vpack.c.bf16 %v2254_v57, %v2250_v56  ;;  %v2255_v4 = vmul.f32 %v3674_v58, %v2149_v21 }
 0xc34   : > { %v2324_v10 = vpack.c.bf16 %v2256_v62, %v2252_v59  ;;  %v2257_v11 = vmul.f32 %v3676_v1, %v2192_v18 }
 0xc35   : > { %v2323_v61 = vpack.c.bf16 %v2255_v4, %v2251_v9 }
 0xc36   : > { %v2325_v14 = vpack.c.bf16 %v2257_v11, %v2253_v5 }
 0xc37   : > { %2557 = vmatprep.mubr.bf16.mxu1 %v2323_v61 }
 0xc38   : > { %2598 = vmatprep.mubr.bf16.mxu0 %v2325_v14  ;;  %2558 = vmatmul.mubr.bf16.vlgmr.msra.gmra.mrb[32].mxu1 %v2322_v2 }
 0xc39   : > { %2599 = vmatmul.mubr.bf16.vlgmr.msra.gmra.mrb[20].mxu0 %v2324_v10 }
 0xc3a   : > { %3333 = vmatpush3.bf16.msra.mxu0 (!%p3140_p13), %v3679_v31  ;;  %3348 = vmatprep.mubr.msk.bf16.mxu0 (!%p3140_p13), %vm4060_vm9, %v4059_v32 }
 0xc3b   : > { %3334 = vmatprep.subr.bf16.mxu0 (!%p3140_p13), %v4059_v32 }
 0xc3e   : > { %3335 = vmatpush3.bf16.msra.mxu0 (!%p3140_p13), %v3680_v33 }
 0xc3f   : > { %3336 = vmatprep.subr.bf16.mxu0 (!%p3140_p13), %v4059_v32 }
 0xc42   : > { %3337 = vmatpush3.bf16.msra.mxu0 (!%p3140_p13), %v3681_v38 }
 0xc43   : > { %3338 = vmatprep.subr.bf16.mxu0 (!%p3140_p13), %v4059_v32 }
 0xc46   : > { %3339 = vmatpush3.bf16.msra.mxu0 (!%p3140_p13), %v3682_v39 }
 0xc47   : > { %3340 = vmatprep.subr.bf16.mxu0 (!%p3140_p13), %v4059_v32 }
 0xc4a   : > { %3341 = vmatpush3.bf16.msra.mxu0 (!%p3140_p13), %v3683_v40 }
 0xc4b   : > { %3342 = vmatprep.subr.bf16.mxu0 (!%p3140_p13), %v4059_v32 }
 0xc4e   : > { %3343 = vmatpush3.bf16.msra.mxu0 (!%p3140_p13), %v3684_v28 }
 0xc4f   : > { %3344 = vmatprep.subr.bf16.mxu0 (!%p3140_p13), %v4059_v32 }
 0xc52   : > { %3345 = vmatpush3.bf16.msra.mxu0 (!%p3140_p13), %v3685_v41 }
 0xc53   : > { %3346 = vmatprep.subr.bf16.mxu0 (!%p3140_p13), %v4059_v32 }
 0xc56   : > { %3347 = vmatpush3.bf16.msra.mxu0 (!%p3140_p13), %v3686_v42 }
 0xd0b   : > { %v3207_v7 = vpop.f32.mrb[32].mxu1 }
 0xd0c   : > { %v3229_v63 = vpop.f32.mrb[20].mxu0  ;;  %v3208_v60 = vpop.f32.mrb[33].mxu1 }
 0xd0d   : > { %v3209_v0 = vadd.f32 %v3208_v60, %v3207_v7  ;;  %v3230_v15 = vpop.f32.mrb[21].mxu0  ;;  %v3210_v12 = vpop.f32.mrb[34].mxu1 }
 0xd0e   : > { %v3231_v16 = vadd.f32 %v3230_v15, %v3229_v63  ;;  %v3232_v17 = vpop.f32.mrb[22].mxu0  ;;  %v3211_v6 = vpop.f32.mrb[35].mxu1 }
 0xd0f   : > { %v2560_v13 = vadd.f32 %v3209_v0, %v3107_v8  ;;  %v3212_v3 = vadd.f32 %v3211_v6, %v3210_v12  ;;  %v3233_v21 = vpop.f32.mrb[23].mxu0 }
 0xd10   : > { %v3234_v18 = vadd.f32 %v3233_v21, %v3232_v17 }
 0xd11   : > { %v2601_v20 = vadd.f32 %v3231_v16, %v2560_v13  ;;  %v2563_v22 = vadd.f32 %v3212_v3, %v3107_v8  ;;  %2614 = sbr.rel (%p3140_p13) target bundleno = 3882 (0xf2a), region = 136 }
 0xd13   : > { %v2607_v23 = vadd.f32 %v2601_v20, %v4771_v19  ;;  %v2604_v36 = vadd.f32 %v3234_v18, %v2563_v22 }
 0xd15   : > { %2609 = vst [vmem:[#allocation2] sm:$0xff] %v2607_v23  ;;  %v2608_v25 = vadd.f32 %v2604_v36, %v4773_v24  ;;  %v2616_v27 = vrot.slane (!%p3140_p13), %v2607_v23, 4 }
 0xd17   : > { %2610 = vst [vmem:[#allocation2 + $0x8] sm:$0x3] %v2608_v25  ;;  %v2619_v29 = vsel (!%p3140_p13), %vm2618_vm8, %v2607_v23, %v2616_v27 }
 0xd18   : > { %v2622_v30 = vsel %vm904_vm0, %v2619_v29, 0.0 }
 0xd19   : > { %2623 = vadd.xlane.f32.xlu0 %v2622_v30 }
 0xda6   : > { %v2624_v19 = vpop.xlane.xlu0 %2623 }
 0xda7   : > { %v2625_v24 = vmul.f32 0.0078125, %v2624_v19 }
 0xda9   : > { %v2626_v34 = vsub.f32 %v2619_v29, %v2625_v24 }
 0xdab   : > { %v2627_v35 = vmul.f32 %v2626_v34, %v2626_v34 }
 0xdad   : > { %v2628_v37 = vsel %vm904_vm0, %v2627_v35, 0.0 }
 0xdae   : > { %2629 = vadd.xlane.f32.xlu0 %v2628_v37 }
 0xe3b   : > { %v2630_v43 = vpop.xlane.xlu0 %2629 }
 0xe3c   : > { %v2631_v44 = vmul.f32 0.0078125, %v2630_v43 }
 0xe3e   : > { %v2632_v45 = vadd.f32 1e-05, %v2631_v44 }
 0xe40   : > { %3687 = vrsqrt.f32 %v2632_v45 }
 0xe4a   : > { %v3688_v46 = vpop.eup %3687 }
 0xe4b   : > { %v2634_v47 = vmul.f32 %v3688_v46, %v2626_v34 }
 0xe4d   : > { %v2641_v49 = vmul.f32 %v3141_v26, %v2634_v47 }
 0xe4f   : > { %v2648_v50 = vadd.f32 %v3142_v48, %v2641_v49 }
 0xe51   : > { %v2665_v51 = vpack.c.bf16 %v2648_v50, %v2648_v50 }
 0xe53   : > { %3349 = vmatmul.mubr.bf16.vlgmr.msra.gmra.mrb[0].mxu0 %v2665_v51 }
 0xf26   : > { %v2748_v52 = vpop.f32.mrb[0].mxu0 }
 0xf27   : > { %v2754_v53 = vpack.c.bf16 %v2748_v52, %v2748_v52  ;;  %v3350_v54 = vpop.f32.mrb[1].mxu0 }
 0xf28   : > { %v2751_v55 = vpop.f32.mrb[2].mxu0 }
 0xf29   : > { %2755 = vst [vmem:[%s5009_s10] sm:$0x1] %v2754_v53  ;;  %v3351_v56 = vpop.f32.mrb[3].mxu0 }
 0xf2a PF: > { %s5010_s27 = sld [smem:[#allocation27_spill]]  ;;  %s5011_s20 = sld [smem:[#allocation25_spill]] }
 0xf2b   : > { %s5012_s26 = sld [smem:[#allocation28_spill]]  ;;  %s5013_s24 = smov %s4029_s25 }
 0xf30   : > { %p38_p0 = scmp.ge.s32.totalorder %s5010_s27, 4   ;;  %s5014_s25 = smov %s5011_s20 }
 0xf32   :  { %40 = sbr.rel (!%p38_p0) target bundleno = 25 (0x19), region = 231 }
 0xf39   :  { %2767 = vsyncpa [#allocation4], 1 }
 0xf3a   :  { %2769 = vsyncpa [#allocation4 + $0x1], 1 }
 0xf3b   :  { %2770 = vsyncpa [#allocation6], 1 }
 0xf3c   :  { %2772 = vsyncpa [#allocation6 + $0x1], 1 }
 0xf3d   :  { %2773 = vsyncpa [#allocation9], 1 }
 0xf3e   :  { %2775 = vsyncpa [#allocation9 + $0x1], 1 }
 0xf3f   :  { %2776 = vsyncpa [#allocation12], 1 }
 0xf40   :  { %2778 = vsyncpa [#allocation12 + $0x1], 1 }
 0xf41   :  { %2779 = vsyncpa [#allocation15], 1 }
 0xf42   :  { %2780 = vsyncpa [#allocation18], 1 }

// kernel: forward.7
= control target key start
LH: loop header
LB: loop body
LE: loop exit
PB: predicated region body
PF: predicated region fallthrough
CT: control target
= control target key end

     0   :  { %s2971_s18 = smov 0   ;;  %s3355_s0 = inlined_call_operand.vmem [shape: bf16[2,128], index: 0, kind: input, shape index: {}]   ;;  %s3356_s1 = inlined_call_operand.vmem [shape: bf16[4,128,384], index: 1, kind: input, shape index: {}]   ;;  %s3357_s2 = inlined_call_operand.vmem [shape: f32[4,1,384], index: 2, kind: input, shape index: {}]   ;;  %s3358_s3 = inlined_call_operand.vmem [shape: bf16[4,128,128], index: 3, kind: input, shape index: {}]   ;;  %s3359_s4 = inlined_call_operand.vmem [shape: f32[4,1,128], index: 4, kind: input, shape index: {}]   ;;  %s3360_s5 = inlined_call_operand.vmem [shape: f32[4,1,128], index: 5, kind: input, shape index: {}]   ;;  %s3361_s6 = inlined_call_operand.vmem [shape: f32[4,1,128], index: 6, kind: input, shape index: {}]   ;;  %s3362_s7 = inlined_call_operand.vmem [shape: bf16[4,128,128], index: 7, kind: input, shape index: {}]   ;;  %s3363_s8 = inlined_call_operand.vmem [shape: f32[4,1,128], index: 8, kind: input, shape index: {}]   ;;  %s3364_s9 = inlined_call_operand.vmem [shape: bf16[4,128,128], index: 9, kind: input, shape index: {}]   ;;  %s3365_s10 = inlined_call_operand.vmem [shape: f32[4,1,128], index: 10, kind: input, shape index: {}]   ;;  %s3366_s11 = inlined_call_operand.vmem [shape: f32[4,1,128], index: 11, kind: input, shape index: {}]   ;;  %s3367_s12 = inlined_call_operand.vmem [shape: f32[4,1,128], index: 12, kind: input, shape index: {}]   ;;  %s3368_s13 = inlined_call_operand.vmem [shape: f32[1,128], index: 13, kind: input, shape index: {}]   ;;  %s3369_s14 = inlined_call_operand.vmem [shape: f32[1,128], index: 14, kind: input, shape index: {}]   ;;  %s3370_s15 = inlined_call_operand.vmem [shape: bf16[2,128], index: 15, kind: output, shape index: {}]  }
   0x1   :  { %3373 = sst [smem:[#allocation5_spill]] %s3355_s0 }
   0x2   :  { %3374 = sst [smem:[#allocation6_spill]] %s3356_s1 }
   0x3   :  { %3375 = sst [smem:[#allocation7_spill]] %s3358_s3 }
   0x4   :  { %3376 = sst [smem:[#allocation8_spill]] %s3368_s13 }
   0x5   :  { %3377 = sst [smem:[#allocation9_spill]] %s3369_s14 }
   0x6   :  { %3378 = sst [smem:[#allocation10_spill]] %s3370_s15 }
   0x7 LB: > { %3379 = sst [smem:[#allocation3_spill]] %s2879_s18  ;;  %s2977_s19 = sadd.s32 4294967295, %s2879_s18   ;;  %s2879_s18 = sphi %s2971_s18, %s25_s18  }
   0x8   : > { %p2427_p0 = scmp.ge.s32.totalorder %s2879_s18, 1  ;;  %p527_p1 = scmp.lt.s32.totalorder %s2879_s18, 5 }
   0xa   : > { %p528_p2 = pnand %p2427_p0, %p527_p1 }
   0xc   : > { %531 = sbr.rel (%p528_p2) target bundleno = 3362 (0xd22), region = 80 }
  0x13   : > { %p610_p3 = scmp.lt.s32.totalorder %s2977_s19, 3  ;;  %s3380_s3 = sld [smem:[#allocation7_spill]] }
  0x14   : > { %s3382_s1 = sld [smem:[#allocation6_spill]]  ;;  %p2435_p4 = scmp.ne.s32.totalorder %s2977_s19, 0 }
  0x15   : > { %s2983_s20 = scalar_select %p610_p3, %s2977_s19, 3 }
  0x16   : > { %s3383_s15 = sld [smem:[#allocation5_spill]] (!%p2435_p4) }
  0x17   : > { %s2759_s21 = smul.u32 192, %s2983_s20  ;;  %s2512_s22 = sshll.u32 %s2983_s20, 6 }
  0x18   : > { %s2760_s23 = smul.u32 3, %s2983_s20  ;;  %s3018_s28 = scalar_lea.vmem %s3362_s7, %s2512_s22 }
  0x19   : > { %s2991_s26 = scalar_lea.vmem %s3380_s3, %s2512_s22  ;;  %s640_s17 = scalar_lea.vmem %s3363_s8, %s2983_s20 }
  0x1a   : > { %3381 = sst [smem:[#allocation4_spill]] %s2991_s26  ;;  %s2996_s29 = scalar_lea.vmem %s3382_s1, %s2759_s21 }
  0x1b   : > { %s3005_s14 = scalar_lea.vmem %s3357_s2, %s2760_s23  ;;  %s3027_s23 = scalar_lea.vmem %s3364_s9, %s2512_s22 }
  0x1c   : > { %s648_s24 = scalar_lea.vmem %s3365_s10, %s2983_s20  ;;  %s651_s26 = scalar_lea.vmem %s3366_s11, %s2983_s20  ;;  %v660_v0 = vld [vmem:[%s3383_s15] sm:$0x1] (!%p2435_p4) }
  0x1d   : > { %s654_s1 = scalar_lea.vmem %s3367_s12, %s2983_s20  ;;  %659 = sbr.rel (%p2435_p4) target bundleno = 36 (0x24), region = 84  ;;  %v661_v1 = vunpack.c.l.bf16 (!%p2435_p4), %v660_v0 }
  0x1f   : > { %662 = vst [vmem:[#allocation2] sm:$0x3] (!%p2435_p4), %v661_v1 }
  0x24 PF: > { %v2779_v2 = vld [vmem:[%s2996_s29 + $0x4] ss:$12 sps:$4 sm:$0xff]   ;;  %v2781_v3 = vld [vmem:[%s2996_s29] ss:$12 sps:$4 sm:$0xff]   ;;  %v2881_v4 = vmov 0   ;;  %v2882_v5 = vmov 0.0   ;;  %v699_v30 = vlaneseq  ;;  %s3385_s30 = scalar_lea.vmem %s3359_s4, %s2983_s20  ;;  %s3386_s15 = scalar_lea.vmem %s3360_s5, %s2983_s20 }
  0x25   : > { %874 = vmatprep.mubr.bf16.mxu0 %v2881_v4  ;;  %2583 = vmatprep.subr.bf16.mxu1 %v2882_v5  ;;  %v2782_v6 = vld [vmem:[%s2996_s29 + $0x1c] ss:$12 sps:$4 sm:$0xff]   ;;  %v2784_v7 = vld [vmem:[%s2996_s29 + $0x18] ss:$12 sps:$4 sm:$0xff]   ;;  %v2785_v8 = vld [vmem:[%s2996_s29 + $0x34] ss:$12 sps:$4 sm:$0xff]  }
  0x26   : > { %842 = vmatprep.subr.bf16.mxu0 %v2779_v2  ;;  %v2787_v9 = vld [vmem:[%s2996_s29 + $0x30] ss:$12 sps:$4 sm:$0xff]   ;;  %v2788_v10 = vld [vmem:[%s2996_s29 + $0x4c] ss:$12 sps:$4 sm:$0xff]   ;;  %v2790_v11 = vld [vmem:[%s2996_s29 + $0x48] ss:$12 sps:$4 sm:$0xff]  }
  0x27   : > { %843 = vmatpush1.bf16.msra.mxu0 %v2781_v3  ;;  %v2803_v12 = vld [vmem:[%s2996_s29 + $0x8] ss:$12 sps:$4 sm:$0xff]   ;;  %v2791_v13 = vld [vmem:[%s2996_s29 + $0x64] ss:$12 sps:$4 sm:$0xff]   ;;  %v2804_v14 = vld [vmem:[%s2996_s29 + $0x20] ss:$12 sps:$4 sm:$0xff]  }
  0x28   : > { %844 = vmatprep.subr.bf16.mxu0 %v2782_v6  ;;  %2584 = vmatpush3.bf16.msra.mxu1 %v2803_v12  ;;  %v2793_v15 = vld [vmem:[%s2996_s29 + $0x60] ss:$12 sps:$4 sm:$0xff]   ;;  %v2794_v16 = vld [vmem:[%s2996_s29 + $0x7c] ss:$12 sps:$4 sm:$0xff]   ;;  %v2796_v17 = vld [vmem:[%s2996_s29 + $0x78] ss:$12 sps:$4 sm:$0xff]  }
  0x29   : > { %2585 = vmatprep.subr.bf16.mxu1 %v2882_v5  ;;  %v2805_v18 = vld [vmem:[%s2996_s29 + $0x38] ss:$12 sps:$4 sm:$0xff]   ;;  %v2797_v19 = vld [vmem:[%s2996_s29 + $0x94] ss:$12 sps:$4 sm:$0xff]   ;;  %v2806_v20 = vld [vmem:[%s2996_s29 + $0x50] ss:$12 sps:$4 sm:$0xff]  }
  0x2a   : > { %v2799_v21 = vld [vmem:[%s2996_s29 + $0x90] ss:$12 sps:$4 sm:$0xff]   ;;  %v2800_v22 = vld [vmem:[%s2996_s29 + $0xac] ss:$12 sps:$4 sm:$0xff]   ;;  %v2807_v23 = vld [vmem:[%s2996_s29 + $0x68] ss:$12 sps:$4 sm:$0xff]  }
  0x2b   : > { %845 = vmatpush1.bf16.msra.mxu0 %v2784_v7  ;;  %v2802_v24 = vld [vmem:[%s2996_s29 + $0xa8] ss:$12 sps:$4 sm:$0xff]   ;;  %v3070_v25 = vld [vmem:[#allocation2] sm:$0x3]  ;;  %v2809_v28 = vld [vmem:[%s2996_s29 + $0x98] ss:$12 sps:$4 sm:$0xff]  }
  0x2c   : > { %846 = vmatprep.subr.bf16.mxu0 %v2785_v8  ;;  %2586 = vmatpush3.bf16.msra.mxu1 %v2804_v14  ;;  %v2808_v26 = vld [vmem:[%s2996_s29 + $0x80] ss:$12 sps:$4 sm:$0xff]   ;;  %v696_v27 = vpack.c.bf16 %v3070_v25, %v3070_v25  ;;  %v2810_v29 = vld [vmem:[%s2996_s29 + $0xb0] ss:$12 sps:$4 sm:$0xff]   ;;  %vm2883_vm0 = vmmov 0   ;;  %v700_v31 = vshrl.u32 %v699_v30, 7 }
  0x2d   : > { %2587 = vmatprep.subr.bf16.mxu1 %v2882_v5  ;;  %2599 = vmatprep.mubr.msk.bf16.mxu1 %vm2883_vm0, %v2882_v5  ;;  %v697_v33 = vld [vmem:[%s3005_s14] sm:$0x7]  ;;  %vm928_vm1 = vcmask 130048   ;;  %s2884_s22 = smov 112   ;;  %s2885_s14 = smov 96   ;;  %vm992_vm2 = vcmask 1040384  }
  0x2e   : > { %v701_v32 = vsub.s32 0, %v700_v31  ;;  %v705_v34 = vsub.s32 1, %v700_v31  ;;  %s2886_s29 = smov 80   ;;  %s2887_s18 = smov 64   ;;  %v709_v47 = vsub.s32 2, %v700_v31  ;;  %vm975_vm3 = vcmask 9216  }
  0x2f   : > { %847 = vmatpush1.bf16.msra.mxu0 %v2787_v9  ;;  %s2888_s0 = smov 48   ;;  %s2889_s13 = smov 32   ;;  %vm988_vm4 = vcmask 15360   ;;  %vm1838_vm5 = vcmask 261120   ;;  %vm1840_vm6 = vcmask 392192   ;;  %vm1842_vm7 = vcmask 523264  }
  0x30   : > { %848 = vmatprep.subr.bf16.mxu0 %v2788_v10  ;;  %2588 = vmatpush3.bf16.msra.mxu1 %v2805_v18  ;;  %v702_v35 = vrot.slane %v697_v33, %v701_v32  ;;  %v706_v36 = vrot.slane %v697_v33, %v705_v34  ;;  %s2890_s3 = smov 16   ;;  %v710_v48 = vrot.slane %v697_v33, %v709_v47  ;;  %s3384_s25 = sld [smem:[#allocation4_spill]]  ;;  %vm1844_vm8 = vcmask 654336  }
  0x31   : > { %2589 = vmatprep.subr.bf16.mxu1 %v2882_v5  ;;  %vm1846_vm9 = vcmask 785408   ;;  %vm1848_vm10 = vcmask 916480   ;;  %vm1964_vm11 = vcmask 1041408   ;;  %p2507_p5 = scmp.ne.s32.totalorder %s2977_s19, 3 }
  0x32   : > { %s3389_s21 = sld [smem:[#allocation9_spill]] (!%p2507_p5)  ;;  %s3390_s16 = sld [smem:[#allocation10_spill]] (!%p2507_p5) }
  0x33   : > { %849 = vmatpush1.bf16.msra.mxu0 %v2790_v11 }
  0x34   : > { %850 = vmatprep.subr.bf16.mxu0 %v2791_v13  ;;  %2590 = vmatpush3.bf16.msra.mxu1 %v2806_v20 }
  0x35   : > { %2591 = vmatprep.subr.bf16.mxu1 %v2882_v5 }
  0x37   : > { %851 = vmatpush1.bf16.msra.mxu0 %v2793_v15 }
  0x38   : > { %852 = vmatprep.subr.bf16.mxu0 %v2794_v16  ;;  %2592 = vmatpush3.bf16.msra.mxu1 %v2807_v23 }
  0x39   : > { %2593 = vmatprep.subr.bf16.mxu1 %v2882_v5 }
  0x3b   : > { %853 = vmatpush1.bf16.msra.mxu0 %v2796_v17 }
  0x3c   : > { %854 = vmatprep.subr.bf16.mxu0 %v2797_v19  ;;  %2594 = vmatpush3.bf16.msra.mxu1 %v2808_v26 }
  0x3d   : > { %2595 = vmatprep.subr.bf16.mxu1 %v2882_v5 }
  0x3f   : > { %855 = vmatpush1.bf16.msra.mxu0 %v2799_v21 }
  0x40   : > { %856 = vmatprep.subr.bf16.mxu0 %v2800_v22  ;;  %2596 = vmatpush3.bf16.msra.mxu1 %v2809_v28 }
  0x41   : > { %2597 = vmatprep.subr.bf16.mxu1 %v2882_v5 }
  0x43   : > { %857 = vmatpush1.bf16.msra.mxu0 %v2802_v24 }
  0x44   : > { %2627 = vmatprep.subr.bf16.mxu0 %v2882_v5  ;;  %2598 = vmatpush3.bf16.msra.mxu1 %v2810_v29 }
  0x45   : > { %2603 = vmatprep.subr.bf16.mxu1 %v2882_v5 }
  0x46   : > { %875 = vmatmul.mubr.bf16.vlgmr.msra.gmra.mrb[0].mxu0 %v696_v27 }
  0x47   : > { %2629 = vmatprep.mubr.msk.bf16.mxu0 %vm2883_vm0, %v2882_v5  ;;  %2600 = vmatmul.mubr.bf16.vlgmr.msra.gmra.mrb[0].mxu1 %v696_v27 }
  0x48   : > { %2605 = vmatprep.mubr.msk.bf16.mxu1 %vm2883_vm0, %v2882_v5 }
 0x119   : > { %v876_v37 = vpop.f32.mrb[0].mxu0 }
 0x11a   : > { %v877_v38 = vadd.f32 %v876_v37, %v702_v35  ;;  %v878_v39 = vpop.f32.mrb[1].mxu0  ;;  %v917_v49 = vpop.f32.mrb[0].mxu1 }
 0x11b   : > { %v879_v40 = vadd.f32 %v878_v39, %v706_v36  ;;  %v880_v41 = vpop.f32.mrb[2].mxu0  ;;  %v918_v50 = vadd.f32 %v917_v49, %v710_v48  ;;  %v2601_v51 = vpop.f32.mrb[1].mxu1 }
 0x11c   : > { %v881_v42 = vpop.f32.mrb[3].mxu0  ;;  %v924_v43 = vmul.f32 0.25, %v877_v38  ;;  %v920_v52 = vpop.f32.mrb[2].mxu1 }
 0x11d   : > { %v926_v44 = vpack.c.bf16 %v879_v40, %v879_v40  ;;  %v3105_v53 = vpack.c.bf16 %v918_v50, %v918_v50  ;;  %v2602_v54 = vpop.f32.mrb[3].mxu1 }
 0x11e   : > { %v925_v46 = vpack.c.bf16 %v924_v43, %v924_v43 }
 0x11f   : > { %1040 = vrot.lane.b32.xlu1 %v926_v44, %s2884_s22  ;;  %v933_v45 = vsel %vm928_vm1, %v926_v44, 0  ;;  %v994_v55 = vsel %vm992_vm2, %v3105_v53, 0 }
 0x120   : > { %2604 = vmatpush3.bf16.xpose.msra.mxu1 %v933_v45 }
 0x121   : > { %2609 = vmatprep.subr.bf16.mxu1 %v2882_v5 }
 0x123   : > { %1037 = vrot.lane.b32.xlu1 %v925_v46, %s2884_s22 }
 0x127   : > { %1149 = vrot.lane.b32.xlu1 %v925_v46, %s2885_s14  ;;  %2606 = vmatmul.mubr.msk.bf16.vlgmr.msra.gmra.mrb[4].mxu1 %vm928_vm1, %v925_v46 }
 0x128   : > { %2611 = vmatprep.mubr.msk.bf16.mxu1 %vm2883_vm0, %v2882_v5  ;;  %2610 = vmatpush3.bf16.msra.mxu1 %v994_v55 }
 0x129   : > { %2615 = vmatprep.subr.bf16.mxu1 %v2882_v5 }
 0x12b   : > { %1261 = vrot.lane.b32.xlu1 %v926_v44, %s2886_s29 }
 0x12f   : > { %1259 = vrot.lane.b32.xlu1 %v925_v46, %s2886_s29 }
 0x133   : > { %1371 = vrot.lane.b32.xlu1 %v926_v44, %s2887_s18 }
 0x137   : > { %1369 = vrot.lane.b32.xlu1 %v925_v46, %s2887_s18 }
 0x13b   : > { %1481 = vrot.lane.b32.xlu1 %v926_v44, %s2888_s0 }
 0x13f   : > { %1591 = vrot.lane.b32.xlu1 %v926_v44, %s2889_s13 }
 0x143   : > { %1701 = vrot.lane.b32.xlu1 %v926_v44, %s2890_s3 }
 0x191   : > { %v1041_v2 = vpop.permute.xlu1 %1040 }
 0x192   : > { %v1046_v16 = vsel %vm928_vm1, %v1041_v2, 0 }
 0x195   : > { %v1038_v3 = vpop.permute.xlu1 %1037 }
 0x199   : > { %v1150_v4 = vpop.permute.xlu1 %1149 }
 0x19d   : > { %v1262_v7 = vpop.permute.xlu1 %1261 }
 0x19e   : > { %v1267_v13 = vsel %vm928_vm1, %v1262_v7, 0 }
 0x1a1   : > { %v1260_v10 = vpop.permute.xlu1 %1259 }
 0x1a5   : > { %v1372_v14 = vpop.permute.xlu1 %1371 }
 0x1a6   : > { %v1377_v18 = vsel %vm928_vm1, %v1372_v14, 0 }
 0x1a9   : > { %v1370_v17 = vpop.permute.xlu1 %1369 }
 0x1ad   : > { %v1482_v19 = vpop.permute.xlu1 %1481 }
 0x1ae   : > { %v1487_v20 = vsel %vm928_vm1, %v1482_v19, 0 }
 0x1b1   : > { %v1592_v21 = vpop.permute.xlu1 %1591 }
 0x1b2   : > { %v1597_v23 = vsel %vm928_vm1, %v1592_v21, 0 }
 0x1b5   : > { %v1702_v24 = vpop.permute.xlu1 %1701 }
 0x1b6   : > { %v1707_v27 = vsel %vm928_vm1, %v1702_v24, 0 }
 0x1fa   : > { %v969_v56 = vpop.f32.mrb[4].mxu1 }
 0x1fb   : > { %v2607_v57 = vpop.f32.mrb[5].mxu1  ;;  %v976_v58 = vsel %vm975_vm3, %v969_v56, -inf }
 0x1fc   : > { %977 = vmax.xlane.f32.xlu0 %v976_v58  ;;  %v972_v59 = vpop.f32.mrb[6].mxu1 }
 0x1fd   : > { %v2608_v60 = vpop.f32.mrb[7].mxu1 }
 0x289   : > { %v978_v61 = vpop.xlane.xlu0 %977 }
 0x28a   : > { %v979_v62 = vsub.f32 %v969_v56, %v978_v61 }
 0x28c   : > { %v980_v63 = vmul.f32 1.442695, %v979_v62 }
 0x28e   : > { %2835 = vpow2.f32 %v980_v63 }
 0x298   : > { %v2836_v0 = vpop.eup %2835 }
 0x299   : > { %v982_v1 = vsel %vm975_vm3, %v2836_v0, 0.0 }
 0x29a   : > { %983 = vadd.xlane.f32.xlu0 %v982_v1 }
 0x2b0   : > { %1151 = vrot.lane.b32.xlu0 %v926_v44, %s2885_s14 }
 0x2b4   : > { %1479 = vrot.lane.b32.xlu0 %v925_v46, %s2888_s0 }
 0x2b8   : > { %1589 = vrot.lane.b32.xlu0 %v925_v46, %s2889_s13 }
 0x2bc   : > { %1699 = vrot.lane.b32.xlu0 %v925_v46, %s2890_s3 }
 0x327   : > { %v984_v6 = vpop.xlane.xlu0 %983 }
 0x328   : > { %2837 = vrcp.f32 %v984_v6 }
 0x32b   : > { %v1152_v8 = vpop.permute.xlu0 %1151 }
 0x32c   : > { %v1157_v9 = vsel %vm928_vm1, %v1152_v8, 0 }
 0x32d   : > { %2628 = vmatpush3.bf16.xpose.msra.mxu0 %v1157_v9 }
 0x32e   : > { %2639 = vmatprep.subr.bf16.mxu0 %v2882_v5 }
 0x32f   : > { %v1480_v22 = vpop.permute.xlu0 %1479 }
 0x332   : > { %v2838_v11 = vpop.eup %2837 }
 0x333   : > { %v986_v12 = vmul.f32 %v2838_v11, %v2836_v0  ;;  %v1590_v26 = vpop.permute.xlu0 %1589 }
 0x334   : > { %2630 = vmatmul.mubr.msk.bf16.vlgmr.msra.gmra.mrb[4].mxu0 %vm928_vm1, %v1150_v4 }
 0x335   : > { %2640 = vmatpush3.bf16.xpose.msra.mxu0 %v1267_v13  ;;  %v987_v15 = vpack.c.bf16 %v986_v12, %v986_v12  ;;  %2641 = vmatprep.mubr.msk.bf16.mxu0 %vm2883_vm0, %v2882_v5 }
 0x336   : > { %2651 = vmatprep.subr.bf16.mxu0 %v2882_v5 }
 0x337   : > { %2612 = vmatmul.mubr.msk.bf16.vlgmr.msra.gmra.mrb[8].mxu1 %vm988_vm4, %v987_v15  ;;  %v1700_v28 = vpop.permute.xlu0 %1699 }
 0x338   : > { %2616 = vmatpush3.bf16.xpose.msra.mxu1 %v1046_v16  ;;  %2617 = vmatprep.mubr.msk.bf16.mxu1 %vm2883_vm0, %v2882_v5 }
 0x339   : > { %2621 = vmatprep.subr.bf16.mxu1 %v2882_v5 }
 0x33c   : > { %2642 = vmatmul.mubr.msk.bf16.vlgmr.msra.gmra.mrb[8].mxu0 %vm928_vm1, %v1260_v10 }
 0x33d   : > { %2652 = vmatpush3.bf16.xpose.msra.mxu0 %v1377_v18  ;;  %2653 = vmatprep.mubr.msk.bf16.mxu0 %vm2883_vm0, %v2882_v5 }
 0x33e   : > { %2663 = vmatprep.subr.bf16.mxu0 %v2882_v5 }
 0x33f   : > { %2618 = vmatmul.mubr.msk.bf16.vlgmr.msra.gmra.mrb[12].mxu1 %vm928_vm1, %v1038_v3 }
 0x340   : > { %2623 = vmatprep.mubr.msk.bf16.mxu1 %vm2883_vm0, %v2882_v5 }
 0x344   : > { %2654 = vmatmul.mubr.msk.bf16.vlgmr.msra.gmra.mrb[12].mxu0 %vm928_vm1, %v1370_v17 }
 0x345   : > { %2664 = vmatpush3.bf16.xpose.msra.mxu0 %v1487_v20  ;;  %2665 = vmatprep.mubr.msk.bf16.mxu0 %vm2883_vm0, %v2882_v5 }
 0x346   : > { %2675 = vmatprep.subr.bf16.mxu0 %v2882_v5 }
 0x34c   : > { %2666 = vmatmul.mubr.msk.bf16.vlgmr.msra.gmra.mrb[16].mxu0 %vm928_vm1, %v1480_v22 }
 0x34d   : > { %2676 = vmatpush3.bf16.xpose.msra.mxu0 %v1597_v23  ;;  %2677 = vmatprep.mubr.msk.bf16.mxu0 %vm2883_vm0, %v2882_v5 }
 0x34e   : > { %2687 = vmatprep.subr.bf16.mxu0 %v2882_v5 }
 0x354   : > { %2678 = vmatmul.mubr.msk.bf16.vlgmr.msra.gmra.mrb[20].mxu0 %vm928_vm1, %v1590_v26 }
 0x355   : > { %2688 = vmatpush3.bf16.xpose.msra.mxu0 %v1707_v27  ;;  %2689 = vmatprep.mubr.msk.bf16.mxu0 %vm2883_vm0, %v2882_v5 }
 0x356   : > { %2699 = vmatprep.subr.bf16.mxu0 %v2882_v5 }
 0x35c   : > { %2690 = vmatmul.mubr.msk.bf16.vlgmr.msra.gmra.mrb[24].mxu0 %vm928_vm1, %v1700_v28 }
 0x35d   : > { %2715 = vmatprep.mubr.msk.bf16.mxu0 %vm2883_vm0, %v2882_v5 }
 0x407   : > { %v1193_v29 = vpop.f32.mrb[4].mxu0 }
 0x408   : > { %v2631_v30 = vpop.f32.mrb[5].mxu0  ;;  %v1199_v31 = vsel %vm975_vm3, %v1193_v29, -inf }
 0x409   : > { %1200 = vmax.xlane.f32.xlu0 %v1199_v31  ;;  %v1196_v32 = vpop.f32.mrb[6].mxu0 }
 0x40a   : > { %v3155_v33 = vpop.f32.mrb[8].mxu1  ;;  %v2632_v34 = vpop.f32.mrb[7].mxu0 }
 0x40b   : > { %v2613_v35 = vpop.f32.mrb[9].mxu1 }
 0x40c   : > { %v1033_v36 = vpop.f32.mrb[10].mxu1 }
 0x40d   : > { %v2614_v37 = vpop.f32.mrb[11].mxu1 }
 0x40f   : > { %v1303_v38 = vpop.f32.mrb[8].mxu0 }
 0x410   : > { %v2643_v39 = vpop.f32.mrb[9].mxu0  ;;  %v1309_v40 = vsel %vm975_vm3, %v1303_v38, -inf }
 0x411   : > { %1310 = vmax.xlane.f32.xlu0 %v1309_v40  ;;  %v1306_v41 = vpop.f32.mrb[10].mxu0 }
 0x412   : > { %v1082_v42 = vpop.f32.mrb[12].mxu1  ;;  %v2644_v43 = vpop.f32.mrb[11].mxu0 }
 0x413   : > { %v2619_v44 = vpop.f32.mrb[13].mxu1  ;;  %v1088_v45 = vsel %vm975_vm3, %v1082_v42, -inf }
 0x414   : > { %1089 = vmax.xlane.f32.xlu1 %v1088_v45  ;;  %v1085_v46 = vpop.f32.mrb[14].mxu1 }
 0x415   : > { %v2620_v47 = vpop.f32.mrb[15].mxu1 }
 0x417   : > { %v1413_v48 = vpop.f32.mrb[12].mxu0 }
 0x418   : > { %v2655_v49 = vpop.f32.mrb[13].mxu0  ;;  %v1419_v50 = vsel %vm975_vm3, %v1413_v48, -inf }
 0x419   : > { %v1416_v51 = vpop.f32.mrb[14].mxu0  ;;  %1420 = vmax.xlane.f32.xlu1 %v1419_v50 }
 0x41a   : > { %v2656_v52 = vpop.f32.mrb[15].mxu0 }
 0x41f   : > { %v1523_v54 = vpop.f32.mrb[16].mxu0 }
 0x420   : > { %v2667_v55 = vpop.f32.mrb[17].mxu0  ;;  %v1529_v56 = vsel %vm975_vm3, %v1523_v54, -inf }
 0x421   : > { %1530 = vmax.xlane.f32.xlu0 %v1529_v56  ;;  %v1526_v57 = vpop.f32.mrb[18].mxu0 }
 0x422   : > { %v2668_v58 = vpop.f32.mrb[19].mxu0 }
 0x427   : > { %v1633_v59 = vpop.f32.mrb[20].mxu0 }
 0x428   : > { %v2679_v60 = vpop.f32.mrb[21].mxu0  ;;  %v1639_v61 = vsel %vm975_vm3, %v1633_v59, -inf }
 0x429   : > { %v1636_v62 = vpop.f32.mrb[22].mxu0  ;;  %1640 = vmax.xlane.f32.xlu1 %v1639_v61 }
 0x42a   : > { %v2680_v63 = vpop.f32.mrb[23].mxu0 }
 0x42f   : > { %v1743_v0 = vpop.f32.mrb[24].mxu0 }
 0x430   : > { %v2691_v1 = vpop.f32.mrb[25].mxu0  ;;  %v1749_v2 = vsel %vm975_vm3, %v1743_v0, -inf }
 0x431   : > { %1750 = vmax.xlane.f32.xlu0 %v1749_v2  ;;  %v1746_v3 = vpop.f32.mrb[26].mxu0 }
 0x432   : > { %v2692_v4 = vpop.f32.mrb[27].mxu0 }
 0x496   : > { %v1201_v6 = vpop.xlane.xlu0 %1200 }
 0x497   : > { %v1202_v7 = vsub.f32 %v1193_v29, %v1201_v6 }
 0x499   : > { %v1203_v8 = vmul.f32 1.442695, %v1202_v7 }
 0x49b   : > { %2839 = vpow2.f32 %v1203_v8 }
 0x49e   : > { %v1311_v9 = vpop.xlane.xlu0 %1310 }
 0x49f   : > { %v1312_v10 = vsub.f32 %v1303_v38, %v1311_v9 }
 0x4a1   : > { %v1313_v11 = vmul.f32 1.442695, %v1312_v10  ;;  %v1090_v12 = vpop.xlane.xlu1 %1089 }
 0x4a2   : > { %v1091_v13 = vsub.f32 %v1082_v42, %v1090_v12 }
 0x4a3   : > { %2841 = vpow2.f32 %v1313_v11 }
 0x4a4   : > { %v1092_v14 = vmul.f32 1.442695, %v1091_v13 }
 0x4a5   : > { %v3163_v15 = vpop.eup %2839 }
 0x4a6   : > { %2843 = vpow2.f32 %v1092_v14  ;;  %v1421_v16 = vpop.xlane.xlu1 %1420  ;;  %v1205_v17 = vsel %vm975_vm3, %v3163_v15, 0.0 }
 0x4a7   : > { %v1422_v18 = vsub.f32 %v1413_v48, %v1421_v16  ;;  %1206 = vadd.xlane.f32.xlu0 %v1205_v17 }
 0x4a9   : > { %v1423_v19 = vmul.f32 1.442695, %v1422_v18 }
 0x4ab   : > { %2845 = vpow2.f32 %v1423_v19 }
 0x4ad   : > { %v3167_v20 = vpop.eup %2841 }
 0x4ae   : > { %v1531_v21 = vpop.xlane.xlu0 %1530  ;;  %v1315_v22 = vsel %vm975_vm3, %v3167_v20, 0.0 }
 0x4af   : > { %v1532_v23 = vsub.f32 %v1523_v54, %v1531_v21  ;;  %1316 = vadd.xlane.f32.xlu1 %v1315_v22 }
 0x4b0   : > { %v2844_v24 = vpop.eup %2843 }
 0x4b1   : > { %v1533_v26 = vmul.f32 1.442695, %v1532_v23  ;;  %v1094_v27 = vsel %vm975_vm3, %v2844_v24, 0.0 }
 0x4b3   : > { %2847 = vpow2.f32 %v1533_v26  ;;  %1095 = vadd.xlane.f32.xlu1 %v1094_v27 }
 0x4b5   : > { %v3172_v28 = vpop.eup %2845 }
 0x4b6   : > { %v1425_v29 = vsel %vm975_vm3, %v3172_v28, 0.0  ;;  %v1641_v32 = vpop.xlane.xlu1 %1640 }
 0x4b7   : > { %1426 = vadd.xlane.f32.xlu0 %v1425_v29  ;;  %v1642_v34 = vsub.f32 %v1633_v59, %v1641_v32 }
 0x4b9   : > { %v1643_v35 = vmul.f32 1.442695, %v1642_v34 }
 0x4bb   : > { %2849 = vpow2.f32 %v1643_v35 }
 0x4bd   : > { %v3176_v30 = vpop.eup %2847 }
 0x4be   : > { %v1535_v31 = vsel %vm975_vm3, %v3176_v30, 0.0  ;;  %v1751_v36 = vpop.xlane.xlu0 %1750 }
 0x4bf   : > { %1536 = vadd.xlane.f32.xlu0 %v1535_v31  ;;  %v1752_v37 = vsub.f32 %v1743_v0, %v1751_v36  ;;  %v2811_v36 = vld [vmem:[%s3384_s25] sm:$0xff]  }
 0x4c0   : > { %2700 = vmatpush3.bf16.msra.mxu0 %v2811_v36  ;;  %v2830_v36 = vld [vmem:[%s3027_s23 + $0x18] sm:$0xff]  }
 0x4c1   : > { %v1753_v39 = vmul.f32 1.442695, %v1752_v37  ;;  %v2812_v37 = vld [vmem:[%s3384_s25 + $0x8] sm:$0xff]   ;;  %2701 = vmatprep.subr.bf16.mxu0 %v2882_v5 }
 0x4c3   : > { %2851 = vpow2.f32 %v1753_v39 }
 0x4c4   : > { %1101 = vrot.lane.b32.xlu1 %v3105_v53, %s2884_s22  ;;  %2702 = vmatpush3.bf16.msra.mxu0 %v2812_v37  ;;  %v2831_v37 = vld [vmem:[%s3027_s23 + $0x20] sm:$0xff]  }
 0x4c5   : > { %v3186_v38 = vpop.eup %2849  ;;  %2703 = vmatprep.subr.bf16.mxu0 %v2882_v5 }
 0x4c6   : > { %v1645_v40 = vsel %vm975_vm3, %v3186_v38, 0.0 }
 0x4cd   : > { %v3190_v41 = vpop.eup %2851 }
 0x4ce   : > { %v1755_v42 = vsel %vm975_vm3, %v3190_v41, 0.0 }
 0x4d5   : > { %1211 = vrot.lane.b32.xlu0 %v3105_v53, %s2885_s14 }
 0x4d9   : > { %1321 = vrot.lane.b32.xlu0 %v3105_v53, %s2886_s29 }
 0x4e8   : > { %1646 = vadd.xlane.f32.xlu1 %v1645_v40 }
 0x4f8   : > { %1756 = vadd.xlane.f32.xlu0 %v1755_v42 }
 0x4f9   : > { %1431 = vrot.lane.b32.xlu1 %v3105_v53, %s2887_s18 }
 0x4fd   : > { %1651 = vrot.lane.b32.xlu1 %v3105_v53, %s2889_s13 }
 0x501   : > { %1761 = vrot.lane.b32.xlu1 %v3105_v53, %s2890_s3 }
 0x50e   : > { %1541 = vrot.lane.b32.xlu0 %v3105_v53, %s2888_s0 }
 0x534   : > { %v1207_v45 = vpop.xlane.xlu0 %1206 }
 0x53c   : > { %v1317_v43 = vpop.xlane.xlu1 %1316 }
 0x540   : > { %v1096_v44 = vpop.xlane.xlu1 %1095 }
 0x541   : > { %2853 = vrcp.f32 %v1096_v44  ;;  %v2815_v44 = vld [vmem:[%s3384_s25 + $0x20] sm:$0xff]  }
 0x542   : > { %2855 = vrcp.f32 %v1207_v45  ;;  %v2816_v45 = vld [vmem:[%s3384_s25 + $0x28] sm:$0xff]  }
 0x543   : > { %2857 = vrcp.f32 %v1317_v43  ;;  %v2814_v43 = vld [vmem:[%s3384_s25 + $0x18] sm:$0xff]  }
 0x544   : > { %v1102_v46 = vpop.permute.xlu1 %1101  ;;  %v1427_v48 = vpop.xlane.xlu0 %1426 }
 0x545   : > { %v1107_v47 = vsel %vm992_vm2, %v1102_v46, 0  ;;  %2859 = vrcp.f32 %v1427_v48  ;;  %v2817_v46 = vld [vmem:[%s3384_s25 + $0x30] sm:$0xff]  }
 0x546   : > { %2622 = vmatpush3.bf16.msra.mxu1 %v1107_v47 }
 0x547   : > { %2633 = vmatprep.subr.bf16.mxu1 %v2882_v5 }
 0x54b   : > { %v2854_v49 = vpop.eup %2853 }
 0x54c   : > { %v1098_v50 = vmul.f32 %v2854_v49, %v2844_v24  ;;  %v1537_v51 = vpop.xlane.xlu0 %1536  ;;  %v2856_v54 = vpop.eup %2855 }
 0x54d   : > { %v1209_v56 = vmul.f32 %v2856_v54, %v3163_v15  ;;  %v2858_v59 = vpop.eup %2857  ;;  %2861 = vrcp.f32 %v1537_v51  ;;  %v2818_v51 = vld [vmem:[%s3384_s25 + $0x38] sm:$0xff]  }
 0x54e   : > { %v1099_v52 = vpack.c.bf16 %v1098_v50, %v1098_v50  ;;  %v1319_v61 = vmul.f32 %v2858_v59, %v3167_v20 }
 0x54f   : > { %v1210_v58 = vpack.c.bf16 %v1209_v56, %v1209_v56  ;;  %v2860_v63 = vpop.eup %2859 }
 0x550   : > { %v1212_v55 = vpop.permute.xlu0 %1211  ;;  %2624 = vmatmul.mubr.msk.bf16.vlgmr.msra.gmra.mrb[16].mxu1 %vm988_vm4, %v1099_v52  ;;  %v1320_v62 = vpack.c.bf16 %v1319_v61, %v1319_v61  ;;  %v1429_v1 = vmul.f32 %v2860_v63, %v3172_v28 }
 0x551   : > { %v1217_v53 = vsel %vm992_vm2, %v1212_v55, 0  ;;  %2635 = vmatprep.mubr.msk.bf16.mxu1 %vm2883_vm0, %v2882_v5 }
 0x552   : > { %2634 = vmatpush3.bf16.msra.mxu1 %v1217_v53  ;;  %v1430_v4 = vpack.c.bf16 %v1429_v1, %v1429_v1 }
 0x553   : > { %2645 = vmatprep.subr.bf16.mxu1 %v2882_v5 }
 0x554   : > { %v1322_v57 = vpop.permute.xlu0 %1321 }
 0x555   : > { %v1327_v60 = vsel %vm992_vm2, %v1322_v57, 0 }
 0x557   : > { %v2862_v6 = vpop.eup %2861 }
 0x558   : > { %2636 = vmatmul.mubr.msk.bf16.vlgmr.msra.gmra.mrb[20].mxu1 %vm988_vm4, %v1210_v58  ;;  %v1539_v8 = vmul.f32 %v2862_v6, %v3176_v30 }
 0x559   : > { %2646 = vmatpush3.bf16.msra.mxu1 %v1327_v60  ;;  %2647 = vmatprep.mubr.msk.bf16.mxu1 %vm2883_vm0, %v2882_v5 }
 0x55a   : > { %2657 = vmatprep.subr.bf16.mxu1 %v2882_v5  ;;  %v1540_v12 = vpack.c.bf16 %v1539_v8, %v1539_v8 }
 0x560   : > { %2648 = vmatmul.mubr.msk.bf16.vlgmr.msra.gmra.mrb[24].mxu1 %vm988_vm4, %v1320_v62 }
 0x561   : > { %2659 = vmatprep.mubr.msk.bf16.mxu1 %vm2883_vm0, %v2882_v5 }
 0x575   : > { %v1647_v0 = vpop.xlane.xlu1 %1646 }
 0x576   : > { %2863 = vrcp.f32 %v1647_v0 }
 0x579   : > { %v1432_v2 = vpop.permute.xlu1 %1431 }
 0x57a   : > { %v1437_v3 = vsel %vm992_vm2, %v1432_v2, 0 }
 0x57b   : > { %2658 = vmatpush3.bf16.msra.mxu1 %v1437_v3 }
 0x57c   : > { %2669 = vmatprep.subr.bf16.mxu1 %v2882_v5 }
 0x57d   : > { %v1652_v11 = vpop.permute.xlu1 %1651 }
 0x57e   : > { %2660 = vmatmul.mubr.msk.bf16.vlgmr.msra.gmra.mrb[28].mxu1 %vm988_vm4, %v1430_v4  ;;  %v1657_v14 = vsel %vm992_vm2, %v1652_v11, 0 }
 0x57f   : > { %2671 = vmatprep.mubr.msk.bf16.mxu1 %vm2883_vm0, %v2882_v5 }
 0x580   : > { %v2864_v13 = vpop.eup %2863 }
 0x581   : > { %v1649_v15 = vmul.f32 %v2864_v13, %v3186_v38  ;;  %v1762_v16 = vpop.permute.xlu1 %1761  ;;  %v2813_v38 = vld [vmem:[%s3384_s25 + $0x10] sm:$0xff]  }
 0x582   : > { %v1767_v19 = vsel %vm992_vm2, %v1762_v16, 0  ;;  %2704 = vmatpush3.bf16.msra.mxu0 %v2813_v38  ;;  %v2832_v38 = vld [vmem:[%s3027_s23 + $0x28] sm:$0xff]  }
 0x583   : > { %v1650_v17 = vpack.c.bf16 %v1649_v15, %v1649_v15  ;;  %2705 = vmatprep.subr.bf16.mxu0 %v2882_v5 }
 0x585   : > { %v1757_v7 = vpop.xlane.xlu0 %1756 }
 0x586   : > { %2865 = vrcp.f32 %v1757_v7  ;;  %2706 = vmatpush3.bf16.msra.mxu0 %v2814_v43  ;;  %v2485_v43 = vld [vmem:[%s3386_s15] ss:$0 sm:$0xff] }
 0x587   : > { %2707 = vmatprep.subr.bf16.mxu0 %v2882_v5 }
 0x589   : > { %v1542_v9 = vpop.permute.xlu0 %1541 }
 0x58a   : > { %v1547_v10 = vsel %vm992_vm2, %v1542_v9, 0  ;;  %2708 = vmatpush3.bf16.msra.mxu0 %v2815_v44 }
 0x58b   : > { %2670 = vmatpush3.bf16.msra.mxu1 %v1547_v10  ;;  %2709 = vmatprep.subr.bf16.mxu0 %v2882_v5 }
 0x58c   : > { %2681 = vmatprep.subr.bf16.mxu1 %v2882_v5 }
 0x58e   : > { %2672 = vmatmul.mubr.msk.bf16.vlgmr.msra.gmra.mrb[32].mxu1 %vm988_vm4, %v1540_v12  ;;  %2710 = vmatpush3.bf16.msra.mxu0 %v2816_v45 }
 0x58f   : > { %2682 = vmatpush3.bf16.msra.mxu1 %v1657_v14  ;;  %2683 = vmatprep.mubr.msk.bf16.mxu1 %vm2883_vm0, %v2882_v5 }
 0x590   : > { %2693 = vmatprep.subr.bf16.mxu1 %v2882_v5  ;;  %v2866_v18 = vpop.eup %2865  ;;  %2711 = vmatprep.subr.bf16.mxu0 %v2882_v5 }
 0x591   : > { %v1759_v20 = vmul.f32 %v2866_v18, %v3190_v41 }
 0x592   : > { %2712 = vmatpush3.bf16.msra.mxu0 %v2817_v46 }
 0x593   : > { %v1760_v21 = vpack.c.bf16 %v1759_v20, %v1759_v20  ;;  %2713 = vmatprep.subr.bf16.mxu0 %v2882_v5  ;;  %v2820_v20 = vld [vmem:[%s3018_s28 + $0x8] sm:$0xff]  }
 0x596   : > { %2684 = vmatmul.mubr.msk.bf16.vlgmr.msra.gmra.mrb[36].mxu1 %vm988_vm4, %v1650_v17  ;;  %2714 = vmatpush3.bf16.msra.mxu0 %v2818_v51  ;;  %v2487_v51 = vld [vmem:[%s640_s17] ss:$0 sm:$0xff] }
 0x597   : > { %2694 = vmatpush3.bf16.msra.mxu1 %v1767_v19  ;;  %2695 = vmatprep.mubr.msk.bf16.mxu1 %vm2883_vm0, %v2882_v5  ;;  %v2819_v19 = vld [vmem:[%s3018_s28] sm:$0xff]  }
 0x598   : > { %2719 = vmatprep.subr.bf16.mxu1 %v2882_v5  ;;  %2739 = vmatprep.subr.bf16.mxu0 %v2882_v5 }
 0x59e   : > { %2696 = vmatmul.mubr.msk.bf16.vlgmr.msra.gmra.mrb[40].mxu1 %vm988_vm4, %v1760_v21 }
 0x59f   : > { %2735 = vmatprep.mubr.msk.bf16.mxu1 %vm2883_vm0, %v2882_v5  ;;  %2720 = vmatpush3.bf16.msra.mxu1 %v2819_v19 }
 0x5a0   : > { %2721 = vmatprep.subr.bf16.mxu1 %v2882_v5 }
 0x5a3   : > { %2722 = vmatpush3.bf16.msra.mxu1 %v2820_v20 }
 0x5a4   : > { %2723 = vmatprep.subr.bf16.mxu1 %v2882_v5 }
 0x623   : > { %v1143_v22 = vpop.f32.mrb[16].mxu1 }
 0x624   : > { %1810 = vrot.lane.b32.xlu1 %v1143_v22, %s2890_s3  ;;  %v2625_v23 = vpop.f32.mrb[17].mxu1 }
 0x625   : > { %v1146_v24 = vpop.f32.mrb[18].mxu1 }
 0x626   : > { %v2626_v26 = vpop.f32.mrb[19].mxu1 }
 0x627   : > { %v2821_v26 = vld [vmem:[%s3018_s28 + $0x10] sm:$0xff]  }
 0x628   : > { %2724 = vmatpush3.bf16.msra.mxu1 %v2821_v26 }
 0x629   : > { %2725 = vmatprep.subr.bf16.mxu1 %v2882_v5 }
 0x62b   : > { %v1253_v27 = vpop.f32.mrb[20].mxu1 }
 0x62c   : > { %1814 = vrot.lane.b32.xlu1 %v1253_v27, %s2889_s13  ;;  %v2637_v28 = vpop.f32.mrb[21].mxu1  ;;  %v2822_v27 = vld [vmem:[%s3018_s28 + $0x18] sm:$0xff]  }
 0x62d   : > { %v1256_v29 = vpop.f32.mrb[22].mxu1  ;;  %2726 = vmatpush3.bf16.msra.mxu1 %v2822_v27  ;;  %v2823_v28 = vld [vmem:[%s3018_s28 + $0x20] sm:$0xff]  }
 0x62e   : > { %v2638_v30 = vpop.f32.mrb[23].mxu1  ;;  %2727 = vmatprep.subr.bf16.mxu1 %v2882_v5  ;;  %v2824_v29 = vld [vmem:[%s3018_s28 + $0x28] sm:$0xff]  }
 0x62f   : > { %v2825_v30 = vld [vmem:[%s3018_s28 + $0x30] sm:$0xff]  }
 0x631   : > { %2728 = vmatpush3.bf16.msra.mxu1 %v2823_v28  ;;  %v2509_v28 = vld [vmem:[%s3389_s21] ss:$0 sm:$0xff] (!%p2507_p5) }
 0x632   : > { %2729 = vmatprep.subr.bf16.mxu1 %v2882_v5 }
 0x633   : > { %v1363_v31 = vpop.f32.mrb[24].mxu1 }
 0x634   : > { %1818 = vrot.lane.b32.xlu0 %v1363_v31, %s2888_s0  ;;  %v2649_v32 = vpop.f32.mrb[25].mxu1  ;;  %v2826_v31 = vld [vmem:[%s3018_s28 + $0x38] sm:$0xff]  }
 0x635   : > { %v1366_v34 = vpop.f32.mrb[26].mxu1  ;;  %2730 = vmatpush3.bf16.msra.mxu1 %v2824_v29  ;;  %v2827_v32 = vld [vmem:[%s3027_s23] sm:$0xff]  }
 0x636   : > { %v2650_v35 = vpop.f32.mrb[27].mxu1  ;;  %2731 = vmatprep.subr.bf16.mxu1 %v2882_v5  ;;  %v2828_v34 = vld [vmem:[%s3027_s23 + $0x8] sm:$0xff]  }
 0x637   : > { %v2829_v35 = vld [vmem:[%s3027_s23 + $0x10] sm:$0xff]  }
 0x639   : > { %2732 = vmatpush3.bf16.msra.mxu1 %v2825_v30 }
 0x63a   : > { %2733 = vmatprep.subr.bf16.mxu1 %v2882_v5 }
 0x63d   : > { %2734 = vmatpush3.bf16.msra.mxu1 %v2826_v31 }
 0x651   : > { %v1473_v39 = vpop.f32.mrb[28].mxu1 }
 0x652   : > { %1822 = vrot.lane.b32.xlu1 %v1473_v39, %s2887_s18  ;;  %v2661_v40 = vpop.f32.mrb[29].mxu1 }
 0x653   : > { %v1476_v41 = vpop.f32.mrb[30].mxu1 }
 0x654   : > { %v2662_v42 = vpop.f32.mrb[31].mxu1 }
 0x661   : > { %v1583_v47 = vpop.f32.mrb[32].mxu1 }
 0x662   : > { %1826 = vrot.lane.b32.xlu0 %v1583_v47, %s2886_s29  ;;  %v2673_v48 = vpop.f32.mrb[33].mxu1  ;;  %s3387_s29 = scalar_lea.vmem %s3361_s6, %s2983_s20 }
 0x663   : > { %v1586_v49 = vpop.f32.mrb[34].mxu1  ;;  %v2486_v45 = vld [vmem:[%s3387_s29] ss:$0 sm:$0xff] }
 0x664   : > { %v2674_v50 = vpop.f32.mrb[35].mxu1  ;;  %v2833_v49 = vld [vmem:[%s3027_s23 + $0x30] sm:$0xff]  }
 0x665   : > { %v2834_v50 = vld [vmem:[%s3027_s23 + $0x38] sm:$0xff]  }
 0x669   : > { %v1693_v52 = vpop.f32.mrb[36].mxu1 }
 0x66a   : > { %1830 = vrot.lane.b32.xlu1 %v1693_v52, %s2885_s14  ;;  %v2685_v54 = vpop.f32.mrb[37].mxu1 }
 0x66b   : > { %v1696_v55 = vpop.f32.mrb[38].mxu1 }
 0x66c   : > { %v2686_v53 = vpop.f32.mrb[39].mxu1 }
 0x671   : > { %v1803_v56 = vpop.f32.mrb[40].mxu1 }
 0x672   : > { %1834 = vrot.lane.b32.xlu0 %v1803_v56, %s2884_s22  ;;  %v2697_v57 = vpop.f32.mrb[41].mxu1 }
 0x673   : > { %v1806_v58 = vpop.f32.mrb[42].mxu1 }
 0x674   : > { %v2698_v59 = vpop.f32.mrb[43].mxu1 }
 0x696   : > { %v1811_v60 = vpop.permute.xlu1 %1810 }
 0x697   : > { %v1837_v0 = vsel %vm928_vm1, %v3155_v33, %v1811_v60  ;;  %v2476_v33 = vld [vmem:[%s3385_s30] ss:$0 sm:$0xff] }
 0x69e   : > { %v1815_v61 = vpop.permute.xlu1 %1814 }
 0x69f   : > { %v1839_v1 = vsel %vm1838_vm5, %v1837_v0, %v1815_v61 }
 0x6a6   : > { %v1819_v62 = vpop.permute.xlu0 %1818 }
 0x6a7   : > { %v1841_v3 = vsel %vm1840_vm6, %v1839_v1, %v1819_v62 }
 0x6c4   : > { %v1823_v63 = vpop.permute.xlu1 %1822 }
 0x6c5   : > { %v1843_v6 = vsel %vm1842_vm7, %v1841_v3, %v1823_v63 }
 0x6d4   : > { %v1827_v2 = vpop.permute.xlu0 %1826 }
 0x6d5   : > { %v1845_v7 = vsel %vm1844_vm8, %v1843_v6, %v1827_v2 }
 0x6dc   : > { %v1831_v4 = vpop.permute.xlu1 %1830 }
 0x6dd   : > { %v1847_v8 = vsel %vm1846_vm9, %v1845_v7, %v1831_v4 }
 0x6e4   : > { %v1835_v9 = vpop.permute.xlu0 %1834 }
 0x6e5   : > { %v1849_v10 = vsel %vm1848_vm10, %v1847_v8, %v1835_v9 }
 0x6e6   : > { %v1850_v11 = vpack.c.bf16 %v1849_v10, %v1849_v10 }
 0x6e8   : > { %2716 = vmatmul.mubr.bf16.vlgmr.msra.gmra.mrb[28].mxu0 %v1850_v11 }
 0x6e9   : > { %2755 = vmatprep.mubr.msk.bf16.mxu0 %vm2883_vm0, %v2882_v5  ;;  %2740 = vmatpush3.bf16.msra.mxu0 %v2827_v32 }
 0x6ea   : > { %2741 = vmatprep.subr.bf16.mxu0 %v2882_v5 }
 0x6ed   : > { %2742 = vmatpush3.bf16.msra.mxu0 %v2828_v34 }
 0x6ee   : > { %2743 = vmatprep.subr.bf16.mxu0 %v2882_v5 }
 0x6f1   : > { %2744 = vmatpush3.bf16.msra.mxu0 %v2829_v35 }
 0x6f2   : > { %2745 = vmatprep.subr.bf16.mxu0 %v2882_v5 }
 0x6f5   : > { %2746 = vmatpush3.bf16.msra.mxu0 %v2830_v36 }
 0x6f6   : > { %2747 = vmatprep.subr.bf16.mxu0 %v2882_v5 }
 0x6f9   : > { %2748 = vmatpush3.bf16.msra.mxu0 %v2831_v37 }
 0x6fa   : > { %2749 = vmatprep.subr.bf16.mxu0 %v2882_v5 }
 0x6fd   : > { %2750 = vmatpush3.bf16.msra.mxu0 %v2832_v38 }
 0x6fe   : > { %2751 = vmatprep.subr.bf16.mxu0 %v2882_v5 }
 0x701   : > { %2752 = vmatpush3.bf16.msra.mxu0 %v2833_v49 }
 0x702   : > { %2753 = vmatprep.subr.bf16.mxu0 %v2882_v5  ;;  %v2504_v5 = vld [vmem:[%s648_s24] ss:$0 sm:$0xff] }
 0x705   : > { %2754 = vmatpush3.bf16.msra.mxu0 %v2834_v50 }
 0x7bb   : > { %v1955_v12 = vpop.f32.mrb[28].mxu0 }
 0x7bc   : > { %v1956_v13 = vadd.f32 %v2476_v33, %v1955_v12  ;;  %v2717_v14 = vpop.f32.mrb[29].mxu0  ;;  %v2505_v33 = vld [vmem:[%s651_s26] ss:$0 sm:$0xff]  ;;  %s3388_s26 = sld [smem:[#allocation8_spill]] (!%p2507_p5) }
 0x7bd   : > { %v1958_v15 = vpop.f32.mrb[30].mxu0 }
 0x7be   : > { %v2718_v16 = vpop.f32.mrb[31].mxu0  ;;  %v1961_v17 = vadd.f32 %v1956_v13, %v3070_v25  ;;  %v2506_v13 = vld [vmem:[%s654_s1] ss:$0 sm:$0xff] }
 0x7c0   : > { %v1965_v18 = vsel %vm1964_vm11, %v1961_v17, 0.0 }
 0x7c1   : > { %1966 = vadd.xlane.f32.xlu1 %v1965_v18 }
 0x7c2   : > { %v2508_v26 = vld [vmem:[%s3388_s26] ss:$0 sm:$0xff] (!%p2507_p5) }
 0x84e   : > { %v1967_v21 = vpop.xlane.xlu1 %1966 }
 0x84f   : > { %v1969_v22 = vmul.f32 0.0078125, %v1967_v21 }
 0x851   : > { %v1970_v23 = vsub.f32 %v1961_v17, %v1969_v22 }
 0x853   : > { %v1971_v24 = vmul.f32 %v1970_v23, %v1970_v23 }
 0x855   : > { %v1972_v25 = vsel %vm1964_vm11, %v1971_v24, 0.0 }
 0x856   : > { %1973 = vadd.xlane.f32.xlu0 %v1972_v25 }
 0x8e3   : > { %v1974_v39 = vpop.xlane.xlu0 %1973 }
 0x8e4   : > { %v1975_v40 = vmul.f32 0.0078125, %v1974_v39 }
 0x8e6   : > { %v1976_v41 = vadd.f32 1e-05, %v1975_v40 }
 0x8e8   : > { %2867 = vrsqrt.f32 %v1976_v41 }
 0x8f2   : > { %v2868_v42 = vpop.eup %2867 }
 0x8f3   : > { %v1978_v44 = vmul.f32 %v2868_v42, %v1970_v23 }
 0x8f5   : > { %v1985_v46 = vmul.f32 %v2485_v43, %v1978_v44 }
 0x8f7   : > { %v1992_v47 = vadd.f32 %v2486_v45, %v1985_v46 }
 0x8f9   : > { %v2009_v48 = vpack.c.bf16 %v1992_v47, %v1992_v47 }
 0x8fb   : > { %2736 = vmatmul.mubr.bf16.vlgmr.msra.gmra.mrb[44].mxu1 %v2009_v48 }
 0x9ce   : > { %v2099_v52 = vpop.f32.mrb[44].mxu1 }
 0x9cf   : > { %v2100_v54 = vadd.f32 %v2487_v51, %v2099_v52  ;;  %v2737_v55 = vpop.f32.mrb[45].mxu1 }
 0x9d0   : > { %v2102_v53 = vpop.f32.mrb[46].mxu1 }
 0x9d1   : > { %v2105_v56 = vmax.f32 %v2100_v54, 0.0  ;;  %v2738_v57 = vpop.f32.mrb[47].mxu1 }
 0x9d3   : > { %v2122_v58 = vpack.c.bf16 %v2105_v56, %v2105_v56 }
 0x9d5   : > { %2756 = vmatmul.mubr.bf16.vlgmr.msra.gmra.mrb[32].mxu0 %v2122_v58 }
 0xaa8   : > { %v2205_v59 = vpop.f32.mrb[32].mxu0 }
 0xaa9   : > { %v2211_v60 = vadd.f32 %v2205_v59, %v1992_v47  ;;  %v2757_v61 = vpop.f32.mrb[33].mxu0 }
 0xaaa   : > { %v2208_v62 = vpop.f32.mrb[34].mxu0 }
 0xaab   : > { %v2758_v63 = vpop.f32.mrb[35].mxu0  ;;  %v2219_v0 = vadd.f32 %v2504_v5, %v2211_v60 }
 0xaad   : > { %v2222_v1 = vsel %vm1964_vm11, %v2219_v0, 0.0 }
 0xaae   : > { %2223 = vadd.xlane.f32.xlu0 %v2222_v1 }
 0xb3b   : > { %v2224_v2 = vpop.xlane.xlu0 %2223 }
 0xb3c   : > { %v2225_v3 = vmul.f32 0.0078125, %v2224_v2 }
 0xb3e   : > { %v2226_v4 = vsub.f32 %v2219_v0, %v2225_v3 }
 0xb40   : > { %v2227_v6 = vmul.f32 %v2226_v4, %v2226_v4 }
 0xb42   : > { %v2228_v7 = vsel %vm1964_vm11, %v2227_v6, 0.0 }
 0xb43   : > { %2229 = vadd.xlane.f32.xlu1 %v2228_v7 }
 0xbd0   : > { %v2230_v8 = vpop.xlane.xlu1 %2229 }
 0xbd1   : > { %v2231_v9 = vmul.f32 0.0078125, %v2230_v8 }
 0xbd3   : > { %v2232_v10 = vadd.f32 1e-05, %v2231_v9 }
 0xbd5   : > { %2869 = vrsqrt.f32 %v2232_v10 }
 0xbdf   : > { %v2870_v11 = vpop.eup %2869 }
 0xbe0   : > { %v2234_v12 = vmul.f32 %v2870_v11, %v2226_v4  ;;  %2253 = sbr.rel (%p2507_p5) target bundleno = 3362 (0xd22), region = 88 }
 0xbe2   : > { %v2241_v14 = vmul.f32 %v2505_v33, %v2234_v12 }
 0xbe4   : > { %v2248_v15 = vadd.f32 %v2506_v13, %v2241_v14 }
 0xbe6   : > { %2249 = vst [vmem:[#allocation2] sm:$0x3] %v2248_v15  ;;  %v2256_v16 = vsel (!%p2507_p5), %vm1964_vm11, %v2248_v15, 0.0 }
 0xbe7   : > { %2257 = vadd.xlane.f32.xlu0 %v2256_v16 }
 0xc74   : > { %v2258_v17 = vpop.xlane.xlu0 %2257 }
 0xc75   : > { %v2259_v18 = vmul.f32 0.0078125, %v2258_v17 }
 0xc77   : > { %v2260_v19 = vsub.f32 %v2248_v15, %v2259_v18 }
 0xc79   : > { %v2261_v20 = vmul.f32 %v2260_v19, %v2260_v19 }
 0xc7b   : > { %v2262_v21 = vsel %vm1964_vm11, %v2261_v20, 0.0 }
 0xc7c   : > { %2263 = vadd.xlane.f32.xlu0 %v2262_v21 }
 0xd09   : > { %v2264_v22 = vpop.xlane.xlu0 %2263 }
 0xd0a   : > { %v2265_v23 = vmul.f32 0.0078125, %v2264_v22 }
 0xd0c   : > { %v2266_v24 = vadd.f32 1e-05, %v2265_v23 }
 0xd0e   : > { %2871 = vrsqrt.f32 %v2266_v24 }
 0xd18   : > { %v2872_v25 = vpop.eup %2871 }
 0xd19   : > { %v2268_v27 = vmul.f32 %v2872_v25, %v2260_v19 }
 0xd1b   : > { %v2275_v29 = vmul.f32 %v2508_v26, %v2268_v27 }
 0xd1d   : > { %v2282_v30 = vadd.f32 %v2509_v28, %v2275_v29 }
 0xd1f   : > { %v2283_v31 = vpack.c.bf16 %v2282_v30, %v2282_v30 }
 0xd21   : > { %2284 = vst [vmem:[%s3390_s16] sm:$0x1] %v2283_v31 }
 0xd22 PF: > { %s3391_s15 = sld [smem:[#allocation3_spill]] }
 0xd28   : > { %s25_s18 = sadd.s32 1, %s3391_s15  }
 0xd29   : > { %p22_p6 = scmp.ge.s32.totalorder %s25_s18, 6  }
 0xd2b   :  { %24 = sbr.rel (!%p22_p6) target bundleno = 7 (0x7), region = 147 }

// kernel: forward.8
= control target key start
LH: loop header
LB: loop body
LE: loop exit
PB: predicated region body
PF: predicated region fallthrough
CT: control target
= control target key end

     0   :  { %s6347_s0 = inlined_call_operand.vmem [shape: f32[8,128], index: 0, kind: input, shape index: {}]   ;;  %s6348_s1 = inlined_call_operand.vmem [shape: bf16[2,128], index: 1, kind: input, shape index: {}]   ;;  %s6349_s2 = inlined_call_operand.vmem [shape: bf16[4,128,384], index: 2, kind: input, shape index: {}]   ;;  %s6350_s3 = inlined_call_operand.vmem [shape: f32[4,1,384], index: 3, kind: input, shape index: {}]   ;;  %s6351_s4 = inlined_call_operand.vmem [shape: bf16[4,128,128], index: 4, kind: input, shape index: {}]   ;;  %s6352_s5 = inlined_call_operand.vmem [shape: f32[4,1,128], index: 5, kind: input, shape index: {}]   ;;  %s6353_s6 = inlined_call_operand.vmem [shape: f32[4,1,128], index: 6, kind: input, shape index: {}]   ;;  %s6354_s7 = inlined_call_operand.vmem [shape: f32[4,1,128], index: 7, kind: input, shape index: {}]   ;;  %s6355_s8 = inlined_call_operand.hbm [shape: bf16[4,128,128], index: 8, kind: input, shape index: {}]   ;;  %s6356_s9 = inlined_call_operand.vmem [shape: f32[4,1,128], index: 9, kind: input, shape index: {}]   ;;  %s6357_s10 = inlined_call_operand.vmem [shape: bf16[4,128,256], index: 10, kind: input, shape index: {}]   ;;  %s6358_s11 = inlined_call_operand.vmem [shape: f32[4,1,256], index: 11, kind: input, shape index: {}]   ;;  %s6359_s12 = inlined_call_operand.hbm [shape: bf16[4,128,128], index: 12, kind: input, shape index: {}]   ;;  %s6360_s13 = inlined_call_operand.vmem [shape: f32[4,1,128], index: 13, kind: input, shape index: {}]   ;;  %s6361_s14 = inlined_call_operand.vmem [shape: f32[4,1,128], index: 14, kind: input, shape index: {}]   ;;  %s6362_s15 = inlined_call_operand.vmem [shape: f32[4,1,128], index: 15, kind: input, shape index: {}]   ;;  %s6363_s16 = inlined_call_operand.hbm [shape: bf16[4,128,128], index: 16, kind: input, shape index: {}]   ;;  %s6364_s17 = inlined_call_operand.vmem [shape: f32[4,1,128], index: 17, kind: input, shape index: {}]   ;;  %s6365_s18 = inlined_call_operand.hbm [shape: bf16[4,128,128], index: 18, kind: input, shape index: {}]   ;;  %s6366_s19 = inlined_call_operand.vmem [shape: f32[4,1,128], index: 19, kind: input, shape index: {}]   ;;  %s6367_s20 = inlined_call_operand.vmem [shape: f32[4,1,128], index: 20, kind: input, shape index: {}]   ;;  %s6368_s21 = inlined_call_operand.vmem [shape: f32[4,1,128], index: 21, kind: input, shape index: {}]   ;;  %s6369_s22 = inlined_call_operand.vmem [shape: f32[1,128], index: 22, kind: input, shape index: {}]   ;;  %s6370_s23 = inlined_call_operand.vmem [shape: f32[1,128], index: 23, kind: input, shape index: {}]   ;;  %s6371_s24 = inlined_call_operand.vmem [shape: bf16[8,128], index: 24, kind: output, shape index: {}]  }
   0x1   :  { %6386 = sst [smem:[#allocation20_spill]] %s6347_s0 }
   0x2   :  { %6387 = sst [smem:[#allocation21_spill]] %s6348_s1 }
   0x3   :  { %6388 = sst [smem:[#allocation22_spill]] %s6349_s2 }
   0x4   :  { %6389 = sst [smem:[#allocation23_spill]] %s6350_s3 }
   0x5   :  { %6390 = sst [smem:[#allocation24_spill]] %s6351_s4 }
   0x6   :  { %6391 = sst [smem:[#allocation25_spill]] %s6352_s5 }
   0x7   :  { %6392 = sst [smem:[#allocation26_spill]] %s6353_s6 }
   0x8   :  { %6393 = sst [smem:[#allocation27_spill]] %s6354_s7 }
   0x9   :  { %6394 = sst [smem:[#allocation28_spill]] %s6355_s8 }
   0xa   :  { %6395 = sst [smem:[#allocation29_spill]] %s6357_s10 }
   0xb   :  { %6396 = sst [smem:[#allocation30_spill]] %s6358_s11 }
   0xc   :  { %6397 = sst [smem:[#allocation31_spill]] %s6359_s12 }
   0xd   :  { %6398 = sst [smem:[#allocation32_spill]] %s6360_s13 }
   0xe   :  { %6399 = sst [smem:[#allocation33_spill]] %s6362_s15 }
   0xf   :  { %6400 = sst [smem:[#allocation34_spill]] %s6363_s16 }
  0x10   :  { %6401 = sst [smem:[#allocation35_spill]] %s6364_s17 }
  0x11   :  { %6402 = sst [smem:[#allocation36_spill]] %s6365_s18 }
  0x12   :  { %6403 = sst [smem:[#allocation37_spill]] %s6366_s19 }
  0x13   :  { %6404 = sst [smem:[#allocation38_spill]] %s6367_s20 }
  0x14   :  { %6405 = sst [smem:[#allocation39_spill]] %s6368_s21 }
  0x15   :  { %6406 = sst [smem:[#allocation40_spill]] %s6369_s22 }
  0x16   :  { %6407 = sst [smem:[#allocation41_spill]] %s6370_s23 }
  0x17   :  { %6408 = sst [smem:[#allocation42_spill]] %s6371_s24 }
  0x18   :  { %29 = vsyncpa [#allocation4], 0 }
  0x19   :  { %31 = vsyncpa [#allocation4 + $0x1], 0 }
  0x1a   :  { %32 = vsyncpa [#allocation6], 0 }
  0x1b   :  { %34 = vsyncpa [#allocation6 + $0x1], 0 }
  0x1c   :  { %35 = vsyncpa [#allocation9], 0 }
  0x1d   :  { %37 = vsyncpa [#allocation9 + $0x1], 0  ;;  %s5445_s5 = smov 0   ;;  %s5447_s26 = smov 0  }
  0x1e   :  { %s5449_s27 = smov 0   ;;  %s5451_s28 = smov 0  }
  0x1f LB: > { %6409 = sst [smem:[#allocation13_spill]] %s5294_s26  ;;  %s5464_s6 = sadd.s32 4294967295, %s5302_s28   ;;  %s5302_s28 = sphi %s5451_s28, %s6466_s28   ;;  %s5298_s27 = sphi %s5449_s27, %s6469_s27   ;;  %s5294_s26 = sphi %s5447_s26, %s6468_s26   ;;  %s5290_s5 = sphi %s5445_s5, %s6467_s5  }
  0x20   : > { %6410 = sst [smem:[#allocation14_spill]] %s5298_s27  ;;  %s5467_s2 = sadd.s32 1, %s5302_s28  }
  0x21   : > { %6411 = sst [smem:[#allocation15_spill]] %s5467_s2  ;;  %s245_s29 = ssub.s32 %s5302_s28, %s5467_s2 }
  0x22   : > { %s248_s0 = sadd.s32 1, %s5298_s27  ;;  %p246_p0 = scmp.eq.s32.totalorder %s245_s29, 0 }
  0x23   : > { %p255_p1 = scmp.ne.s32.totalorder %s5298_s27, %s5294_s26  ;;  %p256_p2 = scmp.eq.s32.totalorder %s5302_s28, 0 }
  0x24   : > { %p261_p3 = scmp.ne.s32.totalorder %s5294_s26, %s5290_s5  ;;  %p262_p5 = scmp.eq.s32.totalorder %s5464_s6, 0 }
  0x25   : > { %s5477_s7 = scalar_select %p246_p0, %s5298_s27, %s248_s0  }
  0x26   : > { %p257_p4 = por %p256_p2, %p255_p1  ;;  %p4927_p6 = scmp.lt.s32.totalorder %s5302_s28, 4 }
  0x27   : > { %6412 = sst [smem:[#allocation16_spill]] %s5477_s7  ;;  %p5481_p7 = por %p262_p5, %p261_p3 }
  0x28   : > { %s5486_s3 = sand.u32 1, %s5298_s27   ;;  %s5492_s8 = sshll.u32 %s5302_s28, 10 }
  0x29   : > { %s6413_s30 = scalar_select %p5481_p7, 1, 0 }
  0x2a   : > { %s5489_s25 = sshll.u32 %s5486_s3, 6  ;;  %p5494_p8 = pnand %p4927_p6, %p257_p4 }
  0x2b   : > { %s781_s1 = sand.u32 1, %s5302_s28   ;;  %s6415_s12 = sld [smem:[#allocation31_spill]] }
  0x2c   : > { %s785_s7 = scalar_lea.vmem [#allocation5], %s5489_s25  ;;  %s5510_s2 = scalar_lea.sflag [#allocation6], %s781_s1 }
  0x2d   : > { %s792_s27 = sshll.u32 %s785_s7, 4  ;;  %p5516_p12 = pneg %p5494_p8  ;;  %s5507_s27 = int_to_ptr.vmem [resolvable:$true] %s792_s27 }
  0x31   : > { %s5503_s0 = scalar_lea.hbm %s6415_s12, %s5492_s8  ;;  %s5145_s7 = scalar_lea.hbm %s6415_s12, 4096 }
  0x32   : > { %s5140_s24 = scalar_lea.hbm %s5503_s0, 1024  ;;  %p5146_p1 = scmp.lt.u32.totalorder %s5503_s0, %s6415_s12 }
  0x33   : > { %p5141_p11 = scmp.ne.s32.totalorder %s5503_s0, %s5140_s24  ;;  %p5147_p2 = scmp.lt.u32.totalorder %s5145_s7, %s5140_s24 }
  0x34   : > { %p5149_p4 = scmp.lt.u32.totalorder %s5140_s24, %s5503_s0 }
  0x35   : > { %p5143_p13 = pnand %p5516_p12, %p5141_p11  ;;  %p5148_p3 = por %p5147_p2, %p5146_p1 }
  0x37   : > { %p5144_p0 = pneg %p5143_p13  ;;  %p5150_p5 = por %p5149_p4, %p5148_p3 }
  0x39   : > { %p5151_p6 = pnand %p5150_p5, %p5144_p0 }
  0x3b   : > { %5154 = shalt.err (!%p5151_p6)
}
  0x3c   : > { %s5155_s1 = scalar_lea.vmem %s5507_s27, 1024  ;;  %s5304_s5 = smov [#allocation5]  }
  0x3d   : > { %p5156_p11 = scmp.ne.s32.totalorder %s5507_s27, %s5155_s1  ;;  %s5160_s29 = sshll.u32 %s5304_s5, 4  ;;  %s5161_s29 = int_to_ptr.vmem [resolvable:$false] %s5160_s29 }
  0x3e   : > { %s5162_s21 = scalar_lea.vmem %s5161_s29, 2048  ;;  %p5163_p10 = scmp.lt.s32.totalorder %s5507_s27, %s5161_s29 }
  0x3f   : > { %p5158_p13 = pnand %p5156_p11, %p5516_p12  ;;  %p5164_p7 = scmp.lt.s32.totalorder %s5162_s21, %s5155_s1 }
  0x41   : > { %p5159_p9 = pneg %p5158_p13  ;;  %p5165_p1 = por %p5164_p7, %p5163_p10 }
  0x43   : > { %p5166_p2 = pnand %p5165_p1, %p5159_p9 }
  0x45   : > { %5169 = shalt.err (!%p5166_p2)
}
  0x46   : > { %s6377_s22 = smov 64   ;;  %s6379_s24 = smov 4  }
  0x47   : > { %4920 = dma.hbm_to_vmem [thread:$0]  (!%p5494_p8), %s5503_s0, 1024, %s5507_s27, %s5510_s2, %s6377_s22, %s6377_s22, %s6379_s24  }
  0x48   : > { %p6417_p7 = scmp.lt.s32.totalorder %s5302_s28, 5  ;;  %p6418_p9 = scmp.ge.s32.totalorder %s5302_s28, 1 }
  0x49   : > { %s6420_s29 = sld [smem:[#allocation28_spill]]  ;;  %s743_s12 = scalar_lea.vmem [#allocation3], %s5489_s25 }
  0x4a   : > { %p5547_p10 = pnand %p6418_p9, %p6417_p7  ;;  %s750_s20 = sshll.u32 %s743_s12, 4  ;;  %s5558_s20 = int_to_ptr.vmem [resolvable:$true] %s750_s20 }
  0x4b   : > { %s6421_s16 = sld [smem:[#allocation34_spill]]  ;;  %s740_s22 = scalar_lea.sflag [#allocation4], %s5486_s3 }
  0x4c   : > { %s6419_s7 = scalar_select %p5547_p10, 1, 0 }
  0x4f   : > { %s5555_s21 = scalar_lea.hbm %s6420_s29, %s5492_s8  ;;  %s5175_s19 = scalar_lea.hbm %s6420_s29, 4096 }
  0x50   : > { %s5170_s24 = scalar_lea.hbm %s5555_s21, 1024  ;;  %p5176_p5 = scmp.lt.u32.totalorder %s5555_s21, %s6420_s29 }
  0x51   : > { %s5564_s28 = scalar_lea.hbm %s6421_s16, %s5492_s8  ;;  %p5171_p0 = scmp.ne.s32.totalorder %s5555_s21, %s5170_s24 }
  0x52   : > { %p5177_p6 = scmp.lt.u32.totalorder %s5175_s19, %s5170_s24  ;;  %p5179_p13 = scmp.lt.u32.totalorder %s5170_s24, %s5555_s21 }
  0x53   : > { %p5173_p3 = pnand %p5171_p0, %p5516_p12 }
  0x54   : > { %p5178_p11 = por %p5177_p6, %p5176_p5 }
  0x55   : > { %p5174_p4 = pneg %p5173_p3 }
  0x56   : > { %p5180_p1 = por %p5179_p13, %p5178_p11 }
  0x58   : > { %p5181_p2 = pnand %p5180_p1, %p5174_p4 }
  0x5a   : > { %5184 = shalt.err (!%p5181_p2)
}
  0x5b   : > { %s5185_s12 = scalar_lea.vmem %s5558_s20, 1024  ;;  %s5307_s27 = smov [#allocation3]  }
  0x5c   : > { %p5186_p7 = scmp.ne.s32.totalorder %s5558_s20, %s5185_s12  ;;  %s5190_s0 = sshll.u32 %s5307_s27, 4  ;;  %s5191_s0 = int_to_ptr.vmem [resolvable:$false] %s5190_s0 }
  0x5d   : > { %s5192_s15 = scalar_lea.vmem %s5191_s0, 2048  ;;  %p5193_p3 = scmp.lt.s32.totalorder %s5558_s20, %s5191_s0 }
  0x5e   : > { %p5188_p9 = pnand %p5186_p7, %p5516_p12  ;;  %p5194_p10 = scmp.lt.s32.totalorder %s5192_s15, %s5185_s12 }
  0x60   : > { %p5189_p0 = pneg %p5188_p9  ;;  %p5195_p5 = por %p5194_p10, %p5193_p3 }
  0x62   : > { %p5196_p6 = pnand %p5195_p5, %p5189_p0 }
  0x64   : > { %5199 = shalt.err (!%p5196_p6)
}
  0x65   : > { %s6422_s17 = smov 4   ;;  %s6423_s19 = smov 64  }
  0x66   : > { %4917 = dma.hbm_to_vmem [thread:$0]  (!%p5494_p8), %s5555_s21, 1024, %s5558_s20, %s740_s22, %s6423_s19, %s6423_s19, %s6422_s17  }
  0x67   : > { %s824_s24 = scalar_lea.vmem [#allocation7], %s5489_s25  ;;  %s5200_s5 = scalar_lea.hbm %s5564_s28, 1024 }
  0x68   : > { %s831_s1 = sshll.u32 %s824_s24, 4  ;;  %p5201_p10 = scmp.ne.s32.totalorder %s5564_s28, %s5200_s5  ;;  %s5594_s1 = int_to_ptr.vmem [resolvable:$true] %s831_s1 }
  0x69   : > { %s5205_s0 = scalar_lea.hbm %s6421_s16, 4096  ;;  %p5206_p13 = scmp.lt.u32.totalorder %s5564_s28, %s6421_s16 }
  0x6a   : > { %p5203_p4 = pnand %p5201_p10, %p5516_p12  ;;  %p5207_p1 = scmp.lt.u32.totalorder %s5205_s0, %s5200_s5 }
  0x6b   : > { %p5209_p7 = scmp.lt.u32.totalorder %s5200_s5, %s5564_s28 }
  0x6c   : > { %p5204_p11 = pneg %p5203_p4  ;;  %p5208_p2 = por %p5207_p1, %p5206_p13 }
  0x6e   : > { %p5210_p9 = por %p5209_p7, %p5208_p2 }
  0x70   : > { %p5211_p0 = pnand %p5210_p9, %p5204_p11 }
  0x72   : > { %5214 = shalt.err (!%p5211_p0)
}
  0x73   : > { %s5215_s20 = scalar_lea.vmem %s5594_s1, 1024  ;;  %s5308_s22 = smov [#allocation7]  }
  0x74   : > { %p5216_p3 = scmp.ne.s32.totalorder %s5594_s1, %s5215_s20  ;;  %s5220_s21 = sshll.u32 %s5308_s22, 4  ;;  %s5221_s21 = int_to_ptr.vmem [resolvable:$false] %s5220_s21 }
  0x75   : > { %s5222_s29 = scalar_lea.vmem %s5221_s21, 2048  ;;  %p5223_p10 = scmp.lt.s32.totalorder %s5594_s1, %s5221_s21 }
  0x76   : > { %p5218_p5 = pnand %p5216_p3, %p5516_p12  ;;  %p5224_p4 = scmp.lt.s32.totalorder %s5222_s29, %s5215_s20 }
  0x78   : > { %p5219_p6 = pneg %p5218_p5  ;;  %p5225_p13 = por %p5224_p4, %p5223_p10 }
  0x7a   : > { %p5226_p1 = pnand %p5225_p13, %p5219_p6 }
  0x7c   : > { %5229 = shalt.err (!%p5226_p1)
}
  0x7d   : > { %4923 = dma.hbm_to_vmem [thread:$0]  (!%p5494_p8), %s5564_s28, 1024, %s5594_s1, %s5510_s2, %s6423_s19, %s6423_s19, %s6422_s17  }
  0x7e   : > { %s6424_s18 = sld [smem:[#allocation36_spill]]  ;;  %s851_s27 = scalar_lea.vmem [#allocation8], %s5489_s25 }
  0x7f   : > { %s858_s0 = sshll.u32 %s851_s27, 4  ;;  %s848_s15 = scalar_lea.sflag [#allocation9], %s5486_s3  ;;  %s5628_s0 = int_to_ptr.vmem [resolvable:$true] %s858_s0 }
  0x84   : > { %s5625_s12 = scalar_lea.hbm %s6424_s18, %s5492_s8  ;;  %s5235_s1 = scalar_lea.hbm %s6424_s18, 4096 }
  0x85   : > { %s5230_s20 = scalar_lea.hbm %s5625_s12, 1024  ;;  %p5236_p9 = scmp.lt.u32.totalorder %s5625_s12, %s6424_s18 }
  0x86   : > { %p5231_p11 = scmp.ne.s32.totalorder %s5625_s12, %s5230_s20  ;;  %p5237_p0 = scmp.lt.u32.totalorder %s5235_s1, %s5230_s20 }
  0x87   : > { %p5239_p5 = scmp.lt.u32.totalorder %s5230_s20, %s5625_s12 }
  0x88   : > { %p5233_p2 = pnand %p5231_p11, %p5516_p12  ;;  %p5238_p3 = por %p5237_p0, %p5236_p9 }
  0x8a   : > { %p5234_p7 = pneg %p5233_p2  ;;  %p5240_p6 = por %p5239_p5, %p5238_p3 }
  0x8c   : > { %p5241_p10 = pnand %p5240_p6, %p5234_p7 }
  0x8e   : > { %5244 = shalt.err (!%p5241_p10)
}
  0x8f   : > { %s5245_s25 = scalar_lea.vmem %s5628_s0, 1024  ;;  %s5309_s21 = smov [#allocation8]  }
  0x90   : > { %p5246_p4 = scmp.ne.s32.totalorder %s5628_s0, %s5245_s25  ;;  %s5250_s29 = sshll.u32 %s5309_s21, 4  ;;  %s5251_s29 = int_to_ptr.vmem [resolvable:$false] %s5250_s29 }
  0x91   : > { %s5252_s24 = scalar_lea.vmem %s5251_s29, 2048  ;;  %p5253_p11 = scmp.lt.s32.totalorder %s5628_s0, %s5251_s29 }
  0x92   : > { %p5248_p13 = pnand %p5246_p4, %p5516_p12  ;;  %p5254_p2 = scmp.lt.s32.totalorder %s5252_s24, %s5245_s25 }
  0x94   : > { %p5249_p1 = pneg %p5248_p13  ;;  %p5255_p9 = por %p5254_p2, %p5253_p11 }
  0x96   : > { %p5256_p0 = pnand %p5255_p9, %p5249_p1 }
  0x98   : > { %5259 = shalt.err (!%p5256_p0)
}
  0x99   : > { %4926 = dma.hbm_to_vmem [thread:$0]  (!%p5494_p8), %s5625_s12, 1024, %s5628_s0, %s848_s15, %s6423_s19, %s6423_s19, %s6422_s17  }
  0x9a   : > { %p6425_p12 = scmp.ne.s32.totalorder %s6419_s7, 0 }
  0x9c   : > { %888 = sbr.rel (%p6425_p12) target bundleno = 5739 (0x166b), region = 116 }
  0xa3   : > { %s890_s23 = sand.u32 1, %s5294_s26   ;;  %p6426_p7 = scmp.ne.s32.totalorder %s6413_s30, 0 }
  0xa4   : > { %s4329_s5 = sshll.u32 %s890_s23, 6  ;;  %s891_s27 = scalar_lea.sflag [#allocation4], %s890_s23 }
  0xa5   : > { %s5660_s20 = scalar_lea.vmem [#allocation3], %s4329_s5 }
  0xa6   : > { %5277 = dma.done.wait (%p6426_p7), %s891_s27, 1024  }
  0xa7   : > { %5279 = vsyncadd (%p6426_p7), %s891_s27, 4294966272  ;;  %s899_s3 = sand.u32 1, %s5464_s6   ;;  %s5667_s17 = scalar_lea.vmem [#allocation5], %s4329_s5 }
  0xa8   : > { %s900_s4 = scalar_lea.sflag [#allocation6], %s899_s3  ;;  %6427 = sst [smem:[#allocation17_spill]] %s5667_s17 }
  0xa9   : > { %5281 = dma.done.wait (%p6426_p7), %s900_s4, 2048  }
  0xaa   : > { %5283 = vsyncadd (%p6426_p7), %s900_s4, 4294965248  ;;  %s5673_s7 = scalar_lea.vmem [#allocation7], %s4329_s5  ;;  %s918_s19 = scalar_lea.sflag [#allocation9], %s890_s23 }
  0xab   : > { %6428 = sst [smem:[#allocation18_spill]] %s5673_s7  ;;  %s5675_s12 = scalar_lea.vmem [#allocation8], %s4329_s5 }
  0xac   : > { %6429 = sst [smem:[#allocation19_spill]] %s5675_s12 }
  0xad   : > { %5285 = dma.done.wait (%p6426_p7), %s918_s19, 1024  }
  0xae   : > { %5287 = vsyncadd (%p6426_p7), %s918_s19, 4294966272  ;;  %p1052_p8 = scmp.lt.s32.totalorder %s5464_s6, 3  ;;  %s6430_s8 = sld [smem:[#allocation24_spill]] }
  0xaf   : > { %s6431_s29 = sld [smem:[#allocation22_spill]]  ;;  %s6433_s16 = sld [smem:[#allocation23_spill]] }
  0xb0   : > { %s5683_s0 = scalar_select %p1052_p8, %s5464_s6, 3 }
  0xb1   : > { %s6436_s10 = sld [smem:[#allocation29_spill]]  ;;  %s6437_s11 = sld [smem:[#allocation30_spill]] }
  0xb2   : > { %s4904_s15 = smul.u32 192, %s5683_s0  ;;  %s4472_s30 = sshll.u32 %s5683_s0, 6 }
  0xb3   : > { %s4905_s2 = smul.u32 3, %s5683_s0  ;;  %s4473_s23 = sshll.u32 %s5683_s0, 7 }
  0xb4   : > { %s5691_s22 = scalar_lea.vmem %s6430_s8, %s4472_s30  ;;  %s4338_s5 = sshll.u32 %s5683_s0, 1 }
  0xb5   : > { %s5696_s24 = scalar_lea.vmem %s6431_s29, %s4904_s15  ;;  %s5705_s18 = scalar_lea.vmem %s6433_s16, %s4905_s2 }
  0xb6   : > { %s1092_s25 = scalar_lea.vmem %s6361_s14, %s5683_s0  ;;  %s6439_s7 = sld [smem:[#allocation33_spill]] }
  0xb7   : > { %s5724_s4 = scalar_lea.vmem %s6436_s10, %s4473_s23  ;;  %s5729_s19 = scalar_lea.vmem %s6437_s11, %s4338_s5 }
  0xb8   : > { %s6440_s27 = sld [smem:[#allocation35_spill]]  ;;  %s6441_s5 = sld [smem:[#allocation37_spill]] }
  0xb9   : > { %s6442_s28 = sld [smem:[#allocation38_spill]]  ;;  %s6443_s12 = sld [smem:[#allocation39_spill]] }
  0xba   : > { %p4339_p3 = scmp.ne.s32.totalorder %s5464_s6, 0 }
  0xbb   : > { %s6444_s29 = sld [smem:[#allocation20_spill]] (!%p4339_p3) }
  0xbc   : > { %s1095_s21 = scalar_lea.vmem %s6439_s7, %s5683_s0  ;;  %1112 = sbr.rel (%p4339_p3) target bundleno = 195 (0xc3), region = 136 }
  0xbe   : > { %s1098_s8 = scalar_lea.vmem %s6440_s27, %s5683_s0  ;;  %s1101_s2 = scalar_lea.vmem %s6441_s5, %s5683_s0 }
  0xbf   : > { %s1104_s1 = scalar_lea.vmem %s6442_s28, %s5683_s0  ;;  %s1107_s30 = scalar_lea.vmem %s6443_s12, %s5683_s0 }
  0xc1   : > { %v1113_v0 = vld [vmem:[%s6444_s29] sm:$0xff] (!%p4339_p3) }
  0xc2   : > { %1114 = vst [vmem:[#allocation2] sm:$0xff] (!%p4339_p3), %v1113_v0 }
  0xc3 PF: > { %v4972_v1 = vld [vmem:[%s5696_s24 + $0x4] ss:$12 sps:$4 sm:$0xff]   ;;  %v4974_v2 = vld [vmem:[%s5696_s24] ss:$12 sps:$4 sm:$0xff]   ;;  %v5310_v3 = vmov 0   ;;  %v5311_v4 = vmov 0.0   ;;  %v1152_v29 = vlaneseq }
  0xc4   : > { %1327 = vmatprep.mubr.bf16.mxu0 %v5310_v3  ;;  %4592 = vmatprep.subr.bf16.mxu1 %v5311_v4  ;;  %v4975_v5 = vld [vmem:[%s5696_s24 + $0x1c] ss:$12 sps:$4 sm:$0xff]   ;;  %v4977_v6 = vld [vmem:[%s5696_s24 + $0x18] ss:$12 sps:$4 sm:$0xff]   ;;  %v4978_v7 = vld [vmem:[%s5696_s24 + $0x34] ss:$12 sps:$4 sm:$0xff]  }
  0xc5   : > { %1295 = vmatprep.subr.bf16.mxu0 %v4972_v1  ;;  %v4980_v8 = vld [vmem:[%s5696_s24 + $0x30] ss:$12 sps:$4 sm:$0xff]   ;;  %v4981_v9 = vld [vmem:[%s5696_s24 + $0x4c] ss:$12 sps:$4 sm:$0xff]   ;;  %v4983_v10 = vld [vmem:[%s5696_s24 + $0x48] ss:$12 sps:$4 sm:$0xff]  }
  0xc6   : > { %1296 = vmatpush1.bf16.msra.mxu0 %v4974_v2  ;;  %v4996_v11 = vld [vmem:[%s5696_s24 + $0x8] ss:$12 sps:$4 sm:$0xff]   ;;  %v4984_v12 = vld [vmem:[%s5696_s24 + $0x64] ss:$12 sps:$4 sm:$0xff]   ;;  %v4997_v13 = vld [vmem:[%s5696_s24 + $0x20] ss:$12 sps:$4 sm:$0xff]  }
  0xc7   : > { %1297 = vmatprep.subr.bf16.mxu0 %v4975_v5  ;;  %4593 = vmatpush3.bf16.msra.mxu1 %v4996_v11  ;;  %v4986_v14 = vld [vmem:[%s5696_s24 + $0x60] ss:$12 sps:$4 sm:$0xff]   ;;  %v4987_v15 = vld [vmem:[%s5696_s24 + $0x7c] ss:$12 sps:$4 sm:$0xff]   ;;  %v4989_v16 = vld [vmem:[%s5696_s24 + $0x78] ss:$12 sps:$4 sm:$0xff]  }
  0xc8   : > { %4594 = vmatprep.subr.bf16.mxu1 %v5311_v4  ;;  %v4998_v17 = vld [vmem:[%s5696_s24 + $0x38] ss:$12 sps:$4 sm:$0xff]   ;;  %v4990_v18 = vld [vmem:[%s5696_s24 + $0x94] ss:$12 sps:$4 sm:$0xff]   ;;  %v4999_v19 = vld [vmem:[%s5696_s24 + $0x50] ss:$12 sps:$4 sm:$0xff]  }
  0xc9   : > { %v4992_v20 = vld [vmem:[%s5696_s24 + $0x90] ss:$12 sps:$4 sm:$0xff]   ;;  %v4993_v21 = vld [vmem:[%s5696_s24 + $0xac] ss:$12 sps:$4 sm:$0xff]   ;;  %v5000_v22 = vld [vmem:[%s5696_s24 + $0x68] ss:$12 sps:$4 sm:$0xff]  }
  0xca   : > { %1298 = vmatpush1.bf16.msra.mxu0 %v4977_v6  ;;  %v4995_v23 = vld [vmem:[%s5696_s24 + $0xa8] ss:$12 sps:$4 sm:$0xff]   ;;  %v5789_v24 = vld [vmem:[#allocation2] sm:$0xff]  ;;  %v5003_v28 = vld [vmem:[%s5696_s24 + $0xb0] ss:$12 sps:$4 sm:$0xff]   ;;  %vm5312_vm0 = vmmov 0  }
  0xcb   : > { %1299 = vmatprep.subr.bf16.mxu0 %v4978_v7  ;;  %4595 = vmatpush3.bf16.msra.mxu1 %v4997_v13  ;;  %v5001_v25 = vld [vmem:[%s5696_s24 + $0x80] ss:$12 sps:$4 sm:$0xff]   ;;  %v1149_v26 = vpack.c.bf16 %v5789_v24, %v5789_v24  ;;  %v5002_v27 = vld [vmem:[%s5696_s24 + $0x98] ss:$12 sps:$4 sm:$0xff]   ;;  %v5808_v30 = vshrl.u32 %v1152_v29, 7  ;;  %vm1381_vm1 = vcmask 130048  }
  0xcc   : > { %4596 = vmatprep.subr.bf16.mxu1 %v5311_v4  ;;  %4608 = vmatprep.mubr.msk.bf16.mxu1 %vm5312_vm0, %v5311_v4  ;;  %v1150_v32 = vld [vmem:[%s5705_s18] sm:$0x7]  ;;  %s5313_s10 = smov 112   ;;  %s5314_s11 = smov 96   ;;  %vm1444_vm2 = vcmask 1043456   ;;  %vm1428_vm3 = vcmask 64512  }
  0xcd   : > { %v1154_v31 = vsub.s32 0, %v5808_v30  ;;  %v1158_v33 = vsub.s32 1, %v5808_v30  ;;  %s5315_s13 = smov 80   ;;  %s5316_s18 = smov 64   ;;  %v1162_v46 = vsub.s32 2, %v5808_v30  ;;  %vm2290_vm4 = vcmask 261120  }
  0xce   : > { %1300 = vmatpush1.bf16.msra.mxu0 %v4980_v8  ;;  %s5317_s17 = smov 48   ;;  %s5318_s24 = smov 32   ;;  %vm2292_vm5 = vcmask 392192   ;;  %vm2294_vm6 = vcmask 523264   ;;  %vm2296_vm7 = vcmask 654336   ;;  %vm2298_vm8 = vcmask 785408  }
  0xcf   : > { %1301 = vmatprep.subr.bf16.mxu0 %v4981_v9  ;;  %4597 = vmatpush3.bf16.msra.mxu1 %v4998_v17  ;;  %v1155_v34 = vrot.slane %v1150_v32, %v1154_v31  ;;  %v1159_v35 = vrot.slane %v1150_v32, %v1158_v33  ;;  %s5319_s26 = smov 16   ;;  %v1163_v47 = vrot.slane %v1150_v32, %v1162_v46  ;;  %vm2300_vm9 = vcmask 916480   ;;  %s6445_s23 = sld [smem:[#allocation25_spill]] }
  0xd0   : > { %4598 = vmatprep.subr.bf16.mxu1 %v5311_v4  ;;  %s6447_s28 = sld [smem:[#allocation21_spill]]  ;;  %s6448_s7 = sld [smem:[#allocation26_spill]]  ;;  %vm2770_vm10 = vcmask 1040384   ;;  %vm2754_vm11 = vcmask 15360  }
  0xd1   : > { %s6453_s16 = sld [smem:[#allocation17_spill]]  ;;  %p4463_p5 = scmp.ne.s32.totalorder %s5464_s6, 3 }
  0xd2   : > { %1302 = vmatpush1.bf16.msra.mxu0 %v4983_v10  ;;  %s6464_s6 = sld [smem:[#allocation41_spill]] (!%p4463_p5) }
  0xd3   : > { %1303 = vmatprep.subr.bf16.mxu0 %v4984_v12  ;;  %4599 = vmatpush3.bf16.msra.mxu1 %v4999_v19 }
  0xd4   : > { %4600 = vmatprep.subr.bf16.mxu1 %v5311_v4 }
  0xd5   : > { %s6446_s27 = scalar_lea.vmem %s6445_s23, %s5683_s0 }
  0xd6   : > { %1304 = vmatpush1.bf16.msra.mxu0 %v4986_v14  ;;  %s6449_s15 = scalar_lea.vmem %s6448_s7, %s5683_s0 }
  0xd7   : > { %1305 = vmatprep.subr.bf16.mxu0 %v4987_v15  ;;  %4601 = vmatpush3.bf16.msra.mxu1 %v5000_v22 }
  0xd8   : > { %4602 = vmatprep.subr.bf16.mxu1 %v5311_v4 }
  0xda   : > { %1306 = vmatpush1.bf16.msra.mxu0 %v4989_v16 }
  0xdb   : > { %1307 = vmatprep.subr.bf16.mxu0 %v4990_v18  ;;  %4603 = vmatpush3.bf16.msra.mxu1 %v5001_v25 }
  0xdc   : > { %4604 = vmatprep.subr.bf16.mxu1 %v5311_v4 }
  0xde   : > { %1308 = vmatpush1.bf16.msra.mxu0 %v4992_v20 }
  0xdf   : > { %1309 = vmatprep.subr.bf16.mxu0 %v4993_v21  ;;  %4605 = vmatpush3.bf16.msra.mxu1 %v5002_v27 }
  0xe0   : > { %4606 = vmatprep.subr.bf16.mxu1 %v5311_v4 }
  0xe2   : > { %1310 = vmatpush1.bf16.msra.mxu0 %v4995_v23 }
  0xe3   : > { %4636 = vmatprep.subr.bf16.mxu0 %v5311_v4  ;;  %4607 = vmatpush3.bf16.msra.mxu1 %v5003_v28 }
  0xe4   : > { %4612 = vmatprep.subr.bf16.mxu1 %v5311_v4 }
  0xe5   : > { %1328 = vmatmul.mubr.bf16.vlgmr.msra.gmra.mrb[0].mxu0 %v1149_v26 }
  0xe6   : > { %4638 = vmatprep.mubr.msk.bf16.mxu0 %vm5312_vm0, %v5311_v4  ;;  %4609 = vmatmul.mubr.bf16.vlgmr.msra.gmra.mrb[0].mxu1 %v1149_v26 }
  0xe7   : > { %4614 = vmatprep.mubr.msk.bf16.mxu1 %vm5312_vm0, %v5311_v4 }
 0x1b8   : > { %v1329_v36 = vpop.f32.mrb[0].mxu0 }
 0x1b9   : > { %v1330_v37 = vadd.f32 %v1329_v36, %v1155_v34  ;;  %v1331_v38 = vpop.f32.mrb[1].mxu0  ;;  %v1370_v48 = vpop.f32.mrb[0].mxu1 }
 0x1ba   : > { %v1332_v39 = vadd.f32 %v1331_v38, %v1159_v35  ;;  %v1333_v40 = vpop.f32.mrb[2].mxu0  ;;  %v1371_v49 = vadd.f32 %v1370_v48, %v1163_v47  ;;  %v4610_v50 = vpop.f32.mrb[1].mxu1 }
 0x1bb   : > { %v1334_v41 = vpop.f32.mrb[3].mxu0  ;;  %v1377_v42 = vmul.f32 0.25, %v1330_v37  ;;  %v1373_v51 = vpop.f32.mrb[2].mxu1 }
 0x1bc   : > { %v1379_v43 = vpack.c.bf16 %v1332_v39, %v1332_v39  ;;  %v5833_v52 = vpack.c.bf16 %v1371_v49, %v1371_v49  ;;  %v4611_v53 = vpop.f32.mrb[3].mxu1 }
 0x1bd   : > { %v1378_v45 = vpack.c.bf16 %v1377_v42, %v1377_v42 }
 0x1be   : > { %1492 = vrot.lane.b32.xlu1 %v1379_v43, %s5313_s10  ;;  %v1386_v44 = vsel %vm1381_vm1, %v1379_v43, 0  ;;  %v1446_v54 = vsel %vm1444_vm2, %v5833_v52, 0 }
 0x1bf   : > { %4613 = vmatpush3.bf16.xpose.msra.mxu1 %v1386_v44 }
 0x1c0   : > { %4618 = vmatprep.subr.bf16.mxu1 %v5311_v4 }
 0x1c2   : > { %1489 = vrot.lane.b32.xlu1 %v1378_v45, %s5313_s10 }
 0x1c6   : > { %1601 = vrot.lane.b32.xlu1 %v1378_v45, %s5314_s11  ;;  %4615 = vmatmul.mubr.msk.bf16.vlgmr.msra.gmra.mrb[4].mxu1 %vm1381_vm1, %v1378_v45 }
 0x1c7   : > { %4620 = vmatprep.mubr.msk.bf16.mxu1 %vm5312_vm0, %v5311_v4  ;;  %4619 = vmatpush3.bf16.msra.mxu1 %v1446_v54 }
 0x1c8   : > { %4624 = vmatprep.subr.bf16.mxu1 %v5311_v4 }
 0x1ca   : > { %1713 = vrot.lane.b32.xlu1 %v1379_v43, %s5315_s13 }
 0x1ce   : > { %1711 = vrot.lane.b32.xlu1 %v1378_v45, %s5315_s13 }
 0x1d2   : > { %1823 = vrot.lane.b32.xlu1 %v1379_v43, %s5316_s18 }
 0x1d6   : > { %1821 = vrot.lane.b32.xlu1 %v1378_v45, %s5316_s18 }
 0x1da   : > { %1933 = vrot.lane.b32.xlu1 %v1379_v43, %s5317_s17 }
 0x1de   : > { %2043 = vrot.lane.b32.xlu1 %v1379_v43, %s5318_s24 }
 0x1e2   : > { %2153 = vrot.lane.b32.xlu1 %v1379_v43, %s5319_s26 }
 0x230   : > { %v1493_v1 = vpop.permute.xlu1 %1492 }
 0x231   : > { %v1498_v16 = vsel %vm1381_vm1, %v1493_v1, 0 }
 0x234   : > { %v1490_v2 = vpop.permute.xlu1 %1489 }
 0x238   : > { %v1602_v5 = vpop.permute.xlu1 %1601 }
 0x23c   : > { %v1714_v7 = vpop.permute.xlu1 %1713 }
 0x23d   : > { %v1719_v13 = vsel %vm1381_vm1, %v1714_v7, 0 }
 0x240   : > { %v1712_v10 = vpop.permute.xlu1 %1711 }
 0x244   : > { %v1824_v14 = vpop.permute.xlu1 %1823 }
 0x245   : > { %v1829_v18 = vsel %vm1381_vm1, %v1824_v14, 0 }
 0x248   : > { %v1822_v17 = vpop.permute.xlu1 %1821 }
 0x24c   : > { %v1934_v19 = vpop.permute.xlu1 %1933 }
 0x24d   : > { %v1939_v20 = vsel %vm1381_vm1, %v1934_v19, 0 }
 0x250   : > { %v2044_v21 = vpop.permute.xlu1 %2043 }
 0x251   : > { %v2049_v23 = vsel %vm1381_vm1, %v2044_v21, 0 }
 0x254   : > { %v2154_v25 = vpop.permute.xlu1 %2153 }
 0x255   : > { %v2159_v27 = vsel %vm1381_vm1, %v2154_v25, 0 }
 0x299   : > { %v1422_v55 = vpop.f32.mrb[4].mxu1 }
 0x29a   : > { %v4616_v56 = vpop.f32.mrb[5].mxu1  ;;  %v1429_v57 = vsel %vm1428_vm3, %v1422_v55, -inf }
 0x29b   : > { %1430 = vmax.xlane.f32.xlu0 %v1429_v57  ;;  %v1425_v58 = vpop.f32.mrb[6].mxu1 }
 0x29c   : > { %v4617_v59 = vpop.f32.mrb[7].mxu1 }
 0x328   : > { %v1431_v60 = vpop.xlane.xlu0 %1430 }
 0x329   : > { %v1432_v61 = vsub.f32 %v1422_v55, %v1431_v60 }
 0x32b   : > { %v1433_v62 = vmul.f32 1.442695, %v1432_v61 }
 0x32d   : > { %5068 = vpow2.f32 %v1433_v62 }
 0x337   : > { %v5069_v63 = vpop.eup %5068 }
 0x338   : > { %v1435_v0 = vsel %vm1428_vm3, %v5069_v63, 0.0 }
 0x339   : > { %1436 = vadd.xlane.f32.xlu0 %v1435_v0 }
 0x34f   : > { %1603 = vrot.lane.b32.xlu0 %v1379_v43, %s5314_s11 }
 0x353   : > { %1931 = vrot.lane.b32.xlu0 %v1378_v45, %s5317_s17 }
 0x357   : > { %2041 = vrot.lane.b32.xlu0 %v1378_v45, %s5318_s24 }
 0x35b   : > { %2151 = vrot.lane.b32.xlu0 %v1378_v45, %s5319_s26 }
 0x3c6   : > { %v1437_v6 = vpop.xlane.xlu0 %1436 }
 0x3c7   : > { %5070 = vrcp.f32 %v1437_v6 }
 0x3ca   : > { %v1604_v8 = vpop.permute.xlu0 %1603 }
 0x3cb   : > { %v1609_v9 = vsel %vm1381_vm1, %v1604_v8, 0 }
 0x3cc   : > { %4637 = vmatpush3.bf16.xpose.msra.mxu0 %v1609_v9 }
 0x3cd   : > { %4648 = vmatprep.subr.bf16.mxu0 %v5311_v4 }
 0x3ce   : > { %v1932_v22 = vpop.permute.xlu0 %1931 }
 0x3d1   : > { %v5071_v11 = vpop.eup %5070 }
 0x3d2   : > { %v1439_v12 = vmul.f32 %v5071_v11, %v5069_v63  ;;  %v2042_v26 = vpop.permute.xlu0 %2041 }
 0x3d3   : > { %4639 = vmatmul.mubr.msk.bf16.vlgmr.msra.gmra.mrb[4].mxu0 %vm1381_vm1, %v1602_v5 }
 0x3d4   : > { %4649 = vmatpush3.bf16.xpose.msra.mxu0 %v1719_v13  ;;  %v1440_v15 = vpack.c.bf16 %v1439_v12, %v1439_v12  ;;  %4650 = vmatprep.mubr.msk.bf16.mxu0 %vm5312_vm0, %v5311_v4 }
 0x3d5   : > { %4660 = vmatprep.subr.bf16.mxu0 %v5311_v4 }
 0x3d6   : > { %4621 = vmatmul.mubr.msk.bf16.vlgmr.msra.gmra.mrb[8].mxu1 %vm1428_vm3, %v1440_v15  ;;  %v2152_v28 = vpop.permute.xlu0 %2151 }
 0x3d7   : > { %4625 = vmatpush3.bf16.xpose.msra.mxu1 %v1498_v16  ;;  %4626 = vmatprep.mubr.msk.bf16.mxu1 %vm5312_vm0, %v5311_v4 }
 0x3d8   : > { %4630 = vmatprep.subr.bf16.mxu1 %v5311_v4 }
 0x3db   : > { %4651 = vmatmul.mubr.msk.bf16.vlgmr.msra.gmra.mrb[8].mxu0 %vm1381_vm1, %v1712_v10 }
 0x3dc   : > { %4661 = vmatpush3.bf16.xpose.msra.mxu0 %v1829_v18  ;;  %4662 = vmatprep.mubr.msk.bf16.mxu0 %vm5312_vm0, %v5311_v4 }
 0x3dd   : > { %4672 = vmatprep.subr.bf16.mxu0 %v5311_v4 }
 0x3de   : > { %4627 = vmatmul.mubr.msk.bf16.vlgmr.msra.gmra.mrb[12].mxu1 %vm1381_vm1, %v1490_v2 }
 0x3df   : > { %4632 = vmatprep.mubr.msk.bf16.mxu1 %vm5312_vm0, %v5311_v4 }
 0x3e3   : > { %4663 = vmatmul.mubr.msk.bf16.vlgmr.msra.gmra.mrb[12].mxu0 %vm1381_vm1, %v1822_v17 }
 0x3e4   : > { %4673 = vmatpush3.bf16.xpose.msra.mxu0 %v1939_v20  ;;  %4674 = vmatprep.mubr.msk.bf16.mxu0 %vm5312_vm0, %v5311_v4 }
 0x3e5   : > { %4684 = vmatprep.subr.bf16.mxu0 %v5311_v4 }
 0x3eb   : > { %4675 = vmatmul.mubr.msk.bf16.vlgmr.msra.gmra.mrb[16].mxu0 %vm1381_vm1, %v1932_v22 }
 0x3ec   : > { %4685 = vmatpush3.bf16.xpose.msra.mxu0 %v2049_v23  ;;  %4686 = vmatprep.mubr.msk.bf16.mxu0 %vm5312_vm0, %v5311_v4 }
 0x3ed   : > { %4696 = vmatprep.subr.bf16.mxu0 %v5311_v4 }
 0x3f3   : > { %4687 = vmatmul.mubr.msk.bf16.vlgmr.msra.gmra.mrb[20].mxu0 %vm1381_vm1, %v2042_v26 }
 0x3f4   : > { %4697 = vmatpush3.bf16.xpose.msra.mxu0 %v2159_v27  ;;  %4698 = vmatprep.mubr.msk.bf16.mxu0 %vm5312_vm0, %v5311_v4 }
 0x3f5   : > { %4708 = vmatprep.subr.bf16.mxu0 %v5311_v4 }
 0x3fb   : > { %4699 = vmatmul.mubr.msk.bf16.vlgmr.msra.gmra.mrb[24].mxu0 %vm1381_vm1, %v2152_v28 }
 0x3fc   : > { %4724 = vmatprep.mubr.msk.bf16.mxu0 %vm5312_vm0, %v5311_v4 }
 0x4a6   : > { %v1645_v29 = vpop.f32.mrb[4].mxu0 }
 0x4a7   : > { %v4640_v32 = vpop.f32.mrb[5].mxu0  ;;  %v1651_v34 = vsel %vm1428_vm3, %v1645_v29, -inf }
 0x4a8   : > { %1652 = vmax.xlane.f32.xlu0 %v1651_v34  ;;  %v1648_v35 = vpop.f32.mrb[6].mxu0 }
 0x4a9   : > { %v5883_v36 = vpop.f32.mrb[8].mxu1  ;;  %v4641_v37 = vpop.f32.mrb[7].mxu0 }
 0x4aa   : > { %v4622_v38 = vpop.f32.mrb[9].mxu1 }
 0x4ab   : > { %v1485_v39 = vpop.f32.mrb[10].mxu1 }
 0x4ac   : > { %v4623_v40 = vpop.f32.mrb[11].mxu1 }
 0x4ae   : > { %v1755_v41 = vpop.f32.mrb[8].mxu0 }
 0x4af   : > { %v4652_v42 = vpop.f32.mrb[9].mxu0  ;;  %v1761_v43 = vsel %vm1428_vm3, %v1755_v41, -inf }
 0x4b0   : > { %1762 = vmax.xlane.f32.xlu0 %v1761_v43  ;;  %v1758_v44 = vpop.f32.mrb[10].mxu0 }
 0x4b1   : > { %v1534_v45 = vpop.f32.mrb[12].mxu1  ;;  %v4653_v46 = vpop.f32.mrb[11].mxu0 }
 0x4b2   : > { %v4628_v47 = vpop.f32.mrb[13].mxu1  ;;  %v1540_v48 = vsel %vm1428_vm3, %v1534_v45, -inf }
 0x4b3   : > { %1541 = vmax.xlane.f32.xlu1 %v1540_v48  ;;  %v1537_v49 = vpop.f32.mrb[14].mxu1 }
 0x4b4   : > { %v4629_v50 = vpop.f32.mrb[15].mxu1 }
 0x4b6   : > { %v1865_v51 = vpop.f32.mrb[12].mxu0 }
 0x4b7   : > { %v4664_v53 = vpop.f32.mrb[13].mxu0  ;;  %v1871_v54 = vsel %vm1428_vm3, %v1865_v51, -inf }
 0x4b8   : > { %v1868_v55 = vpop.f32.mrb[14].mxu0  ;;  %1872 = vmax.xlane.f32.xlu1 %v1871_v54 }
 0x4b9   : > { %v4665_v56 = vpop.f32.mrb[15].mxu0 }
 0x4be   : > { %v1975_v57 = vpop.f32.mrb[16].mxu0 }
 0x4bf   : > { %v4676_v58 = vpop.f32.mrb[17].mxu0  ;;  %v1981_v59 = vsel %vm1428_vm3, %v1975_v57, -inf }
 0x4c0   : > { %1982 = vmax.xlane.f32.xlu0 %v1981_v59  ;;  %v1978_v60 = vpop.f32.mrb[18].mxu0 }
 0x4c1   : > { %v4677_v61 = vpop.f32.mrb[19].mxu0 }
 0x4c6   : > { %v2085_v62 = vpop.f32.mrb[20].mxu0 }
 0x4c7   : > { %v4688_v63 = vpop.f32.mrb[21].mxu0  ;;  %v2091_v0 = vsel %vm1428_vm3, %v2085_v62, -inf }
 0x4c8   : > { %v2088_v1 = vpop.f32.mrb[22].mxu0  ;;  %2092 = vmax.xlane.f32.xlu1 %v2091_v0 }
 0x4c9   : > { %v4689_v2 = vpop.f32.mrb[23].mxu0 }
 0x4ce   : > { %v2195_v5 = vpop.f32.mrb[24].mxu0 }
 0x4cf   : > { %v4700_v6 = vpop.f32.mrb[25].mxu0  ;;  %v2201_v7 = vsel %vm1428_vm3, %v2195_v5, -inf }
 0x4d0   : > { %2202 = vmax.xlane.f32.xlu0 %v2201_v7  ;;  %v2198_v8 = vpop.f32.mrb[26].mxu0 }
 0x4d1   : > { %v4701_v9 = vpop.f32.mrb[27].mxu0 }
 0x535   : > { %v1653_v10 = vpop.xlane.xlu0 %1652 }
 0x536   : > { %v1654_v11 = vsub.f32 %v1645_v29, %v1653_v10 }
 0x538   : > { %v1655_v12 = vmul.f32 1.442695, %v1654_v11 }
 0x53a   : > { %5072 = vpow2.f32 %v1655_v12 }
 0x53d   : > { %v1763_v13 = vpop.xlane.xlu0 %1762 }
 0x53e   : > { %v1764_v14 = vsub.f32 %v1755_v41, %v1763_v13 }
 0x540   : > { %v1765_v15 = vmul.f32 1.442695, %v1764_v14  ;;  %v1542_v16 = vpop.xlane.xlu1 %1541 }
 0x541   : > { %v1543_v17 = vsub.f32 %v1534_v45, %v1542_v16 }
 0x542   : > { %5074 = vpow2.f32 %v1765_v15 }
 0x543   : > { %v1544_v18 = vmul.f32 1.442695, %v1543_v17 }
 0x544   : > { %v5891_v19 = vpop.eup %5072 }
 0x545   : > { %5076 = vpow2.f32 %v1544_v18  ;;  %v1873_v20 = vpop.xlane.xlu1 %1872  ;;  %v1657_v21 = vsel %vm1428_vm3, %v5891_v19, 0.0 }
 0x546   : > { %v1874_v22 = vsub.f32 %v1865_v51, %v1873_v20  ;;  %1658 = vadd.xlane.f32.xlu0 %v1657_v21 }
 0x548   : > { %v1875_v23 = vmul.f32 1.442695, %v1874_v22 }
 0x54a   : > { %5078 = vpow2.f32 %v1875_v23 }
 0x54c   : > { %v5895_v25 = vpop.eup %5074 }
 0x54d   : > { %v1983_v26 = vpop.xlane.xlu0 %1982  ;;  %v1767_v27 = vsel %vm1428_vm3, %v5895_v25, 0.0 }
 0x54e   : > { %v1984_v28 = vsub.f32 %v1975_v57, %v1983_v26  ;;  %1768 = vadd.xlane.f32.xlu1 %v1767_v27 }
 0x54f   : > { %v5077_v29 = vpop.eup %5076 }
 0x550   : > { %v1985_v32 = vmul.f32 1.442695, %v1984_v28  ;;  %v1546_v34 = vsel %vm1428_vm3, %v5077_v29, 0.0 }
 0x552   : > { %5080 = vpow2.f32 %v1985_v32  ;;  %1547 = vadd.xlane.f32.xlu1 %v1546_v34 }
 0x554   : > { %v5900_v35 = vpop.eup %5078 }
 0x555   : > { %v1877_v37 = vsel %vm1428_vm3, %v5900_v35, 0.0  ;;  %v2093_v40 = vpop.xlane.xlu1 %2092 }
 0x556   : > { %1878 = vadd.xlane.f32.xlu0 %v1877_v37  ;;  %v2094_v41 = vsub.f32 %v2085_v62, %v2093_v40 }
 0x558   : > { %v2095_v42 = vmul.f32 1.442695, %v2094_v41 }
 0x55a   : > { %5082 = vpow2.f32 %v2095_v42 }
 0x55c   : > { %v5904_v38 = vpop.eup %5080 }
 0x55d   : > { %v1987_v39 = vsel %vm1428_vm3, %v5904_v38, 0.0  ;;  %v2203_v43 = vpop.xlane.xlu0 %2202 }
 0x55e   : > { %1988 = vadd.xlane.f32.xlu0 %v1987_v39  ;;  %v2204_v44 = vsub.f32 %v2195_v5, %v2203_v43 }
 0x560   : > { %v2205_v46 = vmul.f32 1.442695, %v2204_v44 }
 0x562   : > { %5084 = vpow2.f32 %v2205_v46 }
 0x563   : > { %1553 = vrot.lane.b32.xlu1 %v5833_v52, %s5313_s10 }
 0x564   : > { %v5914_v45 = vpop.eup %5082 }
 0x565   : > { %v2097_v47 = vsel %vm1428_vm3, %v5914_v45, 0.0 }
 0x56c   : > { %v5918_v48 = vpop.eup %5084 }
 0x56d   : > { %v2207_v49 = vsel %vm1428_vm3, %v5918_v48, 0.0 }
 0x574   : > { %1663 = vrot.lane.b32.xlu0 %v5833_v52, %s5314_s11 }
 0x578   : > { %1773 = vrot.lane.b32.xlu0 %v5833_v52, %s5315_s13 }
 0x587   : > { %2098 = vadd.xlane.f32.xlu1 %v2097_v47  ;;  %v5004_v47 = vld [vmem:[%s5691_s22] sm:$0xff]  }
 0x588   : > { %4709 = vmatpush3.bf16.msra.mxu0 %v5004_v47 }
 0x589   : > { %4710 = vmatprep.subr.bf16.mxu0 %v5311_v4 }
 0x597   : > { %2208 = vadd.xlane.f32.xlu0 %v2207_v49  ;;  %v5006_v49 = vld [vmem:[%s5691_s22 + $0x10] sm:$0xff]  }
 0x598   : > { %1883 = vrot.lane.b32.xlu1 %v5833_v52, %s5316_s18 }
 0x59c   : > { %2103 = vrot.lane.b32.xlu1 %v5833_v52, %s5318_s24 }
 0x5a0   : > { %2213 = vrot.lane.b32.xlu1 %v5833_v52, %s5319_s26 }
 0x5ad   : > { %1993 = vrot.lane.b32.xlu0 %v5833_v52, %s5317_s17 }
 0x5d3   : > { %v1659_v53 = vpop.xlane.xlu0 %1658 }
 0x5db   : > { %v1769_v50 = vpop.xlane.xlu1 %1768 }
 0x5df   : > { %v1548_v51 = vpop.xlane.xlu1 %1547 }
 0x5e0   : > { %5086 = vrcp.f32 %v1548_v51 }
 0x5e1   : > { %5088 = vrcp.f32 %v1659_v53 }
 0x5e2   : > { %5090 = vrcp.f32 %v1769_v50 }
 0x5e3   : > { %v1554_v54 = vpop.permute.xlu1 %1553  ;;  %v1879_v56 = vpop.xlane.xlu0 %1878 }
 0x5e4   : > { %v1559_v55 = vsel %vm1444_vm2, %v1554_v54, 0  ;;  %5092 = vrcp.f32 %v1879_v56  ;;  %v5008_v56 = vld [vmem:[%s5691_s22 + $0x20] sm:$0xff]  }
 0x5e5   : > { %4631 = vmatpush3.bf16.msra.mxu1 %v1559_v55  ;;  %v5007_v55 = vld [vmem:[%s5691_s22 + $0x18] sm:$0xff]  }
 0x5e6   : > { %4642 = vmatprep.subr.bf16.mxu1 %v5311_v4 }
 0x5ea   : > { %v5087_v57 = vpop.eup %5086 }
 0x5eb   : > { %v1550_v58 = vmul.f32 %v5087_v57, %v5077_v29  ;;  %v1989_v59 = vpop.xlane.xlu0 %1988  ;;  %v5089_v61 = vpop.eup %5088  ;;  %v5009_v57 = vld [vmem:[%s5691_s22 + $0x28] sm:$0xff]  }
 0x5ec   : > { %v1661_v63 = vmul.f32 %v5089_v61, %v5891_v19  ;;  %v5091_v2 = vpop.eup %5090  ;;  %5094 = vrcp.f32 %v1989_v59 }
 0x5ed   : > { %v1551_v60 = vpack.c.bf16 %v1550_v58, %v1550_v58  ;;  %v1771_v6 = vmul.f32 %v5091_v2, %v5895_v25  ;;  %v5010_v58 = vld [vmem:[%s5691_s22 + $0x30] sm:$0xff]  }
 0x5ee   : > { %v1662_v1 = vpack.c.bf16 %v1661_v63, %v1661_v63  ;;  %v5093_v8 = vpop.eup %5092 }
 0x5ef   : > { %v1664_v62 = vpop.permute.xlu0 %1663  ;;  %4633 = vmatmul.mubr.msk.bf16.vlgmr.msra.gmra.mrb[16].mxu1 %vm1428_vm3, %v1551_v60  ;;  %v1772_v7 = vpack.c.bf16 %v1771_v6, %v1771_v6  ;;  %v1881_v10 = vmul.f32 %v5093_v8, %v5900_v35 }
 0x5f0   : > { %v1669_v52 = vsel %vm1444_vm2, %v1664_v62, 0  ;;  %4644 = vmatprep.mubr.msk.bf16.mxu1 %vm5312_vm0, %v5311_v4 }
 0x5f1   : > { %4643 = vmatpush3.bf16.msra.mxu1 %v1669_v52  ;;  %v1882_v13 = vpack.c.bf16 %v1881_v10, %v1881_v10  ;;  %v5011_v52 = vld [vmem:[%s5691_s22 + $0x38] sm:$0xff]  }
 0x5f2   : > { %4654 = vmatprep.subr.bf16.mxu1 %v5311_v4 }
 0x5f3   : > { %v1774_v0 = vpop.permute.xlu0 %1773 }
 0x5f4   : > { %v1779_v5 = vsel %vm1444_vm2, %v1774_v0, 0 }
 0x5f6   : > { %v5095_v14 = vpop.eup %5094 }
 0x5f7   : > { %4645 = vmatmul.mubr.msk.bf16.vlgmr.msra.gmra.mrb[20].mxu1 %vm1428_vm3, %v1662_v1  ;;  %v1991_v16 = vmul.f32 %v5095_v14, %v5904_v38 }
 0x5f8   : > { %4655 = vmatpush3.bf16.msra.mxu1 %v1779_v5  ;;  %4656 = vmatprep.mubr.msk.bf16.mxu1 %vm5312_vm0, %v5311_v4 }
 0x5f9   : > { %4666 = vmatprep.subr.bf16.mxu1 %v5311_v4  ;;  %v1992_v20 = vpack.c.bf16 %v1991_v16, %v1991_v16 }
 0x5ff   : > { %4657 = vmatmul.mubr.msk.bf16.vlgmr.msra.gmra.mrb[24].mxu1 %vm1428_vm3, %v1772_v7 }
 0x600   : > { %4668 = vmatprep.mubr.msk.bf16.mxu1 %vm5312_vm0, %v5311_v4 }
 0x614   : > { %v2099_v9 = vpop.xlane.xlu1 %2098 }
 0x615   : > { %5096 = vrcp.f32 %v2099_v9 }
 0x618   : > { %v1884_v11 = vpop.permute.xlu1 %1883 }
 0x619   : > { %v1889_v12 = vsel %vm1444_vm2, %v1884_v11, 0 }
 0x61a   : > { %4667 = vmatpush3.bf16.msra.mxu1 %v1889_v12 }
 0x61b   : > { %4678 = vmatprep.subr.bf16.mxu1 %v5311_v4 }
 0x61c   : > { %v2104_v19 = vpop.permute.xlu1 %2103 }
 0x61d   : > { %4669 = vmatmul.mubr.msk.bf16.vlgmr.msra.gmra.mrb[28].mxu1 %vm1428_vm3, %v1882_v13  ;;  %v2109_v22 = vsel %vm1444_vm2, %v2104_v19, 0 }
 0x61e   : > { %4680 = vmatprep.mubr.msk.bf16.mxu1 %vm5312_vm0, %v5311_v4 }
 0x61f   : > { %v5097_v21 = vpop.eup %5096 }
 0x620   : > { %v2101_v23 = vmul.f32 %v5097_v21, %v5914_v45  ;;  %v2214_v25 = vpop.permute.xlu1 %2213 }
 0x621   : > { %v2219_v28 = vsel %vm1444_vm2, %v2214_v25, 0 }
 0x622   : > { %v2102_v26 = vpack.c.bf16 %v2101_v23, %v2101_v23  ;;  %v4380_v23 = vld [vmem:[%s6446_s27] ss:$0 sm:$0xff] }
 0x624   : > { %v2209_v15 = vpop.xlane.xlu0 %2208 }
 0x625   : > { %5098 = vrcp.f32 %v2209_v15 }
 0x628   : > { %v1994_v17 = vpop.permute.xlu0 %1993 }
 0x629   : > { %v1999_v18 = vsel %vm1444_vm2, %v1994_v17, 0 }
 0x62a   : > { %4679 = vmatpush3.bf16.msra.mxu1 %v1999_v18 }
 0x62b   : > { %4690 = vmatprep.subr.bf16.mxu1 %v5311_v4 }
 0x62d   : > { %4681 = vmatmul.mubr.msk.bf16.vlgmr.msra.gmra.mrb[32].mxu1 %vm1428_vm3, %v1992_v20 }
 0x62e   : > { %4691 = vmatpush3.bf16.msra.mxu1 %v2109_v22  ;;  %4692 = vmatprep.mubr.msk.bf16.mxu1 %vm5312_vm0, %v5311_v4 }
 0x62f   : > { %4702 = vmatprep.subr.bf16.mxu1 %v5311_v4  ;;  %v5099_v27 = vpop.eup %5098 }
 0x630   : > { %v2211_v29 = vmul.f32 %v5099_v27, %v5918_v48  ;;  %v5005_v48 = vld [vmem:[%s5691_s22 + $0x8] sm:$0xff]  }
 0x631   : > { %4711 = vmatpush3.bf16.msra.mxu0 %v5005_v48 }
 0x632   : > { %v2212_v32 = vpack.c.bf16 %v2211_v29, %v2211_v29  ;;  %4712 = vmatprep.subr.bf16.mxu0 %v5311_v4 }
 0x635   : > { %4693 = vmatmul.mubr.msk.bf16.vlgmr.msra.gmra.mrb[36].mxu1 %vm1428_vm3, %v2102_v26  ;;  %4713 = vmatpush3.bf16.msra.mxu0 %v5006_v49  ;;  %v5029_v49 = vld [vmem:[%s5660_s20 + $0x10] sm:$0xff]  }
 0x636   : > { %4703 = vmatpush3.bf16.msra.mxu1 %v2219_v28  ;;  %4704 = vmatprep.mubr.msk.bf16.mxu1 %vm5312_vm0, %v5311_v4 }
 0x637   : > { %4728 = vmatprep.subr.bf16.mxu1 %v5311_v4  ;;  %4714 = vmatprep.subr.bf16.mxu0 %v5311_v4 }
 0x639   : > { %4715 = vmatpush3.bf16.msra.mxu0 %v5007_v55  ;;  %v5034_v55 = vld [vmem:[%s5724_s4 + $0x60] ss:$8 sps:$4 sm:$0xff]  }
 0x63a   : > { %4716 = vmatprep.subr.bf16.mxu0 %v5311_v4 }
 0x63d   : > { %4705 = vmatmul.mubr.msk.bf16.vlgmr.msra.gmra.mrb[40].mxu1 %vm1428_vm3, %v2212_v32  ;;  %4717 = vmatpush3.bf16.msra.mxu0 %v5008_v56  ;;  %v5037_v56 = vld [vmem:[%s5660_s20 + $0x20] sm:$0xff]  }
 0x63e   : > { %4744 = vmatprep.mubr.msk.bf16.mxu1 %vm5312_vm0, %v5311_v4  ;;  %4718 = vmatprep.subr.bf16.mxu0 %v5311_v4 }
 0x641   : > { %4719 = vmatpush3.bf16.msra.mxu0 %v5009_v57  ;;  %v5040_v57 = vld [vmem:[%s5724_s4 + $0x74] ss:$8 sps:$4 sm:$0xff]  }
 0x642   : > { %4720 = vmatprep.subr.bf16.mxu0 %v5311_v4 }
 0x645   : > { %4721 = vmatpush3.bf16.msra.mxu0 %v5010_v58  ;;  %v5038_v58 = vld [vmem:[%s5724_s4 + $0x70] ss:$8 sps:$4 sm:$0xff]  }
 0x646   : > { %4722 = vmatprep.subr.bf16.mxu0 %v5311_v4 }
 0x649   : > { %4723 = vmatpush3.bf16.msra.mxu0 %v5011_v52 }
 0x6c2   : > { %v1595_v34 = vpop.f32.mrb[16].mxu1 }
 0x6c3   : > { %2262 = vrot.lane.b32.xlu1 %v1595_v34, %s5319_s26  ;;  %v4634_v35 = vpop.f32.mrb[17].mxu1  ;;  %v5012_v34 = vld [vmem:[%s5724_s4] ss:$8 sps:$4 sm:$0xff]  }
 0x6c4   : > { %v1598_v37 = vpop.f32.mrb[18].mxu1  ;;  %v5014_v35 = vld [vmem:[%s5724_s4 + $0x4] ss:$8 sps:$4 sm:$0xff]  }
 0x6c5   : > { %v4635_v38 = vpop.f32.mrb[19].mxu1  ;;  %2662 = vmatprep.subr.bf16.mxu0 %v5014_v35  ;;  %v5021_v37 = vld [vmem:[%s5660_s20] sm:$0xff]  }
 0x6c6   : > { %v5015_v38 = vld [vmem:[%s5724_s4 + $0x10] ss:$8 sps:$4 sm:$0xff]   ;;  %4729 = vmatpush3.bf16.msra.mxu1 %v5021_v37 }
 0x6c7   : > { %4730 = vmatprep.subr.bf16.mxu1 %v5311_v4 }
 0x6ca   : > { %v1705_v39 = vpop.f32.mrb[20].mxu1 }
 0x6cb   : > { %2266 = vrot.lane.b32.xlu1 %v1705_v39, %s5318_s24  ;;  %v4646_v40 = vpop.f32.mrb[21].mxu1  ;;  %v5020_v39 = vld [vmem:[%s5724_s4 + $0x24] ss:$8 sps:$4 sm:$0xff]  }
 0x6cc   : > { %v1708_v41 = vpop.f32.mrb[22].mxu1  ;;  %v5025_v40 = vld [vmem:[%s5660_s20 + $0x8] sm:$0xff]  }
 0x6cd   : > { %v4647_v42 = vpop.f32.mrb[23].mxu1  ;;  %v5024_v41 = vld [vmem:[%s5724_s4 + $0x34] ss:$8 sps:$4 sm:$0xff]   ;;  %4731 = vmatpush3.bf16.msra.mxu1 %v5025_v40 }
 0x6ce   : > { %4732 = vmatprep.subr.bf16.mxu1 %v5311_v4  ;;  %v5022_v42 = vld [vmem:[%s5724_s4 + $0x30] ss:$8 sps:$4 sm:$0xff]  }
 0x6d1   : > { %4733 = vmatpush3.bf16.msra.mxu1 %v5029_v49 }
 0x6d2   : > { %v1815_v43 = vpop.f32.mrb[24].mxu1  ;;  %4734 = vmatprep.subr.bf16.mxu1 %v5311_v4 }
 0x6d3   : > { %2270 = vrot.lane.b32.xlu0 %v1815_v43, %s5317_s17  ;;  %v4658_v44 = vpop.f32.mrb[25].mxu1  ;;  %v5028_v43 = vld [vmem:[%s5724_s4 + $0x44] ss:$8 sps:$4 sm:$0xff]  }
 0x6d4   : > { %v1818_v45 = vpop.f32.mrb[26].mxu1  ;;  %v5026_v44 = vld [vmem:[%s5724_s4 + $0x40] ss:$8 sps:$4 sm:$0xff]  }
 0x6d5   : > { %v4659_v46 = vpop.f32.mrb[27].mxu1 }
 0x6f0   : > { %v1925_v50 = vpop.f32.mrb[28].mxu1 }
 0x6f1   : > { %2274 = vrot.lane.b32.xlu1 %v1925_v50, %s5316_s18  ;;  %v4670_v51 = vpop.f32.mrb[29].mxu1  ;;  %v5032_v50 = vld [vmem:[%s5724_s4 + $0x54] ss:$8 sps:$4 sm:$0xff]  }
 0x6f2   : > { %v1928_v53 = vpop.f32.mrb[30].mxu1  ;;  %v5030_v51 = vld [vmem:[%s5724_s4 + $0x50] ss:$8 sps:$4 sm:$0xff]  }
 0x6f3   : > { %v4671_v54 = vpop.f32.mrb[31].mxu1  ;;  %v5033_v53 = vld [vmem:[%s5660_s20 + $0x18] sm:$0xff]  }
 0x6f4   : > { %4735 = vmatpush3.bf16.msra.mxu1 %v5033_v53  ;;  %v5036_v54 = vld [vmem:[%s5724_s4 + $0x64] ss:$8 sps:$4 sm:$0xff]  }
 0x6f5   : > { %4736 = vmatprep.subr.bf16.mxu1 %v5311_v4 }
 0x6f8   : > { %4737 = vmatpush3.bf16.msra.mxu1 %v5037_v56 }
 0x6f9   : > { %4738 = vmatprep.subr.bf16.mxu1 %v5311_v4 }
 0x700   : > { %v2035_v59 = vpop.f32.mrb[32].mxu1 }
 0x701   : > { %2278 = vrot.lane.b32.xlu0 %v2035_v59, %s5315_s13  ;;  %v4682_v60 = vpop.f32.mrb[33].mxu1  ;;  %v5041_v59 = vld [vmem:[%s5660_s20 + $0x28] sm:$0xff]  }
 0x702   : > { %v2038_v61 = vpop.f32.mrb[34].mxu1  ;;  %4739 = vmatpush3.bf16.msra.mxu1 %v5041_v59  ;;  %v1116_v60 = vld [vmem:[%s6447_s28] sm:$0x1] }
 0x703   : > { %v4683_v62 = vpop.f32.mrb[35].mxu1  ;;  %4740 = vmatprep.subr.bf16.mxu1 %v5311_v4  ;;  %v5042_v61 = vld [vmem:[%s5660_s20 + $0x30] sm:$0xff]  }
 0x704   : > { %v5043_v62 = vld [vmem:[%s5660_s20 + $0x38] sm:$0xff]   ;;  %s6450_s20 = sld [smem:[#allocation27_spill]] }
 0x706   : > { %4741 = vmatpush3.bf16.msra.mxu1 %v5042_v61 }
 0x707   : > { %4742 = vmatprep.subr.bf16.mxu1 %v5311_v4 }
 0x708   : > { %v2145_v63 = vpop.f32.mrb[36].mxu1 }
 0x709   : > { %2282 = vrot.lane.b32.xlu1 %v2145_v63, %s5314_s11  ;;  %v4694_v0 = vpop.f32.mrb[37].mxu1 }
 0x70a   : > { %v2148_v1 = vpop.f32.mrb[38].mxu1  ;;  %4743 = vmatpush3.bf16.msra.mxu1 %v5043_v62  ;;  %s6451_s3 = scalar_lea.vmem %s6450_s20, %s5683_s0 }
 0x70b   : > { %v4695_v2 = vpop.f32.mrb[39].mxu1  ;;  %4748 = vmatprep.subr.bf16.mxu1 %v5311_v4 }
 0x70c   : > { %v4389_v2 = vld [vmem:[%s6449_s15] ss:$0 sm:$0xff] }
 0x710   : > { %v2255_v5 = vpop.f32.mrb[40].mxu1 }
 0x711   : > { %2286 = vrot.lane.b32.xlu0 %v2255_v5, %s5313_s10  ;;  %v4706_v6 = vpop.f32.mrb[41].mxu1 }
 0x712   : > { %v2258_v7 = vpop.f32.mrb[42].mxu1  ;;  %v4390_v6 = vld [vmem:[%s6451_s3] ss:$0 sm:$0xff] }
 0x713   : > { %v4707_v8 = vpop.f32.mrb[43].mxu1 }
 0x735   : > { %v2263_v9 = vpop.permute.xlu1 %2262 }
 0x736   : > { %v2289_v13 = vsel %vm1381_vm1, %v5883_v36, %v2263_v9 }
 0x73d   : > { %v2267_v10 = vpop.permute.xlu1 %2266 }
 0x73e   : > { %v2291_v14 = vsel %vm2290_vm4, %v2289_v13, %v2267_v10  ;;  %v2570_v10 = vld [vmem:[%s5729_s19] sm:$0x3]  ;;  %s6452_s19 = scalar_lea.vmem %s6356_s9, %s5683_s0 }
 0x745   : > { %v2271_v11 = vpop.permute.xlu0 %2270 }
 0x746   : > { %v2293_v16 = vsel %vm2292_vm5, %v2291_v14, %v2271_v11  ;;  %v2575_v11 = vrot.slane %v2570_v10, %v1154_v31 }
 0x763   : > { %v2275_v12 = vpop.permute.xlu1 %2274 }
 0x764   : > { %v2295_v18 = vsel %vm2294_vm6, %v2293_v16, %v2275_v12 }
 0x773   : > { %v2279_v15 = vpop.permute.xlu0 %2278 }
 0x774   : > { %v2297_v19 = vsel %vm2296_vm7, %v2295_v18, %v2279_v15 }
 0x77b   : > { %v2283_v17 = vpop.permute.xlu1 %2282 }
 0x77c   : > { %v2299_v20 = vsel %vm2298_vm8, %v2297_v19, %v2283_v17  ;;  %v2579_v19 = vrot.slane %v2570_v10, %v1158_v33 }
 0x783   : > { %v2287_v36 = vpop.permute.xlu0 %2286 }
 0x784   : > { %v2301_v21 = vsel %vm2300_vm9, %v2299_v20, %v2287_v36  ;;  %v4391_v20 = vld [vmem:[%s6452_s19] ss:$0 sm:$0xff] }
 0x785   : > { %v2302_v22 = vpack.c.bf16 %v2301_v21, %v2301_v21 }
 0x787   : > { %4725 = vmatmul.mubr.bf16.vlgmr.msra.gmra.mrb[28].mxu0 %v2302_v22 }
 0x788   : > { %2694 = vmatprep.mubr.bf16.mxu0 %v5310_v3  ;;  %v5017_v3 = vld [vmem:[%s5724_s4 + $0x14] ss:$8 sps:$4 sm:$0xff]   ;;  %2663 = vmatpush1.bf16.msra.mxu0 %v5012_v34 }
 0x789   : > { %2664 = vmatprep.subr.bf16.mxu0 %v5017_v3 }
 0x78c   : > { %2665 = vmatpush1.bf16.msra.mxu0 %v5015_v38 }
 0x78d   : > { %2666 = vmatprep.subr.bf16.mxu0 %v5020_v39 }
 0x85a   : > { %v2407_v25 = vpop.f32.mrb[28].mxu0 }
 0x85b   : > { %v2408_v26 = vadd.f32 %v4380_v23, %v2407_v25  ;;  %v4726_v27 = vpop.f32.mrb[29].mxu0 }
 0x85c   : > { %v2410_v28 = vpop.f32.mrb[30].mxu0 }
 0x85d   : > { %v4727_v29 = vpop.f32.mrb[31].mxu0  ;;  %v2413_v32 = vadd.f32 %v2408_v26, %v5789_v24  ;;  %v5018_v24 = vld [vmem:[%s5724_s4 + $0x20] ss:$8 sps:$4 sm:$0xff]  }
 0x85e   : > { %2667 = vmatpush1.bf16.msra.mxu0 %v5018_v24 }
 0x85f   : > { %2416 = vadd.xlane.f32.xlu1 %v2413_v32  ;;  %2668 = vmatprep.subr.bf16.mxu0 %v5024_v41 }
 0x862   : > { %2669 = vmatpush1.bf16.msra.mxu0 %v5022_v42 }
 0x863   : > { %2670 = vmatprep.subr.bf16.mxu0 %v5028_v43 }
 0x866   : > { %2671 = vmatpush1.bf16.msra.mxu0 %v5026_v44 }
 0x867   : > { %2672 = vmatprep.subr.bf16.mxu0 %v5032_v50 }
 0x86a   : > { %2673 = vmatpush1.bf16.msra.mxu0 %v5030_v51 }
 0x86b   : > { %2674 = vmatprep.subr.bf16.mxu0 %v5036_v54 }
 0x86e   : > { %2675 = vmatpush1.bf16.msra.mxu0 %v5034_v55 }
 0x86f   : > { %2676 = vmatprep.subr.bf16.mxu0 %v5040_v57 }
 0x872   : > { %2677 = vmatpush1.bf16.msra.mxu0 %v5038_v58 }
 0x873   : > { %4772 = vmatprep.subr.bf16.mxu0 %v5311_v4 }
 0x875   : > { %2695 = vmatmul.mubr.bf16.vlgmr.msra.gmra.mrb[32].mxu0 %v1116_v60 }
 0x876   : > { %4774 = vmatprep.mubr.msk.bf16.mxu0 %vm5312_vm0, %v5311_v4 }
 0x8ec   : > { %v2417_v45 = vpop.xlane.xlu1 %2416 }
 0x8ed   : > { %v2419_v46 = vmul.f32 0.0078125, %v2417_v45 }
 0x8ef   : > { %v2420_v47 = vsub.f32 %v2413_v32, %v2419_v46 }
 0x8f1   : > { %v2421_v48 = vmul.f32 %v2420_v47, %v2420_v47 }
 0x8f3   : > { %2422 = vadd.xlane.f32.xlu0 %v2421_v48 }
 0x948   : > { %v2696_v12 = vpop.f32.mrb[32].mxu0 }
 0x949   : > { %v2697_v13 = vadd.f32 %v2696_v12, %v2575_v11  ;;  %v2698_v14 = vpop.f32.mrb[33].mxu0 }
 0x94a   : > { %v2700_v15 = vpop.f32.mrb[34].mxu0  ;;  %v2699_v31 = vadd.f32 %v2698_v14, %v2579_v19 }
 0x94b   : > { %v2706_v16 = vpack.c.bf16 %v2697_v13, %v2697_v13  ;;  %v2701_v17 = vpop.f32.mrb[35].mxu0 }
 0x94c   : > { %v6074_v25 = vpack.c.bf16 %v2699_v31, %v2699_v31 }
 0x94d   : > { %v2712_v18 = vsel %vm1381_vm1, %v2706_v16, 0 }
 0x94e   : > { %v2772_v30 = vsel %vm2770_vm10, %v6074_v25, 0 }
 0x980   : > { %v2423_v52 = vpop.xlane.xlu0 %2422 }
 0x981   : > { %v2424_v63 = vmul.f32 0.0078125, %v2423_v52 }
 0x983   : > { %v2425_v0 = vadd.f32 1e-05, %v2424_v63 }
 0x985   : > { %5100 = vrsqrt.f32 %v2425_v0 }
 0x98f   : > { %v5101_v1 = vpop.eup %5100 }
 0x990   : > { %v2427_v5 = vmul.f32 %v5101_v1, %v2420_v47 }
 0x992   : > { %v2434_v7 = vmul.f32 %v4389_v2, %v2427_v5 }
 0x994   : > { %v6056_v8 = vadd.f32 %v4390_v6, %v2434_v7 }
 0x996   : > { %v2458_v9 = vpack.c.bf16 %v6056_v8, %v6056_v8 }
 0x998   : > { %4745 = vmatmul.mubr.bf16.vlgmr.msra.gmra.mrb[44].mxu1 %v2458_v9 }
 0x999   : > { %4750 = vmatprep.mubr.msk.bf16.mxu1 %vm5312_vm0, %v5311_v4  ;;  %4749 = vmatpush3.bf16.xpose.msra.mxu1 %v2712_v18 }
 0x99a   : > { %4754 = vmatprep.subr.bf16.mxu1 %v5311_v4 }
 0xa6b   : > { %v2548_v36 = vpop.f32.mrb[44].mxu1 }
 0xa6c   : > { %v2549_v21 = vadd.f32 %v4391_v20, %v2548_v36  ;;  %v4746_v22 = vpop.f32.mrb[45].mxu1 }
 0xa6d   : > { %v2551_v23 = vpop.f32.mrb[46].mxu1 }
 0xa6e   : > { %v2704_v26 = vmul.f32 0.25, %v2549_v21  ;;  %v4747_v27 = vpop.f32.mrb[47].mxu1 }
 0xa70   : > { %v2705_v28 = vpack.c.bf16 %v2704_v26, %v2704_v26 }
 0xa72   : > { %4751 = vmatmul.mubr.msk.bf16.vlgmr.msra.gmra.mrb[48].mxu1 %vm1381_vm1, %v2705_v28 }
 0xa73   : > { %4755 = vmatpush3.bf16.msra.mxu1 %v2772_v30  ;;  %4756 = vmatprep.mubr.msk.bf16.mxu1 %vm5312_vm0, %v5311_v4 }
 0xa74   : > { %4760 = vmatprep.subr.bf16.mxu1 %v5311_v4 }
 0xb45   : > { %v2748_v33 = vpop.f32.mrb[48].mxu1 }
 0xb46   : > { %v4752_v29 = vpop.f32.mrb[49].mxu1  ;;  %v2755_v32 = vsel %vm2754_vm11, %v2748_v33, -inf }
 0xb47   : > { %2756 = vmax.xlane.f32.xlu0 %v2755_v32  ;;  %v2751_v34 = vpop.f32.mrb[50].mxu1 }
 0xb48   : > { %v4753_v35 = vpop.f32.mrb[51].mxu1 }
 0xb5d   : > { %2818 = vrot.lane.b32.xlu0 %v2706_v16, %s5313_s10 }
 0xb61   : > { %2927 = vrot.lane.b32.xlu0 %v2705_v28, %s5314_s11 }
 0xb65   : > { %3037 = vrot.lane.b32.xlu0 %v2705_v28, %s5315_s13 }
 0xb69   : > { %3147 = vrot.lane.b32.xlu0 %v2705_v28, %s5316_s18 }
 0xb6d   : > { %3257 = vrot.lane.b32.xlu0 %v2705_v28, %s5317_s17 }
 0xb71   : > { %3367 = vrot.lane.b32.xlu0 %v2705_v28, %s5318_s24 }
 0xb75   : > { %3477 = vrot.lane.b32.xlu0 %v2705_v28, %s5319_s26 }
 0xbd4   : > { %v2757_v3 = vpop.xlane.xlu0 %2756 }
 0xbd5   : > { %v2758_v37 = vsub.f32 %v2748_v33, %v2757_v3 }
 0xbd7   : > { %v2759_v38 = vmul.f32 1.442695, %v2758_v37 }
 0xbd8   : > { %v2819_v44 = vpop.permute.xlu0 %2818 }
 0xbd9   : > { %5102 = vpow2.f32 %v2759_v38  ;;  %v2824_v49 = vsel %vm1381_vm1, %v2819_v44, 0 }
 0xbdc   : > { %v2928_v50 = vpop.permute.xlu0 %2927 }
 0xbe0   : > { %v3038_v54 = vpop.permute.xlu0 %3037 }
 0xbe3   : > { %v5103_v39 = vpop.eup %5102 }
 0xbe4   : > { %v2761_v40 = vsel %vm2754_vm11, %v5103_v39, 0.0  ;;  %v3148_v57 = vpop.permute.xlu0 %3147 }
 0xbe5   : > { %2762 = vadd.xlane.f32.xlu1 %v2761_v40 }
 0xbe8   : > { %v3258_v60 = vpop.permute.xlu0 %3257 }
 0xbec   : > { %v3368_v52 = vpop.permute.xlu0 %3367 }
 0xbf0   : > { %v3478_v0 = vpop.permute.xlu0 %3477 }
 0xbf6   : > { %2815 = vrot.lane.b32.xlu1 %v2705_v28, %s5313_s10 }
 0xbfa   : > { %2929 = vrot.lane.b32.xlu1 %v2706_v16, %s5314_s11 }
 0xbfe   : > { %3039 = vrot.lane.b32.xlu1 %v2706_v16, %s5315_s13 }
 0xc02   : > { %3149 = vrot.lane.b32.xlu1 %v2706_v16, %s5316_s18 }
 0xc06   : > { %3259 = vrot.lane.b32.xlu1 %v2706_v16, %s5317_s17 }
 0xc0a   : > { %3369 = vrot.lane.b32.xlu1 %v2706_v16, %s5318_s24 }
 0xc0e   : > { %3479 = vrot.lane.b32.xlu1 %v2706_v16, %s5319_s26 }
 0xc72   : > { %v2763_v24 = vpop.xlane.xlu1 %2762 }
 0xc73   : > { %5104 = vrcp.f32 %v2763_v24 }
 0xc76   : > { %v2816_v41 = vpop.permute.xlu1 %2815 }
 0xc7a   : > { %v2930_v42 = vpop.permute.xlu1 %2929 }
 0xc7b   : > { %v2935_v43 = vsel %vm1381_vm1, %v2930_v42, 0 }
 0xc7c   : > { %4773 = vmatpush3.bf16.xpose.msra.mxu0 %v2935_v43 }
 0xc7d   : > { %v5105_v45 = vpop.eup %5104  ;;  %4784 = vmatprep.subr.bf16.mxu0 %v5311_v4 }
 0xc7e   : > { %v2765_v46 = vmul.f32 %v5105_v45, %v5103_v39  ;;  %v3040_v47 = vpop.permute.xlu1 %3039 }
 0xc7f   : > { %v3045_v51 = vsel %vm1381_vm1, %v3040_v47, 0 }
 0xc80   : > { %v2766_v48 = vpack.c.bf16 %v2765_v46, %v2765_v46 }
 0xc82   : > { %4757 = vmatmul.mubr.msk.bf16.vlgmr.msra.gmra.mrb[52].mxu1 %vm2754_vm11, %v2766_v48  ;;  %v3150_v53 = vpop.permute.xlu1 %3149 }
 0xc83   : > { %4761 = vmatpush3.bf16.xpose.msra.mxu1 %v2824_v49  ;;  %4775 = vmatmul.mubr.msk.bf16.vlgmr.msra.gmra.mrb[36].mxu0 %vm1381_vm1, %v2928_v50  ;;  %v3155_v55 = vsel %vm1381_vm1, %v3150_v53, 0 }
 0xc84   : > { %4785 = vmatpush3.bf16.xpose.msra.mxu0 %v3045_v51  ;;  %4762 = vmatprep.mubr.msk.bf16.mxu1 %vm5312_vm0, %v5311_v4 }
 0xc85   : > { %4786 = vmatprep.mubr.msk.bf16.mxu0 %vm5312_vm0, %v5311_v4  ;;  %4796 = vmatprep.subr.bf16.mxu0 %v5311_v4 }
 0xc86   : > { %4766 = vmatprep.subr.bf16.mxu1 %v5311_v4  ;;  %v3260_v56 = vpop.permute.xlu1 %3259 }
 0xc87   : > { %v3265_v58 = vsel %vm1381_vm1, %v3260_v56, 0 }
 0xc8a   : > { %4763 = vmatmul.mubr.msk.bf16.vlgmr.msra.gmra.mrb[56].mxu1 %vm1381_vm1, %v2816_v41  ;;  %v3370_v59 = vpop.permute.xlu1 %3369 }
 0xc8b   : > { %4787 = vmatmul.mubr.msk.bf16.vlgmr.msra.gmra.mrb[40].mxu0 %vm1381_vm1, %v3038_v54  ;;  %4768 = vmatprep.mubr.msk.bf16.mxu1 %vm5312_vm0, %v5311_v4  ;;  %v3375_v61 = vsel %vm1381_vm1, %v3370_v59, 0 }
 0xc8c   : > { %4797 = vmatpush3.bf16.xpose.msra.mxu0 %v3155_v55  ;;  %4798 = vmatprep.mubr.msk.bf16.mxu0 %vm5312_vm0, %v5311_v4 }
 0xc8d   : > { %4808 = vmatprep.subr.bf16.mxu0 %v5311_v4 }
 0xc8e   : > { %v3480_v62 = vpop.permute.xlu1 %3479 }
 0xc8f   : > { %v3485_v63 = vsel %vm1381_vm1, %v3480_v62, 0 }
 0xc93   : > { %4799 = vmatmul.mubr.msk.bf16.vlgmr.msra.gmra.mrb[44].mxu0 %vm1381_vm1, %v3148_v57 }
 0xc94   : > { %4809 = vmatpush3.bf16.xpose.msra.mxu0 %v3265_v58  ;;  %4810 = vmatprep.mubr.msk.bf16.mxu0 %vm5312_vm0, %v5311_v4 }
 0xc95   : > { %4820 = vmatprep.subr.bf16.mxu0 %v5311_v4 }
 0xc9b   : > { %4811 = vmatmul.mubr.msk.bf16.vlgmr.msra.gmra.mrb[48].mxu0 %vm1381_vm1, %v3258_v60 }
 0xc9c   : > { %4821 = vmatpush3.bf16.xpose.msra.mxu0 %v3375_v61  ;;  %4822 = vmatprep.mubr.msk.bf16.mxu0 %vm5312_vm0, %v5311_v4 }
 0xc9d   : > { %4832 = vmatprep.subr.bf16.mxu0 %v5311_v4 }
 0xca3   : > { %4823 = vmatmul.mubr.msk.bf16.vlgmr.msra.gmra.mrb[52].mxu0 %vm1381_vm1, %v3368_v52 }
 0xca4   : > { %4833 = vmatpush3.bf16.xpose.msra.mxu0 %v3485_v63  ;;  %4834 = vmatprep.mubr.msk.bf16.mxu0 %vm5312_vm0, %v5311_v4 }
 0xca5   : > { %4844 = vmatprep.subr.bf16.mxu0 %v5311_v4 }
 0xcab   : > { %4835 = vmatmul.mubr.msk.bf16.vlgmr.msra.gmra.mrb[56].mxu0 %vm1381_vm1, %v3478_v0 }
 0xcac   : > { %4860 = vmatprep.mubr.msk.bf16.mxu0 %vm5312_vm0, %v5311_v4 }
 0xd55   : > { %v6136_v1 = vpop.f32.mrb[52].mxu1 }
 0xd56   : > { %v4758_v2 = vpop.f32.mrb[53].mxu1  ;;  %v2971_v5 = vpop.f32.mrb[36].mxu0 }
 0xd57   : > { %v2811_v6 = vpop.f32.mrb[54].mxu1  ;;  %v4776_v7 = vpop.f32.mrb[37].mxu0  ;;  %v2977_v9 = vsel %vm2754_vm11, %v2971_v5, -inf }
 0xd58   : > { %2978 = vmax.xlane.f32.xlu0 %v2977_v9  ;;  %v4759_v10 = vpop.f32.mrb[55].mxu1  ;;  %v2974_v11 = vpop.f32.mrb[38].mxu0 }
 0xd59   : > { %v4777_v12 = vpop.f32.mrb[39].mxu0 }
 0xd5d   : > { %v2860_v13 = vpop.f32.mrb[56].mxu1 }
 0xd5e   : > { %v4764_v14 = vpop.f32.mrb[57].mxu1  ;;  %v3081_v15 = vpop.f32.mrb[40].mxu0  ;;  %v2866_v16 = vsel %vm2754_vm11, %v2860_v13, -inf }
 0xd5f   : > { %v4788_v17 = vpop.f32.mrb[41].mxu0  ;;  %2867 = vmax.xlane.f32.xlu1 %v2866_v16  ;;  %v2863_v18 = vpop.f32.mrb[58].mxu1  ;;  %v3087_v19 = vsel %vm2754_vm11, %v3081_v15, -inf }
 0xd60   : > { %3088 = vmax.xlane.f32.xlu0 %v3087_v19  ;;  %v4765_v20 = vpop.f32.mrb[59].mxu1  ;;  %v3084_v31 = vpop.f32.mrb[42].mxu0 }
 0xd61   : > { %v4789_v36 = vpop.f32.mrb[43].mxu0 }
 0xd66   : > { %v3191_v21 = vpop.f32.mrb[44].mxu0 }
 0xd67   : > { %v4800_v22 = vpop.f32.mrb[45].mxu0  ;;  %v3197_v23 = vsel %vm2754_vm11, %v3191_v21, -inf }
 0xd68   : > { %v3194_v26 = vpop.f32.mrb[46].mxu0  ;;  %3198 = vmax.xlane.f32.xlu1 %v3197_v23 }
 0xd69   : > { %v4801_v27 = vpop.f32.mrb[47].mxu0 }
 0xd6e   : > { %v3301_v28 = vpop.f32.mrb[48].mxu0 }
 0xd6f   : > { %v4812_v30 = vpop.f32.mrb[49].mxu0  ;;  %v3307_v33 = vsel %vm2754_vm11, %v3301_v28, -inf }
 0xd70   : > { %3308 = vmax.xlane.f32.xlu0 %v3307_v33  ;;  %v3304_v29 = vpop.f32.mrb[50].mxu0 }
 0xd71   : > { %v4813_v32 = vpop.f32.mrb[51].mxu0 }
 0xd76   : > { %v3411_v34 = vpop.f32.mrb[52].mxu0 }
 0xd77   : > { %v4824_v35 = vpop.f32.mrb[53].mxu0  ;;  %v3417_v3 = vsel %vm2754_vm11, %v3411_v34, -inf }
 0xd78   : > { %v3414_v37 = vpop.f32.mrb[54].mxu0  ;;  %3418 = vmax.xlane.f32.xlu1 %v3417_v3 }
 0xd79   : > { %v4825_v38 = vpop.f32.mrb[55].mxu0 }
 0xd7e   : > { %v3521_v39 = vpop.f32.mrb[56].mxu0 }
 0xd7f   : > { %v4836_v40 = vpop.f32.mrb[57].mxu0  ;;  %v3527_v24 = vsel %vm2754_vm11, %v3521_v39, -inf }
 0xd80   : > { %3528 = vmax.xlane.f32.xlu0 %v3527_v24  ;;  %v3524_v41 = vpop.f32.mrb[58].mxu0 }
 0xd81   : > { %v4837_v42 = vpop.f32.mrb[59].mxu0 }
 0xde5   : > { %v2979_v43 = vpop.xlane.xlu0 %2978 }
 0xde6   : > { %v2980_v44 = vsub.f32 %v2971_v5, %v2979_v43 }
 0xde8   : > { %v2981_v45 = vmul.f32 1.442695, %v2980_v44 }
 0xdea   : > { %5106 = vpow2.f32 %v2981_v45 }
 0xdec   : > { %v2868_v46 = vpop.xlane.xlu1 %2867 }
 0xded   : > { %v2869_v47 = vsub.f32 %v2860_v13, %v2868_v46  ;;  %v3089_v48 = vpop.xlane.xlu0 %3088 }
 0xdee   : > { %v3090_v49 = vsub.f32 %v3081_v15, %v3089_v48 }
 0xdef   : > { %v2870_v50 = vmul.f32 1.442695, %v2869_v47 }
 0xdf0   : > { %v3091_v51 = vmul.f32 1.442695, %v3090_v49 }
 0xdf2   : > { %5108 = vpow2.f32 %v3091_v51 }
 0xdf3   : > { %5110 = vpow2.f32 %v2870_v50 }
 0xdf4   : > { %v6145_v53 = vpop.eup %5106 }
 0xdf5   : > { %v3199_v54 = vpop.xlane.xlu1 %3198  ;;  %v2983_v55 = vsel %vm2754_vm11, %v6145_v53, 0.0 }
 0xdf6   : > { %v3200_v56 = vsub.f32 %v3191_v21, %v3199_v54  ;;  %2984 = vadd.xlane.f32.xlu0 %v2983_v55 }
 0xdf8   : > { %v3201_v57 = vmul.f32 1.442695, %v3200_v56 }
 0xdfa   : > { %5112 = vpow2.f32 %v3201_v57 }
 0xdfc   : > { %v6149_v58 = vpop.eup %5108 }
 0xdfd   : > { %v3309_v59 = vpop.xlane.xlu0 %3308  ;;  %v3093_v60 = vsel %vm2754_vm11, %v6149_v58, 0.0  ;;  %v5111_v61 = vpop.eup %5110 }
 0xdfe   : > { %v3310_v62 = vsub.f32 %v3301_v28, %v3309_v59  ;;  %3094 = vadd.xlane.f32.xlu1 %v3093_v60  ;;  %v2872_v63 = vsel %vm2754_vm11, %v5111_v61, 0.0 }
 0xe00   : > { %v3311_v52 = vmul.f32 1.442695, %v3310_v62 }
 0xe02   : > { %5114 = vpow2.f32 %v3311_v52  ;;  %2873 = vadd.xlane.f32.xlu1 %v2872_v63 }
 0xe04   : > { %v6154_v0 = vpop.eup %5112 }
 0xe05   : > { %v3203_v2 = vsel %vm2754_vm11, %v6154_v0, 0.0  ;;  %v3419_v7 = vpop.xlane.xlu1 %3418 }
 0xe06   : > { %3204 = vadd.xlane.f32.xlu0 %v3203_v2  ;;  %v3420_v9 = vsub.f32 %v3411_v34, %v3419_v7 }
 0xe08   : > { %v3421_v10 = vmul.f32 1.442695, %v3420_v9 }
 0xe0a   : > { %5116 = vpow2.f32 %v3421_v10 }
 0xe0c   : > { %v6158_v5 = vpop.eup %5114 }
 0xe0d   : > { %v3313_v6 = vsel %vm2754_vm11, %v6158_v5, 0.0  ;;  %v3529_v11 = vpop.xlane.xlu0 %3528 }
 0xe0e   : > { %3314 = vadd.xlane.f32.xlu0 %v3313_v6  ;;  %v3530_v12 = vsub.f32 %v3521_v39, %v3529_v11  ;;  %v5044_v11 = vld [vmem:[%s6453_s16] sm:$0xff]  }
 0xe0f   : > { %4845 = vmatpush3.bf16.msra.mxu0 %v5044_v11 }
 0xe10   : > { %v3531_v14 = vmul.f32 1.442695, %v3530_v12  ;;  %v5045_v12 = vld [vmem:[%s6453_s16 + $0x8] sm:$0xff]   ;;  %4846 = vmatprep.subr.bf16.mxu0 %v5311_v4 }
 0xe12   : > { %5118 = vpow2.f32 %v3531_v14 }
 0xe13   : > { %2879 = vrot.lane.b32.xlu1 %v6074_v25, %s5313_s10  ;;  %4847 = vmatpush3.bf16.msra.mxu0 %v5045_v12 }
 0xe14   : > { %v6168_v13 = vpop.eup %5116  ;;  %4848 = vmatprep.subr.bf16.mxu0 %v5311_v4 }
 0xe15   : > { %v3423_v15 = vsel %vm2754_vm11, %v6168_v13, 0.0 }
 0xe1c   : > { %v6172_v16 = vpop.eup %5118 }
 0xe1d   : > { %v3533_v17 = vsel %vm2754_vm11, %v6172_v16, 0.0 }
 0xe24   : > { %2989 = vrot.lane.b32.xlu0 %v6074_v25, %s5314_s11 }
 0xe28   : > { %3099 = vrot.lane.b32.xlu0 %v6074_v25, %s5315_s13 }
 0xe37   : > { %3424 = vadd.xlane.f32.xlu1 %v3423_v15 }
 0xe47   : > { %3534 = vadd.xlane.f32.xlu0 %v3533_v17 }
 0xe48   : > { %3209 = vrot.lane.b32.xlu1 %v6074_v25, %s5316_s18 }
 0xe4c   : > { %3429 = vrot.lane.b32.xlu1 %v6074_v25, %s5318_s24 }
 0xe50   : > { %3539 = vrot.lane.b32.xlu1 %v6074_v25, %s5319_s26 }
 0xe5d   : > { %3319 = vrot.lane.b32.xlu0 %v6074_v25, %s5317_s17 }
 0xe83   : > { %v2985_v20 = vpop.xlane.xlu0 %2984 }
 0xe8b   : > { %v3095_v18 = vpop.xlane.xlu1 %3094 }
 0xe8f   : > { %v2874_v19 = vpop.xlane.xlu1 %2873 }
 0xe90   : > { %5120 = vrcp.f32 %v2874_v19  ;;  %v5048_v19 = vld [vmem:[%s6453_s16 + $0x20] sm:$0xff]  }
 0xe91   : > { %5122 = vrcp.f32 %v2985_v20  ;;  %v5049_v20 = vld [vmem:[%s6453_s16 + $0x28] sm:$0xff]  }
 0xe92   : > { %5124 = vrcp.f32 %v3095_v18  ;;  %v5047_v18 = vld [vmem:[%s6453_s16 + $0x18] sm:$0xff]  }
 0xe93   : > { %v2880_v31 = vpop.permute.xlu1 %2879  ;;  %v3205_v21 = vpop.xlane.xlu0 %3204 }
 0xe94   : > { %v2885_v36 = vsel %vm2770_vm10, %v2880_v31, 0  ;;  %5126 = vrcp.f32 %v3205_v21  ;;  %v5050_v31 = vld [vmem:[%s6453_s16 + $0x30] sm:$0xff]  }
 0xe95   : > { %4767 = vmatpush3.bf16.msra.mxu1 %v2885_v36 }
 0xe96   : > { %4778 = vmatprep.subr.bf16.mxu1 %v5311_v4 }
 0xe9a   : > { %v5121_v22 = vpop.eup %5120 }
 0xe9b   : > { %v2876_v23 = vmul.f32 %v5121_v22, %v5111_v61  ;;  %v3315_v26 = vpop.xlane.xlu0 %3314  ;;  %v5123_v28 = vpop.eup %5122 }
 0xe9c   : > { %v2987_v33 = vmul.f32 %v5123_v28, %v6145_v53  ;;  %v5125_v34 = vpop.eup %5124  ;;  %5128 = vrcp.f32 %v3315_v26  ;;  %v5051_v26 = vld [vmem:[%s6453_s16 + $0x38] sm:$0xff]  }
 0xe9d   : > { %v2877_v27 = vpack.c.bf16 %v2876_v23, %v2876_v23  ;;  %v3097_v3 = vmul.f32 %v5125_v34, %v6149_v58 }
 0xe9e   : > { %v2988_v32 = vpack.c.bf16 %v2987_v33, %v2987_v33  ;;  %v5127_v38 = vpop.eup %5126 }
 0xe9f   : > { %v2990_v30 = vpop.permute.xlu0 %2989  ;;  %4769 = vmatmul.mubr.msk.bf16.vlgmr.msra.gmra.mrb[60].mxu1 %vm2754_vm11, %v2877_v27  ;;  %v3098_v37 = vpack.c.bf16 %v3097_v3, %v3097_v3  ;;  %v3207_v40 = vmul.f32 %v5127_v38, %v6154_v0 }
 0xea0   : > { %v2995_v25 = vsel %vm2770_vm10, %v2990_v30, 0  ;;  %4780 = vmatprep.mubr.msk.bf16.mxu1 %vm5312_vm0, %v5311_v4 }
 0xea1   : > { %4779 = vmatpush3.bf16.msra.mxu1 %v2995_v25  ;;  %v3208_v42 = vpack.c.bf16 %v3207_v40, %v3207_v40 }
 0xea2   : > { %4790 = vmatprep.subr.bf16.mxu1 %v5311_v4 }
 0xea3   : > { %v3100_v29 = vpop.permute.xlu0 %3099 }
 0xea4   : > { %v3105_v35 = vsel %vm2770_vm10, %v3100_v29, 0 }
 0xea6   : > { %v5129_v43 = vpop.eup %5128 }
 0xea7   : > { %4781 = vmatmul.mubr.msk.bf16.vlgmr.msra.gmra.mrb[64].mxu1 %vm2754_vm11, %v2988_v32  ;;  %v3317_v45 = vmul.f32 %v5129_v43, %v6158_v5 }
 0xea8   : > { %4791 = vmatpush3.bf16.msra.mxu1 %v3105_v35  ;;  %4792 = vmatprep.mubr.msk.bf16.mxu1 %vm5312_vm0, %v5311_v4 }
 0xea9   : > { %4802 = vmatprep.subr.bf16.mxu1 %v5311_v4  ;;  %v3318_v49 = vpack.c.bf16 %v3317_v45, %v3317_v45 }
 0xeaf   : > { %4793 = vmatmul.mubr.msk.bf16.vlgmr.msra.gmra.mrb[68].mxu1 %vm2754_vm11, %v3098_v37 }
 0xeb0   : > { %4804 = vmatprep.mubr.msk.bf16.mxu1 %vm5312_vm0, %v5311_v4 }
 0xec4   : > { %v3425_v39 = vpop.xlane.xlu1 %3424 }
 0xec5   : > { %5130 = vrcp.f32 %v3425_v39 }
 0xec8   : > { %v3210_v24 = vpop.permute.xlu1 %3209 }
 0xec9   : > { %v3215_v41 = vsel %vm2770_vm10, %v3210_v24, 0 }
 0xeca   : > { %4803 = vmatpush3.bf16.msra.mxu1 %v3215_v41 }
 0xecb   : > { %4814 = vmatprep.subr.bf16.mxu1 %v5311_v4 }
 0xecc   : > { %v3430_v48 = vpop.permute.xlu1 %3429 }
 0xecd   : > { %4805 = vmatmul.mubr.msk.bf16.vlgmr.msra.gmra.mrb[72].mxu1 %vm2754_vm11, %v3208_v42  ;;  %v3435_v51 = vsel %vm2770_vm10, %v3430_v48, 0 }
 0xece   : > { %4816 = vmatprep.mubr.msk.bf16.mxu1 %vm5312_vm0, %v5311_v4 }
 0xecf   : > { %v5131_v50 = vpop.eup %5130 }
 0xed0   : > { %v3427_v53 = vmul.f32 %v5131_v50, %v6168_v13  ;;  %v3540_v54 = vpop.permute.xlu1 %3539  ;;  %v5046_v13 = vld [vmem:[%s6453_s16 + $0x10] sm:$0xff]  }
 0xed1   : > { %v3545_v57 = vsel %vm2770_vm10, %v3540_v54, 0  ;;  %4849 = vmatpush3.bf16.msra.mxu0 %v5046_v13 }
 0xed2   : > { %v3428_v55 = vpack.c.bf16 %v3427_v53, %v3427_v53  ;;  %4850 = vmatprep.subr.bf16.mxu0 %v5311_v4 }
 0xed4   : > { %v3535_v44 = vpop.xlane.xlu0 %3534 }
 0xed5   : > { %5132 = vrcp.f32 %v3535_v44  ;;  %4851 = vmatpush3.bf16.msra.mxu0 %v5047_v18  ;;  %v4442_v18 = vld [vmem:[%s1095_s21] ss:$0 sm:$0xff] }
 0xed6   : > { %4852 = vmatprep.subr.bf16.mxu0 %v5311_v4 }
 0xed8   : > { %v3320_v46 = vpop.permute.xlu0 %3319 }
 0xed9   : > { %v3325_v47 = vsel %vm2770_vm10, %v3320_v46, 0  ;;  %4853 = vmatpush3.bf16.msra.mxu0 %v5048_v19 }
 0xeda   : > { %4815 = vmatpush3.bf16.msra.mxu1 %v3325_v47  ;;  %4854 = vmatprep.subr.bf16.mxu0 %v5311_v4 }
 0xedb   : > { %4826 = vmatprep.subr.bf16.mxu1 %v5311_v4 }
 0xedd   : > { %4817 = vmatmul.mubr.msk.bf16.vlgmr.msra.gmra.mrb[76].mxu1 %vm2754_vm11, %v3318_v49  ;;  %4855 = vmatpush3.bf16.msra.mxu0 %v5049_v20 }
 0xede   : > { %4827 = vmatpush3.bf16.msra.mxu1 %v3435_v51  ;;  %4828 = vmatprep.mubr.msk.bf16.mxu1 %vm5312_vm0, %v5311_v4 }
 0xedf   : > { %4838 = vmatprep.subr.bf16.mxu1 %v5311_v4  ;;  %v5133_v56 = vpop.eup %5132  ;;  %4856 = vmatprep.subr.bf16.mxu0 %v5311_v4 }
 0xee0   : > { %v3537_v58 = vmul.f32 %v5133_v56, %v6172_v16 }
 0xee1   : > { %4857 = vmatpush3.bf16.msra.mxu0 %v5050_v31 }
 0xee2   : > { %v3538_v59 = vpack.c.bf16 %v3537_v58, %v3537_v58  ;;  %4858 = vmatprep.subr.bf16.mxu0 %v5311_v4 }
 0xee5   : > { %4829 = vmatmul.mubr.msk.bf16.vlgmr.msra.gmra.mrb[80].mxu1 %vm2754_vm11, %v3428_v55  ;;  %4859 = vmatpush3.bf16.msra.mxu0 %v5051_v26 }
 0xee6   : > { %4839 = vmatpush3.bf16.msra.mxu1 %v3545_v57  ;;  %4840 = vmatprep.mubr.msk.bf16.mxu1 %vm5312_vm0, %v5311_v4 }
 0xee7   : > { %4864 = vmatprep.subr.bf16.mxu1 %v5311_v4  ;;  %4884 = vmatprep.subr.bf16.mxu0 %v5311_v4 }
 0xeed   : > { %4841 = vmatmul.mubr.msk.bf16.vlgmr.msra.gmra.mrb[84].mxu1 %vm2754_vm11, %v3538_v59 }
 0xeee   : > { %4880 = vmatprep.mubr.msk.bf16.mxu1 %vm5312_vm0, %v5311_v4 }
 0xf72   : > { %v2921_v60 = vpop.f32.mrb[60].mxu1 }
 0xf73   : > { %3588 = vrot.lane.b32.xlu1 %v2921_v60, %s5319_s26  ;;  %v4770_v61 = vpop.f32.mrb[61].mxu1 }
 0xf74   : > { %v2924_v62 = vpop.f32.mrb[62].mxu1 }
 0xf75   : > { %v4771_v52 = vpop.f32.mrb[63].mxu1 }
 0xf7a   : > { %v3031_v63 = vpop.f32.mrb[64].mxu1 }
 0xf7b   : > { %3592 = vrot.lane.b32.xlu1 %v3031_v63, %s5318_s24  ;;  %v4782_v0 = vpop.f32.mrb[65].mxu1  ;;  %s6457_s24 = sld [smem:[#allocation19_spill]] }
 0xf7c   : > { %v3034_v2 = vpop.f32.mrb[66].mxu1 }
 0xf7d   : > { %v4783_v5 = vpop.f32.mrb[67].mxu1 }
 0xf81   : > { %v5060_v5 = vld [vmem:[%s6457_s24] sm:$0xff]   ;;  %v5065_v11 = vld [vmem:[%s6457_s24 + $0x28] sm:$0xff]  }
 0xf82   : > { %v3141_v6 = vpop.f32.mrb[68].mxu1 }
 0xf83   : > { %3596 = vrot.lane.b32.xlu0 %v3141_v6, %s5317_s17  ;;  %v4794_v7 = vpop.f32.mrb[69].mxu1  ;;  %v5061_v6 = vld [vmem:[%s6457_s24 + $0x8] sm:$0xff]  }
 0xf84   : > { %v3144_v9 = vpop.f32.mrb[70].mxu1  ;;  %v5062_v7 = vld [vmem:[%s6457_s24 + $0x10] sm:$0xff]  }
 0xf85   : > { %v4795_v10 = vpop.f32.mrb[71].mxu1  ;;  %v5063_v9 = vld [vmem:[%s6457_s24 + $0x18] sm:$0xff]  }
 0xf86   : > { %v5064_v10 = vld [vmem:[%s6457_s24 + $0x20] sm:$0xff]  }
 0xfa0   : > { %v3251_v14 = vpop.f32.mrb[72].mxu1 }
 0xfa1   : > { %3600 = vrot.lane.b32.xlu1 %v3251_v14, %s5316_s18  ;;  %v4806_v15 = vpop.f32.mrb[73].mxu1  ;;  %s6455_s18 = sld [smem:[#allocation32_spill]] }
 0xfa2   : > { %v3254_v16 = vpop.f32.mrb[74].mxu1 }
 0xfa3   : > { %v4807_v17 = vpop.f32.mrb[75].mxu1  ;;  %v4441_v16 = vld [vmem:[%s1092_s25] ss:$0 sm:$0xff] }
 0xfa7   : > { %s6456_s17 = scalar_lea.vmem %s6455_s18, %s5683_s0 }
 0xfb0   : > { %v3361_v36 = vpop.f32.mrb[76].mxu1 }
 0xfb1   : > { %3604 = vrot.lane.b32.xlu0 %v3361_v36, %s5315_s13  ;;  %v4818_v21 = vpop.f32.mrb[77].mxu1  ;;  %v5066_v36 = vld [vmem:[%s6457_s24 + $0x30] sm:$0xff]   ;;  %s6465_s13 = sld [smem:[#allocation42_spill]] (!%p4463_p5) }
 0xfb2   : > { %v3364_v22 = vpop.f32.mrb[78].mxu1  ;;  %v5067_v21 = vld [vmem:[%s6457_s24 + $0x38] sm:$0xff]  }
 0xfb3   : > { %v4819_v23 = vpop.f32.mrb[79].mxu1  ;;  %v4443_v22 = vld [vmem:[%s1098_s8] ss:$0 sm:$0xff] }
 0xfb8   : > { %v3471_v27 = vpop.f32.mrb[80].mxu1 }
 0xfb9   : > { %3608 = vrot.lane.b32.xlu1 %v3471_v27, %s5314_s11  ;;  %v4830_v28 = vpop.f32.mrb[81].mxu1 }
 0xfba   : > { %v3474_v30 = vpop.f32.mrb[82].mxu1 }
 0xfbb   : > { %v4831_v25 = vpop.f32.mrb[83].mxu1 }
 0xfc0   : > { %v3581_v33 = vpop.f32.mrb[84].mxu1 }
 0xfc1   : > { %3612 = vrot.lane.b32.xlu0 %v3581_v33, %s5313_s10  ;;  %v4842_v29 = vpop.f32.mrb[85].mxu1  ;;  %s6454_s10 = sld [smem:[#allocation18_spill]] }
 0xfc2   : > { %v3584_v32 = vpop.f32.mrb[86].mxu1 }
 0xfc3   : > { %v4843_v34 = vpop.f32.mrb[87].mxu1 }
 0xfc7   : > { %v5052_v56 = vld [vmem:[%s6454_s10] sm:$0xff]   ;;  %v5053_v57 = vld [vmem:[%s6454_s10 + $0x8] sm:$0xff]   ;;  %v5055_v62 = vld [vmem:[%s6454_s10 + $0x18] sm:$0xff]  }
 0xfc8   : > { %4865 = vmatpush3.bf16.msra.mxu1 %v5052_v56  ;;  %v5056_v52 = vld [vmem:[%s6454_s10 + $0x20] sm:$0xff]   ;;  %v5057_v63 = vld [vmem:[%s6454_s10 + $0x28] sm:$0xff]   ;;  %v5058_v0 = vld [vmem:[%s6454_s10 + $0x30] sm:$0xff]  }
 0xfc9   : > { %4866 = vmatprep.subr.bf16.mxu1 %v5311_v4  ;;  %v5059_v2 = vld [vmem:[%s6454_s10 + $0x38] sm:$0xff]  }
 0xfcc   : > { %4867 = vmatpush3.bf16.msra.mxu1 %v5053_v57 }
 0xfcd   : > { %4868 = vmatprep.subr.bf16.mxu1 %v5311_v4 }
 0xfe5   : > { %v3589_v35 = vpop.permute.xlu1 %3588 }
 0xfe6   : > { %v3615_v39 = vsel %vm1381_vm1, %v6136_v1, %v3589_v35  ;;  %v4432_v1 = vld [vmem:[%s6456_s17] ss:$0 sm:$0xff] }
 0xfed   : > { %v3593_v3 = vpop.permute.xlu1 %3592 }
 0xfee   : > { %v3616_v40 = vsel %vm2290_vm4, %v3615_v39, %v3593_v3 }
 0xff5   : > { %v3597_v37 = vpop.permute.xlu0 %3596 }
 0xff6   : > { %v3617_v41 = vsel %vm2292_vm5, %v3616_v40, %v3597_v37 }
0x1013   : > { %v3601_v38 = vpop.permute.xlu1 %3600 }
0x1014   : > { %v3618_v43 = vsel %vm2294_vm6, %v3617_v41, %v3601_v38 }
0x1023   : > { %v3605_v24 = vpop.permute.xlu0 %3604 }
0x1024   : > { %v3619_v44 = vsel %vm2296_vm7, %v3618_v43, %v3605_v24 }
0x102b   : > { %v3609_v42 = vpop.permute.xlu1 %3608 }
0x102c   : > { %v3620_v45 = vsel %vm2298_vm8, %v3619_v44, %v3609_v42 }
0x1033   : > { %v3613_v46 = vpop.permute.xlu0 %3612 }
0x1034   : > { %v3621_v47 = vsel %vm2300_vm9, %v3620_v45, %v3613_v46  ;;  %v4461_v45 = vld [vmem:[%s1104_s1] ss:$0 sm:$0xff] }
0x1035   : > { %v3622_v48 = vpack.c.bf16 %v3621_v47, %v3621_v47  ;;  %v4462_v47 = vld [vmem:[%s1107_s30] ss:$0 sm:$0xff]  ;;  %s6463_s30 = sld [smem:[#allocation40_spill]] (!%p4463_p5) }
0x1037   : > { %4861 = vmatmul.mubr.bf16.vlgmr.msra.gmra.mrb[60].mxu0 %v3622_v48 }
0x1038   : > { %4900 = vmatprep.mubr.msk.bf16.mxu0 %vm5312_vm0, %v5311_v4  ;;  %4885 = vmatpush3.bf16.msra.mxu0 %v5060_v5 }
0x1039   : > { %4886 = vmatprep.subr.bf16.mxu0 %v5311_v4 }
0x103c   : > { %4887 = vmatpush3.bf16.msra.mxu0 %v5061_v6 }
0x103d   : > { %4888 = vmatprep.subr.bf16.mxu0 %v5311_v4 }
0x1040   : > { %4889 = vmatpush3.bf16.msra.mxu0 %v5062_v7 }
0x1041   : > { %4890 = vmatprep.subr.bf16.mxu0 %v5311_v4 }
0x1044   : > { %4891 = vmatpush3.bf16.msra.mxu0 %v5063_v9 }
0x1045   : > { %4892 = vmatprep.subr.bf16.mxu0 %v5311_v4 }
0x1048   : > { %4893 = vmatpush3.bf16.msra.mxu0 %v5064_v10 }
0x1049   : > { %4894 = vmatprep.subr.bf16.mxu0 %v5311_v4 }
0x104c   : > { %4895 = vmatpush3.bf16.msra.mxu0 %v5065_v11 }
0x104d   : > { %4896 = vmatprep.subr.bf16.mxu0 %v5311_v4 }
0x1050   : > { %4897 = vmatpush3.bf16.msra.mxu0 %v5066_v36 }
0x1051   : > { %4898 = vmatprep.subr.bf16.mxu0 %v5311_v4 }
0x1054   : > { %4899 = vmatpush3.bf16.msra.mxu0 %v5067_v21 }
0x110a   : > { %v3727_v49 = vpop.f32.mrb[60].mxu0 }
0x110b   : > { %v3728_v50 = vadd.f32 %v4432_v1, %v3727_v49  ;;  %v4862_v51 = vpop.f32.mrb[61].mxu0 }
0x110c   : > { %v3730_v53 = vpop.f32.mrb[62].mxu0 }
0x110d   : > { %v4863_v54 = vpop.f32.mrb[63].mxu0  ;;  %v3733_v55 = vadd.f32 %v3728_v50, %v6056_v8  ;;  %v5054_v8 = vld [vmem:[%s6454_s10 + $0x10] sm:$0xff]  }
0x110e   : > { %4869 = vmatpush3.bf16.msra.mxu1 %v5054_v8 }
0x110f   : > { %3736 = vadd.xlane.f32.xlu1 %v3733_v55  ;;  %4870 = vmatprep.subr.bf16.mxu1 %v5311_v4 }
0x1112   : > { %4871 = vmatpush3.bf16.msra.mxu1 %v5055_v62 }
0x1113   : > { %4872 = vmatprep.subr.bf16.mxu1 %v5311_v4 }
0x1116   : > { %4873 = vmatpush3.bf16.msra.mxu1 %v5056_v52 }
0x1117   : > { %4874 = vmatprep.subr.bf16.mxu1 %v5311_v4 }
0x111a   : > { %4875 = vmatpush3.bf16.msra.mxu1 %v5057_v63 }
0x111b   : > { %4876 = vmatprep.subr.bf16.mxu1 %v5311_v4 }
0x111e   : > { %4877 = vmatpush3.bf16.msra.mxu1 %v5058_v0 }
0x111f   : > { %4878 = vmatprep.subr.bf16.mxu1 %v5311_v4  ;;  %v4460_v4 = vld [vmem:[%s1101_s2] ss:$0 sm:$0xff] }
0x1122   : > { %4879 = vmatpush3.bf16.msra.mxu1 %v5059_v2 }
0x119c   : > { %v3737_v58 = vpop.xlane.xlu1 %3736 }
0x119d   : > { %v3738_v59 = vmul.f32 0.0078125, %v3737_v58  ;;  %v4464_v58 = vld [vmem:[%s6463_s30] ss:$0 sm:$0xff] (!%p4463_p5) }
0x119f   : > { %v3739_v60 = vsub.f32 %v3733_v55, %v3738_v59 }
0x11a1   : > { %v3740_v61 = vmul.f32 %v3739_v60, %v3739_v60 }
0x11a3   : > { %3741 = vadd.xlane.f32.xlu0 %v3740_v61 }
0x1230   : > { %v3742_v12 = vpop.xlane.xlu0 %3741 }
0x1231   : > { %v3743_v13 = vmul.f32 0.0078125, %v3742_v12 }
0x1233   : > { %v3744_v14 = vadd.f32 1e-05, %v3743_v13 }
0x1235   : > { %5134 = vrsqrt.f32 %v3744_v14 }
0x123f   : > { %v5135_v15 = vpop.eup %5134 }
0x1240   : > { %v3746_v17 = vmul.f32 %v5135_v15, %v3739_v60  ;;  %v4465_v60 = vld [vmem:[%s6464_s6] ss:$0 sm:$0xff] (!%p4463_p5) }
0x1242   : > { %v3753_v19 = vmul.f32 %v4441_v16, %v3746_v17 }
0x1244   : > { %v3760_v20 = vadd.f32 %v4442_v18, %v3753_v19 }
0x1246   : > { %v3777_v31 = vpack.c.bf16 %v3760_v20, %v3760_v20 }
0x1248   : > { %4881 = vmatmul.mubr.bf16.vlgmr.msra.gmra.mrb[88].mxu1 %v3777_v31 }
0x131b   : > { %v3867_v23 = vpop.f32.mrb[88].mxu1 }
0x131c   : > { %v3868_v26 = vadd.f32 %v4443_v22, %v3867_v23  ;;  %v4882_v27 = vpop.f32.mrb[89].mxu1 }
0x131d   : > { %v3870_v28 = vpop.f32.mrb[90].mxu1 }
0x131e   : > { %v3873_v30 = vmax.f32 %v3868_v26, 0.0  ;;  %v4883_v25 = vpop.f32.mrb[91].mxu1 }
0x1320   : > { %v3890_v33 = vpack.c.bf16 %v3873_v30, %v3873_v30 }
0x1322   : > { %4901 = vmatmul.mubr.bf16.vlgmr.msra.gmra.mrb[64].mxu0 %v3890_v33 }
0x13f5   : > { %v3973_v29 = vpop.f32.mrb[64].mxu0 }
0x13f6   : > { %v3979_v32 = vadd.f32 %v3973_v29, %v3760_v20  ;;  %v4902_v34 = vpop.f32.mrb[65].mxu0 }
0x13f7   : > { %v3976_v35 = vpop.f32.mrb[66].mxu0 }
0x13f8   : > { %v4903_v3 = vpop.f32.mrb[67].mxu0  ;;  %v3987_v37 = vadd.f32 %v4460_v4, %v3979_v32 }
0x13fa   : > { %3990 = vadd.xlane.f32.xlu0 %v3987_v37 }
0x1487   : > { %v3991_v38 = vpop.xlane.xlu0 %3990 }
0x1488   : > { %v3992_v39 = vmul.f32 0.0078125, %v3991_v38 }
0x148a   : > { %v3993_v40 = vsub.f32 %v3987_v37, %v3992_v39 }
0x148c   : > { %v3994_v24 = vmul.f32 %v3993_v40, %v3993_v40 }
0x148e   : > { %3995 = vadd.xlane.f32.xlu1 %v3994_v24 }
0x151b   : > { %v3996_v41 = vpop.xlane.xlu1 %3995 }
0x151c   : > { %v3997_v42 = vmul.f32 0.0078125, %v3996_v41 }
0x151e   : > { %v3998_v43 = vadd.f32 1e-05, %v3997_v42 }
0x1520   : > { %5136 = vrsqrt.f32 %v3998_v43 }
0x152a   : > { %v5137_v44 = vpop.eup %5136 }
0x152b   : > { %v4000_v46 = vmul.f32 %v5137_v44, %v3993_v40  ;;  %4019 = sbr.rel (%p4463_p5) target bundleno = 5739 (0x166b), region = 140 }
0x152d   : > { %v4007_v48 = vmul.f32 %v4461_v45, %v4000_v46 }
0x152f   : > { %v4014_v1 = vadd.f32 %v4462_v47, %v4007_v48 }
0x1531   : > { %4015 = vst [vmem:[#allocation2] sm:$0xff] %v4014_v1  ;;  %4022 = vadd.xlane.f32.xlu0 (!%p4463_p5), %v4014_v1 }
0x15be   : > { %v4023_v49 = vpop.xlane.xlu0 %4022 }
0x15bf   : > { %v4024_v50 = vmul.f32 0.0078125, %v4023_v49 }
0x15c1   : > { %v4025_v51 = vsub.f32 %v4014_v1, %v4024_v50 }
0x15c3   : > { %v4026_v53 = vmul.f32 %v4025_v51, %v4025_v51 }
0x15c5   : > { %4027 = vadd.xlane.f32.xlu0 %v4026_v53 }
0x1652   : > { %v4028_v54 = vpop.xlane.xlu0 %4027 }
0x1653   : > { %v4029_v55 = vmul.f32 0.0078125, %v4028_v54 }
0x1655   : > { %v4030_v56 = vadd.f32 1e-05, %v4029_v55 }
0x1657   : > { %5138 = vrsqrt.f32 %v4030_v56 }
0x1661   : > { %v5139_v57 = vpop.eup %5138 }
0x1662   : > { %v4032_v59 = vmul.f32 %v5139_v57, %v4025_v51 }
0x1664   : > { %v4039_v61 = vmul.f32 %v4464_v58, %v4032_v59 }
0x1666   : > { %v4046_v8 = vadd.f32 %v4465_v60, %v4039_v61 }
0x1668   : > { %v4047_v62 = vpack.c.bf16 %v4046_v8, %v4046_v8 }
0x166a   : > { %4048 = vst [vmem:[%s6465_s13] sm:$0xf] %v4047_v62 }
0x166b PF: > { %s6466_s28 = sld [smem:[#allocation15_spill]]  ;;  %s6467_s5 = sld [smem:[#allocation13_spill]] }
0x166c   : > { %s6468_s26 = sld [smem:[#allocation14_spill]]  ;;  %s6469_s27 = sld [smem:[#allocation16_spill]] }
0x1671   : > { %p40_p6 = scmp.ge.s32.totalorder %s6466_s28, 6  }
0x1673   :  { %42 = sbr.rel (!%p40_p6) target bundleno = 31 (0x1f), region = 245 }
0x167a   :  { %4060 = vsyncpa [#allocation4], 1 }
0x167b   :  { %4062 = vsyncpa [#allocation4 + $0x1], 1 }
0x167c   :  { %4063 = vsyncpa [#allocation6], 1 }
0x167d   :  { %4065 = vsyncpa [#allocation6 + $0x1], 1 }
0x167e   :  { %4066 = vsyncpa [#allocation9], 1 }
0x167f   :  { %4068 = vsyncpa [#allocation9 + $0x1], 1 }

</bundles_post_ra>
